<compile_context>
chip_gen: v6e
topology: v6e:2x2x1
jax: 0.10.0
libtpu: 0.0.40
codegen_flags: <defaults>
</compile_context>

<pallas_src>
import functools

import jax
import jax.numpy as jnp
import numpy as np
from jax import lax
from jax.experimental import pallas as pl
from jax.experimental.pallas import tpu as pltpu


# ---------------------------------------------------------------------------
# Small helpers
# ---------------------------------------------------------------------------
def _bn_fold(gamma, beta, mean, var, eps=1e-5):
    scale = gamma / jnp.sqrt(var + eps)
    shift = beta - mean * scale
    return scale.astype(jnp.float32), shift.astype(jnp.float32)


def _conv_w_ky_major(w):
    # PyTorch conv weight (Cout, Cin, 3, 3) -> (3, 3*Cin, Cout).
    # Rows within each ky are ordered (kx major, cin minor), matching the
    # in-kernel operand layout op[..., kx*Cin + c] = x[h+ky, w+kx, c].
    cout, cin, kh, kw = w.shape
    wt = jnp.transpose(w, (2, 3, 1, 0)).reshape(kh, kw * cin, cout)
    return wt.astype(jnp.bfloat16)


def _pick_tile_h(ho, wo, *, target_m=2048, max_blocks=8):
    divisors = [t for t in range(1, ho + 1) if ho % t == 0]
    ok = [t for t in divisors if ho // t <= max_blocks]
    for t in ok:
        if t * wo >= target_m:
            return t
    return ok[-1]


def _padded_bytes(shape, dtype):
    # VMEM footprint of an array, accounting for (sublane, lane) tile padding.
    dt = jnp.dtype(dtype)
    s = list(shape)
    if len(s) >= 2:
        sub = 8 * max(1, 4 // dt.itemsize)
        s[-1] = -(-s[-1] // 128) * 128
        s[-2] = -(-s[-2] // sub) * sub
    elif len(s) == 1:
        s[-1] = -(-s[-1] // 128) * 128
    return int(np.prod(s, dtype=np.int64)) * dt.itemsize if s else dt.itemsize


def _vmem_cap_bytes():
    # Generation-aware cap: ~60% of physical VMEM (v5e/v6e: 128 MiB, v7x: 64 MiB).
    try:
        info = pltpu.get_tpu_info()
        phys = int(getattr(info, "vmem_capacity_bytes", 64 << 20))
    except Exception:  # pragma: no cover - conservative fallback
        phys = 64 << 20
    return max(32 << 20, int(phys * 0.6))


# ---------------------------------------------------------------------------
# Fully fused ResidualBlock Pallas kernel
# ---------------------------------------------------------------------------
def _fused_residual_block(x_nhwc, w1_3, w2_3, bn_tab, ws, *, stride,
                          out_dtype=jnp.float32):
    """Whole ResidualBlock forward as one Pallas kernel (grid over batch).

    x_nhwc : (N, H, W, Cin)     bf16
    w1_3   : (3, 3*Cin, Cout)   bf16   conv1 weights, ky-major taps
    w2_3   : (3, 3*Cout, Cout)  bf16   conv2 weights
    bn_tab : (6, Cout)          f32    [scale1, shift1, scale2, shift2, scale_s, shift_s]
    ws     : (Cin, Cout) bf16 or None  1x1 projection-shortcut weights
    """
    n, h, w, cin = x_nhwc.shape
    cout = w1_3.shape[-1]
    ho = (h - 1) // stride + 1
    wo = (w - 1) // stride + 1
    hp, wp = h + 2, w + 2
    has_proj = ws is not None
    th = _pick_tile_h(ho, wo)
    nb = ho // th

    def kernel(*refs):
        if has_proj:
            (x_ref, w1_ref, w2_ref, bn_ref, ws_ref, o_ref,
             xp_s, y1p_s, op1_s, op2_s) = refs
        else:
            (x_ref, w1_ref, w2_ref, bn_ref, o_ref,
             xp_s, y1p_s, op1_s, op2_s) = refs
        f32 = jnp.float32

        # -- stage 0: zero-padded input + zero-padded y1 live in VMEM ------
        xp_s[...] = jnp.zeros(xp_s.shape, xp_s.dtype)
        y1p_s[...] = jnp.zeros(y1p_s.shape, y1p_s.dtype)
        xp_s[1:h + 1, 1:w + 1, :] = x_ref[...]

        sc1, sh1 = bn_ref[0:1, :], bn_ref[1:2, :]
        sc2, sh2 = bn_ref[2:3, :], bn_ref[3:4, :]

        def conv3x3(src_s, op_s, w_ref, r0, kc, s):
            # 3x3 conv for `th` output rows starting at output row r0:
            # 3 MXU matmuls (one per ky), contraction K = 3*kc (kx taps merged
            # into the op_s VMEM operand buffer).
            m = th * wo
            acc = jnp.zeros((m, cout), f32)
            for ky in range(3):
                for kx in range(3):
                    if s == 1:
                        tap = src_s[r0 + ky:r0 + ky + th, kx:kx + wo, :]
                    else:
                        # TODO(synk): stride>1 path (strided windows) untested.
                        tap = src_s[pl.ds(r0 * s + ky, th, s),
                                    pl.ds(kx, wo, s), :]
                    op_s[:, :, kx * kc:(kx + 1) * kc] = tap
                acc = acc + jnp.dot(op_s[...].reshape(m, 3 * kc), w_ref[ky],
                                    preferred_element_type=f32)
            return acc

        # -- stage 1: conv1 -> BN1 (f32) -> ReLU -> padded y1 (bf16, VMEM) --
        for rb in range(nb):
            r0 = rb * th
            a1 = conv3x3(xp_s, op1_s, w1_ref, r0, cin, stride)
            y1 = jnp.maximum(a1 * sc1 + sh1, 0.0)
            y1p_s[1 + r0:1 + r0 + th, 1:1 + wo, :] = (
                y1.reshape(th, wo, cout).astype(y1p_s.dtype))

        # -- stage 2: conv2 -> BN2 -> (+ shortcut from resident x) -> ReLU --
        for rb in range(nb):
            r0 = rb * th
            a2 = conv3x3(y1p_s, op2_s, w2_ref, r0, cout, 1)
            y = a2 * sc2 + sh2
            m = th * wo
            if has_proj:
                scs, shs = bn_ref[4:5, :], bn_ref[5:6, :]
                if stride == 1:
                    xs = xp_s[1 + r0:1 + r0 + th, 1:1 + wo, :]
                else:
                    xs = xp_s[pl.ds(1 + r0 * stride, th, stride),
                              pl.ds(1, wo, stride), :]
                p = jnp.dot(xs.reshape(m, cin), ws_ref[...],
                            preferred_element_type=f32)
                y = y + (p * scs + shs)
            else:
                idn = xp_s[1 + r0:1 + r0 + th, 1:1 + wo, :]
                y = y + idn.reshape(m, cout).astype(f32)
            y = jnp.maximum(y, 0.0)
            o_ref[r0:r0 + th, :, :] = y.reshape(th, wo, cout).astype(o_ref.dtype)

    in_specs = [
        pl.BlockSpec((None, h, w, cin), lambda b: (b, 0, 0, 0)),
        pl.BlockSpec((3, 3 * cin, cout), lambda b: (0, 0, 0)),
        pl.BlockSpec((3, 3 * cout, cout), lambda b: (0, 0, 0)),
        pl.BlockSpec((6, cout), lambda b: (0, 0)),
    ]
    args = [x_nhwc, w1_3, w2_3, bn_tab]
    if has_proj:
        in_specs.append(pl.BlockSpec((cin, cout), lambda b: (0, 0)))
        args.append(ws)

    scratch_shapes = [
        pltpu.VMEM((hp, wp, cin), jnp.bfloat16),           # padded input
        pltpu.VMEM((ho + 2, wo + 2, cout), jnp.bfloat16),  # padded y1
        pltpu.VMEM((th, wo, 3 * cin), jnp.bfloat16),       # conv1 operand
        pltpu.VMEM((th, wo, 3 * cout), jnp.bfloat16),      # conv2 operand
    ]

    # VMEM budget (layout-padded), clamped by a generation-aware cap.
    est = 2 * _padded_bytes((h, w, cin), jnp.bfloat16)
    est += 2 * _padded_bytes((3, 3 * cin, cout), jnp.bfloat16)
    est += 2 * _padded_bytes((3, 3 * cout, cout), jnp.bfloat16)
    est += 2 * _padded_bytes((6, cout), jnp.float32)
    if has_proj:
        est += 2 * _padded_bytes((cin, cout), jnp.bfloat16)
    est += 2 * _padded_bytes((ho, wo, cout), out_dtype)
    est += _padded_bytes((hp, wp, cin), jnp.bfloat16)
    est += _padded_bytes((ho + 2, wo + 2, cout), jnp.bfloat16)
    est += _padded_bytes((th, wo, 3 * cin), jnp.bfloat16)
    est += _padded_bytes((th, wo, 3 * cout), jnp.bfloat16)
    est += 2 * _padded_bytes((th * wo, cout), jnp.float32)  # live accumulators
    vmem_limit = int(min(_vmem_cap_bytes(), max(16 << 20, 2 * est + (4 << 20))))

    return pl.pallas_call(
        kernel,
        out_shape=jax.ShapeDtypeStruct((n, ho, wo, cout), out_dtype),
        grid=(n,),
        in_specs=in_specs,
        out_specs=pl.BlockSpec((None, ho, wo, cout), lambda b: (b, 0, 0, 0)),
        scratch_shapes=scratch_shapes,
        compiler_params=pltpu.CompilerParams(
            dimension_semantics=("parallel",),
            vmem_limit_bytes=vmem_limit),
    )(*args)


# ---------------------------------------------------------------------------
# ResidualBlock forward (wrapper)
# ---------------------------------------------------------------------------
def residual_block(x_nchw, params, *, stride=1):
    """Forward pass of the PyTorch ResidualBlock (inference-mode BatchNorm)."""
    n, cin, h, w = x_nchw.shape
    cout = params["w1"].shape[0]

    # Single fused cast+transpose pass NCHW f32 -> NHWC bf16.  Zero padding and
    # every intermediate activation are handled inside the kernel (VMEM).
    x = jnp.transpose(x_nchw.astype(jnp.bfloat16), (0, 2, 3, 1))

    scale1, shift1 = _bn_fold(*params["bn1"])
    scale2, shift2 = _bn_fold(*params["bn2"])
    w1_3 = _conv_w_ky_major(params["w1"])
    w2_3 = _conv_w_ky_major(params["w2"])

    has_proj = (stride != 1) or (cin != cout)
    if has_proj:
        scale_s, shift_s = _bn_fold(*params["bns"])
        ws = jnp.transpose(params["ws"].reshape(cout, cin)).astype(jnp.bfloat16)
    else:
        scale_s = jnp.zeros((cout,), jnp.float32)
        shift_s = jnp.zeros((cout,), jnp.float32)
        ws = None
    bn_tab = jnp.stack([scale1, shift1, scale2, shift2, scale_s, shift_s],
                       axis=0).astype(jnp.float32)

    out_nhwc = _fused_residual_block(x, w1_3, w2_3, bn_tab, ws, stride=stride)
    return jnp.transpose(out_nhwc, (0, 3, 1, 2))          # back to NCHW, f32


# ---------------------------------------------------------------------------
# Pure-JAX f32 reference (numerical sanity check)
# ---------------------------------------------------------------------------
def _ref_block(x_nchw, params, *, stride=1):
    dn = ("NCHW", "OIHW", "NCHW")

    def conv(x, w, s, pad):
        return lax.conv_general_dilated(x, w, (s, s), pad,
                                        dimension_numbers=dn)

    def bn(x, p):
        scale, shift = _bn_fold(*p)
        return x * scale[None, :, None, None] + shift[None, :, None, None]

    y = jax.nn.relu(bn(conv(x_nchw, params["w1"], stride, ((1, 1), (1, 1))),
                       params["bn1"]))
    y = bn(conv(y, params["w2"], 1, ((1, 1), (1, 1))), params["bn2"])
    in_c, out_c = x_nchw.shape[1], params["w1"].shape[0]
    if stride != 1 or in_c != out_c:
        sc = bn(conv(x_nchw, params["ws"], stride, ((0, 0), (0, 0))),
                params["bns"])
    else:
        sc = x_nchw
    return jax.nn.relu(y + sc)


# ---------------------------------------------------------------------------
def make_params(key, in_channels, out_channels, stride):
    ks = jax.random.split(key, 6)
    f32 = jnp.float32

    def bn_params(k, c):
        kg, kb, km, kv = jax.random.split(k, 4)
        gamma = 1.0 + 0.1 * jax.random.normal(kg, (c,), f32)
        beta = 0.1 * jax.random.normal(kb, (c,), f32)
        mean = 0.1 * jax.random.normal(km, (c,), f32)
        var = 1.0 + 0.1 * jnp.abs(jax.random.normal(kv, (c,), f32))
        return (gamma, beta, mean, var)

    params = {
        "w1": 0.1 * jax.random.normal(ks[0], (out_channels, in_channels, 3, 3), f32),
        "w2": 0.1 * jax.random.normal(ks[1], (out_channels, out_channels, 3, 3), f32),
        "bn1": bn_params(ks[2], out_channels),
        "bn2": bn_params(ks[3], out_channels),
    }
    if stride != 1 or in_channels != out_channels:
        params["ws"] = 0.1 * jax.random.normal(
            ks[4], (out_channels, in_channels, 1, 1), f32)
        params["bns"] = bn_params(ks[5], out_channels)
    return params


if __name__ == "__main__":
    key = jax.random.PRNGKey(0)
    batch, h, w = 2, 16, 16

    # Case 1: projection shortcut (in_channels != out_channels), stride 1.
    in_c, out_c, stride = 4, 8, 1
    kx, kp, krest = jax.random.split(key, 3)
    x = jax.random.normal(kx, (batch, in_c, h, w), jnp.float32)
    params = make_params(kp, in_c, out_c, stride)

    fwd = jax.jit(functools.partial(residual_block, stride=stride))
    out = jax.block_until_ready(fwd(x, params))
    ref = jax.block_until_ready(_ref_block(x, params, stride=stride))
    np.testing.assert_allclose(np.asarray(out), np.asarray(ref),
                               rtol=2e-2, atol=2e-2)
    assert out.shape == (batch, out_c, h // stride, w // stride)

    # Case 2: identity shortcut (in_channels == out_channels), stride 1.
    kx2, kp2 = jax.random.split(krest)
    x2 = jax.random.normal(kx2, (batch, 8, h, w), jnp.float32)
    params2 = make_params(kp2, 8, 8, 1)
    fwd2 = jax.jit(functools.partial(residual_block, stride=1))
    out2 = jax.block_until_ready(fwd2(x2, params2))
    ref2 = jax.block_until_ready(_ref_block(x2, params2, stride=1))
    np.testing.assert_allclose(np.asarray(out2), np.asarray(ref2),
                               rtol=2e-2, atol=2e-2)
    assert out2.shape == (batch, 8, h, w)

    print("KERNEL_OK")
</pallas_src>

<mosaic_0001>
module attributes {stable_mosaic.version = 11 : i64} {
  func.func @kernel(%arg0: i32, %arg1: memref<1x16x16x4xbf16, #tpu.memory_space<vmem>>, %arg2: memref<3x12x8xbf16, #tpu.memory_space<vmem>>, %arg3: memref<3x24x8xbf16, #tpu.memory_space<vmem>>, %arg4: memref<6x8xf32, #tpu.memory_space<vmem>>, %arg5: memref<4x8xbf16, #tpu.memory_space<vmem>>, %arg6: memref<1x16x16x8xf32, #tpu.memory_space<vmem>>, %arg7: memref<18x18x4xbf16, #tpu.memory_space<vmem>>, %arg8: memref<18x18x8xbf16, #tpu.memory_space<vmem>>, %arg9: memref<16x16x12xbf16, #tpu.memory_space<vmem>>, %arg10: memref<16x16x24xbf16, #tpu.memory_space<vmem>>) attributes {dimension_semantics = [#tpu.dimension_semantics<parallel>], iteration_bounds = array<i64: 2>, scalar_prefetch = 0 : i64, scratch_operands = 4 : i64, tpu.core_type = #tpu.core_type<tc>, window_params = [{transform_indices = @transform_0, window_bounds = array<i64: 1, 16, 16, 4>}, {pipeline_mode = #tpu.pipeline_mode<synchronous>, transform_indices = @transform_1, window_bounds = array<i64: 3, 12, 8>}, {pipeline_mode = #tpu.pipeline_mode<synchronous>, transform_indices = @transform_2, window_bounds = array<i64: 3, 24, 8>}, {pipeline_mode = #tpu.pipeline_mode<synchronous>, transform_indices = @transform_3, window_bounds = array<i64: 6, 8>}, {pipeline_mode = #tpu.pipeline_mode<synchronous>, transform_indices = @transform_4, window_bounds = array<i64: 4, 8>}, {transform_indices = @transform_5, window_bounds = array<i64: 1, 16, 16, 8>}]} {
    %cst = arith.constant 0.000000e+00 : bf16
    %0 = vector.broadcast %cst : bf16 to vector<18x18x4xbf16>
    %c0 = arith.constant 0 : index
    %c0_0 = arith.constant 0 : index
    %c0_1 = arith.constant 0 : index
    %1 = vector.load %arg7[%c0, %c0_0, %c0_1] : memref<18x18x4xbf16, #tpu.memory_space<vmem>>, vector<18x18x4xbf16>
    tpu.vector_store %arg7[%c0, %c0_0, %c0_1], %0 {strides = array<i32>} : memref<18x18x4xbf16, #tpu.memory_space<vmem>>, vector<18x18x4xbf16>,
    %cst_2 = arith.constant 0.000000e+00 : bf16
    %2 = vector.broadcast %cst_2 : bf16 to vector<18x18x8xbf16>
    %c0_3 = arith.constant 0 : index
    %c0_4 = arith.constant 0 : index
    %c0_5 = arith.constant 0 : index
    %3 = vector.load %arg8[%c0_3, %c0_4, %c0_5] : memref<18x18x8xbf16, #tpu.memory_space<vmem>>, vector<18x18x8xbf16>
    tpu.vector_store %arg8[%c0_3, %c0_4, %c0_5], %2 {strides = array<i32>} : memref<18x18x8xbf16, #tpu.memory_space<vmem>>, vector<18x18x8xbf16>,
    %c0_6 = arith.constant 0 : index
    %c0_7 = arith.constant 0 : index
    %c0_8 = arith.constant 0 : index
    %c0_9 = arith.constant 0 : index
    %4 = vector.load %arg1[%c0_6, %c0_7, %c0_8, %c0_9] : memref<1x16x16x4xbf16, #tpu.memory_space<vmem>>, vector<1x16x16x4xbf16>
    %5 = vector.shape_cast %4 : vector<1x16x16x4xbf16> to vector<16x16x4xbf16>
    %c1 = arith.constant 1 : index
    %c1_10 = arith.constant 1 : index
    %c0_11 = arith.constant 0 : index
    %6 = vector.load %arg7[%c1, %c1_10, %c0_11] : memref<18x18x4xbf16, #tpu.memory_space<vmem>>, vector<16x16x4xbf16>
    tpu.vector_store %arg7[%c1, %c1_10, %c0_11], %5 {strides = array<i32>} : memref<18x18x4xbf16, #tpu.memory_space<vmem>>, vector<16x16x4xbf16>,
    %c0_12 = arith.constant 0 : index
    %c0_13 = arith.constant 0 : index
    %7 = vector.load %arg4[%c0_12, %c0_13] : memref<6x8xf32, #tpu.memory_space<vmem>>, vector<1x8xf32>
    %c1_14 = arith.constant 1 : index
    %c0_15 = arith.constant 0 : index
    %8 = vector.load %arg4[%c1_14, %c0_15] : memref<6x8xf32, #tpu.memory_space<vmem>>, vector<1x8xf32>
    %c2 = arith.constant 2 : index
    %c0_16 = arith.constant 0 : index
    %9 = vector.load %arg4[%c2, %c0_16] : memref<6x8xf32, #tpu.memory_space<vmem>>, vector<1x8xf32>
    %c3 = arith.constant 3 : index
    %c0_17 = arith.constant 0 : index
    %10 = vector.load %arg4[%c3, %c0_17] : memref<6x8xf32, #tpu.memory_space<vmem>>, vector<1x8xf32>
    %cst_18 = arith.constant 0.000000e+00 : f32
    %11 = vector.broadcast %cst_18 : f32 to vector<256x8xf32>
    %c0_19 = arith.constant 0 : index
    %c0_20 = arith.constant 0 : index
    %c0_21 = arith.constant 0 : index
    %12 = vector.load %arg7[%c0_19, %c0_20, %c0_21] : memref<18x18x4xbf16, #tpu.memory_space<vmem>>, vector<16x16x4xbf16>
    %c0_22 = arith.constant 0 : index
    %c0_23 = arith.constant 0 : index
    %c0_24 = arith.constant 0 : index
    %13 = vector.load %arg9[%c0_22, %c0_23, %c0_24] : memref<16x16x12xbf16, #tpu.memory_space<vmem>>, vector<16x16x4xbf16>
    tpu.vector_store %arg9[%c0_22, %c0_23, %c0_24], %12 {strides = array<i32>} : memref<16x16x12xbf16, #tpu.memory_space<vmem>>, vector<16x16x4xbf16>,
    %c0_25 = arith.constant 0 : index
    %c1_26 = arith.constant 1 : index
    %c0_27 = arith.constant 0 : index
    %14 = vector.load %arg7[%c0_25, %c1_26, %c0_27] : memref<18x18x4xbf16, #tpu.memory_space<vmem>>, vector<16x16x4xbf16>
    %c0_28 = arith.constant 0 : index
    %c0_29 = arith.constant 0 : index
    %c4 = arith.constant 4 : index
    %15 = vector.load %arg9[%c0_28, %c0_29, %c4] : memref<16x16x12xbf16, #tpu.memory_space<vmem>>, vector<16x16x4xbf16>
    tpu.vector_store %arg9[%c0_28, %c0_29, %c4], %14 {strides = array<i32>} : memref<16x16x12xbf16, #tpu.memory_space<vmem>>, vector<16x16x4xbf16>,
    %c0_30 = arith.constant 0 : index
    %c2_31 = arith.constant 2 : index
    %c0_32 = arith.constant 0 : index
    %16 = vector.load %arg7[%c0_30, %c2_31, %c0_32] : memref<18x18x4xbf16, #tpu.memory_space<vmem>>, vector<16x16x4xbf16>
    %c0_33 = arith.constant 0 : index
    %c0_34 = arith.constant 0 : index
    %c8 = arith.constant 8 : index
    %17 = vector.load %arg9[%c0_33, %c0_34, %c8] : memref<16x16x12xbf16, #tpu.memory_space<vmem>>, vector<16x16x4xbf16>
    tpu.vector_store %arg9[%c0_33, %c0_34, %c8], %16 {strides = array<i32>} : memref<16x16x12xbf16, #tpu.memory_space<vmem>>, vector<16x16x4xbf16>,
    %c0_35 = arith.constant 0 : index
    %c0_36 = arith.constant 0 : index
    %c0_37 = arith.constant 0 : index
    %18 = vector.load %arg9[%c0_35, %c0_36, %c0_37] : memref<16x16x12xbf16, #tpu.memory_space<vmem>>, vector<16x16x12xbf16>
    %19 = vector.shape_cast %18 : vector<16x16x12xbf16> to vector<256x12xbf16>
    %c0_38 = arith.constant 0 : index
    %c0_39 = arith.constant 0 : index
    %c0_40 = arith.constant 0 : index
    %20 = vector.load %arg2[%c0_38, %c0_39, %c0_40] : memref<3x12x8xbf16, #tpu.memory_space<vmem>>, vector<1x12x8xbf16>
    %21 = vector.shape_cast %20 : vector<1x12x8xbf16> to vector<12x8xbf16>
    %cst_41 = arith.constant dense<0.000000e+00> : vector<256x8xf32>
    %22 = tpu.matmul %19, %21, %cst_41 {dimension_numbers = #tpu.dot_dimension_numbers<[1], [0], [0], [1], [0, 0, 1, 1], [], []>} : vector<256x12xbf16>, vector<12x8xbf16>, vector<256x8xf32> -> vector<256x8xf32>
    %23 = arith.addf %11, %22 : vector<256x8xf32>
    %c1_42 = arith.constant 1 : index
    %c0_43 = arith.constant 0 : index
    %c0_44 = arith.constant 0 : index
    %24 = vector.load %arg7[%c1_42, %c0_43, %c0_44] : memref<18x18x4xbf16, #tpu.memory_space<vmem>>, vector<16x16x4xbf16>
    %c0_45 = arith.constant 0 : index
    %c0_46 = arith.constant 0 : index
    %c0_47 = arith.constant 0 : index
    %25 = vector.load %arg9[%c0_45, %c0_46, %c0_47] : memref<16x16x12xbf16, #tpu.memory_space<vmem>>, vector<16x16x4xbf16>
    tpu.vector_store %arg9[%c0_45, %c0_46, %c0_47], %24 {strides = array<i32>} : memref<16x16x12xbf16, #tpu.memory_space<vmem>>, vector<16x16x4xbf16>,
    %c1_48 = arith.constant 1 : index
    %c1_49 = arith.constant 1 : index
    %c0_50 = arith.constant 0 : index
    %26 = vector.load %arg7[%c1_48, %c1_49, %c0_50] : memref<18x18x4xbf16, #tpu.memory_space<vmem>>, vector<16x16x4xbf16>
    %c0_51 = arith.constant 0 : index
    %c0_52 = arith.constant 0 : index
    %c4_53 = arith.constant 4 : index
    %27 = vector.load %arg9[%c0_51, %c0_52, %c4_53] : memref<16x16x12xbf16, #tpu.memory_space<vmem>>, vector<16x16x4xbf16>
    tpu.vector_store %arg9[%c0_51, %c0_52, %c4_53], %26 {strides = array<i32>} : memref<16x16x12xbf16, #tpu.memory_space<vmem>>, vector<16x16x4xbf16>,
    %c1_54 = arith.constant 1 : index
    %c2_55 = arith.constant 2 : index
    %c0_56 = arith.constant 0 : index
    %28 = vector.load %arg7[%c1_54, %c2_55, %c0_56] : memref<18x18x4xbf16, #tpu.memory_space<vmem>>, vector<16x16x4xbf16>
    %c0_57 = arith.constant 0 : index
    %c0_58 = arith.constant 0 : index
    %c8_59 = arith.constant 8 : index
    %29 = vector.load %arg9[%c0_57, %c0_58, %c8_59] : memref<16x16x12xbf16, #tpu.memory_space<vmem>>, vector<16x16x4xbf16>
    tpu.vector_store %arg9[%c0_57, %c0_58, %c8_59], %28 {strides = array<i32>} : memref<16x16x12xbf16, #tpu.memory_space<vmem>>, vector<16x16x4xbf16>,
    %c0_60 = arith.constant 0 : index
    %c0_61 = arith.constant 0 : index
    %c0_62 = arith.constant 0 : index
    %30 = vector.load %arg9[%c0_60, %c0_61, %c0_62] : memref<16x16x12xbf16, #tpu.memory_space<vmem>>, vector<16x16x12xbf16>
    %31 = vector.shape_cast %30 : vector<16x16x12xbf16> to vector<256x12xbf16>
    %c1_63 = arith.constant 1 : index
    %c0_64 = arith.constant 0 : index
    %c0_65 = arith.constant 0 : index
    %32 = vector.load %arg2[%c1_63, %c0_64, %c0_65] : memref<3x12x8xbf16, #tpu.memory_space<vmem>>, vector<1x12x8xbf16>
    %33 = vector.shape_cast %32 : vector<1x12x8xbf16> to vector<12x8xbf16>
    %cst_66 = arith.constant dense<0.000000e+00> : vector<256x8xf32>
    %34 = tpu.matmul %31, %33, %cst_66 {dimension_numbers = #tpu.dot_dimension_numbers<[1], [0], [0], [1], [0, 0, 1, 1], [], []>} : vector<256x12xbf16>, vector<12x8xbf16>, vector<256x8xf32> -> vector<256x8xf32>
    %35 = arith.addf %23, %34 : vector<256x8xf32>
    %c2_67 = arith.constant 2 : index
    %c0_68 = arith.constant 0 : index
    %c0_69 = arith.constant 0 : index
    %36 = vector.load %arg7[%c2_67, %c0_68, %c0_69] : memref<18x18x4xbf16, #tpu.memory_space<vmem>>, vector<16x16x4xbf16>
    %c0_70 = arith.constant 0 : index
    %c0_71 = arith.constant 0 : index
    %c0_72 = arith.constant 0 : index
    %37 = vector.load %arg9[%c0_70, %c0_71, %c0_72] : memref<16x16x12xbf16, #tpu.memory_space<vmem>>, vector<16x16x4xbf16>
    tpu.vector_store %arg9[%c0_70, %c0_71, %c0_72], %36 {strides = array<i32>} : memref<16x16x12xbf16, #tpu.memory_space<vmem>>, vector<16x16x4xbf16>,
    %c2_73 = arith.constant 2 : index
    %c1_74 = arith.constant 1 : index
    %c0_75 = arith.constant 0 : index
    %38 = vector.load %arg7[%c2_73, %c1_74, %c0_75] : memref<18x18x4xbf16, #tpu.memory_space<vmem>>, vector<16x16x4xbf16>
    %c0_76 = arith.constant 0 : index
    %c0_77 = arith.constant 0 : index
    %c4_78 = arith.constant 4 : index
    %39 = vector.load %arg9[%c0_76, %c0_77, %c4_78] : memref<16x16x12xbf16, #tpu.memory_space<vmem>>, vector<16x16x4xbf16>
    tpu.vector_store %arg9[%c0_76, %c0_77, %c4_78], %38 {strides = array<i32>} : memref<16x16x12xbf16, #tpu.memory_space<vmem>>, vector<16x16x4xbf16>,
    %c2_79 = arith.constant 2 : index
    %c2_80 = arith.constant 2 : index
    %c0_81 = arith.constant 0 : index
    %40 = vector.load %arg7[%c2_79, %c2_80, %c0_81] : memref<18x18x4xbf16, #tpu.memory_space<vmem>>, vector<16x16x4xbf16>
    %c0_82 = arith.constant 0 : index
    %c0_83 = arith.constant 0 : index
    %c8_84 = arith.constant 8 : index
    %41 = vector.load %arg9[%c0_82, %c0_83, %c8_84] : memref<16x16x12xbf16, #tpu.memory_space<vmem>>, vector<16x16x4xbf16>
    tpu.vector_store %arg9[%c0_82, %c0_83, %c8_84], %40 {strides = array<i32>} : memref<16x16x12xbf16, #tpu.memory_space<vmem>>, vector<16x16x4xbf16>,
    %c0_85 = arith.constant 0 : index
    %c0_86 = arith.constant 0 : index
    %c0_87 = arith.constant 0 : index
    %42 = vector.load %arg9[%c0_85, %c0_86, %c0_87] : memref<16x16x12xbf16, #tpu.memory_space<vmem>>, vector<16x16x12xbf16>
    %43 = vector.shape_cast %42 : vector<16x16x12xbf16> to vector<256x12xbf16>
    %c2_88 = arith.constant 2 : index
    %c0_89 = arith.constant 0 : index
    %c0_90 = arith.constant 0 : index
    %44 = vector.load %arg2[%c2_88, %c0_89, %c0_90] : memref<3x12x8xbf16, #tpu.memory_space<vmem>>, vector<1x12x8xbf16>
    %45 = vector.shape_cast %44 : vector<1x12x8xbf16> to vector<12x8xbf16>
    %cst_91 = arith.constant dense<0.000000e+00> : vector<256x8xf32>
    %46 = tpu.matmul %43, %45, %cst_91 {dimension_numbers = #tpu.dot_dimension_numbers<[1], [0], [0], [1], [0, 0, 1, 1], [], []>} : vector<256x12xbf16>, vector<12x8xbf16>, vector<256x8xf32> -> vector<256x8xf32>
    %47 = arith.addf %35, %46 : vector<256x8xf32>
    %48 = vector.broadcast %7 : vector<1x8xf32> to vector<256x8xf32>
    %49 = arith.mulf %47, %48 : vector<256x8xf32>
    %50 = vector.broadcast %8 : vector<1x8xf32> to vector<256x8xf32>
    %51 = arith.addf %49, %50 : vector<256x8xf32>
    %cst_92 = arith.constant 0.000000e+00 : f32
    %52 = vector.broadcast %cst_92 : f32 to vector<256x8xf32>
    %53 = arith.maximumf %51, %52 : vector<256x8xf32>
    %54 = vector.shape_cast %53 : vector<256x8xf32> to vector<16x16x8xf32>
    %55 = arith.truncf %54 : vector<16x16x8xf32> to vector<16x16x8xbf16>
    %c1_93 = arith.constant 1 : index
    %c1_94 = arith.constant 1 : index
    %c0_95 = arith.constant 0 : index
    %56 = vector.load %arg8[%c1_93, %c1_94, %c0_95] : memref<18x18x8xbf16, #tpu.memory_space<vmem>>, vector<16x16x8xbf16>
    tpu.vector_store %arg8[%c1_93, %c1_94, %c0_95], %55 {strides = array<i32>} : memref<18x18x8xbf16, #tpu.memory_space<vmem>>, vector<16x16x8xbf16>,
    %cst_96 = arith.constant 0.000000e+00 : f32
    %57 = vector.broadcast %cst_96 : f32 to vector<256x8xf32>
    %c0_97 = arith.constant 0 : index
    %c0_98 = arith.constant 0 : index
    %c0_99 = arith.constant 0 : index
    %58 = vector.load %arg8[%c0_97, %c0_98, %c0_99] : memref<18x18x8xbf16, #tpu.memory_space<vmem>>, vector<16x16x8xbf16>
    %c0_100 = arith.constant 0 : index
    %c0_101 = arith.constant 0 : index
    %c0_102 = arith.constant 0 : index
    %59 = vector.load %arg10[%c0_100, %c0_101, %c0_102] : memref<16x16x24xbf16, #tpu.memory_space<vmem>>, vector<16x16x8xbf16>
    tpu.vector_store %arg10[%c0_100, %c0_101, %c0_102], %58 {strides = array<i32>} : memref<16x16x24xbf16, #tpu.memory_space<vmem>>, vector<16x16x8xbf16>,
    %c0_103 = arith.constant 0 : index
    %c1_104 = arith.constant 1 : index
    %c0_105 = arith.constant 0 : index
    %60 = vector.load %arg8[%c0_103, %c1_104, %c0_105] : memref<18x18x8xbf16, #tpu.memory_space<vmem>>, vector<16x16x8xbf16>
    %c0_106 = arith.constant 0 : index
    %c0_107 = arith.constant 0 : index
    %c8_108 = arith.constant 8 : index
    %61 = vector.load %arg10[%c0_106, %c0_107, %c8_108] : memref<16x16x24xbf16, #tpu.memory_space<vmem>>, vector<16x16x8xbf16>
    tpu.vector_store %arg10[%c0_106, %c0_107, %c8_108], %60 {strides = array<i32>} : memref<16x16x24xbf16, #tpu.memory_space<vmem>>, vector<16x16x8xbf16>,
    %c0_109 = arith.constant 0 : index
    %c2_110 = arith.constant 2 : index
    %c0_111 = arith.constant 0 : index
    %62 = vector.load %arg8[%c0_109, %c2_110, %c0_111] : memref<18x18x8xbf16, #tpu.memory_space<vmem>>, vector<16x16x8xbf16>
    %c0_112 = arith.constant 0 : index
    %c0_113 = arith.constant 0 : index
    %c16 = arith.constant 16 : index
    %63 = vector.load %arg10[%c0_112, %c0_113, %c16] : memref<16x16x24xbf16, #tpu.memory_space<vmem>>, vector<16x16x8xbf16>
    tpu.vector_store %arg10[%c0_112, %c0_113, %c16], %62 {strides = array<i32>} : memref<16x16x24xbf16, #tpu.memory_space<vmem>>, vector<16x16x8xbf16>,
    %c0_114 = arith.constant 0 : index
    %c0_115 = arith.constant 0 : index
    %c0_116 = arith.constant 0 : index
    %64 = vector.load %arg10[%c0_114, %c0_115, %c0_116] : memref<16x16x24xbf16, #tpu.memory_space<vmem>>, vector<16x16x24xbf16>
    %65 = vector.shape_cast %64 : vector<16x16x24xbf16> to vector<256x24xbf16>
    %c0_117 = arith.constant 0 : index
    %c0_118 = arith.constant 0 : index
    %c0_119 = arith.constant 0 : index
    %66 = vector.load %arg3[%c0_117, %c0_118, %c0_119] : memref<3x24x8xbf16, #tpu.memory_space<vmem>>, vector<1x24x8xbf16>
    %67 = vector.shape_cast %66 : vector<1x24x8xbf16> to vector<24x8xbf16>
    %cst_120 = arith.constant dense<0.000000e+00> : vector<256x8xf32>
    %68 = tpu.matmul %65, %67, %cst_120 {dimension_numbers = #tpu.dot_dimension_numbers<[1], [0], [0], [1], [0, 0, 1, 1], [], []>} : vector<256x24xbf16>, vector<24x8xbf16>, vector<256x8xf32> -> vector<256x8xf32>
    %69 = arith.addf %57, %68 : vector<256x8xf32>
    %c1_121 = arith.constant 1 : index
    %c0_122 = arith.constant 0 : index
    %c0_123 = arith.constant 0 : index
    %70 = vector.load %arg8[%c1_121, %c0_122, %c0_123] : memref<18x18x8xbf16, #tpu.memory_space<vmem>>, vector<16x16x8xbf16>
    %c0_124 = arith.constant 0 : index
    %c0_125 = arith.constant 0 : index
    %c0_126 = arith.constant 0 : index
    %71 = vector.load %arg10[%c0_124, %c0_125, %c0_126] : memref<16x16x24xbf16, #tpu.memory_space<vmem>>, vector<16x16x8xbf16>
    tpu.vector_store %arg10[%c0_124, %c0_125, %c0_126], %70 {strides = array<i32>} : memref<16x16x24xbf16, #tpu.memory_space<vmem>>, vector<16x16x8xbf16>,
    %c1_127 = arith.constant 1 : index
    %c1_128 = arith.constant 1 : index
    %c0_129 = arith.constant 0 : index
    %72 = vector.load %arg8[%c1_127, %c1_128, %c0_129] : memref<18x18x8xbf16, #tpu.memory_space<vmem>>, vector<16x16x8xbf16>
    %c0_130 = arith.constant 0 : index
    %c0_131 = arith.constant 0 : index
    %c8_132 = arith.constant 8 : index
    %73 = vector.load %arg10[%c0_130, %c0_131, %c8_132] : memref<16x16x24xbf16, #tpu.memory_space<vmem>>, vector<16x16x8xbf16>
    tpu.vector_store %arg10[%c0_130, %c0_131, %c8_132], %72 {strides = array<i32>} : memref<16x16x24xbf16, #tpu.memory_space<vmem>>, vector<16x16x8xbf16>,
    %c1_133 = arith.constant 1 : index
    %c2_134 = arith.constant 2 : index
    %c0_135 = arith.constant 0 : index
    %74 = vector.load %arg8[%c1_133, %c2_134, %c0_135] : memref<18x18x8xbf16, #tpu.memory_space<vmem>>, vector<16x16x8xbf16>
    %c0_136 = arith.constant 0 : index
    %c0_137 = arith.constant 0 : index
    %c16_138 = arith.constant 16 : index
    %75 = vector.load %arg10[%c0_136, %c0_137, %c16_138] : memref<16x16x24xbf16, #tpu.memory_space<vmem>>, vector<16x16x8xbf16>
    tpu.vector_store %arg10[%c0_136, %c0_137, %c16_138], %74 {strides = array<i32>} : memref<16x16x24xbf16, #tpu.memory_space<vmem>>, vector<16x16x8xbf16>,
    %c0_139 = arith.constant 0 : index
    %c0_140 = arith.constant 0 : index
    %c0_141 = arith.constant 0 : index
    %76 = vector.load %arg10[%c0_139, %c0_140, %c0_141] : memref<16x16x24xbf16, #tpu.memory_space<vmem>>, vector<16x16x24xbf16>
    %77 = vector.shape_cast %76 : vector<16x16x24xbf16> to vector<256x24xbf16>
    %c1_142 = arith.constant 1 : index
    %c0_143 = arith.constant 0 : index
    %c0_144 = arith.constant 0 : index
    %78 = vector.load %arg3[%c1_142, %c0_143, %c0_144] : memref<3x24x8xbf16, #tpu.memory_space<vmem>>, vector<1x24x8xbf16>
    %79 = vector.shape_cast %78 : vector<1x24x8xbf16> to vector<24x8xbf16>
    %cst_145 = arith.constant dense<0.000000e+00> : vector<256x8xf32>
    %80 = tpu.matmul %77, %79, %cst_145 {dimension_numbers = #tpu.dot_dimension_numbers<[1], [0], [0], [1], [0, 0, 1, 1], [], []>} : vector<256x24xbf16>, vector<24x8xbf16>, vector<256x8xf32> -> vector<256x8xf32>
    %81 = arith.addf %69, %80 : vector<256x8xf32>
    %c2_146 = arith.constant 2 : index
    %c0_147 = arith.constant 0 : index
    %c0_148 = arith.constant 0 : index
    %82 = vector.load %arg8[%c2_146, %c0_147, %c0_148] : memref<18x18x8xbf16, #tpu.memory_space<vmem>>, vector<16x16x8xbf16>
    %c0_149 = arith.constant 0 : index
    %c0_150 = arith.constant 0 : index
    %c0_151 = arith.constant 0 : index
    %83 = vector.load %arg10[%c0_149, %c0_150, %c0_151] : memref<16x16x24xbf16, #tpu.memory_space<vmem>>, vector<16x16x8xbf16>
    tpu.vector_store %arg10[%c0_149, %c0_150, %c0_151], %82 {strides = array<i32>} : memref<16x16x24xbf16, #tpu.memory_space<vmem>>, vector<16x16x8xbf16>,
    %c2_152 = arith.constant 2 : index
    %c1_153 = arith.constant 1 : index
    %c0_154 = arith.constant 0 : index
    %84 = vector.load %arg8[%c2_152, %c1_153, %c0_154] : memref<18x18x8xbf16, #tpu.memory_space<vmem>>, vector<16x16x8xbf16>
    %c0_155 = arith.constant 0 : index
    %c0_156 = arith.constant 0 : index
    %c8_157 = arith.constant 8 : index
    %85 = vector.load %arg10[%c0_155, %c0_156, %c8_157] : memref<16x16x24xbf16, #tpu.memory_space<vmem>>, vector<16x16x8xbf16>
    tpu.vector_store %arg10[%c0_155, %c0_156, %c8_157], %84 {strides = array<i32>} : memref<16x16x24xbf16, #tpu.memory_space<vmem>>, vector<16x16x8xbf16>,
    %c2_158 = arith.constant 2 : index
    %c2_159 = arith.constant 2 : index
    %c0_160 = arith.constant 0 : index
    %86 = vector.load %arg8[%c2_158, %c2_159, %c0_160] : memref<18x18x8xbf16, #tpu.memory_space<vmem>>, vector<16x16x8xbf16>
    %c0_161 = arith.constant 0 : index
    %c0_162 = arith.constant 0 : index
    %c16_163 = arith.constant 16 : index
    %87 = vector.load %arg10[%c0_161, %c0_162, %c16_163] : memref<16x16x24xbf16, #tpu.memory_space<vmem>>, vector<16x16x8xbf16>
    tpu.vector_store %arg10[%c0_161, %c0_162, %c16_163], %86 {strides = array<i32>} : memref<16x16x24xbf16, #tpu.memory_space<vmem>>, vector<16x16x8xbf16>,
    %c0_164 = arith.constant 0 : index
    %c0_165 = arith.constant 0 : index
    %c0_166 = arith.constant 0 : index
    %88 = vector.load %arg10[%c0_164, %c0_165, %c0_166] : memref<16x16x24xbf16, #tpu.memory_space<vmem>>, vector<16x16x24xbf16>
    %89 = vector.shape_cast %88 : vector<16x16x24xbf16> to vector<256x24xbf16>
    %c2_167 = arith.constant 2 : index
    %c0_168 = arith.constant 0 : index
    %c0_169 = arith.constant 0 : index
    %90 = vector.load %arg3[%c2_167, %c0_168, %c0_169] : memref<3x24x8xbf16, #tpu.memory_space<vmem>>, vector<1x24x8xbf16>
    %91 = vector.shape_cast %90 : vector<1x24x8xbf16> to vector<24x8xbf16>
    %cst_170 = arith.constant dense<0.000000e+00> : vector<256x8xf32>
    %92 = tpu.matmul %89, %91, %cst_170 {dimension_numbers = #tpu.dot_dimension_numbers<[1], [0], [0], [1], [0, 0, 1, 1], [], []>} : vector<256x24xbf16>, vector<24x8xbf16>, vector<256x8xf32> -> vector<256x8xf32>
    %93 = arith.addf %81, %92 : vector<256x8xf32>
    %94 = vector.broadcast %9 : vector<1x8xf32> to vector<256x8xf32>
    %95 = arith.mulf %93, %94 : vector<256x8xf32>
    %96 = vector.broadcast %10 : vector<1x8xf32> to vector<256x8xf32>
    %97 = arith.addf %95, %96 : vector<256x8xf32>
    %c4_171 = arith.constant 4 : index
    %c0_172 = arith.constant 0 : index
    %98 = vector.load %arg4[%c4_171, %c0_172] : memref<6x8xf32, #tpu.memory_space<vmem>>, vector<1x8xf32>
    %c5 = arith.constant 5 : index
    %c0_173 = arith.constant 0 : index
    %99 = vector.load %arg4[%c5, %c0_173] : memref<6x8xf32, #tpu.memory_space<vmem>>, vector<1x8xf32>
    %c1_174 = arith.constant 1 : index
    %c1_175 = arith.constant 1 : index
    %c0_176 = arith.constant 0 : index
    %100 = vector.load %arg7[%c1_174, %c1_175, %c0_176] : memref<18x18x4xbf16, #tpu.memory_space<vmem>>, vector<16x16x4xbf16>
    %101 = vector.shape_cast %100 : vector<16x16x4xbf16> to vector<256x4xbf16>
    %c0_177 = arith.constant 0 : index
    %c0_178 = arith.constant 0 : index
    %102 = vector.load %arg5[%c0_177, %c0_178] : memref<4x8xbf16, #tpu.memory_space<vmem>>, vector<4x8xbf16>
    %cst_179 = arith.constant dense<0.000000e+00> : vector<256x8xf32>
    %103 = tpu.matmul %101, %102, %cst_179 {dimension_numbers = #tpu.dot_dimension_numbers<[1], [0], [0], [1], [0, 0, 1, 1], [], []>} : vector<256x4xbf16>, vector<4x8xbf16>, vector<256x8xf32> -> vector<256x8xf32>
    %104 = vector.broadcast %98 : vector<1x8xf32> to vector<256x8xf32>
    %105 = arith.mulf %103, %104 : vector<256x8xf32>
    %106 = vector.broadcast %99 : vector<1x8xf32> to vector<256x8xf32>
    %107 = arith.addf %105, %106 : vector<256x8xf32>
    %108 = arith.addf %97, %107 : vector<256x8xf32>
    %cst_180 = arith.constant 0.000000e+00 : f32
    %109 = vector.broadcast %cst_180 : f32 to vector<256x8xf32>
    %110 = arith.maximumf %108, %109 : vector<256x8xf32>
    %111 = vector.shape_cast %110 : vector<256x8xf32> to vector<16x16x8xf32>
    %c0_181 = arith.constant 0 : index
    %c0_182 = arith.constant 0 : index
    %c0_183 = arith.constant 0 : index
    %c0_184 = arith.constant 0 : index
    %112 = vector.load %arg6[%c0_181, %c0_182, %c0_183, %c0_184] : memref<1x16x16x8xf32, #tpu.memory_space<vmem>>, vector<1x16x16x8xf32>
    %113 = vector.shape_cast %112 : vector<1x16x16x8xf32> to vector<16x16x8xf32>
    %114 = vector.shape_cast %111 : vector<16x16x8xf32> to vector<1x16x16x8xf32>
    tpu.vector_store %arg6[%c0_181, %c0_182, %c0_183, %c0_184], %114 {strides = array<i32>} : memref<1x16x16x8xf32, #tpu.memory_space<vmem>>, vector<1x16x16x8xf32>,
    return
  }
  func.func @transform_0(%arg0: i32) -> (i32, i32, i32, i32) {
    %c0_i32 = arith.constant 0 : i32
    %c0_i32_0 = arith.constant 0 : i32
    %c0_i32_1 = arith.constant 0 : i32
    %c0_i32_2 = arith.constant 0 : i32
    return %arg0, %c0_i32, %c0_i32_0, %c0_i32_1 : i32, i32, i32, i32
  }
  func.func @transform_1(%arg0: i32) -> (i32, i32, i32) {
    %c0_i32 = arith.constant 0 : i32
    %c0_i32_0 = arith.constant 0 : i32
    %c0_i32_1 = arith.constant 0 : i32
    %c0_i32_2 = arith.constant 0 : i32
    return %c0_i32, %c0_i32_0, %c0_i32_1 : i32, i32, i32
  }
  func.func @transform_2(%arg0: i32) -> (i32, i32, i32) {
    %c0_i32 = arith.constant 0 : i32
    %c0_i32_0 = arith.constant 0 : i32
    %c0_i32_1 = arith.constant 0 : i32
    %c0_i32_2 = arith.constant 0 : i32
    return %c0_i32, %c0_i32_0, %c0_i32_1 : i32, i32, i32
  }
  func.func @transform_3(%arg0: i32) -> (i32, i32) {
    %c0_i32 = arith.constant 0 : i32
    %c0_i32_0 = arith.constant 0 : i32
    %c0_i32_1 = arith.constant 0 : i32
    return %c0_i32, %c0_i32_0 : i32, i32
  }
  func.func @transform_4(%arg0: i32) -> (i32, i32) {
    %c0_i32 = arith.constant 0 : i32
    %c0_i32_0 = arith.constant 0 : i32
    %c0_i32_1 = arith.constant 0 : i32
    return %c0_i32, %c0_i32_0 : i32, i32
  }
  func.func @transform_5(%arg0: i32) -> (i32, i32, i32, i32) {
    %c0_i32 = arith.constant 0 : i32
    %c0_i32_0 = arith.constant 0 : i32
    %c0_i32_1 = arith.constant 0 : i32
    %c0_i32_2 = arith.constant 0 : i32
    return %arg0, %c0_i32, %c0_i32_0, %c0_i32_1 : i32, i32, i32, i32
  }
}

</mosaic_0001>

<bundles_post_ra>
// kernel: residual_block.1
= control target key start
LH: loop header
LB: loop body
LE: loop exit
PB: predicated region body
PF: predicated region fallthrough
CT: control target
= control target key end

     0   :  { %s11195_s18 = smov 0   ;;  %s15918_s0 = inlined_call_operand.vmem [shape: bf16[2,16,16,4], index: 0, kind: input, shape index: {}]   ;;  %s15919_s1 = inlined_call_operand.vmem [shape: bf16[3,12,8], index: 1, kind: input, shape index: {}]   ;;  %s15920_s2 = inlined_call_operand.vmem [shape: bf16[3,24,8], index: 2, kind: input, shape index: {}]   ;;  %s15921_s3 = inlined_call_operand.vmem [shape: f32[6,8], index: 3, kind: input, shape index: {}]   ;;  %s15922_s4 = inlined_call_operand.vmem [shape: bf16[4,8], index: 4, kind: input, shape index: {}]   ;;  %s15923_s5 = inlined_call_operand.vmem [shape: f32[2,16,16,8], index: 5, kind: output, shape index: {}]  }
   0x1 LB: > { %s10290_s19 = sadd.s32 4294967295, %s11159_s18   ;;  %p10294_p0 = scmp.ge.s32.totalorder %s11159_s18, 1  ;;  %s11159_s18 = sphi %s11195_s18, %s15_s18  }
   0x2   : > { %p187_p1 = scmp.lt.s32.totalorder %s11159_s18, 3 }
   0x4   : > { %p188_p2 = pnand %p10294_p0, %p187_p1 }
   0x6   : > { %191 = sbr.rel (%p188_p2) target bundleno = 1515 (0x5eb), region = 40 }
   0xb   : > { %vm226_vm0 = vcmask 27648   ;;  %v15924_v0 = vmov 0   ;;  %vm229_vm1 = vcmask 24576   ;;  %vm927_vm2 = vsmask.f32 3328  ;;  %p215_p3 = scmp.lt.s32.totalorder %s10290_s19, 1 }
   0xc   : > { %227 = vst.msk [vmem:[#allocation2] sm:$0xf] %vm226_vm0, %v15924_v0  ;;  %228 = vst.msk [vmem:[#allocation2 + $0x4] sm:$0xf] %vm226_vm0, %v15924_v0  ;;  %vm928_vm3 = vsmask.f32 7440 }
   0xd   : > { %231 = vst.msk [vmem:[#allocation2 + $0xc] sm:$0xf] %vm226_vm0, %v15924_v0  ;;  %232 = vst.msk [vmem:[#allocation2 + $0x10] sm:$0xf] %vm226_vm0, %v15924_v0  ;;  %vm1539_vm4 = vcmask 1042432   ;;  %vm1540_vm7 = vcmask 1046532  }
   0xe   : > { %234 = vst.msk [vmem:[#allocation2 + $0x18] sm:$0xf] %vm226_vm0, %v15924_v0  ;;  %235 = vst.msk [vmem:[#allocation2 + $0x1c] sm:$0xf] %vm226_vm0, %v15924_v0  ;;  %vm370_vm5 = vsmask.f32 256 }
   0xf   : > { %237 = vst.msk [vmem:[#allocation2 + $0x24] sm:$0xf] %vm226_vm0, %v15924_v0  ;;  %238 = vst.msk [vmem:[#allocation2 + $0x28] sm:$0xf] %vm226_vm0, %v15924_v0  ;;  %vm371_vm6 = vsmask.f32 4368 }
  0x10   : > { %240 = vst.msk [vmem:[#allocation2 + $0x30] sm:$0xf] %vm226_vm0, %v15924_v0  ;;  %241 = vst.msk [vmem:[#allocation2 + $0x34] sm:$0xf] %vm226_vm0, %v15924_v0  ;;  %s16015_s19 = smov (!%p215_p3, %s10290_s19), 1  ;;  %s11162_s24 = smov 8  }
  0x11   : > { %243 = vst.msk [vmem:[#allocation2 + $0x3c] sm:$0xf] %vm226_vm0, %v15924_v0  ;;  %244 = vst.msk [vmem:[#allocation2 + $0x40] sm:$0xf] %vm226_vm0, %v15924_v0  ;;  %vm695_vm8 = vsmask.f32 7938 }
  0x12   : > { %246 = vst.msk [vmem:[#allocation2 + $0x48] sm:$0xf] %vm226_vm0, %v15924_v0  ;;  %247 = vst.msk [vmem:[#allocation2 + $0x4c] sm:$0xf] %vm226_vm0, %v15924_v0  ;;  %s10678_s20 = sshll.u32 %s16015_s19, 7  ;;  %v15936_v31 = vmov 0 }
  0x13   : > { %249 = vst.msk [vmem:[#allocation2 + $0x54] sm:$0xf] %vm226_vm0, %v15924_v0  ;;  %250 = vst.msk [vmem:[#allocation2 + $0x58] sm:$0xf] %vm226_vm0, %v15924_v0  ;;  %s11321_s23 = scalar_lea.vmem %s15918_s0, %s10678_s20  ;;  %v879_v1 = vld [vmem:[#allocation2] sm:$0xf] }
  0x14   : > { %252 = vst.msk [vmem:[#allocation2 + $0x60] sm:$0xf] %vm226_vm0, %v15924_v0  ;;  %253 = vst.msk [vmem:[#allocation2 + $0x64] sm:$0xf] %vm226_vm0, %v15924_v0  ;;  %v880_v2 = vld [vmem:[#allocation2 + $0x4] sm:$0xf] }
  0x15   : > { %255 = vst.msk [vmem:[#allocation2 + $0x6c] sm:$0xf] %vm226_vm0, %v15924_v0  ;;  %256 = vst.msk [vmem:[#allocation2 + $0x70] sm:$0xf] %vm226_vm0, %v15924_v0  ;;  %v1443_v3 = vld [vmem:[#allocation2] sm:$0xe] }
  0x16   : > { %258 = vst.msk [vmem:[#allocation2 + $0x78] sm:$0xf] %vm226_vm0, %v15924_v0  ;;  %259 = vst.msk [vmem:[#allocation2 + $0x7c] sm:$0xf] %vm226_vm0, %v15924_v0  ;;  %v931_v4 = vshrl.u32 %v879_v1, 16  ;;  %v934_v5 = vshll.u32 %v879_v1, 16 }
  0x17   : > { %261 = vst.msk [vmem:[#allocation2 + $0x84] sm:$0xf] %vm226_vm0, %v15924_v0  ;;  %262 = vst.msk [vmem:[#allocation2 + $0x88] sm:$0xf] %vm226_vm0, %v15924_v0  ;;  %v940_v6 = vshll.u32 %v880_v2, 16  ;;  %v944_v7 = vshrl.u32 %v880_v2, 16 }
  0x18   : > { %264 = vst.msk [vmem:[#allocation2 + $0x90] sm:$0xf] %vm226_vm0, %v15924_v0  ;;  %265 = vst.msk [vmem:[#allocation2 + $0x94] sm:$0xf] %vm226_vm0, %v15924_v0  ;;  %v11323_v8 = vld [vmem:[#allocation2 + $0x4] sm:$0xf] }
  0x19   : > { %267 = vst.msk [vmem:[#allocation2 + $0x9c] sm:$0xf] %vm226_vm0, %v15924_v0  ;;  %268 = vst.msk [vmem:[#allocation2 + $0xa0] sm:$0xf] %vm226_vm0, %v15924_v0  ;;  %v10299_v10 = vrot.slane %v1443_v3, 9  ;;  %v1544_v11 = vrot.slane %v11323_v8, 5 }
  0x1a   : > { %270 = vst.msk [vmem:[#allocation2 + $0xa8] sm:$0xf] %vm226_vm0, %v15924_v0  ;;  %271 = vst.msk [vmem:[#allocation2 + $0xac] sm:$0xf] %vm226_vm0, %v15924_v0  ;;  %v352_v13 = vld [vmem:[%s11321_s23 + $0x38] sm:$0xf] }
  0x1b   : > { %273 = vst.msk [vmem:[#allocation2 + $0xb4] sm:$0xf] %vm226_vm0, %v15924_v0  ;;  %274 = vst.msk [vmem:[#allocation2 + $0xb8] sm:$0xf] %vm226_vm0, %v15924_v0  ;;  %v933_v14 = vrot.slane %v931_v4, 4  ;;  %v936_v15 = vrot.slane %v934_v5, 5 }
  0x1c   : > { %276 = vst.msk [vmem:[#allocation2 + $0xc0] sm:$0xf] %vm226_vm0, %v15924_v0  ;;  %277 = vst.msk [vmem:[#allocation2 + $0xc4] sm:$0xf] %vm226_vm0, %v15924_v0  ;;  %v942_v16 = vrot.slane %v940_v6, 5  ;;  %v946_v17 = vrot.slane %v944_v7, 4 }
  0x1d   : > { %279 = vst.msk [vmem:[#allocation2 + $0xcc] sm:$0xf] %vm226_vm0, %v15924_v0  ;;  %280 = vst.msk [vmem:[#allocation2 + $0xd0] sm:$0xf] %vm226_vm0, %v15924_v0  ;;  %v353_v18 = vld [vmem:[%s11321_s23 + $0x3c] sm:$0xf]  ;;  %v937_v24 = vor.u32 %v936_v15, %v933_v14 }
  0x1e   : > { %230 = vst.msk [vmem:[#allocation2 + $0x8] sm:$0x1] %vm229_vm1, %v15924_v0  ;;  %233 = vst.msk [vmem:[#allocation2 + $0x14] sm:$0x1] %vm229_vm1, %v15924_v0  ;;  %v493_v21 = vshrl.u32 %v352_v13, 16  ;;  %v496_v22 = vshll.u32 %v352_v13, 16  ;;  %v947_v25 = vor.u32 %v946_v17, %v942_v16 }
  0x1f   : > { %236 = vst.msk [vmem:[#allocation2 + $0x20] sm:$0x1] %vm229_vm1, %v15924_v0  ;;  %239 = vst.msk [vmem:[#allocation2 + $0x2c] sm:$0x1] %vm229_vm1, %v15924_v0  ;;  %v501_v26 = vshrl.u32 %v353_v18, 16  ;;  %v504_v27 = vshll.u32 %v353_v18, 16 }
  0x20   : > { %242 = vst.msk [vmem:[#allocation2 + $0x38] sm:$0x1] %vm229_vm1, %v15924_v0  ;;  %245 = vst.msk [vmem:[#allocation2 + $0x44] sm:$0x1] %vm229_vm1, %v15924_v0  ;;  %v748_v28 = vld [vmem:[#allocation2 + $0x60] sm:$0xf] }
  0x21   : > { %248 = vst.msk [vmem:[#allocation2 + $0x50] sm:$0x1] %vm229_vm1, %v15924_v0  ;;  %251 = vst.msk [vmem:[#allocation2 + $0x5c] sm:$0x1] %vm229_vm1, %v15924_v0  ;;  %v354_v29 = vld [vmem:[%s11321_s23 + $0x40] sm:$0xf] }
  0x22   : > { %254 = vst.msk [vmem:[#allocation2 + $0x68] sm:$0x1] %vm229_vm1, %v15924_v0  ;;  %257 = vst.msk [vmem:[#allocation2 + $0x74] sm:$0x1] %vm229_vm1, %v15924_v0  ;;  %v495_v32 = vrot.slane %v493_v21, 7  ;;  %v510_v34 = vshrl.u32 %v354_v29, 16 }
  0x23   : > { %260 = vst.msk [vmem:[#allocation2 + $0x80] sm:$0x1] %vm229_vm1, %v15924_v0  ;;  %263 = vst.msk [vmem:[#allocation2 + $0x8c] sm:$0x1] %vm229_vm1, %v15924_v0  ;;  %v355_v33 = vld [vmem:[%s11321_s23 + $0x44] sm:$0xf] }
  0x24   : > { %266 = vst.msk [vmem:[#allocation2 + $0x98] sm:$0x1] %vm229_vm1, %v15924_v0  ;;  %269 = vst.msk [vmem:[#allocation2 + $0xa4] sm:$0x1] %vm229_vm1, %v15924_v0  ;;  %v513_v35 = vshll.u32 %v354_v29, 16  ;;  %v938_v36 = vrot.slane %v937_v24, 4  ;;  %v498_v42 = vor.u32 %v496_v22, %v495_v32 }
  0x25   : > { %272 = vst.msk [vmem:[#allocation2 + $0xb0] sm:$0x1] %vm229_vm1, %v15924_v0  ;;  %275 = vst.msk [vmem:[#allocation2 + $0xbc] sm:$0x1] %vm229_vm1, %v15924_v0  ;;  %v881_v12 = vld [vmem:[#allocation2 + $0x8] sm:$0x1] }
  0x26   : > { %278 = vst.msk [vmem:[#allocation2 + $0xc8] sm:$0x1] %vm229_vm1, %v15924_v0  ;;  %281 = vst.msk [vmem:[#allocation2 + $0xd4] sm:$0x1] %vm229_vm1, %v15924_v0  ;;  %v950_v20 = vshll.u32 %v881_v12, 16  ;;  %v948_v37 = vrot.slane %v947_v25, 4 }
  0x27   : > { %vm11326_vm9 = vmor %vm1539_vm4, %vm1540_vm7  ;;  %v503_v38 = vrot.slane %v501_v26, 7  ;;  %v518_v41 = vshrl.u32 %v355_v33, 16  ;;  %v499_v43 = vrot.slane %v495_v32, 4  ;;  %v512_v45 = vrot.slane %v510_v34, 7  ;;  %v755_v47 = vld [vmem:[#allocation2 + $0x6c] sm:$0xf] }
  0x28   : > { %v1545_v19 = vsel %vm11326_vm9, %v10299_v10, %v1544_v11  ;;  %vm11339_vm10 = vmor %vm927_vm2, %vm928_vm3  ;;  %v952_v30 = vrot.slane %v950_v20, 5  ;;  %v521_v46 = vshll.u32 %v355_v33, 16  ;;  %v338_v52 = vld [vmem:[%s11321_s23] sm:$0xf]  ;;  %v339_v53 = vld [vmem:[%s11321_s23 + $0x4] sm:$0xf] }
  0x29   : > { %1654 = vrot.lane.b32.xlu1 %v1545_v19, %s11162_s24  ;;  %vm11347_vm11 = vmor %vm370_vm5, %vm371_vm6  ;;  %v752_v40 = vld [vmem:[#allocation2 + $0x68] sm:$0x1]  ;;  %v943_v48 = vsel %vm11339_vm10, %v938_v36, %v942_v16  ;;  %v506_v50 = vor.u32 %v504_v27, %v503_v38  ;;  %v508_v51 = vrot.slane %v503_v38, 4  ;;  %s11163_s25 = smov 4   ;;  %v515_v55 = vor.u32 %v513_v35, %v512_v45  ;;  %v759_v61 = vld [vmem:[#allocation2 + $0x74] sm:$0x1] }
  0x2a   : > { %v15937_v31 = vsel %vm11347_vm11, 4294967295, %v15936_v31  ;;  %vm11354_vm12 = vmand %vm226_vm0, %vm695_vm8  ;;  %v953_v49 = vsel %vm11339_vm10, %v948_v37, %v952_v30  ;;  %1314 = vrot.lane.b32.xlu0 %v943_v48, %s11163_s25  ;;  %v516_v56 = vrot.slane %v512_v45, 4  ;;  %v520_v57 = vrot.slane %v518_v41, 7  ;;  %v340_v58 = vld [vmem:[%s11321_s23 + $0x8] sm:$0xf]  ;;  %s11164_s7 = smov 16  }
  0x2b   : > { %15938 = vst [vmem:[#allocation6_spill] sm:$0xff] %v15937_v31  ;;  %vm11360_vm13 = vmand %vm229_vm1, %vm370_vm5  ;;  %v749_v54 = vsel %vm11354_vm12, %v498_v42, %v748_v28  ;;  %v507_v59 = vsel %vm11347_vm11, %v499_v43, %v506_v50  ;;  %v374_v62 = vshrl.u32 %v338_v52, 16  ;;  %v377_v63 = vshll.u32 %v338_v52, 16  ;;  %v341_v1 = vld [vmem:[%s11321_s23 + $0xc] sm:$0xf]  ;;  %s10679_s15 = sshll.u32 %s16015_s19, 8 }
  0x2c   : > { %750 = vst [vmem:[#allocation2 + $0x60] sm:$0xf] %v749_v54  ;;  %v753_v60 = vsel %vm11360_vm13, %v508_v51, %v752_v40  ;;  %751 = vst.msk [vmem:[#allocation2 + $0x64] sm:$0xf] %vm226_vm0, %v507_v59  ;;  %v523_v2 = vor.u32 %v521_v46, %v520_v57  ;;  %v756_v3 = vsel %vm11354_vm12, %v515_v55, %v755_v47  ;;  %v525_v4 = vrot.slane %v520_v57, 4  ;;  %s15666_s19 = scalar_lea.vmem %s15923_s5, %s10679_s15 }
  0x2d   : > { %754 = vst [vmem:[#allocation2 + $0x68] sm:$0x1] %v753_v60  ;;  %v382_v5 = vshrl.u32 %v339_v53, 16  ;;  %757 = vst [vmem:[#allocation2 + $0x6c] sm:$0xf] %v756_v3  ;;  %v376_v6 = vrot.slane %v374_v62, 7 }
  0x2e   : > { %v385_v7 = vshll.u32 %v339_v53, 16  ;;  %v391_v10 = vshrl.u32 %v340_v58, 16  ;;  %v394_v12 = vshll.u32 %v340_v58, 16  ;;  %v342_v13 = vld [vmem:[%s11321_s23 + $0x10] sm:$0xf]  ;;  %1316 = vrot.lane.b32.xlu0 %v953_v49, %s11163_s25  ;;  %v524_v14 = vsel %vm11347_vm11, %v516_v56, %v523_v2 }
  0x2f   : > { %v760_v15 = vsel %vm11360_vm13, %v525_v4, %v759_v61  ;;  %v384_v16 = vrot.slane %v382_v5, 7  ;;  %v697_v17 = vld [vmem:[#allocation2 + $0xc] sm:$0xf]  ;;  %v399_v18 = vshrl.u32 %v341_v1, 16  ;;  %v706_v19 = vld [vmem:[#allocation2 + $0x18] sm:$0xf]  ;;  %v379_v20 = vor.u32 %v377_v63, %v376_v6 }
  0x30   : > { %758 = vst.msk [vmem:[#allocation2 + $0x70] sm:$0xf] %vm226_vm0, %v524_v14  ;;  %761 = vst [vmem:[#allocation2 + $0x74] sm:$0x1] %v760_v15  ;;  %v380_v21 = vrot.slane %v376_v6, 4  ;;  %v393_v22 = vrot.slane %v391_v10, 7 }
  0x31   : > { %v402_v24 = vshll.u32 %v341_v1, 16  ;;  %v703_v25 = vld [vmem:[#allocation2 + $0x14] sm:$0x1]  ;;  %v387_v26 = vor.u32 %v385_v7, %v384_v16  ;;  %v401_v27 = vrot.slane %v399_v18, 7  ;;  %v389_v28 = vrot.slane %v384_v16, 4 }
  0x32   : > { %v343_v29 = vld [vmem:[%s11321_s23 + $0x14] sm:$0xf]  ;;  %v408_v30 = vshrl.u32 %v342_v13, 16  ;;  %v698_v32 = vsel %vm11354_vm12, %v379_v20, %v697_v17  ;;  %v396_v33 = vor.u32 %v394_v12, %v393_v22  ;;  %v397_v34 = vrot.slane %v393_v22, 4  ;;  %v713_v42 = vld [vmem:[#allocation2 + $0x24] sm:$0xf] }
  0x33   : > { %v411_v35 = vshll.u32 %v342_v13, 16  ;;  %v1467_v36 = vld [vmem:[#allocation2 + $0x60] sm:$0xe]  ;;  %v388_v37 = vsel %vm11347_vm11, %v380_v21, %v387_v26  ;;  %699 = vst [vmem:[#allocation2 + $0xc] sm:$0xf] %v698_v32  ;;  %v404_v38 = vor.u32 %v402_v24, %v401_v27  ;;  %v704_v40 = vsel %vm11360_vm13, %v389_v28, %v703_v25 }
  0x34   : > { %v410_v41 = vrot.slane %v408_v30, 7  ;;  %v1468_v43 = vld [vmem:[#allocation2 + $0x64] sm:$0xf]  ;;  %v10307_v45 = vrot.slane %v1467_v36, 9  ;;  %v1469_v46 = vld [vmem:[#allocation2 + $0x68] sm:$0x1]  ;;  %v707_v47 = vsel %vm11354_vm12, %v396_v33, %v706_v19 }
  0x35   : > { %700 = vst.msk [vmem:[#allocation2 + $0x10] sm:$0xf] %vm226_vm0, %v388_v37  ;;  %705 = vst [vmem:[#allocation2 + $0x14] sm:$0x1] %v704_v40  ;;  %v416_v48 = vshrl.u32 %v343_v29, 16  ;;  %v1600_v50 = vrot.slane %v1468_v43, 5  ;;  %v405_v53 = vsel %vm11347_vm11, %v397_v34, %v404_v38 }
  0x36   : > { %v710_v49 = vld [vmem:[#allocation2 + $0x20] sm:$0x1]  ;;  %v1603_v51 = vrot.slane %v1469_v46, 5  ;;  %v1470_v52 = vld [vmem:[#allocation2 + $0x6c] sm:$0xe]  ;;  %v413_v54 = vor.u32 %v411_v35, %v410_v41  ;;  %v414_v57 = vrot.slane %v410_v41, 4 }
  0x37   : > { %708 = vst [vmem:[#allocation2 + $0x18] sm:$0xf] %v707_v47  ;;  %v11401_v55 = vld [vmem:[#allocation2 + $0x64] sm:$0xf]  ;;  %v10308_v56 = vrot.slane %v1470_v52, 9  ;;  %v11404_v58 = vrot.slane %v416_v48, 7  ;;  %v1601_v61 = vsel %vm11326_vm9, %v10307_v45, %v1600_v50 }
  0x38   : > { %709 = vst.msk [vmem:[#allocation2 + $0x1c] sm:$0xf] %vm226_vm0, %v405_v53  ;;  %v419_v59 = vshll.u32 %v343_v29, 16  ;;  %v11406_v60 = vld [vmem:[#allocation2 + $0x68] sm:$0x1]  ;;  %v1602_v62 = vrot.slane %v1600_v50, 4  ;;  %v714_v2 = vsel %vm11354_vm12, %v413_v54, %v713_v42  ;;  %1686 = vrot.lane.b32.xlu1 %v1601_v61, %s11162_s24 }
  0x39   : > { %v1471_v63 = vld [vmem:[#allocation2 + $0x70] sm:$0xf]  ;;  %v1472_v1 = vld [vmem:[#allocation2 + $0x74] sm:$0x1]  ;;  %v406_v3 = vrot.slane %v401_v27, 4  ;;  %v1132_v7 = vshll.u32 %v11401_v55, 16 }
  0x3a   : > { %v1607_v4 = vrot.slane %v1471_v63, 5  ;;  %v1610_v5 = vrot.slane %v1472_v1, 5  ;;  %v421_v6 = vor.u32 %v419_v59, %v11404_v58  ;;  %715 = vst [vmem:[#allocation2 + $0x24] sm:$0xf] %v714_v2  ;;  %v1604_v10 = vsel %vm11326_vm9, %v1602_v62, %v1603_v51  ;;  %v882_v17 = vld [vmem:[#allocation2 + $0xc] sm:$0xf] }
  0x3b   : > { %v711_v12 = vsel %vm11360_vm13, %v406_v3, %v710_v49  ;;  %v1136_v13 = vshrl.u32 %v11401_v55, 16  ;;  %v1142_v14 = vshll.u32 %v11406_v60, 16  ;;  %1688 = vrot.lane.b32.xlu0 %v1604_v10, %s11162_s24  ;;  %v11426_v19 = vrot.slane %v1132_v7, 5  ;;  %v903_v2 = vld [vmem:[#allocation2 + $0x60] sm:$0xf] }
  0x3c   : > { %v1608_v15 = vsel %vm11326_vm9, %v10308_v56, %v1607_v4  ;;  %v1609_v16 = vrot.slane %v1607_v4, 4  ;;  %v422_v18 = vsel %vm11347_vm11, %v414_v57, %v421_v6  ;;  %712 = vst [vmem:[#allocation2 + $0x20] sm:$0x1] %v711_v12  ;;  %v883_v20 = vld [vmem:[#allocation2 + $0x10] sm:$0xf]  ;;  %v955_v21 = vshrl.u32 %v882_v17, 16 }
  0x3d   : > { %v958_v22 = vshll.u32 %v882_v17, 16  ;;  %v884_v24 = vld [vmem:[#allocation2 + $0x14] sm:$0x1]  ;;  %716 = vst.msk [vmem:[#allocation2 + $0x28] sm:$0xf] %vm226_vm0, %v422_v18  ;;  %1690 = vrot.lane.b32.xlu1 %v1608_v15, %s11162_s24  ;;  %v964_v26 = vshll.u32 %v883_v20, 16 }
  0x3e   : > { %v1611_v25 = vsel %vm11326_vm9, %v1609_v16, %v1610_v5  ;;  %v968_v27 = vshrl.u32 %v883_v20, 16  ;;  %v885_v28 = vld [vmem:[#allocation2 + $0x18] sm:$0xf]  ;;  %v974_v29 = vshll.u32 %v884_v24, 16  ;;  %v957_v30 = vrot.slane %v955_v21, 4 }
  0x3f   : > { %v960_v32 = vrot.slane %v958_v22, 5  ;;  %v886_v33 = vld [vmem:[#allocation2 + $0x1c] sm:$0xf]  ;;  %v979_v34 = vshrl.u32 %v885_v28, 16  ;;  %v982_v35 = vshll.u32 %v885_v28, 16  ;;  %1692 = vrot.lane.b32.xlu0 %v1611_v25, %s11162_s24  ;;  %v966_v36 = vrot.slane %v964_v26, 5 }
  0x40   : > { %v988_v37 = vshll.u32 %v886_v33, 16  ;;  %v992_v38 = vshrl.u32 %v886_v33, 16  ;;  %v970_v40 = vrot.slane %v968_v27, 4  ;;  %v976_v45 = vrot.slane %v974_v29, 5  ;;  %v907_v7 = vld [vmem:[#allocation2 + $0x70] sm:$0xf] }
  0x41   : > { %v961_v41 = vor.u32 %v960_v32, %v957_v30  ;;  %v981_v42 = vrot.slane %v979_v34, 4  ;;  %v984_v43 = vrot.slane %v982_v35, 5  ;;  %v888_v46 = vld [vmem:[#allocation2 + $0x24] sm:$0xf]  ;;  %v1138_v55 = vrot.slane %v1136_v13, 4 }
  0x42   : > { %v990_v47 = vrot.slane %v988_v37, 5  ;;  %v971_v48 = vor.u32 %v970_v40, %v966_v36  ;;  %v1003_v49 = vshrl.u32 %v888_v46, 16  ;;  %v1006_v50 = vshll.u32 %v888_v46, 16  ;;  %v908_v10 = vld [vmem:[#allocation2 + $0x74] sm:$0x1] }
  0x43   : > { %v962_v51 = vrot.slane %v961_v41, 4  ;;  %v985_v52 = vor.u32 %v984_v43, %v981_v42  ;;  %v887_v53 = vld [vmem:[#allocation2 + $0x20] sm:$0x1]  ;;  %v994_v54 = vrot.slane %v992_v38, 4  ;;  %v1139_v15 = vor.u32 %v1138_v55, %v11426_v19  ;;  %v906_v27 = vld [vmem:[#allocation2 + $0x6c] sm:$0xf] }
  0x44   : > { %v972_v56 = vrot.slane %v971_v48, 4  ;;  %v11433_v57 = vld [vmem:[#allocation2 + $0x28] sm:$0xf]  ;;  %v1005_v59 = vrot.slane %v1003_v49, 4  ;;  %v1008_v60 = vrot.slane %v1006_v50, 5  ;;  %v998_v61 = vshll.u32 %v887_v53, 16 }
  0x45   : > { %v967_v62 = vsel %vm11339_vm10, %v962_v51, %v966_v36  ;;  %v986_v63 = vrot.slane %v985_v52, 4  ;;  %v1012_v1 = vshll.u32 %v11433_v57, 16  ;;  %v995_v5 = vor.u32 %v994_v54, %v990_v47  ;;  %v1445_v34 = vld [vmem:[#allocation2 + $0x8] sm:$0x1]  ;;  %v1446_v38 = vld [vmem:[#allocation2 + $0xc] sm:$0xe] }
  0x46   : > { %1318 = vrot.lane.b32.xlu1 %v967_v62, %s11163_s25  ;;  %v977_v3 = vsel %vm11339_vm10, %v972_v56, %v976_v45  ;;  %v1009_v4 = vor.u32 %v1008_v60, %v1005_v59  ;;  %v1000_v6 = vrot.slane %v998_v61, 5  ;;  %v1144_v16 = vrot.slane %v1142_v14, 5  ;;  %v1447_v40 = vld [vmem:[#allocation2 + $0x10] sm:$0xf]  ;;  %v356_v45 = vld [vmem:[%s11321_s23 + $0x48] sm:$0xf] }
  0x47   : > { %v991_v12 = vsel %vm11339_vm10, %v986_v63, %v990_v47  ;;  %v11443_v13 = vrot.slane %v1012_v1, 5  ;;  %v996_v18 = vrot.slane %v995_v5, 4  ;;  %v1123_v20 = vshrl.u32 %v903_v2, 16  ;;  %v357_v46 = vld [vmem:[%s11321_s23 + $0x4c] sm:$0xf] }
  0x48   : > { %1322 = vrot.lane.b32.xlu0 %v991_v12, %s11163_s25  ;;  %v1010_v17 = vrot.slane %v1009_v4, 4  ;;  %v1126_v21 = vshll.u32 %v903_v2, 16  ;;  %v1140_v22 = vrot.slane %v1139_v15, 4  ;;  %v1156_v24 = vshll.u32 %v907_v7, 16  ;;  %v1448_v51 = vld [vmem:[#allocation2 + $0x14] sm:$0x1] }
  0x49   : > { %v1160_v25 = vshrl.u32 %v907_v7, 16  ;;  %v1166_v26 = vshll.u32 %v908_v10, 16  ;;  %v1125_v29 = vrot.slane %v1123_v20, 4  ;;  %v1001_v30 = vsel %vm11339_vm10, %v996_v18, %v1000_v6  ;;  %v358_v56 = vld [vmem:[%s11321_s23 + $0x50] sm:$0xf] }
  0x4a   : > { %1320 = vrot.lane.b32.xlu1 %v977_v3, %s11163_s25  ;;  %v1015_v28 = vsel %vm11339_vm10, %v1010_v17, %v11443_v13  ;;  %v1128_v14 = vrot.slane %v1126_v21, 5  ;;  %v1158_v32 = vrot.slane %v1156_v24, 5  ;;  %v1147_v36 = vshrl.u32 %v906_v27, 16  ;;  %v359_v63 = vld [vmem:[%s11321_s23 + $0x54] sm:$0xf] }
  0x4b   : > { %v1162_v33 = vrot.slane %v1160_v25, 4  ;;  %v1150_v37 = vshll.u32 %v906_v27, 16  ;;  %v1145_v41 = vsel %vm11339_vm10, %v1140_v22, %v1144_v16  ;;  %v1168_v43 = vrot.slane %v1166_v26, 5  ;;  %v762_v10 = vld [vmem:[#allocation2 + $0x78] sm:$0xf] }
  0x4c   : > { %1326 = vrot.lane.b32.xlu0 %v1015_v28, %s11163_s25  ;;  %v1129_v35 = vor.u32 %v1128_v14, %v1125_v29  ;;  %v1149_v48 = vrot.slane %v1147_v36, 4  ;;  %v1546_v50 = vrot.slane %v1544_v11, 4  ;;  %v1547_v53 = vrot.slane %v1445_v34, 5  ;;  %v766_v20 = vld [vmem:[#allocation2 + $0x80] sm:$0x1] }
  0x4d   : > { %v1163_v42 = vor.u32 %v1162_v33, %v1158_v32  ;;  %v1152_v49 = vrot.slane %v1150_v37, 5  ;;  %v10300_v54 = vrot.slane %v1446_v38, 9  ;;  %v1551_v55 = vrot.slane %v1447_v40, 5  ;;  %v769_v27 = vld [vmem:[#allocation2 + $0x84] sm:$0xf] }
  0x4e   : > { %1324 = vrot.lane.b32.xlu1 %v1001_v30, %s11163_s25  ;;  %v1130_v47 = vrot.slane %v1129_v35, 4  ;;  %v527_v61 = vshrl.u32 %v356_v45, 16  ;;  %v530_v62 = vshll.u32 %v356_v45, 16  ;;  %v1554_v11 = vrot.slane %v1448_v51, 5  ;;  %v717_v38 = vld [vmem:[#allocation2 + $0x2c] sm:$0x1] }
  0x4f   : > { %v1164_v52 = vrot.slane %v1163_v42, 4  ;;  %v1153_v60 = vor.u32 %v1152_v49, %v1149_v48  ;;  %v535_v1 = vshrl.u32 %v357_v46, 16  ;;  %v538_v2 = vshll.u32 %v357_v46, 16  ;;  %v1905_v45 = vld [vmem:[#allocation2 + $0x6c] sm:$0xf] }
  0x50   : > { %1348 = vrot.lane.b32.xlu0 %v1145_v41, %s11163_s25  ;;  %v1135_v59 = vsel %vm11339_vm10, %v1130_v47, %v11426_v19  ;;  %v529_v4 = vrot.slane %v527_v61, 7  ;;  %v544_v5 = vshrl.u32 %v358_v56, 16  ;;  %v547_v6 = vshll.u32 %v358_v56, 16  ;;  %v1906_v47 = vld [vmem:[#allocation2 + $0x70] sm:$0xf] }
  0x51   : > { %v1169_v8 = vsel %vm11339_vm10, %v1164_v52, %v1168_v43  ;;  %v1154_v3 = vrot.slane %v1153_v60, 4  ;;  %v1548_v7 = vsel %vm11326_vm9, %v1546_v50, %v1547_v53  ;;  %v537_v19 = vrot.slane %v535_v1, 7 }
  0x52   : > { %1346 = vrot.lane.b32.xlu1 %v1135_v59, %s11163_s25  ;;  %v552_v12 = vshrl.u32 %v359_v63, 16  ;;  %v555_v15 = vshll.u32 %v359_v63, 16  ;;  %v532_v17 = vor.u32 %v530_v62, %v529_v4  ;;  %v533_v18 = vrot.slane %v529_v4, 4 }
  0x53   : > { %v1159_v16 = vsel %vm11339_vm10, %v1154_v3, %v1158_v32  ;;  %v546_v21 = vrot.slane %v544_v5, 7  ;;  %v1553_v22 = vrot.slane %v1551_v55, 4  ;;  %v540_v24 = vor.u32 %v538_v2, %v537_v19  ;;  %v773_v32 = vld [vmem:[#allocation2 + $0x8c] sm:$0x1] }
  0x54   : > { %1352 = vrot.lane.b32.xlu0 %v1169_v8, %s11163_s25  ;;  %v542_v25 = vrot.slane %v537_v19, 4  ;;  %v554_v26 = vrot.slane %v552_v12, 7  ;;  %v1552_v28 = vsel %vm11326_vm9, %v10300_v54, %v1551_v55  ;;  %v763_v29 = vsel %vm11354_vm12, %v532_v17, %v762_v10 }
  0x55   : > { %v549_v14 = vor.u32 %v547_v6, %v546_v21  ;;  %v550_v30 = vrot.slane %v546_v21, 4  ;;  %v541_v33 = vsel %vm11347_vm11, %v533_v18, %v540_v24  ;;  %764 = vst [vmem:[#allocation2 + $0x78] sm:$0xf] %v763_v29  ;;  %v1555_v40 = vsel %vm11326_vm9, %v1553_v22, %v1554_v11 }
  0x56   : > { %1350 = vrot.lane.b32.xlu1 %v1159_v16, %s11163_s25  ;;  %v767_v34 = vsel %vm11360_vm13, %v542_v25, %v766_v20  ;;  %v557_v35 = vor.u32 %v555_v15, %v554_v26  ;;  %v559_v36 = vrot.slane %v554_v26, 4  ;;  %765 = vst.msk [vmem:[#allocation2 + $0x7c] sm:$0xf] %vm226_vm0, %v541_v33  ;;  %v423_v43 = vrot.slane %v11404_v58, 4 }
  0x57   : > { %768 = vst [vmem:[#allocation2 + $0x80] sm:$0x1] %v767_v34  ;;  %v770_v37 = vsel %vm11354_vm12, %v549_v14, %v769_v27  ;;  %v1016_v48 = vshrl.u32 %v11433_v57, 16  ;;  %v2122_v50 = vshrl.u32 %v1905_v45, 16  ;;  %v2125_v51 = vshll.u32 %v1905_v45, 16 }
  0x58   : > { %1656 = vrot.lane.b32.xlu0 %v1548_v7, %s11162_s24  ;;  %v558_v41 = vsel %vm11347_vm11, %v550_v30, %v557_v35  ;;  %771 = vst [vmem:[#allocation2 + $0x84] sm:$0xf] %v770_v37  ;;  %v774_v42 = vsel %vm11360_vm13, %v559_v36, %v773_v32  ;;  %v718_v46 = vsel %vm11360_vm13, %v423_v43, %v717_v38  ;;  %v2131_v61 = vshll.u32 %v1906_v47, 16  ;;  %v1449_v57 = vld [vmem:[#allocation2 + $0x18] sm:$0xe] }
  0x59   : > { %772 = vst.msk [vmem:[#allocation2 + $0x88] sm:$0xf] %vm226_vm0, %v558_v41  ;;  %775 = vst [vmem:[#allocation2 + $0x8c] sm:$0x1] %v774_v42  ;;  %v2135_v6 = vshrl.u32 %v1906_v47, 16  ;;  %v2124_v25 = vrot.slane %v2122_v50, 4 }
  0x5a   : > { %1658 = vrot.lane.b32.xlu1 %v1552_v28, %s11162_s24  ;;  %719 = vst [vmem:[#allocation2 + $0x2c] sm:$0x1] %v718_v46  ;;  %v2127_v36 = vrot.slane %v2125_v51, 5  ;;  %v11506_v37 = vrot.slane %v2131_v61, 5  ;;  %v1907_v46 = vld [vmem:[#allocation2 + $0x74] sm:$0x1] }
  0x5b   : > { %v2137_v38 = vrot.slane %v2135_v6, 4  ;;  %vm1410_vm14 = vcmask 60448   ;;  %vm1750_vm15 = vcmask 93248   ;;  %vm2946_vm1 = vcmask 1045504  }
  0x5c   : > { %1660 = vrot.lane.b32.xlu0 %v1555_v40, %s11162_s24  ;;  %v909_v49 = vld [vmem:[#allocation2 + $0x78] sm:$0xf]  ;;  %vm2897_vm2 = vcmask 97280   ;;  %vm282_vm3 = vcmask 60416   ;;  %vm285_vm4 = vcmask 57344   ;;  %vm6299_vm6 = vcmask 191616  }
  0x5d   : > { %v910_v52 = vld [vmem:[#allocation2 + $0x7c] sm:$0xf]  ;;  %v1171_v58 = vshrl.u32 %v909_v49, 16  ;;  %v1174_v53 = vshll.u32 %v909_v49, 16  ;;  %v1473_v27 = vld [vmem:[#allocation2 + $0x78] sm:$0xe]  ;;  %vm13161_vm7 = vmand %vm282_vm3, %vm695_vm8 }
  0x5e   : > { %v911_v54 = vld [vmem:[#allocation2 + $0x80] sm:$0x1]  ;;  %v1180_v55 = vshll.u32 %v910_v52, 16  ;;  %v1184_v56 = vshrl.u32 %v910_v52, 16  ;;  %v1474_v15 = vld [vmem:[#allocation2 + $0x7c] sm:$0xf]  ;;  %vm13181_vm8 = vmand %vm285_vm4, %vm370_vm5 }
  0x5f   : > { %v1190_v59 = vshll.u32 %v911_v54, 16  ;;  %v912_v60 = vld [vmem:[#allocation2 + $0x84] sm:$0xf]  ;;  %v1173_v62 = vrot.slane %v1171_v58, 4  ;;  %v1176_v63 = vrot.slane %v1174_v53, 5  ;;  %v1614_v28 = vrot.slane %v1474_v15, 5 }
  0x60   : > { %v913_v8 = vld [vmem:[#allocation2 + $0x88] sm:$0xf]  ;;  %v1195_v11 = vshrl.u32 %v912_v60, 16  ;;  %v1198_v1 = vshll.u32 %v912_v60, 16  ;;  %v1182_v2 = vrot.slane %v1180_v55, 5  ;;  %v1186_v3 = vrot.slane %v1184_v56, 4 }
  0x61   : > { %v1204_v4 = vshll.u32 %v913_v8, 16  ;;  %v914_v5 = vld [vmem:[#allocation2 + $0x8c] sm:$0x1]  ;;  %v1177_v7 = vor.u32 %v1176_v63, %v1173_v62  ;;  %v1208_v12 = vshrl.u32 %v913_v8, 16  ;;  %v1192_v17 = vrot.slane %v1190_v59, 5 }
  0x62   : > { %v1197_v19 = vrot.slane %v1195_v11, 4  ;;  %v1200_v10 = vrot.slane %v1198_v1, 5  ;;  %v1187_v16 = vor.u32 %v1186_v3, %v1182_v2  ;;  %v1214_v20 = vshll.u32 %v914_v5, 16  ;;  %v1475_v29 = vld [vmem:[#allocation2 + $0x80] sm:$0x1] }
  0x63   : > { %v1206_v18 = vrot.slane %v1204_v4, 5  ;;  %v1178_v21 = vrot.slane %v1177_v7, 4  ;;  %v1210_v24 = vrot.slane %v1208_v12, 4  ;;  %v1477_v34 = vld [vmem:[#allocation2 + $0x88] sm:$0xf]  ;;  %v10309_v43 = vrot.slane %v1473_v27, 9 }
  0x64   : > { %v1201_v22 = vor.u32 %v1200_v10, %v1197_v19  ;;  %v1188_v26 = vrot.slane %v1187_v16, 4  ;;  %v1216_v33 = vrot.slane %v1214_v20, 5  ;;  %v1908_v40 = vld [vmem:[#allocation2 + $0x78] sm:$0xf]  ;;  %v1617_v45 = vrot.slane %v1475_v29, 5 }
  0x65   : > { %v1183_v14 = vsel %vm11339_vm10, %v1178_v21, %v1182_v2  ;;  %v1211_v32 = vor.u32 %v1210_v24, %v1206_v18  ;;  %v1616_v47 = vrot.slane %v1614_v28, 4  ;;  %v1476_v49 = vld [vmem:[#allocation2 + $0x84] sm:$0xe]  ;;  %v1621_v50 = vrot.slane %v1477_v34, 5  ;;  %v1909_v52 = vld [vmem:[#allocation2 + $0x7c] sm:$0xf] }
  0x66   : > { %v1202_v30 = vrot.slane %v1201_v22, 4  ;;  %1354 = vrot.lane.b32.xlu1 %v1183_v14, %s11163_s25  ;;  %v1193_v35 = vsel %vm11339_vm10, %v1188_v26, %v1192_v17  ;;  %v1478_v58 = vld [vmem:[#allocation2 + $0x8c] sm:$0x1]  ;;  %v2146_v53 = vshrl.u32 %v1908_v40, 16  ;;  %v2149_v54 = vshll.u32 %v1908_v40, 16 }
  0x67   : > { %1356 = vrot.lane.b32.xlu0 %v1193_v35, %s11163_s25  ;;  %v1212_v42 = vrot.slane %v1211_v32, 4  ;;  %v2128_v55 = vor.u32 %v2127_v36, %v2124_v25  ;;  %v2141_v56 = vshll.u32 %v1907_v46, 16  ;;  %v1018_v59 = vrot.slane %v1016_v48, 4  ;;  %v11519_v62 = vld [vmem:[#allocation2 + $0x1c] sm:$0xf] }
  0x68   : > { %v1207_v41 = vsel %vm11339_vm10, %v1202_v30, %v1206_v18  ;;  %v1615_v60 = vsel %vm11326_vm9, %v10309_v43, %v1614_v28  ;;  %v10310_v61 = vrot.slane %v1476_v49, 9  ;;  %v2155_v63 = vshll.u32 %v1909_v52, 16  ;;  %v890_v4 = vld [vmem:[#allocation2 + $0x2c] sm:$0x1]  ;;  %v11524_v48 = vld [vmem:[#allocation2 + $0x20] sm:$0x1] }
  0x69   : > { %v1217_v51 = vsel %vm11339_vm10, %v1212_v42, %v1216_v33  ;;  %v2159_v8 = vshrl.u32 %v1909_v52, 16  ;;  %v1618_v11 = vsel %vm11326_vm9, %v1616_v47, %v1617_v45  ;;  %v1623_v1 = vrot.slane %v1621_v50, 4  ;;  %v11526_v7 = vld [vmem:[#allocation2 + $0x6c] sm:$0xe]  ;;  %v11528_v19 = vld [vmem:[#allocation2 + $0x70] sm:$0xf] }
  0x6a   : > { %1358 = vrot.lane.b32.xlu1 %v1207_v41, %s11163_s25  ;;  %v1624_v2 = vrot.slane %v1478_v58, 5  ;;  %v2138_v3 = vor.u32 %v2137_v38, %v11506_v37  ;;  %v2148_v5 = vrot.slane %v2146_v53, 4  ;;  %v2151_v6 = vrot.slane %v2149_v54, 5  ;;  %v1881_v17 = vld [vmem:[#allocation2 + $0xc] sm:$0xf] }
  0x6b   : > { %1360 = vrot.lane.b32.xlu0 %v1217_v51, %s11163_s25  ;;  %v2129_v10 = vrot.slane %v2128_v55, 4  ;;  %v2143_v12 = vrot.slane %v2141_v56, 5  ;;  %v1019_v15 = vor.u32 %v1018_v59, %v11443_v13  ;;  %v1558_v16 = vrot.slane %v11519_v62, 5  ;;  %v2467_v24 = vld [vmem:[#allocation2 + $0x74] sm:$0x1] }
  0x6c   : > { %v1622_v18 = vsel %vm11326_vm9, %v10310_v61, %v1621_v50  ;;  %v1022_v20 = vshll.u32 %v890_v4, 16  ;;  %v11536_v21 = vrot.slane %v2155_v63, 5  ;;  %v2161_v22 = vrot.slane %v2159_v8, 4  ;;  %v1452_v25 = vld [vmem:[#allocation2 + $0x24] sm:$0xe] }
  0x6d   : > { %v1625_v26 = vsel %vm11326_vm9, %v1623_v1, %v1624_v2  ;;  %v2139_v27 = vrot.slane %v2138_v3, 4  ;;  %v1910_v28 = vld [vmem:[#allocation2 + $0x80] sm:$0x1]  ;;  %v2595_v13 = vrot.slane %v11528_v19, 5  ;;  %v10301_v14 = vrot.slane %v1449_v57, 9 }
  0x6e   : > { %1694 = vrot.lane.b32.xlu1 %v1615_v60, %s11162_s24  ;;  %v815_v29 = vld [vmem:[#allocation2] sm:$0xf]  ;;  %v2152_v30 = vor.u32 %v2151_v6, %v2148_v5  ;;  %v1930_v32 = vshrl.u32 %v1881_v17, 16  ;;  %v1933_v33 = vshll.u32 %v1881_v17, 16  ;;  %v816_v34 = vld [vmem:[#allocation2 + $0x4] sm:$0xf]  ;;  %v2134_v35 = vsel %vm11339_vm10, %v2129_v10, %v11506_v37 }
  0x6f   : > { %1696 = vrot.lane.b32.xlu0 %v1618_v11, %s11162_s24  ;;  %847 = vst.msk [vmem:[#allocation4] sm:$0xf] %vm226_vm0, %v815_v29  ;;  %v1560_v36 = vrot.slane %v1558_v16, 4  ;;  %v1561_v38 = vrot.slane %v11524_v48, 5  ;;  %v10323_v40 = vrot.slane %v11526_v7, 9  ;;  %v1020_v42 = vrot.slane %v1019_v15, 4 }
  0x70   : > { %v1453_v41 = vld [vmem:[#allocation2 + $0x28] sm:$0xf]  ;;  %848 = vst.msk [vmem:[#allocation4 + $0x4] sm:$0xf] %vm226_vm0, %v816_v34  ;;  %v1024_v43 = vrot.slane %v1022_v20, 5  ;;  %v2162_v45 = vor.u32 %v2161_v22, %v11536_v21  ;;  %v2165_v46 = vshll.u32 %v1910_v28, 16  ;;  %v2144_v37 = vsel %vm11339_vm10, %v2139_v27, %v2143_v12 }
  0x71   : > { %v1882_v47 = vld [vmem:[#allocation2 + $0x10] sm:$0xf]  ;;  %v2597_v49 = vrot.slane %v2595_v13, 4  ;;  %v2598_v50 = vrot.slane %v2467_v24, 5  ;;  %v10302_v52 = vrot.slane %v1452_v25, 9  ;;  %v11553_v51 = vrot.slane %v2152_v30, 4 }
  0x72   : > { %1698 = vrot.lane.b32.xlu1 %v1622_v18, %s11162_s24  ;;  %v1565_v58 = vrot.slane %v1453_v41, 5  ;;  %v11555_v53 = vld [vmem:[#allocation2 + $0x2c] sm:$0x1]  ;;  %v1932_v54 = vrot.slane %v1930_v32, 4  ;;  %v1935_v55 = vrot.slane %v1933_v33, 5  ;;  %v1939_v56 = vshll.u32 %v1882_v47, 16 }
  0x73   : > { %1700 = vrot.lane.b32.xlu0 %v1625_v26, %s11162_s24  ;;  %v1943_v59 = vshrl.u32 %v1882_v47, 16  ;;  %v11558_v60 = vld [vmem:[#allocation2 + $0x14] sm:$0x1]  ;;  %v11560_v61 = vld [vmem:[#allocation2 + $0x18] sm:$0xf]  ;;  %v1025_v63 = vsel %vm11339_vm10, %v1020_v42, %v1024_v43  ;;  %v1559_v8 = vsel %vm11326_vm9, %v10301_v14, %v1558_v16  ;;  %v11568_v11 = vrot.slane %v2162_v45, 4 }
  0x74   : > { %v360_v62 = vld [vmem:[%s11321_s23 + $0x58] sm:$0xf]  ;;  %v11570_v1 = vrot.slane %v2165_v46, 5  ;;  %v11572_v2 = vld [vmem:[#allocation2 + $0x1c] sm:$0xf]  ;;  %v1562_v57 = vsel %vm11326_vm9, %v1560_v36, %v1561_v38  ;;  %v11579_v48 = vsel %vm11326_vm9, %v10323_v40, %v2595_v13  ;;  %v11583_v5 = vsel %vm11326_vm9, %v2597_v49, %v2598_v50 }
  0x75   : > { %v361_v3 = vld [vmem:[%s11321_s23 + $0x5c] sm:$0xf]  ;;  %v817_v4 = vld [vmem:[#allocation2 + $0xc] sm:$0xf]  ;;  %v1568_v6 = vrot.slane %v11555_v53, 5  ;;  %v2158_v10 = vsel %vm11339_vm10, %v11553_v51, %v11536_v21  ;;  %v11594_v12 = vsel %vm11326_vm9, %v10302_v52, %v1565_v58  ;;  %v11596_v15 = vrot.slane %v1565_v58, 4 }
  0x76   : > { %2345 = vrot.lane.b32.xlu1 %v2134_v35, %s11163_s25  ;;  %v362_v7 = vld [vmem:[%s11321_s23 + $0x60] sm:$0xf]  ;;  %849 = vst.msk [vmem:[#allocation4 + $0x8] sm:$0xf] %vm226_vm0, %v817_v4  ;;  %v819_v19 = vld [vmem:[#allocation2 + $0x18] sm:$0xf]  ;;  %v1936_v16 = vor.u32 %v1935_v55, %v1932_v54  ;;  %v2168_v26 = vsel %vm11339_vm10, %v11568_v11, %v11570_v1 }
  0x77   : > { %2347 = vrot.lane.b32.xlu0 %v2144_v37, %s11163_s25  ;;  %851 = vst.msk [vmem:[#allocation4 + $0x10] sm:$0xf] %vm226_vm0, %v819_v19  ;;  %v818_v17 = vld [vmem:[#allocation2 + $0x10] sm:$0xf]  ;;  %v821_v18 = vld [vmem:[#allocation2 + $0x24] sm:$0xf] }
  0x78   : > { %v11600_v20 = vrot.slane %v1939_v56, 5  ;;  %v11602_v22 = vrot.slane %v1943_v59, 4  ;;  %v561_v24 = vshrl.u32 %v360_v62, 16  ;;  %v564_v21 = vshll.u32 %v360_v62, 16  ;;  %v363_v25 = vld [vmem:[%s11321_s23 + $0x64] sm:$0xf] }
  0x79   : > { %850 = vst.msk [vmem:[#allocation4 + $0xc] sm:$0xf] %vm226_vm0, %v818_v17  ;;  %853 = vst.msk [vmem:[#allocation4 + $0x18] sm:$0xf] %vm226_vm0, %v821_v18  ;;  %v1949_v27 = vshll.u32 %v11558_v60, 16  ;;  %v1954_v28 = vshrl.u32 %v11560_v61, 16 }
  0x7a   : > { %1328 = vrot.lane.b32.xlu1 %v1025_v63, %s11163_s25  ;;  %v569_v13 = vshrl.u32 %v361_v3, 16  ;;  %v776_v29 = vld [vmem:[#allocation2 + $0x90] sm:$0xf]  ;;  %v344_v14 = vld [vmem:[%s11321_s23 + $0x18] sm:$0xf]  ;;  %v1957_v30 = vshll.u32 %v11560_v61, 16  ;;  %v1946_v45 = vor.u32 %v11602_v22, %v11600_v20 }
  0x7b   : > { %1662 = vrot.lane.b32.xlu0 %v1559_v8, %s11162_s24  ;;  %v1963_v32 = vshll.u32 %v11572_v2, 16  ;;  %v563_v33 = vrot.slane %v561_v24, 7  ;;  %v572_v34 = vshll.u32 %v361_v3, 16  ;;  %v780_v35 = vld [vmem:[#allocation2 + $0x98] sm:$0x1]  ;;  %v11617_v38 = vrot.slane %v1936_v16, 4 }
  0x7c   : > { %v820_v36 = vld [vmem:[#allocation2 + $0x1c] sm:$0xf]  ;;  %v571_v40 = vrot.slane %v569_v13, 7  ;;  %v578_v41 = vshrl.u32 %v362_v7, 16  ;;  %v581_v42 = vshll.u32 %v362_v7, 16  ;;  %v586_v37 = vshrl.u32 %v363_v25, 16 }
  0x7d   : > { %852 = vst.msk [vmem:[#allocation4 + $0x14] sm:$0xf] %vm226_vm0, %v820_v36  ;;  %v832_v43 = vld [vmem:[#allocation2 + $0x64] sm:$0xf]  ;;  %v566_v46 = vor.u32 %v564_v21, %v563_v33  ;;  %v567_v47 = vrot.slane %v563_v33, 4  ;;  %v589_v54 = vshll.u32 %v363_v25, 16 }
  0x7e   : > { %1664 = vrot.lane.b32.xlu1 %v1562_v57, %s11162_s24  ;;  %864 = vst.msk [vmem:[#allocation4 + $0x44] sm:$0xf] %vm226_vm0, %v832_v43  ;;  %v831_v49 = vld [vmem:[#allocation2 + $0x60] sm:$0xf]  ;;  %v834_v50 = vld [vmem:[#allocation2 + $0x70] sm:$0xf]  ;;  %v574_v52 = vor.u32 %v572_v34, %v571_v40 }
  0x7f   : > { %2349 = vrot.lane.b32.xlu0 %v2158_v10, %s11163_s25  ;;  %v576_v51 = vrot.slane %v571_v40, 4  ;;  %v580_v58 = vrot.slane %v578_v41, 7  ;;  %v345_v55 = vld [vmem:[%s11321_s23 + $0x1c] sm:$0xf]  ;;  %863 = vst.msk [vmem:[#allocation4 + $0x40] sm:$0xf] %vm226_vm0, %v831_v49  ;;  %v777_v56 = vsel %vm11354_vm12, %v566_v46, %v776_v29 }
  0x80   : > { %866 = vst.msk [vmem:[#allocation4 + $0x4c] sm:$0xf] %vm226_vm0, %v834_v50  ;;  %v588_v59 = vrot.slane %v586_v37, 7  ;;  %v783_v61 = vld [vmem:[#allocation2 + $0x9c] sm:$0xf]  ;;  %v425_v62 = vshrl.u32 %v344_v14, 16  ;;  %v575_v8 = vsel %vm11347_vm11, %v567_v47, %v574_v52 }
  0x81   : > { %v428_v63 = vshll.u32 %v344_v14, 16  ;;  %778 = vst [vmem:[#allocation2 + $0x90] sm:$0xf] %v777_v56  ;;  %v781_v11 = vsel %vm11360_vm13, %v576_v51, %v780_v35  ;;  %v583_v1 = vor.u32 %v581_v42, %v580_v58  ;;  %v584_v3 = vrot.slane %v580_v58, 4  ;;  %v787_v4 = vld [vmem:[#allocation2 + $0xa4] sm:$0x1] }
  0x82   : > { %v833_v57 = vld [vmem:[#allocation2 + $0x6c] sm:$0xf]  ;;  %2351 = vrot.lane.b32.xlu1 %v2168_v26, %s11163_s25  ;;  %v11635_v7 = vld [vmem:[#allocation2 + $0x7c] sm:$0xf]  ;;  %779 = vst.msk [vmem:[#allocation2 + $0x94] sm:$0xf] %vm226_vm0, %v575_v8  ;;  %v591_v19 = vor.u32 %v589_v54, %v588_v59 }
  0x83   : > { %782 = vst [vmem:[#allocation2 + $0x98] sm:$0x1] %v781_v11  ;;  %v593_v10 = vrot.slane %v588_v59, 4  ;;  %v427_v16 = vrot.slane %v425_v62, 7  ;;  %v433_v17 = vshrl.u32 %v345_v55, 16  ;;  %2681 = vrot.lane.b32.xlu0 %v11579_v48, %s11162_s24  ;;  %v1956_v18 = vrot.slane %v1954_v28, 4 }
  0x84   : > { %865 = vst.msk [vmem:[#allocation4 + $0x48] sm:$0xf] %vm226_vm0, %v833_v57  ;;  %v1967_v24 = vshrl.u32 %v11572_v2, 16  ;;  %v784_v21 = vsel %vm11354_vm12, %v583_v1, %v783_v61  ;;  %v436_v25 = vshll.u32 %v345_v55, 16  ;;  %v720_v26 = vld [vmem:[#allocation2 + $0x30] sm:$0xf]  ;;  %v592_v29 = vsel %vm11347_vm11, %v584_v3, %v591_v19 }
  0x85   : > { %v1959_v13 = vrot.slane %v1957_v30, 5  ;;  %785 = vst [vmem:[#allocation2 + $0x9c] sm:$0xf] %v784_v21  ;;  %v788_v14 = vsel %vm11360_vm13, %v593_v10, %v787_v4  ;;  %v430_v33 = vor.u32 %v428_v63, %v427_v16  ;;  %v835_v34 = vld [vmem:[#allocation2 + $0x78] sm:$0xf]  ;;  %v1569_v48 = vsel %vm11326_vm9, %v11596_v15, %v1568_v6 }
  0x86   : > { %v2468_v28 = vld [vmem:[#allocation2 + $0x78] sm:$0xe]  ;;  %786 = vst.msk [vmem:[#allocation2 + $0xa0] sm:$0xf] %vm226_vm0, %v592_v29  ;;  %789 = vst [vmem:[#allocation2 + $0xa4] sm:$0x1] %v788_v14  ;;  %2683 = vrot.lane.b32.xlu1 %v11583_v5, %s11162_s24 }
  0x87   : > { %v431_v30 = vrot.slane %v427_v16, 4  ;;  %v435_v35 = vrot.slane %v433_v17, 7  ;;  %867 = vst.msk [vmem:[#allocation4 + $0x50] sm:$0xf] %vm226_vm0, %v835_v34  ;;  %v836_v36 = vld [vmem:[#allocation2 + $0x7c] sm:$0xf]  ;;  %v721_v15 = vsel %vm11354_vm12, %v430_v33, %v720_v26  ;;  %1666 = vrot.lane.b32.xlu0 %v11594_v12, %s11162_s24  ;;  %v1960_v46 = vor.u32 %v1959_v13, %v1956_v18 }
  0x88   : > { %v1951_v40 = vrot.slane %v1949_v27, 5  ;;  %v2602_v53 = vrot.slane %v11635_v7, 5  ;;  %v11662_v6 = vrot.slane %v1963_v32, 5  ;;  %v724_v41 = vld [vmem:[#allocation2 + $0x38] sm:$0x1]  ;;  %v1947_v60 = vrot.slane %v1946_v45, 4 }
  0x89   : > { %868 = vst.msk [vmem:[#allocation4 + $0x54] sm:$0xf] %vm226_vm0, %v836_v36  ;;  %v2470_v5 = vld [vmem:[#allocation2 + $0x80] sm:$0x1]  ;;  %v1969_v27 = vrot.slane %v1967_v24, 4  ;;  %v438_v42 = vor.u32 %v436_v25, %v435_v35  ;;  %v440_v2 = vrot.slane %v435_v35, 4  ;;  %v1942_v32 = vsel %vm11339_vm10, %v11617_v38, %v11600_v20 }
  0x8a   : > { %722 = vst [vmem:[#allocation2 + $0x30] sm:$0xf] %v721_v15  ;;  %v10324_v43 = vrot.slane %v2468_v28, 9  ;;  %v1886_v47 = vld [vmem:[#allocation2 + $0x20] sm:$0x1]  ;;  %1668 = vrot.lane.b32.xlu1 %v1569_v48, %s11162_s24  ;;  %v2604_v50 = vrot.slane %v2602_v53, 4  ;;  %v1952_v20 = vsel %vm11339_vm10, %v1947_v60, %v1951_v40 }
  0x8b   : > { %v915_v37 = vld [vmem:[#allocation2 + $0x90] sm:$0xf]  ;;  %v2445_v12 = vld [vmem:[#allocation2 + $0x1c] sm:$0xf]  ;;  %v439_v22 = vsel %vm11347_vm11, %v431_v30, %v438_v42  ;;  %v725_v45 = vsel %vm11360_vm13, %v440_v2, %v724_v41  ;;  %v2605_v52 = vrot.slane %v2470_v5, 5  ;;  %2313 = vrot.lane.b32.xlu0 %v1942_v32, %s11163_s25  ;;  %v1970_v38 = vor.u32 %v1969_v27, %v11662_v6 }
  0x8c   : > { %v2442_v49 = vld [vmem:[#allocation2 + $0x10] sm:$0xf]  ;;  %v916_v51 = vld [vmem:[#allocation2 + $0x94] sm:$0xf]  ;;  %v1219_v58 = vshrl.u32 %v915_v37, 16  ;;  %v1222_v54 = vshll.u32 %v915_v37, 16  ;;  %v2603_v59 = vsel %vm11326_vm9, %v10324_v43, %v2602_v53 }
  0x8d   : > { %723 = vst.msk [vmem:[#allocation2 + $0x34] sm:$0xf] %vm226_vm0, %v439_v22  ;;  %726 = vst [vmem:[#allocation2 + $0x38] sm:$0x1] %v725_v45  ;;  %v1973_v55 = vshll.u32 %v1886_v47, 16  ;;  %v1961_v61 = vrot.slane %v1960_v46, 4  ;;  %v2606_v57 = vsel %vm11326_vm9, %v2604_v50, %v2605_v52 }
  0x8e   : > { %v2441_v56 = vld [vmem:[#allocation2 + $0xc] sm:$0xe]  ;;  %v2539_v62 = vrot.slane %v2442_v49, 5  ;;  %v2443_v63 = vld [vmem:[#allocation2 + $0x14] sm:$0x1]  ;;  %v2546_v1 = vrot.slane %v2445_v12, 5  ;;  %2315 = vrot.lane.b32.xlu1 %v1952_v20, %s11163_s25 }
  0x8f   : > { %v918_v8 = vld [vmem:[#allocation2 + $0x9c] sm:$0xf]  ;;  %v2444_v11 = vld [vmem:[#allocation2 + $0x18] sm:$0xe]  ;;  %v1228_v3 = vshll.u32 %v916_v51, 16  ;;  %v1232_v4 = vshrl.u32 %v916_v51, 16  ;;  %2685 = vrot.lane.b32.xlu0 %v2603_v59, %s11162_s24  ;;  %v1966_v26 = vsel %vm11339_vm10, %v1961_v61, %v11662_v6 }
  0x90   : > { %v10315_v7 = vrot.slane %v2441_v56, 9  ;;  %v2446_v19 = vld [vmem:[#allocation2 + $0x20] sm:$0x1]  ;;  %v1221_v10 = vrot.slane %v1219_v58, 4  ;;  %v1224_v16 = vrot.slane %v1222_v54, 5  ;;  %v1971_v17 = vrot.slane %v1970_v38, 4 }
  0x91   : > { %v1975_v18 = vrot.slane %v1973_v55, 5  ;;  %v919_v24 = vld [vmem:[#allocation2 + $0xa0] sm:$0xf]  ;;  %v1243_v21 = vshrl.u32 %v918_v8, 16  ;;  %v1246_v25 = vshll.u32 %v918_v8, 16  ;;  %v2541_v13 = vrot.slane %v2539_v62, 4 }
  0x92   : > { %v2542_v29 = vrot.slane %v2443_v63, 5  ;;  %v10316_v14 = vrot.slane %v2444_v11, 9  ;;  %v2548_v33 = vrot.slane %v2546_v1, 4  ;;  %v2549_v34 = vrot.slane %v2446_v19, 5  ;;  %v346_v30 = vld [vmem:[%s11321_s23 + $0x20] sm:$0xf]  ;;  %2687 = vrot.lane.b32.xlu1 %v2606_v57, %s11162_s24 }
  0x93   : > { %v11695_v48 = vrot.slane %v1228_v3, 5  ;;  %v1234_v28 = vrot.slane %v1232_v4, 4  ;;  %v1225_v35 = vor.u32 %v1224_v16, %v1221_v10  ;;  %v917_v36 = vld [vmem:[#allocation2 + $0x98] sm:$0x1]  ;;  %v1252_v40 = vshll.u32 %v919_v24, 16  ;;  %2317 = vrot.lane.b32.xlu0 %v1966_v26, %s11163_s25 }
  0x94   : > { %v1256_v53 = vshrl.u32 %v919_v24, 16  ;;  %v1976_v6 = vsel %vm11339_vm10, %v1971_v17, %v1975_v18  ;;  %v1245_v15 = vrot.slane %v1243_v21, 4  ;;  %v1248_v41 = vrot.slane %v1246_v25, 5  ;;  %v1911_v42 = vld [vmem:[#allocation2 + $0x84] sm:$0xf] }
  0x95   : > { %v2540_v60 = vsel %vm11326_vm9, %v10315_v7, %v2539_v62  ;;  %v2543_v5 = vsel %vm11326_vm9, %v2541_v13, %v2542_v29  ;;  %v2547_v27 = vsel %vm11326_vm9, %v10316_v14, %v2546_v1  ;;  %v11708_v2 = vld [vmem:[#allocation2 + $0x88] sm:$0xf]  ;;  %v442_v32 = vshrl.u32 %v346_v30, 16  ;;  %v891_v37 = vld [vmem:[#allocation2 + $0x30] sm:$0xf] }
  0x96   : > { %v2550_v43 = vsel %vm11326_vm9, %v2548_v33, %v2549_v34  ;;  %v1235_v46 = vor.u32 %v1234_v28, %v11695_v48  ;;  %v1238_v47 = vshll.u32 %v917_v36, 16  ;;  %2319 = vrot.lane.b32.xlu1 %v1976_v6, %s11163_s25  ;;  %v1226_v49 = vrot.slane %v1225_v35, 4  ;;  %v920_v22 = vld [vmem:[#allocation2 + $0xa4] sm:$0x1]  ;;  %v892_v20 = vld [vmem:[#allocation2 + $0x34] sm:$0xf] }
  0x97   : > { %v11714_v12 = vrot.slane %v1252_v40, 5  ;;  %v1258_v45 = vrot.slane %v1256_v53, 4  ;;  %2649 = vrot.lane.b32.xlu0 %v2540_v60, %s11162_s24  ;;  %v1249_v50 = vor.u32 %v1248_v41, %v1245_v15  ;;  %v2170_v52 = vshrl.u32 %v1911_v42, 16  ;;  %v347_v54 = vld [vmem:[%s11321_s23 + $0x24] sm:$0xf] }
  0x98   : > { %v2173_v51 = vshll.u32 %v1911_v42, 16  ;;  %v2179_v58 = vshll.u32 %v11708_v2, 16  ;;  %v1027_v38 = vshrl.u32 %v891_v37, 16  ;;  %v1030_v55 = vshll.u32 %v891_v37, 16  ;;  %v11725_v3 = vld [vmem:[#allocation2 + $0x94] sm:$0xf] }
  0x99   : > { %v2183_v56 = vshrl.u32 %v11708_v2, 16  ;;  %v444_v59 = vrot.slane %v442_v32, 7  ;;  %v1236_v61 = vrot.slane %v1235_v46, 4  ;;  %v1240_v62 = vrot.slane %v1238_v47, 5  ;;  %v727_v7 = vld [vmem:[#allocation2 + $0x3c] sm:$0xf] }
  0x9a   : > { %v1262_v63 = vshll.u32 %v920_v22, 16  ;;  %v445_v8 = vshll.u32 %v346_v30, 16  ;;  %2651 = vrot.lane.b32.xlu1 %v2543_v5, %s11162_s24  ;;  %v1231_v11 = vsel %vm11339_vm10, %v1226_v49, %v11695_v48  ;;  %v1259_v1 = vor.u32 %v1258_v45, %v11714_v12  ;;  %v1479_v10 = vld [vmem:[#allocation2 + $0x90] sm:$0xe]  ;;  %v731_v24 = vld [vmem:[#allocation2 + $0x44] sm:$0x1] }
  0x9b   : > { %v450_v4 = vshrl.u32 %v347_v54, 16  ;;  %v453_v57 = vshll.u32 %v347_v54, 16  ;;  %2653 = vrot.lane.b32.xlu0 %v2547_v27, %s11162_s24  ;;  %v1250_v19 = vrot.slane %v1249_v50, 4  ;;  %v1036_v16 = vshll.u32 %v892_v20, 16  ;;  %v1655_v26 = vpop.permute.xlu1 %1654  ;;  %v837_v14 = vld [vmem:[#allocation2 + $0x84] sm:$0xf] }
  0x9c   : > { %v1040_v17 = vshrl.u32 %v892_v20, 16  ;;  %v447_v18 = vor.u32 %v445_v8, %v444_v59  ;;  %v1029_v21 = vrot.slane %v1027_v38, 4  ;;  %v1032_v25 = vrot.slane %v1030_v55, 5  ;;  %v1315_v34 = vpop.permute.xlu0 %1314  ;;  %869 = vst.msk [vmem:[#allocation4 + $0x58] sm:$0xf] %vm226_vm0, %v837_v14 }
  0x9d   : > { %v448_v13 = vrot.slane %v444_v59, 4  ;;  %v452_v29 = vrot.slane %v450_v4, 7  ;;  %v1628_v33 = vrot.slane %v11725_v3, 5  ;;  %v11729_v48 = vrot.slane %v2170_v52, 4  ;;  %v838_v35 = vld [vmem:[#allocation2 + $0x88] sm:$0xf] }
  0x9e   : > { %v11731_v28 = vrot.slane %v2173_v51, 5  ;;  %v728_v30 = vsel %vm11354_vm12, %v447_v18, %v727_v7  ;;  %2655 = vrot.lane.b32.xlu1 %v2550_v43, %s11162_s24  ;;  %v1264_v36 = vrot.slane %v1262_v63, 5  ;;  %v10311_v40 = vrot.slane %v1479_v10, 9  ;;  %v1481_v53 = vld [vmem:[#allocation2 + $0x98] sm:$0x1] }
  0x9f   : > { %1411 = vst.msk [vmem:[#allocation4] sm:$0xf] %vm1410_vm14, %v1315_v34  ;;  %v455_v6 = vor.u32 %v453_v57, %v452_v29  ;;  %729 = vst [vmem:[#allocation2 + $0x3c] sm:$0xf] %v728_v30  ;;  %v457_v15 = vrot.slane %v452_v29, 4  ;;  %1362 = vrot.lane.b32.xlu0 %v1231_v11, %s11163_s25  ;;  %v1241_v41 = vsel %vm11339_vm10, %v1236_v61, %v1240_v62  ;;  %v1260_v60 = vrot.slane %v1259_v1, 4 }
  0xa0   : > { %870 = vst.msk [vmem:[#allocation4 + $0x5c] sm:$0xf] %vm226_vm0, %v838_v35  ;;  %v11742_v5 = vrot.slane %v1036_v16, 5  ;;  %v1042_v27 = vrot.slane %v1040_v17, 4  ;;  %v11745_v42 = vld [vmem:[#allocation2 + $0x8c] sm:$0x1]  ;;  %v1255_v32 = vsel %vm11339_vm10, %v1250_v19, %v11714_v12  ;;  %v1033_v43 = vor.u32 %v1032_v25, %v1029_v21  ;;  %v1317_v50 = vpop.permute.xlu0 %1316 }
  0xa1   : > { %1751 = vst.msk [vmem:[#allocation4] sm:$0xf] %vm1750_vm15, %v1655_v26  ;;  %v893_v46 = vld [vmem:[#allocation2 + $0x38] sm:$0x1]  ;;  %v11750_v47 = vld [vmem:[#allocation2 + $0xa0] sm:$0xf]  ;;  %v456_v37 = vsel %vm11347_vm11, %v448_v13, %v455_v6  ;;  %v732_v49 = vsel %vm11360_vm13, %v457_v15, %v731_v24  ;;  %v1265_v20 = vsel %vm11339_vm10, %v1260_v60, %v1264_v36  ;;  %v1629_v62 = vsel %vm11326_vm9, %v10311_v40, %v1628_v33 }
  0xa2   : > { %v1630_v22 = vrot.slane %v1628_v33, 4  ;;  %v1631_v45 = vrot.slane %v1481_v53, 5  ;;  %730 = vst.msk [vmem:[#allocation2 + $0x40] sm:$0xf] %vm226_vm0, %v456_v37  ;;  %733 = vst [vmem:[#allocation2 + $0x44] sm:$0x1] %v732_v49  ;;  %1364 = vrot.lane.b32.xlu1 %v1241_v41, %s11163_s25  ;;  %v1043_v38 = vor.u32 %v1042_v27, %v11742_v5  ;;  %v2176_v11 = vor.u32 %v11731_v28, %v11729_v48 }
  0xa3   : > { %v1482_v52 = vld [vmem:[#allocation2 + $0x9c] sm:$0xe]  ;;  %1412 = vst.msk [vmem:[#allocation4 + $0x4] sm:$0xf] %vm1410_vm14, %v1317_v50  ;;  %v11761_v12 = vrot.slane %v2179_v58, 5  ;;  %v2189_v51 = vshll.u32 %v11745_v42, 16  ;;  %1366 = vrot.lane.b32.xlu0 %v1255_v32, %s11163_s25 }
  0xa4   : > { %v1914_v54 = vld [vmem:[#allocation2 + $0x90] sm:$0xf]  ;;  %v1046_v55 = vshll.u32 %v893_v46, 16  ;;  %v1635_v59 = vrot.slane %v11750_v47, 5  ;;  %v1915_v61 = vld [vmem:[#allocation2 + $0x94] sm:$0xf]  ;;  %v1632_v3 = vsel %vm11326_vm9, %v1630_v22, %v1631_v45 }
  0xa5   : > { %v1034_v63 = vrot.slane %v1033_v43, 4  ;;  %v1484_v58 = vld [vmem:[#allocation2 + $0xa4] sm:$0x1]  ;;  %v1817_v8 = vld [vmem:[#allocation2 + $0xc] sm:$0xf]  ;;  %v2185_v1 = vrot.slane %v2183_v56, 4 }
  0xa6   : > { %v10312_v4 = vrot.slane %v1482_v52, 9  ;;  %v894_v57 = vld [vmem:[#allocation2 + $0x3c] sm:$0xf]  ;;  %v2194_v7 = vshrl.u32 %v1914_v54, 16  ;;  %v2197_v19 = vshll.u32 %v1914_v54, 16  ;;  %1368 = vrot.lane.b32.xlu1 %v1265_v20, %s11163_s25  ;;  %v2203_v18 = vshll.u32 %v1915_v61, 16 }
  0xa7   : > { %v1051_v16 = vshrl.u32 %v894_v57, 16  ;;  %v1054_v17 = vshll.u32 %v894_v57, 16  ;;  %v2207_v24 = vshrl.u32 %v1915_v61, 16  ;;  %1702 = vrot.lane.b32.xlu0 %v1629_v62, %s11162_s24  ;;  %v1044_v21 = vrot.slane %v1043_v38, 4  ;;  %v1456_v26 = vld [vmem:[#allocation2 + $0x34] sm:$0xf] }
  0xa8   : > { %v11778_v10 = vld [vmem:[#allocation4] sm:$0xf]  ;;  %v1048_v2 = vrot.slane %v1046_v55, 5  ;;  %v1637_v56 = vrot.slane %v1635_v59, 4  ;;  %v1638_v25 = vrot.slane %v1484_v58, 5  ;;  %v1039_v13 = vsel %vm11339_vm10, %v1034_v63, %v11742_v5 }
  0xa9   : > { %1849 = vst.msk [vmem:[#allocation4] sm:$0xf] %vm226_vm0, %v1817_v8  ;;  %v2186_v29 = vor.u32 %v2185_v1, %v11761_v12  ;;  %v895_v14 = vld [vmem:[#allocation2 + $0x40] sm:$0xf]  ;;  %v1053_v33 = vrot.slane %v1051_v16, 4  ;;  %v1056_v34 = vrot.slane %v1054_v17, 5  ;;  %v1636_v32 = vsel %vm11326_vm9, %v10312_v4, %v1635_v59 }
  0xaa   : > { %v1060_v48 = vshll.u32 %v895_v14, 16  ;;  %v1064_v28 = vshrl.u32 %v895_v14, 16  ;;  %v2196_v30 = vrot.slane %v2194_v7, 4  ;;  %v2199_v35 = vrot.slane %v2197_v19, 5  ;;  %1704 = vrot.lane.b32.xlu1 %v1632_v3, %s11162_s24  ;;  %v11787_v36 = vpop.permute.xlu1 %1686  ;;  %v1455_v40 = vld [vmem:[#allocation2 + $0x30] sm:$0xe] }
  0xab   : > { %v1572_v53 = vrot.slane %v1456_v26, 5  ;;  %v11789_v6 = vrot.slane %v2203_v18, 5  ;;  %v2209_v15 = vrot.slane %v2207_v24, 4  ;;  %1330 = vrot.lane.b32.xlu0 %v1039_v13, %s11163_s25  ;;  %v1049_v41 = vsel %vm11339_vm10, %v1044_v21, %v1048_v2  ;;  %v1457_v27 = vld [vmem:[#allocation2 + $0x38] sm:$0x1] }
  0xac   : > { %v11794_v60 = vrot.slane %v1060_v48, 5  ;;  %v1066_v5 = vrot.slane %v1064_v28, 4  ;;  %v1916_v42 = vld [vmem:[#allocation2 + $0x98] sm:$0x1]  ;;  %v2177_v43 = vrot.slane %v2176_v11, 4  ;;  %v2191_v46 = vrot.slane %v2189_v51, 5 }
  0xad   : > { %v11798_v47 = vpop.permute.xlu0 %1688  ;;  %v1057_v37 = vor.u32 %v1056_v34, %v1053_v33  ;;  %v896_v49 = vld [vmem:[#allocation2 + $0x44] sm:$0x1]  ;;  %v1639_v45 = vsel %vm11326_vm9, %v1637_v56, %v1638_v25  ;;  %v2187_v50 = vrot.slane %v2186_v29, 4  ;;  %v10303_v52 = vrot.slane %v1455_v40, 9  ;;  %v2471_v20 = vld [vmem:[#allocation2 + $0x84] sm:$0xe] }
  0xae   : > { %v1887_v22 = vld [vmem:[#allocation2 + $0x24] sm:$0xf]  ;;  %v2200_v54 = vor.u32 %v2199_v35, %v2196_v30  ;;  %v2472_v38 = vld [vmem:[#allocation2 + $0x88] sm:$0xf]  ;;  %1332 = vrot.lane.b32.xlu1 %v1049_v41, %s11163_s25  ;;  %v1574_v55 = vrot.slane %v1572_v53, 4  ;;  %v1575_v61 = vrot.slane %v1457_v27, 5  ;;  %v2210_v59 = vor.u32 %v2209_v15, %v11789_v6 }
  0xaf   : > { %v2213_v51 = vshll.u32 %v1916_v42, 16  ;;  %v822_v62 = vld [vmem:[#allocation2 + $0x28] sm:$0xf]  ;;  %1706 = vrot.lane.b32.xlu0 %v1636_v32, %s11162_s24  ;;  %v1067_v63 = vor.u32 %v1066_v5, %v11794_v60  ;;  %v1070_v58 = vshll.u32 %v896_v49, 16  ;;  %v11806_v8 = vld [vmem:[#allocation2 + $0x8c] sm:$0x1]  ;;  %v2182_v3 = vsel %vm11339_vm10, %v2177_v43, %v11761_v12  ;;  %v11812_v57 = vpop.permute.xlu1 %1690 }
  0xb0   : > { %v1978_v11 = vshrl.u32 %v1887_v22, 16  ;;  %v1981_v1 = vshll.u32 %v1887_v22, 16  ;;  %854 = vst.msk [vmem:[#allocation4 + $0x1c] sm:$0xf] %vm226_vm0, %v822_v62  ;;  %v1058_v4 = vrot.slane %v1057_v37, 4  ;;  %v10325_v7 = vrot.slane %v2471_v20, 9 }
  0xb1   : > { %v2192_v19 = vsel %vm11339_vm10, %v2187_v50, %v2191_v46  ;;  %v1573_v16 = vsel %vm11326_vm9, %v10303_v52, %v1572_v53  ;;  %v11818_v17 = vrot.slane %v2200_v54, 4  ;;  %v2609_v18 = vrot.slane %v2472_v38, 5  ;;  %v11820_v24 = vld [vmem:[#allocation2 + $0x28] sm:$0xf]  ;;  %v11824_v12 = vpop.permute.xlu0 %1692  ;;  %v365_v13 = vld [vmem:[%s11321_s23 + $0x6c] sm:$0xf] }
  0xb2   : > { %v364_v21 = vld [vmem:[%s11321_s23 + $0x68] sm:$0xf]  ;;  %1708 = vrot.lane.b32.xlu1 %v1639_v45, %s11162_s24  ;;  %v11828_v2 = vsel %vm11326_vm9, %v1574_v55, %v1575_v61  ;;  %v11830_v56 = vrot.slane %v2210_v59, 4  ;;  %v11832_v25 = vrot.slane %v2213_v51, 5  ;;  %v2612_v26 = vrot.slane %v11806_v8, 5 }
  0xb3   : > { %2353 = vrot.lane.b32.xlu0 %v2182_v3, %s11163_s25  ;;  %v1068_v29 = vrot.slane %v1067_v63, 4  ;;  %v1072_v14 = vrot.slane %v1070_v58, 5  ;;  %v11837_v33 = vld [vmem:[#allocation2 + $0x3c] sm:$0xe]  ;;  %v11839_v34 = vrot.slane %v1978_v11, 4  ;;  %v11841_v48 = vrot.slane %v1981_v1, 5 }
  0xb4   : > { %v1063_v28 = vsel %vm11339_vm10, %v1058_v4, %v11794_v60  ;;  %v11848_v30 = vsel %vm11326_vm9, %v10325_v7, %v2609_v18  ;;  %v1987_v35 = vshll.u32 %v11820_v24, 16  ;;  %v595_v40 = vshrl.u32 %v364_v21, 16  ;;  %v366_v53 = vld [vmem:[%s11321_s23 + $0x70] sm:$0xf]  ;;  %v367_v37 = vld [vmem:[%s11321_s23 + $0x74] sm:$0xf] }
  0xb5   : > { %v2206_v15 = vsel %vm11339_vm10, %v11818_v17, %v11789_v6  ;;  %v11856_v41 = vrot.slane %v2609_v18, 4  ;;  %v1991_v5 = vshrl.u32 %v11820_v24, 16  ;;  %v598_v27 = vshll.u32 %v364_v21, 16  ;;  %v790_v50 = vld [vmem:[#allocation2 + $0xa8] sm:$0xf] }
  0xb6   : > { %2355 = vrot.lane.b32.xlu1 %v2192_v19, %s11163_s25  ;;  %v2216_v42 = vsel %vm11339_vm10, %v11830_v56, %v11832_v25  ;;  %v10304_v32 = vrot.slane %v11837_v33, 9  ;;  %v597_v43 = vrot.slane %v595_v40, 7  ;;  %v603_v46 = vshrl.u32 %v365_v13, 16  ;;  %v348_v54 = vld [vmem:[%s11321_s23 + $0x28] sm:$0xf] }
  0xb7   : > { %1334 = vrot.lane.b32.xlu0 %v1063_v28, %s11163_s25  ;;  %v1073_v49 = vsel %vm11339_vm10, %v1068_v29, %v1072_v14  ;;  %v1984_v22 = vor.u32 %v11841_v48, %v11839_v34  ;;  %v606_v45 = vshll.u32 %v365_v13, 16  ;;  %v612_v52 = vshrl.u32 %v366_v53, 16  ;;  %v794_v51 = vld [vmem:[#allocation2 + $0xb0] sm:$0x1]  ;;  %v349_v1 = vld [vmem:[%s11321_s23 + $0x2c] sm:$0xf] }
  0xb8   : > { %v1319_v60 = vpop.permute.xlu1 %1318  ;;  %v11873_v38 = vrot.slane %v1987_v35, 5  ;;  %v600_v55 = vor.u32 %v598_v27, %v597_v43  ;;  %v601_v61 = vrot.slane %v597_v43, 4  ;;  %v605_v59 = vrot.slane %v603_v46, 7  ;;  %v797_v18 = vld [vmem:[#allocation2 + $0xb4] sm:$0xf] }
  0xb9   : > { %1413 = vst.msk [vmem:[#allocation4 + $0x8] sm:$0xf] %vm1410_vm14, %v1319_v60  ;;  %v614_v62 = vrot.slane %v612_v52, 7  ;;  %v615_v63 = vshll.u32 %v366_v53, 16  ;;  %v620_v58 = vshrl.u32 %v367_v37, 16  ;;  %v623_v11 = vshll.u32 %v367_v37, 16 }
  0xba   : > { %v1323_v20 = vpop.permute.xlu0 %1322  ;;  %1336 = vrot.lane.b32.xlu1 %v1073_v49, %s11163_s25  ;;  %v608_v4 = vor.u32 %v606_v45, %v605_v59  ;;  %v791_v7 = vsel %vm11354_vm12, %v600_v55, %v790_v50  ;;  %v610_v19 = vrot.slane %v605_v59, 4  ;;  %v459_v24 = vshrl.u32 %v348_v54, 16  ;;  %v11882_v21 = vld [vmem:[#allocation2 + $0x30] sm:$0xf]  ;;  %v1459_v40 = vld [vmem:[#allocation2 + $0x40] sm:$0xf] }
  0xbb   : > { %1415 = vst.msk [vmem:[#allocation4 + $0x10] sm:$0xf] %vm1410_vm14, %v1323_v20  ;;  %1670 = vrot.lane.b32.xlu0 %v1573_v16, %s11162_s24  ;;  %792 = vst [vmem:[#allocation2 + $0xa8] sm:$0xf] %v791_v7  ;;  %v617_v13 = vor.u32 %v615_v63, %v614_v62  ;;  %v618_v29 = vrot.slane %v614_v62, 4  ;;  %v622_v14 = vrot.slane %v620_v58, 7 }
  0xbc   : > { %v1321_v3 = vpop.permute.xlu1 %1320  ;;  %v462_v28 = vshll.u32 %v348_v54, 16  ;;  %v609_v53 = vsel %vm11347_vm11, %v601_v61, %v608_v4  ;;  %v795_v27 = vsel %vm11360_vm13, %v610_v19, %v794_v51  ;;  %v801_v60 = vld [vmem:[#allocation2 + $0xbc] sm:$0x1]  ;;  %v461_v43 = vrot.slane %v459_v24, 7  ;;  %v734_v50 = vld [vmem:[#allocation2 + $0x48] sm:$0xf] }
  0xbd   : > { %1414 = vst.msk [vmem:[#allocation4 + $0xc] sm:$0xf] %vm1410_vm14, %v1321_v3  ;;  %v467_v16 = vshrl.u32 %v349_v1, 16  ;;  %796 = vst [vmem:[#allocation2 + $0xb0] sm:$0x1] %v795_v27  ;;  %v625_v46 = vor.u32 %v623_v11, %v622_v14  ;;  %v798_v37 = vsel %vm11354_vm12, %v617_v13, %v797_v18  ;;  %v627_v49 = vrot.slane %v622_v14, 4 }
  0xbe   : > { %v1327_v35 = vpop.permute.xlu0 %1326  ;;  %793 = vst.msk [vmem:[#allocation2 + $0xac] sm:$0xf] %vm226_vm0, %v609_v53  ;;  %v470_v45 = vshll.u32 %v349_v1, 16  ;;  %1672 = vrot.lane.b32.xlu1 %v11828_v2, %s11162_s24  ;;  %v1993_v54 = vrot.slane %v1991_v5, 4  ;;  %v1891_v20 = vld [vmem:[#allocation2 + $0x34] sm:$0xf]  ;;  %v464_v55 = vor.u32 %v462_v28, %v461_v43  ;;  %v2613_v18 = vsel %vm11326_vm9, %v11856_v41, %v2612_v26 }
  0xbf   : > { %1417 = vst.msk [vmem:[#allocation4 + $0x18] sm:$0xf] %vm1410_vm14, %v1327_v35  ;;  %799 = vst [vmem:[#allocation2 + $0xb4] sm:$0xf] %v798_v37  ;;  %v465_v61 = vrot.slane %v461_v43, 4  ;;  %v469_v59 = vrot.slane %v467_v16, 7  ;;  %2357 = vrot.lane.b32.xlu0 %v2206_v15, %s11163_s25  ;;  %v626_v5 = vsel %vm11347_vm11, %v618_v29, %v625_v46  ;;  %v802_v63 = vsel %vm11360_vm13, %v627_v49, %v801_v60 }
  0xc0   : > { %v1325_v52 = vpop.permute.xlu1 %1324  ;;  %v1579_v51 = vrot.slane %v1459_v40, 5  ;;  %v1889_v62 = vld [vmem:[#allocation2 + $0x2c] sm:$0x1]  ;;  %v2002_v2 = vshrl.u32 %v11882_v21, 16  ;;  %v738_v58 = vld [vmem:[#allocation2 + $0x50] sm:$0x1]  ;;  %v735_v17 = vsel %vm11354_vm12, %v464_v55, %v734_v50 }
  0xc1   : > { %1416 = vst.msk [vmem:[#allocation4 + $0x14] sm:$0xf] %vm1410_vm14, %v1325_v52  ;;  %v1460_v1 = vld [vmem:[#allocation2 + $0x44] sm:$0x1]  ;;  %v2005_v3 = vshll.u32 %v11882_v21, 16  ;;  %v472_v6 = vor.u32 %v470_v45, %v469_v59  ;;  %v474_v15 = vrot.slane %v469_v59, 4 }
  0xc2   : > { %v1349_v11 = vpop.permute.xlu0 %1348  ;;  %800 = vst.msk [vmem:[#allocation2 + $0xb8] sm:$0xf] %vm226_vm0, %v626_v5  ;;  %803 = vst [vmem:[#allocation2 + $0xbc] sm:$0x1] %v802_v63  ;;  %v11911_v4 = vld [vmem:[#allocation2 + $0x94] sm:$0xf]  ;;  %2359 = vrot.lane.b32.xlu1 %v2216_v42, %s11163_s25  ;;  %v1580_v26 = vsel %vm11326_vm9, %v10304_v32, %v1579_v51 }
  0xc3   : > { %1428 = vst.msk [vmem:[#allocation4 + $0x44] sm:$0xf] %vm1410_vm14, %v1349_v11  ;;  %v2011_v7 = vshll.u32 %v1891_v20, 16  ;;  %v2015_v19 = vshrl.u32 %v1891_v20, 16  ;;  %736 = vst [vmem:[#allocation2 + $0x48] sm:$0xf] %v735_v17  ;;  %v473_v13 = vsel %vm11347_vm11, %v465_v61, %v472_v6  ;;  %v739_v29 = vsel %vm11360_vm13, %v474_v15, %v738_v58  ;;  %2689 = vrot.lane.b32.xlu0 %v11848_v30, %s11162_s24 }
  0xc4   : > { %1768 = vst.msk [vmem:[#allocation4 + $0x44] sm:$0xf] %vm1750_vm15, %v11798_v47  ;;  %v1347_v24 = vpop.permute.xlu1 %1346  ;;  %v1997_v21 = vshll.u32 %v1889_v62, 16  ;;  %v1581_v56 = vrot.slane %v1579_v51, 4  ;;  %v1582_v8 = vrot.slane %v1460_v1, 5  ;;  %v1985_v25 = vrot.slane %v1984_v22, 4 }
  0xc5   : > { %1427 = vst.msk [vmem:[#allocation4 + $0x40] sm:$0xf] %vm1410_vm14, %v1347_v24  ;;  %v1994_v47 = vor.u32 %v1993_v54, %v11873_v38  ;;  %740 = vst [vmem:[#allocation2 + $0x50] sm:$0x1] %v739_v29  ;;  %v2474_v41 = vld [vmem:[#allocation2 + $0x90] sm:$0xe] }
  0xc6   : > { %737 = vst.msk [vmem:[#allocation2 + $0x4c] sm:$0xf] %vm226_vm0, %v473_v13  ;;  %v1353_v30 = vpop.permute.xlu0 %1352  ;;  %v2616_v42 = vrot.slane %v11911_v4, 5  ;;  %v2004_v14 = vrot.slane %v2002_v2, 4  ;;  %v2007_v34 = vrot.slane %v2005_v3, 5  ;;  %v11946_v48 = vrot.slane %v2011_v7, 5  ;;  %2691 = vrot.lane.b32.xlu1 %v2613_v18, %s11162_s24 }
  0xc7   : > { %1767 = vst.msk [vmem:[#allocation4 + $0x40] sm:$0xf] %vm1750_vm15, %v11787_v36  ;;  %v1892_v22 = vld [vmem:[#allocation2 + $0x38] sm:$0x1]  ;;  %v2017_v28 = vrot.slane %v2015_v19, 4  ;;  %1674 = vrot.lane.b32.xlu0 %v1580_v26, %s11162_s24  ;;  %v1583_v35 = vsel %vm11326_vm9, %v1581_v56, %v1582_v8  ;;  %v1995_v40 = vrot.slane %v1994_v47, 4  ;;  %v1990_v60 = vsel %vm11339_vm10, %v1985_v25, %v11873_v38 }
  0xc8   : > { %1430 = vst.msk [vmem:[#allocation4 + $0x4c] sm:$0xf] %vm1410_vm14, %v1353_v30  ;;  %v1351_v33 = vpop.permute.xlu1 %1350  ;;  %v2476_v32 = vld [vmem:[#allocation2 + $0x98] sm:$0x1]  ;;  %v921_v36 = vld [vmem:[#allocation2 + $0xa8] sm:$0xf]  ;;  %v2008_v16 = vor.u32 %v2007_v34, %v2004_v14 }
  0xc9   : > { %1770 = vst.msk [vmem:[#allocation4 + $0x4c] sm:$0xf] %vm1750_vm15, %v11824_v12  ;;  %v1999_v53 = vrot.slane %v1997_v21, 5  ;;  %v10326_v27 = vrot.slane %v2474_v41, 9  ;;  %v2618_v43 = vrot.slane %v2616_v42, 4  ;;  %v2021_v46 = vshll.u32 %v1892_v22, 16 }
  0xca   : > { %1429 = vst.msk [vmem:[#allocation4 + $0x48] sm:$0xf] %vm1410_vm14, %v1351_v33  ;;  %v1657_v12 = vpop.permute.xlu0 %1656  ;;  %v11960_v37 = vld [vmem:[#allocation2 + $0x24] sm:$0xe]  ;;  %v11962_v49 = vld [vmem:[#allocation2 + $0x28] sm:$0xf]  ;;  %v2018_v50 = vor.u32 %v2017_v28, %v11946_v48  ;;  %1676 = vrot.lane.b32.xlu1 %v1583_v35, %s11162_s24 }
  0xcb   : > { %1769 = vst.msk [vmem:[#allocation4 + $0x48] sm:$0xf] %vm1750_vm15, %v11812_v57  ;;  %1752 = vst.msk [vmem:[#allocation4 + $0x4] sm:$0xf] %vm1750_vm15, %v1657_v12  ;;  %v2619_v45 = vrot.slane %v2476_v32, 5  ;;  %v1267_v52 = vshrl.u32 %v921_v36, 16  ;;  %2321 = vrot.lane.b32.xlu0 %v1990_v60, %s11163_s25  ;;  %v2000_v59 = vsel %vm11339_vm10, %v1995_v40, %v1999_v53  ;;  %v2617_v51 = vsel %vm11326_vm9, %v10326_v27, %v2616_v42 }
  0xcc   : > { %v1833_v54 = vld [vmem:[#allocation2 + $0x6c] sm:$0xf]  ;;  %v1834_v20 = vld [vmem:[#allocation2 + $0x70] sm:$0xf]  ;;  %v1659_v38 = vpop.permute.xlu1 %1658  ;;  %v1270_v61 = vshll.u32 %v921_v36, 16  ;;  %v2009_v3 = vrot.slane %v2008_v16, 4 }
  0xcd   : > { %v11967_v57 = vld [vmem:[#allocation2 + $0x2c] sm:$0x1]  ;;  %v11969_v55 = vld [vmem:[#allocation2 + $0x30] sm:$0xe]  ;;  %1753 = vst.msk [vmem:[#allocation4 + $0x8] sm:$0xf] %vm1750_vm15, %v1659_v38  ;;  %v2620_v7 = vsel %vm11326_vm9, %v2618_v43, %v2619_v45 }
  0xce   : > { %v2451_v62 = vld [vmem:[#allocation2 + $0x34] sm:$0xf]  ;;  %v11977_v2 = vld [vmem:[#allocation2 + $0x38] sm:$0x1]  ;;  %v922_v5 = vld [vmem:[#allocation2 + $0xac] sm:$0xf]  ;;  %v1661_v1 = vpop.permute.xlu0 %1660  ;;  %2323 = vrot.lane.b32.xlu1 %v2000_v59, %s11163_s25  ;;  %v2014_v22 = vsel %vm11339_vm10, %v2009_v3, %v11946_v48 }
  0xcf   : > { %v924_v63 = vld [vmem:[#allocation2 + $0xb4] sm:$0xf]  ;;  %v1818_v11 = vld [vmem:[#allocation2 + $0x10] sm:$0xf]  ;;  %v11981_v6 = vrot.slane %v2021_v46, 5  ;;  %v10317_v17 = vrot.slane %v11960_v37, 9  ;;  %2693 = vrot.lane.b32.xlu0 %v2617_v51, %s11162_s24 }
  0xd0   : > { %v11979_v58 = vld [vmem:[#allocation4 + $0x40] sm:$0xff]   ;;  %v2553_v15 = vrot.slane %v11962_v49, 5  ;;  %1754 = vst.msk [vmem:[#allocation4 + $0xc] sm:$0xf] %vm1750_vm15, %v1661_v1  ;;  %v2019_v19 = vrot.slane %v2018_v50, 4  ;;  %v1269_v18 = vrot.slane %v1267_v52, 4 }
  0xd1   : > { %1865 = vst.msk [vmem:[#allocation4 + $0x40] sm:$0xf] %vm226_vm0, %v1833_v54  ;;  %1866 = vst.msk [vmem:[#allocation4 + $0x44] sm:$0xf] %vm226_vm0, %v1834_v20  ;;  %v350_v4 = vld [vmem:[%s11321_s23 + $0x30] sm:$0xf] }
  0xd2   : > { %v1835_v24 = vld [vmem:[#allocation2 + $0x78] sm:$0xf]  ;;  %v1836_v21 = vld [vmem:[#allocation2 + $0x7c] sm:$0xf]  ;;  %v1272_v29 = vrot.slane %v1270_v61, 5  ;;  %v1276_v56 = vshll.u32 %v922_v5, 16  ;;  %v2024_v36 = vsel %vm11339_vm10, %v2019_v19, %v11981_v6  ;;  %2695 = vrot.lane.b32.xlu1 %v2620_v7, %s11162_s24  ;;  %v2554_v52 = vsel %vm11326_vm9, %v10317_v17, %v2553_v15 }
  0xd3   : > { %v1819_v13 = vld [vmem:[#allocation2 + $0x18] sm:$0xf]  ;;  %v1280_v8 = vshrl.u32 %v922_v5, 16  ;;  %v1291_v25 = vshrl.u32 %v924_v63, 16  ;;  %v2556_v47 = vrot.slane %v11967_v57, 5  ;;  %v10318_v26 = vrot.slane %v11969_v55, 9  ;;  %2325 = vrot.lane.b32.xlu0 %v2014_v22, %s11163_s25 }
  0xd4   : > { %v1294_v30 = vshll.u32 %v924_v63, 16  ;;  %v11995_v41 = vld [vmem:[#allocation4 + $0x48] sm:$0xff]   ;;  %v476_v42 = vshrl.u32 %v350_v4, 16  ;;  %v11997_v14 = vld [vmem:[#allocation4 + $0x4] sm:$0xf]  ;;  %v2560_v28 = vrot.slane %v2451_v62, 5  ;;  %v1273_v60 = vor.u32 %v1272_v29, %v1269_v18 }
  0xd5   : > { %v1820_v34 = vld [vmem:[#allocation2 + $0x1c] sm:$0xf]  ;;  %v2563_v33 = vrot.slane %v11977_v2, 5  ;;  %v925_v32 = vld [vmem:[#allocation2 + $0xb8] sm:$0xf]  ;;  %v2555_v35 = vrot.slane %v2553_v15, 4 }
  0xd6   : > { %1867 = vst.msk [vmem:[#allocation4 + $0x48] sm:$0xf] %vm226_vm0, %v1835_v24  ;;  %1868 = vst.msk [vmem:[#allocation4 + $0x4c] sm:$0xf] %vm226_vm0, %v1836_v21  ;;  %v923_v40 = vld [vmem:[#allocation2 + $0xb0] sm:$0x1]  ;;  %v2561_v54 = vsel %vm11326_vm9, %v10318_v26, %v2560_v28  ;;  %2327 = vrot.lane.b32.xlu1 %v2024_v36, %s11163_s25 }
  0xd7   : > { %1850 = vst.msk [vmem:[#allocation4 + $0x4] sm:$0xf] %vm226_vm0, %v1818_v11  ;;  %v351_v53 = vld [vmem:[%s11321_s23 + $0x34] sm:$0xf]  ;;  %v479_v27 = vshll.u32 %v350_v4, 16  ;;  %v12013_v12 = vrot.slane %v1276_v56, 5  ;;  %v2557_v55 = vsel %vm11326_vm9, %v2555_v35, %v2556_v47  ;;  %2657 = vrot.lane.b32.xlu0 %v2554_v52, %s11162_s24 }
  0xd8   : > { %v12011_v48 = vld [vmem:[#allocation4 + $0x8] sm:$0xf]  ;;  %v1282_v43 = vrot.slane %v1280_v8, 4  ;;  %v12015_v16 = vrot.slane %v1291_v25, 4  ;;  %v1296_v46 = vrot.slane %v1294_v30, 5  ;;  %v1300_v37 = vshll.u32 %v925_v32, 16  ;;  %v1355_v24 = vpop.permute.xlu1 %1354 }
  0xd9   : > { %1851 = vst.msk [vmem:[#allocation4 + $0x8] sm:$0xf] %vm226_vm0, %v1819_v13  ;;  %v1304_v49 = vshrl.u32 %v925_v32, 16  ;;  %v478_v45 = vrot.slane %v476_v42, 7  ;;  %v12019_v50 = vld [vmem:[#allocation4 + $0xc] sm:$0xf]  ;;  %v1357_v25 = vpop.permute.xlu0 %1356 }
  0xda   : > { %v2562_v20 = vrot.slane %v2560_v28, 4  ;;  %v484_v38 = vshrl.u32 %v351_v53, 16  ;;  %v741_v57 = vld [vmem:[#allocation2 + $0x54] sm:$0xf]  ;;  %1852 = vst.msk [vmem:[#allocation4 + $0xc] sm:$0xf] %vm226_vm0, %v1820_v34  ;;  %v1283_v11 = vor.u32 %v1282_v43, %v12013_v12  ;;  %v1297_v17 = vor.u32 %v1296_v46, %v12015_v16  ;;  %2659 = vrot.lane.b32.xlu1 %v2557_v55, %s11162_s24 }
  0xdb   : > { %v1286_v61 = vshll.u32 %v923_v40, 16  ;;  %v897_v59 = vld [vmem:[#allocation2 + $0x48] sm:$0xf]  ;;  %v481_v51 = vor.u32 %v479_v27, %v478_v45  ;;  %v487_v62 = vshll.u32 %v351_v53, 16  ;;  %v745_v5 = vld [vmem:[#allocation2 + $0x5c] sm:$0x1]  ;;  %2661 = vrot.lane.b32.xlu0 %v2561_v54, %s11162_s24 }
  0xdc   : > { %v1274_v63 = vrot.slane %v1273_v60, 4  ;;  %v482_v1 = vrot.slane %v478_v45, 4  ;;  %v486_v3 = vrot.slane %v484_v38, 7  ;;  %v839_v6 = vld [vmem:[#allocation2 + $0x90] sm:$0xf]  ;;  %v12032_v15 = vrot.slane %v1300_v37, 5  ;;  %v1359_v60 = vpop.permute.xlu1 %1358 }
  0xdd   : > { %v1306_v4 = vrot.slane %v1304_v49, 4  ;;  %v898_v7 = vld [vmem:[#allocation2 + $0x4c] sm:$0xf]  ;;  %v742_v19 = vsel %vm11354_vm12, %v481_v51, %v741_v57  ;;  %871 = vst.msk [vmem:[#allocation4 + $0x60] sm:$0xf] %vm226_vm0, %v839_v6  ;;  %v1075_v13 = vshrl.u32 %v897_v59, 16  ;;  %v2564_v32 = vsel %vm11326_vm9, %v2562_v20, %v2563_v33  ;;  %v1361_v33 = vpop.permute.xlu0 %1360 }
  0xde   : > { %v840_v18 = vld [vmem:[#allocation2 + $0x94] sm:$0xf]  ;;  %v926_v21 = vld [vmem:[#allocation2 + $0xbc] sm:$0x1]  ;;  %v1078_v29 = vshll.u32 %v897_v59, 16  ;;  %v489_v56 = vor.u32 %v487_v62, %v486_v3  ;;  %v491_v8 = vrot.slane %v486_v3, 4  ;;  %v1279_v43 = vsel %vm11339_vm10, %v1274_v63, %v12013_v12  ;;  %2663 = vrot.lane.b32.xlu1 %v2564_v32, %s11162_s24 }
  0xdf   : > { %743 = vst [vmem:[#allocation2 + $0x54] sm:$0xf] %v742_v19  ;;  %872 = vst.msk [vmem:[#allocation4 + $0x64] sm:$0xf] %vm226_vm0, %v840_v18  ;;  %v1288_v47 = vrot.slane %v1286_v61, 5  ;;  %v1084_v26 = vshll.u32 %v898_v7, 16  ;;  %v1307_v35 = vor.u32 %v1306_v4, %v12032_v15  ;;  %1370 = vrot.lane.b32.xlu0 %v1279_v43, %s11163_s25 }
  0xe0   : > { %1431 = vst.msk [vmem:[#allocation4 + $0x50] sm:$0xf] %vm1410_vm14, %v1355_v24  ;;  %1432 = vst.msk [vmem:[#allocation4 + $0x54] sm:$0xf] %vm1410_vm14, %v1357_v25  ;;  %v1088_v30 = vshrl.u32 %v898_v7, 16  ;;  %v490_v34 = vsel %vm11347_vm11, %v482_v1, %v489_v56  ;;  %v746_v22 = vsel %vm11360_vm13, %v491_v8, %v745_v5  ;;  %v1284_v36 = vrot.slane %v1283_v11, 4  ;;  %v1695_v62 = vpop.permute.xlu1 %1694 }
  0xe1   : > { %v12041_v42 = vld [vmem:[#allocation2 + $0x9c] sm:$0xf]  ;;  %v11101_v28 = vld [vmem:[%s15919_s1 + $0x8] sm:$0x3f]   ;;  %v1310_v40 = vshll.u32 %v926_v21, 16  ;;  %v1298_v16 = vrot.slane %v1297_v17, 4  ;;  %v1697_v3 = vpop.permute.xlu0 %1696 }
  0xe2   : > { %744 = vst.msk [vmem:[#allocation2 + $0x58] sm:$0xf] %vm226_vm0, %v490_v34  ;;  %747 = vst [vmem:[#allocation2 + $0x5c] sm:$0x1] %v746_v22  ;;  %v841_v53 = vld [vmem:[#allocation2 + $0x9c] sm:$0xf]  ;;  %11081 = vmatprep.subr.msk.bf16.mxu1 %vm2946_vm1, %v11101_v28  ;;  %v1289_v57 = vsel %vm11339_vm10, %v1284_v36, %v1288_v47  ;;  %11080 = vmatprep.subr.msk.bf16.mxu0 %vm2946_vm1, %v11101_v28 }
  0xe3   : > { %v842_v27 = vld [vmem:[#allocation2 + $0xa0] sm:$0xf]  ;;  %v1486_v46 = vld [vmem:[#allocation2 + $0xac] sm:$0xf]  ;;  %v1077_v2 = vrot.slane %v1075_v13, 4  ;;  %v1080_v37 = vrot.slane %v1078_v29, 5  ;;  %v1303_v5 = vsel %vm11339_vm10, %v1298_v16, %v12032_v15  ;;  %1372 = vrot.lane.b32.xlu1 %v1289_v57, %s11163_s25 }
  0xe4   : > { %873 = vst.msk [vmem:[#allocation4 + $0x68] sm:$0xf] %vm226_vm0, %v841_v53  ;;  %874 = vst.msk [vmem:[#allocation4 + $0x6c] sm:$0xf] %vm226_vm0, %v842_v27  ;;  %v1485_v49 = vld [vmem:[#allocation2 + $0xa8] sm:$0xe]  ;;  %1374 = vrot.lane.b32.xlu0 %v1303_v5, %s11163_s25  ;;  %v1699_v8 = vpop.permute.xlu1 %1698 }
  0xe5   : > { %1433 = vst.msk [vmem:[#allocation4 + $0x58] sm:$0xf] %vm1410_vm14, %v1359_v60  ;;  %v2218_v45 = vshrl.u32 %v12041_v42, 16  ;;  %1434 = vst.msk [vmem:[#allocation4 + $0x5c] sm:$0xf] %vm1410_vm14, %v1361_v33  ;;  %v12066_v12 = vrot.slane %v1084_v26, 5  ;;  %v1081_v1 = vor.u32 %v1080_v37, %v1077_v2 }
  0xe6   : > { %v1090_v52 = vrot.slane %v1088_v30, 4  ;;  %v1918_v54 = vld [vmem:[#allocation2 + $0xa0] sm:$0xf]  ;;  %v2221_v20 = vshll.u32 %v12041_v42, 16  ;;  %v2948_v38 = vsel %vm2946_vm1, %v11101_v28, 0  ;;  %v1308_v55 = vrot.slane %v1307_v35, 4  ;;  %v1701_v28 = vpop.permute.xlu0 %1700 }
  0xe7   : > { %v1312_v61 = vrot.slane %v1310_v40, 5  ;;  %v1642_v59 = vrot.slane %v1486_v46, 5  ;;  %v899_v51 = vld [vmem:[#allocation2 + $0x50] sm:$0x1]  ;;  %11079 = vmatpush3.bf16.msra.mxu1 %v2948_v38  ;;  %v10313_v63 = vrot.slane %v1485_v49, 9  ;;  %v2227_v6 = vshll.u32 %v1918_v54, 16  ;;  %10835 = vmatpush3.bf16.msra.mxu0 %v2948_v38 }
  0xe8   : > { %v1487_v11 = vld [vmem:[#allocation2 + $0xb0] sm:$0x1]  ;;  %1771 = vst.msk [vmem:[#allocation4 + $0x50] sm:$0xf] %vm1750_vm15, %v1695_v62  ;;  %v900_v17 = vld [vmem:[#allocation2 + $0x54] sm:$0xf]  ;;  %v1091_v4 = vor.u32 %v1090_v52, %v12066_v12  ;;  %v2346_v52 = vpop.permute.xlu1 %2345 }
  0xe9   : > { %1772 = vst.msk [vmem:[#allocation4 + $0x54] sm:$0xf] %vm1750_vm15, %v1697_v3  ;;  %v1094_v7 = vshll.u32 %v899_v51, 16  ;;  %v12082_v19 = vrot.slane %v2218_v45, 4  ;;  %v2231_v15 = vshrl.u32 %v1918_v54, 16  ;;  %v1313_v18 = vsel %vm11339_vm10, %v1308_v55, %v1312_v61 }
  0xea   : > { %v1644_v24 = vrot.slane %v1642_v59, 4  ;;  %v1645_v21 = vrot.slane %v1487_v11, 5  ;;  %v1489_v13 = vld [vmem:[#allocation2 + $0xb8] sm:$0xf]  ;;  %v2223_v29 = vrot.slane %v2221_v20, 5  ;;  %v1643_v25 = vsel %vm11326_vm9, %v10313_v63, %v1642_v59  ;;  %1376 = vrot.lane.b32.xlu1 %v1313_v18, %s11163_s25  ;;  %v2348_v61 = vpop.permute.xlu0 %2347 }
  0xeb   : > { %v1837_v56 = vld [vmem:[#allocation2 + $0x84] sm:$0xf]  ;;  %v1082_v47 = vrot.slane %v1081_v1, 4  ;;  %v901_v30 = vld [vmem:[#allocation2 + $0x58] sm:$0xf]  ;;  %v1099_v42 = vshrl.u32 %v900_v17, 16  ;;  %1710 = vrot.lane.b32.xlu0 %v1643_v25, %s11162_s24 }
  0xec   : > { %v1919_v26 = vld [vmem:[#allocation2 + $0xa4] sm:$0x1]  ;;  %v1102_v34 = vshll.u32 %v900_v17, 16  ;;  %v1838_v22 = vld [vmem:[#allocation2 + $0x88] sm:$0xf]  ;;  %v12090_v36 = vrot.slane %v2227_v6, 5  ;;  %v1646_v16 = vsel %vm11326_vm9, %v1644_v24, %v1645_v21  ;;  %v2224_v46 = vor.u32 %v2223_v29, %v12082_v19  ;;  %v1329_v19 = vpop.permute.xlu1 %1328 }
  0xed   : > { %1773 = vst.msk [vmem:[#allocation4 + $0x58] sm:$0xf] %vm1750_vm15, %v1699_v8  ;;  %v1488_v32 = vld [vmem:[#allocation2 + $0xb4] sm:$0xe]  ;;  %v1920_v35 = vld [vmem:[#allocation2 + $0xa8] sm:$0xf]  ;;  %v1087_v54 = vsel %vm11339_vm10, %v1082_v47, %v12066_v12 }
  0xee   : > { %1774 = vst.msk [vmem:[#allocation4 + $0x5c] sm:$0xf] %vm1750_vm15, %v1701_v28  ;;  %v1092_v40 = vrot.slane %v1091_v4, 4  ;;  %v1096_v53 = vrot.slane %v1094_v7, 5  ;;  %v1649_v27 = vrot.slane %v1489_v13, 5  ;;  %v2233_v43 = vrot.slane %v2231_v15, 4  ;;  %1712 = vrot.lane.b32.xlu1 %v1646_v16, %s11162_s24  ;;  %v1663_v29 = vpop.permute.xlu0 %1662 }
  0xef   : > { %v1490_v60 = vld [vmem:[#allocation2 + $0xbc] sm:$0x1]  ;;  %v1108_v2 = vshll.u32 %v901_v30, 16  ;;  %v1112_v37 = vshrl.u32 %v901_v30, 16  ;;  %v823_v33 = vld [vmem:[#allocation2 + $0x30] sm:$0xf]  ;;  %1338 = vrot.lane.b32.xlu0 %v1087_v54, %s11163_s25 }
  0xf0   : > { %v824_v49 = vld [vmem:[#allocation2 + $0x34] sm:$0xf]  ;;  %v12098_v45 = vld [vmem:[#allocation4 + $0x50] sm:$0xf]  ;;  %v10314_v20 = vrot.slane %v1488_v32, 9  ;;  %v1101_v38 = vrot.slane %v1099_v42, 4  ;;  %v2234_v5 = vor.u32 %v2233_v43, %v12090_v36  ;;  %v1097_v3 = vsel %vm11339_vm10, %v1092_v40, %v1096_v53 }
  0xf1   : > { %v1104_v57 = vrot.slane %v1102_v34, 5  ;;  %855 = vst.msk [vmem:[#allocation4 + $0x20] sm:$0xf] %vm226_vm0, %v823_v33  ;;  %856 = vst.msk [vmem:[#allocation4 + $0x24] sm:$0xf] %vm226_vm0, %v824_v49  ;;  %v1652_v59 = vrot.slane %v1490_v60, 5 }
  0xf2   : > { %1869 = vst.msk [vmem:[#allocation4 + $0x50] sm:$0xf] %vm226_vm0, %v1837_v56  ;;  %v12106_v55 = vld [vmem:[#allocation4 + $0x54] sm:$0xf]  ;;  %v2237_v51 = vshll.u32 %v1919_v26, 16  ;;  %v1651_v12 = vrot.slane %v1649_v27, 4  ;;  %v1650_v15 = vsel %vm11326_vm9, %v10314_v20, %v1649_v27  ;;  %1340 = vrot.lane.b32.xlu1 %v1097_v3, %s11163_s25  ;;  %v2350_v60 = vpop.permute.xlu0 %2349 }
  0xf3   : > { %2425 = vst.msk [vmem:[#allocation4 + $0x40] sm:$0xf] %vm1410_vm14, %v2346_v52  ;;  %v1839_v62 = vld [vmem:[#allocation2 + $0x90] sm:$0xf]  ;;  %2426 = vst.msk [vmem:[#allocation4 + $0x44] sm:$0xf] %vm1410_vm14, %v2348_v61  ;;  %v1105_v24 = vor.u32 %v1104_v57, %v1101_v38  ;;  %1714 = vrot.lane.b32.xlu0 %v1650_v15, %s11162_s24 }
  0xf4   : > { %1870 = vst.msk [vmem:[#allocation4 + $0x54] sm:$0xf] %vm226_vm0, %v1838_v22  ;;  %v2242_v63 = vshrl.u32 %v1920_v35, 16  ;;  %v2245_v11 = vshll.u32 %v1920_v35, 16  ;;  %v1840_v1 = vld [vmem:[#allocation2 + $0x94] sm:$0xf]  ;;  %v1653_v8 = vsel %vm11326_vm9, %v1651_v12, %v1652_v59  ;;  %v1665_v35 = vpop.permute.xlu1 %1664 }
  0xf5   : > { %v12116_v6 = vrot.slane %v1108_v2, 5  ;;  %v1114_v17 = vrot.slane %v1112_v37, 4  ;;  %v1921_v4 = vld [vmem:[#allocation2 + $0xac] sm:$0xf]  ;;  %v12118_v7 = vld [vmem:[#allocation4 + $0x58] sm:$0xf] }
  0xf6   : > { %v2225_v18 = vrot.slane %v2224_v46, 4  ;;  %v902_v21 = vld [vmem:[#allocation2 + $0x5c] sm:$0x1]  ;;  %1871 = vst.msk [vmem:[#allocation4 + $0x58] sm:$0xf] %vm226_vm0, %v1839_v62  ;;  %v2239_v56 = vrot.slane %v2237_v51, 5  ;;  %1716 = vrot.lane.b32.xlu1 %v1653_v8, %s11162_s24  ;;  %v2682_v3 = vpop.permute.xlu0 %2681 }
  0xf7   : > { %v12123_v13 = vld [vmem:[#allocation4 + $0x5c] sm:$0xf]  ;;  %1418 = vst.msk [vmem:[#allocation4 + $0x1c] sm:$0xf] %vm1410_vm14, %v1329_v19  ;;  %v2235_v25 = vrot.slane %v2234_v5, 4  ;;  %v2244_v26 = vrot.slane %v2242_v63, 4  ;;  %v1115_v42 = vor.u32 %v1114_v17, %v12116_v6 }
  0xf8   : > { %1872 = vst.msk [vmem:[#allocation4 + $0x5c] sm:$0xf] %vm226_vm0, %v1840_v1  ;;  %v12131_v47 = vld [vmem:[#allocation2 + $0x4c] sm:$0xf]  ;;  %v2247_v30 = vrot.slane %v2245_v11, 5  ;;  %v1118_v34 = vshll.u32 %v902_v21, 16  ;;  %v2230_v40 = vsel %vm11339_vm10, %v2225_v18, %v12090_v36  ;;  %v2352_v51 = vpop.permute.xlu1 %2351 }
  0xf9   : > { %1755 = vst.msk [vmem:[#allocation4 + $0x10] sm:$0xf] %vm1750_vm15, %v1663_v29  ;;  %v1461_v22 = vld [vmem:[#allocation2 + $0x48] sm:$0xe]  ;;  %v2251_v28 = vshll.u32 %v1921_v4, 16  ;;  %v2255_v32 = vshrl.u32 %v1921_v4, 16  ;;  %v2240_v2 = vsel %vm11339_vm10, %v2235_v25, %v2239_v56  ;;  %2361 = vrot.lane.b32.xlu0 %v2230_v40, %s11163_s25 }
  0xfa   : > { %v1106_v53 = vrot.slane %v1105_v24, 4  ;;  %v1821_v27 = vld [vmem:[#allocation2 + $0x24] sm:$0xf]  ;;  %1756 = vst.msk [vmem:[#allocation4 + $0x14] sm:$0xf] %vm1750_vm15, %v1665_v35  ;;  %v1586_v43 = vrot.slane %v12131_v47, 5  ;;  %v2248_v33 = vor.u32 %v2247_v30, %v2244_v26  ;;  %2363 = vrot.lane.b32.xlu1 %v2240_v2, %s11163_s25  ;;  %v1667_v40 = vpop.permute.xlu0 %1666 }
  0xfb   : > { %v1463_v16 = vld [vmem:[#allocation2 + $0x50] sm:$0x1]  ;;  %v368_v46 = vld [vmem:[%s11321_s23 + $0x78] sm:$0xf]  ;;  %2427 = vst.msk [vmem:[#allocation4 + $0x48] sm:$0xf] %vm1410_vm14, %v2350_v60 }
  0xfc   : > { %v10305_v37 = vrot.slane %v1461_v22, 9  ;;  %v1922_v49 = vld [vmem:[#allocation2 + $0xb0] sm:$0x1]  ;;  %v12145_v36 = vld [vmem:[#allocation2 + $0x3c] sm:$0xf]  ;;  %v1116_v54 = vrot.slane %v1115_v42, 4  ;;  %v1111_v62 = vsel %vm11339_vm10, %v1106_v53, %v12116_v6  ;;  %v2684_v42 = vpop.permute.xlu1 %2683 }
  0xfd   : > { %v369_v52 = vld [vmem:[%s11321_s23 + $0x7c] sm:$0xf]  ;;  %v1120_v20 = vrot.slane %v1118_v34, 5  ;;  %v12149_v38 = vrot.slane %v2251_v28, 5  ;;  %v2257_v57 = vrot.slane %v2255_v32, 4  ;;  %v1589_v12 = vrot.slane %v1463_v16, 5  ;;  %1342 = vrot.lane.b32.xlu0 %v1111_v62, %s11163_s25 }
  0xfe   : > { %v825_v61 = vld [vmem:[#allocation2 + $0x3c] sm:$0xf]  ;;  %v1822_v59 = vld [vmem:[#allocation2 + $0x28] sm:$0xf]  ;;  %v629_v5 = vshrl.u32 %v368_v46, 16  ;;  %v632_v63 = vshll.u32 %v368_v46, 16  ;;  %v1587_v34 = vsel %vm11326_vm9, %v10305_v37, %v1586_v43 }
  0xff   : > { %857 = vst.msk [vmem:[#allocation4 + $0x28] sm:$0xf] %vm226_vm0, %v825_v61  ;;  %v826_v11 = vld [vmem:[#allocation2 + $0x40] sm:$0xf]  ;;  %v1588_v17 = vrot.slane %v1586_v43, 4  ;;  %v2261_v4 = vshll.u32 %v1922_v49, 16  ;;  %v1121_v29 = vsel %vm11339_vm10, %v1116_v54, %v1120_v20  ;;  %v2258_v56 = vor.u32 %v2257_v57, %v12149_v38 }
 0x100   : > { %v12155_v1 = vld [vmem:[#allocation4 + $0x10] sm:$0xf]  ;;  %2428 = vst.msk [vmem:[#allocation4 + $0x4c] sm:$0xf] %vm1410_vm14, %v2352_v51  ;;  %v637_v19 = vshrl.u32 %v369_v52, 16  ;;  %v640_v15 = vshll.u32 %v369_v52, 16  ;;  %1344 = vrot.lane.b32.xlu1 %v1121_v29, %s11163_s25  ;;  %v1669_v20 = vpop.permute.xlu1 %1668 }
 0x101   : > { %858 = vst.msk [vmem:[#allocation4 + $0x2c] sm:$0xf] %vm226_vm0, %v826_v11  ;;  %1853 = vst.msk [vmem:[#allocation4 + $0x10] sm:$0xf] %vm226_vm0, %v1821_v27  ;;  %v2249_v6 = vrot.slane %v2248_v33, 4  ;;  %v631_v21 = vrot.slane %v629_v5, 7  ;;  %v1590_v53 = vsel %vm11326_vm9, %v1588_v17, %v1589_v12  ;;  %1678 = vrot.lane.b32.xlu0 %v1587_v34, %s11162_s24  ;;  %v2314_v5 = vpop.permute.xlu0 %2313 }
 0x102   : > { %2761 = vst.msk [vmem:[#allocation4 + $0x40] sm:$0xf] %vm1750_vm15, %v2682_v3  ;;  %v12162_v18 = vld [vmem:[#allocation2 + $0x9c] sm:$0xe]  ;;  %v2478_v24 = vld [vmem:[#allocation2 + $0xa0] sm:$0xf] }
 0x103   : > { %v1894_v8 = vld [vmem:[#allocation2 + $0x40] sm:$0xf]  ;;  %v2026_v25 = vshrl.u32 %v12145_v36, 16  ;;  %v639_v47 = vrot.slane %v637_v19, 7  ;;  %v12169_v30 = vld [vmem:[#allocation4 + $0x14] sm:$0xf]  ;;  %v634_v28 = vor.u32 %v632_v63, %v631_v21  ;;  %v2254_v57 = vsel %vm11339_vm10, %v2249_v6, %v12149_v38 }
 0x104   : > { %v804_v26 = vld [vmem:[#allocation2 + $0xc0] sm:$0xf]  ;;  %v2029_v22 = vshll.u32 %v12145_v36, 16  ;;  %v635_v32 = vrot.slane %v631_v21, 4  ;;  %v808_v35 = vld [vmem:[#allocation2 + $0xc8] sm:$0x1]  ;;  %1680 = vrot.lane.b32.xlu1 %v1590_v53, %s11162_s24  ;;  %v2316_v21 = vpop.permute.xlu1 %2315 }
 0x105   : > { %1854 = vst.msk [vmem:[#allocation4 + $0x14] sm:$0xf] %vm226_vm0, %v1822_v59  ;;  %v2263_v27 = vrot.slane %v2261_v4, 5  ;;  %v642_v60 = vor.u32 %v640_v15, %v639_v47  ;;  %v644_v16 = vrot.slane %v639_v47, 4  ;;  %v2623_v43 = vrot.slane %v2478_v24, 5  ;;  %2365 = vrot.lane.b32.xlu0 %v2254_v57, %s11163_s25 }
 0x106   : > { %2762 = vst.msk [vmem:[#allocation4 + $0x44] sm:$0xf] %vm1750_vm15, %v2684_v42  ;;  %1757 = vst.msk [vmem:[#allocation4 + $0x18] sm:$0xf] %vm1750_vm15, %v1667_v40  ;;  %v2035_v46 = vshll.u32 %v1894_v8, 16  ;;  %v2039_v2 = vshrl.u32 %v1894_v8, 16  ;;  %v805_v37 = vsel %vm11354_vm12, %v634_v28, %v804_v26  ;;  %v2686_v42 = vpop.permute.xlu0 %2685 }
 0x107   : > { %v2259_v33 = vrot.slane %v2258_v56, 4  ;;  %v10327_v49 = vrot.slane %v12162_v18, 9  ;;  %v2479_v36 = vld [vmem:[#allocation2 + $0xa4] sm:$0x1]  ;;  %v643_v52 = vsel %vm11347_vm11, %v635_v32, %v642_v60  ;;  %806 = vst [vmem:[#allocation2 + $0xc0] sm:$0xf] %v805_v37  ;;  %v809_v54 = vsel %vm11360_vm13, %v644_v16, %v808_v35 }
 0x108   : > { %v3425_v39 = vld [vmem:[#allocation2 + $0x78] sm:$0xf]  ;;  %v3426_v61 = vld [vmem:[#allocation2 + $0x7c] sm:$0xf]  ;;  %v2028_v51 = vrot.slane %v2026_v25, 4  ;;  %v2031_v62 = vrot.slane %v2029_v22, 5 }
 0x109   : > { %v1465_v59 = vld [vmem:[#allocation2 + $0x58] sm:$0xf]  ;;  %807 = vst.msk [vmem:[#allocation2 + $0xc4] sm:$0xf] %vm226_vm0, %v643_v52  ;;  %810 = vst [vmem:[#allocation2 + $0xc8] sm:$0x1] %v809_v54  ;;  %v2264_v19 = vsel %vm11339_vm10, %v2259_v33, %v2263_v27  ;;  %v2624_v15 = vsel %vm11326_vm9, %v10327_v49, %v2623_v43 }
 0x10a   : > { %v1823_v12 = vld [vmem:[#allocation2 + $0x30] sm:$0xf]  ;;  %1758 = vst.msk [vmem:[#allocation4 + $0x1c] sm:$0xf] %vm1750_vm15, %v1669_v20  ;;  %v1464_v63 = vld [vmem:[#allocation2 + $0x54] sm:$0xe]  ;;  %v2032_v8 = vor.u32 %v2031_v62, %v2028_v51  ;;  %2367 = vrot.lane.b32.xlu1 %v2264_v19, %s11163_s25  ;;  %2697 = vrot.lane.b32.xlu0 %v2624_v15, %s11162_s24  ;;  %v2318_v49 = vpop.permute.xlu0 %2317 }
 0x10b   : > { %v1896_v44 = vld [vmem:[#allocation2 + $0x48] sm:$0xf]  ;;  %2409 = vst.msk [vmem:[#allocation4] sm:$0xf] %vm1410_vm14, %v2314_v5  ;;  %v2625_v11 = vrot.slane %v2623_v43, 4  ;;  %v2626_v38 = vrot.slane %v2479_v36, 5  ;;  %v2688_v43 = vpop.permute.xlu1 %2687 }
 0x10c   : > { %v12195_v3 = vrot.slane %v2035_v46, 5  ;;  %v1895_v17 = vld [vmem:[#allocation2 + $0x44] sm:$0x1]  ;;  %v2041_v4 = vrot.slane %v2039_v2, 4  ;;  %v1593_v6 = vrot.slane %v1465_v59, 5  ;;  %v10306_v56 = vrot.slane %v1464_v63, 9 }
 0x10d   : > { %v1466_v18 = vld [vmem:[#allocation2 + $0x5c] sm:$0x1]  ;;  %v1897_v24 = vld [vmem:[#allocation2 + $0x4c] sm:$0xf]  ;;  %v11100_v29 = vld [vmem:[#allocation4 + $0x40] sm:$0xff]   ;;  %v2050_v25 = vshrl.u32 %v1896_v44, 16  ;;  %v2627_v22 = vsel %vm11326_vm9, %v2625_v11, %v2626_v38 }
 0x10e   : > { %v2053_v47 = vshll.u32 %v1896_v44, 16  ;;  %v12202_v26 = vld [vmem:[#allocation4 + $0x18] sm:$0xf]  ;;  %2410 = vst.msk [vmem:[#allocation4 + $0x4] sm:$0xf] %vm1410_vm14, %v2316_v21  ;;  %10852 = vmatprep.mubr.msk.bf16.mxu1 %vm2897_vm2, %v11100_v29  ;;  %v2042_v28 = vor.u32 %v2041_v4, %v12195_v3  ;;  %v2045_v32 = vshll.u32 %v1895_v17, 16  ;;  %v1594_v46 = vsel %vm11326_vm9, %v10306_v56, %v1593_v6  ;;  %2699 = vrot.lane.b32.xlu1 %v2627_v22, %s11162_s24  ;;  %v2650_v17 = vpop.permute.xlu0 %2649 }
 0x10f   : > { %3457 = vst.msk [vmem:[#allocation4 + $0x40] sm:$0xf] %vm226_vm0, %v3425_v39  ;;  %3458 = vst.msk [vmem:[#allocation4 + $0x44] sm:$0xf] %vm226_vm0, %v3426_v61  ;;  %v1824_v34 = vld [vmem:[#allocation2 + $0x34] sm:$0xf]  ;;  %1682 = vrot.lane.b32.xlu0 %v1594_v46, %s11162_s24  ;;  %v2320_v62 = vpop.permute.xlu1 %2319 }
 0x110   : > { %1855 = vst.msk [vmem:[#allocation4 + $0x18] sm:$0xf] %vm226_vm0, %v1823_v12  ;;  %v1595_v35 = vrot.slane %v1593_v6, 4  ;;  %v1596_v40 = vrot.slane %v1466_v18, 5  ;;  %v2481_v53 = vld [vmem:[#allocation2 + $0xac] sm:$0xf] }
 0x111   : > { %2763 = vst.msk [vmem:[#allocation4 + $0x48] sm:$0xf] %vm1750_vm15, %v2686_v42  ;;  %v2059_v27 = vshll.u32 %v1897_v24, 16  ;;  %v2063_v60 = vshrl.u32 %v1897_v24, 16  ;;  %v12215_v16 = vld [vmem:[#allocation4 + $0x1c] sm:$0xf] }
 0x112   : > { %v2033_v2 = vrot.slane %v2032_v8, 4  ;;  %v2052_v37 = vrot.slane %v2050_v25, 4  ;;  %v2055_v33 = vrot.slane %v2053_v47, 5  ;;  %1856 = vst.msk [vmem:[#allocation4 + $0x1c] sm:$0xf] %vm226_vm0, %v1824_v34  ;;  %v2043_v52 = vrot.slane %v2042_v28, 4  ;;  %v2654_v22 = vpop.permute.xlu0 %2653 }
 0x113   : > { %2764 = vst.msk [vmem:[#allocation4 + $0x4c] sm:$0xf] %vm1750_vm15, %v2688_v43  ;;  %v2480_v36 = vld [vmem:[#allocation2 + $0xa8] sm:$0xe]  ;;  %v2047_v54 = vrot.slane %v2045_v32, 5  ;;  %v2630_v20 = vrot.slane %v2481_v53, 5  ;;  %v1597_v39 = vsel %vm11326_vm9, %v1595_v35, %v1596_v40  ;;  %v2652_v25 = vpop.permute.xlu1 %2651 }
 0x114   : > { %2411 = vst.msk [vmem:[#allocation4 + $0x8] sm:$0xf] %vm1410_vm14, %v2318_v49  ;;  %v3427_v57 = vld [vmem:[#allocation2 + $0x84] sm:$0xf]  ;;  %v2482_v61 = vld [vmem:[#allocation2 + $0xb0] sm:$0x1]  ;;  %v2038_v12 = vsel %vm11339_vm10, %v2033_v2, %v12195_v3  ;;  %v2056_v63 = vor.u32 %v2055_v33, %v2052_v37  ;;  %1684 = vrot.lane.b32.xlu1 %v1597_v39, %s11162_s24 }
 0x115   : > { %v12226_v59 = vrot.slane %v2059_v27, 5  ;;  %v2065_v51 = vrot.slane %v2063_v60, 4  ;;  %v10328_v5 = vrot.slane %v2480_v36, 9  ;;  %v1898_v44 = vld [vmem:[#allocation2 + $0x50] sm:$0x1]  ;;  %v2048_v19 = vsel %vm11339_vm10, %v2043_v52, %v2047_v54  ;;  %2329 = vrot.lane.b32.xlu0 %v2038_v12, %s11163_s25 }
 0x116   : > { %v1923_v11 = vld [vmem:[#allocation2 + $0xb4] sm:$0xf]  ;;  %2412 = vst.msk [vmem:[#allocation4 + $0xc] sm:$0xf] %vm1410_vm14, %v2320_v62  ;;  %v3428_v4 = vld [vmem:[#allocation2 + $0x88] sm:$0xf] }
 0x117   : > { %2745 = vst.msk [vmem:[#allocation4] sm:$0xf] %vm1750_vm15, %v2650_v17  ;;  %v2632_v15 = vrot.slane %v2630_v20, 4  ;;  %v2633_v3 = vrot.slane %v2482_v61, 5  ;;  %v2454_v6 = vld [vmem:[#allocation2 + $0x40] sm:$0xf]  ;;  %v2066_v18 = vor.u32 %v2065_v51, %v12226_v59  ;;  %v2631_v47 = vsel %vm11326_vm9, %v10328_v5, %v2630_v20  ;;  %v2656_v49 = vpop.permute.xlu1 %2655  ;;  %v1363_v51 = vpop.permute.xlu0 %1362 }
 0x118   : > { %v2795_v38 = vld [vmem:[#allocation4 + $0x48] sm:$0xf]  ;;  %v2069_v24 = vshll.u32 %v1898_v44, 16  ;;  %v2266_v29 = vshrl.u32 %v1923_v11, 16  ;;  %v2269_v56 = vshll.u32 %v1923_v11, 16  ;;  %v2057_v42 = vrot.slane %v2056_v63, 4  ;;  %2331 = vrot.lane.b32.xlu1 %v2048_v19, %s11163_s25 }
 0x119   : > { %3459 = vst.msk [vmem:[#allocation4 + $0x48] sm:$0xf] %vm226_vm0, %v3427_v57  ;;  %v1924_v21 = vld [vmem:[#allocation2 + $0xb8] sm:$0xf]  ;;  %v2453_v28 = vld [vmem:[#allocation2 + $0x3c] sm:$0xe]  ;;  %v2634_v35 = vsel %vm11326_vm9, %v2632_v15, %v2633_v3  ;;  %2701 = vrot.lane.b32.xlu0 %v2631_v47, %s11162_s24 }
 0x11a   : > { %v2796_v8 = vld [vmem:[#allocation4 + $0x4c] sm:$0xf]  ;;  %2746 = vst.msk [vmem:[#allocation4 + $0x4] sm:$0xf] %vm1750_vm15, %v2652_v25  ;;  %v1926_v32 = vld [vmem:[#allocation2 + $0xc0] sm:$0xf]  ;;  %v2062_v36 = vsel %vm11339_vm10, %v2057_v42, %v12226_v59 }
 0x11b   : > { %3460 = vst.msk [vmem:[#allocation4 + $0x4c] sm:$0xf] %vm226_vm0, %v3428_v4  ;;  %v10342_v34 = vcombine.low %v2795_v38, %v2796_v8  ;;  %v2567_v40 = vrot.slane %v2454_v6, 5  ;;  %v2455_v53 = vld [vmem:[#allocation2 + $0x44] sm:$0x1]  ;;  %v2275_v27 = vshll.u32 %v1924_v21, 16  ;;  %v1365_v6 = vpop.permute.xlu1 %1364  ;;  %v1367_v25 = vpop.permute.xlu0 %1366 }
 0x11c   : > { %2747 = vst.msk [vmem:[#allocation4 + $0x8] sm:$0xf] %vm1750_vm15, %v2654_v22  ;;  %v2279_v60 = vshrl.u32 %v1924_v21, 16  ;;  %v2067_v43 = vrot.slane %v2066_v18, 4  ;;  %v2071_v46 = vrot.slane %v2069_v24, 5  ;;  %v2268_v37 = vrot.slane %v2266_v29, 4  ;;  %2703 = vrot.lane.b32.xlu1 %v2634_v35, %s11162_s24 }
 0x11d   : > { %10853 = vmatmul.mubr.msk.bf16.vlgmr.msra.gmra.mxu1 %vm2897_vm2, %v10342_v34  ;;  %v2457_v2 = vld [vmem:[#allocation2 + $0x4c] sm:$0xf]  ;;  %v2271_v33 = vrot.slane %v2269_v56, 5  ;;  %v3409_v52 = vld [vmem:[#allocation2 + $0x18] sm:$0xf]  ;;  %v10319_v54 = vrot.slane %v2453_v28, 9  ;;  %2333 = vrot.lane.b32.xlu0 %v2062_v36, %s11163_s25 }
 0x11e   : > { %v1927_v20 = vld [vmem:[#allocation2 + $0xc4] sm:$0xf]  ;;  %v2290_v57 = vshrl.u32 %v1926_v32, 16  ;;  %v2293_v39 = vshll.u32 %v1926_v32, 16  ;;  %2748 = vst.msk [vmem:[#allocation4 + $0xc] sm:$0xf] %vm1750_vm15, %v2656_v49  ;;  %v2072_v38 = vsel %vm11339_vm10, %v2067_v43, %v2071_v46 }
 0x11f   : > { %v3411_v61 = vld [vmem:[#allocation2 + $0x24] sm:$0xf]  ;;  %v2570_v62 = vrot.slane %v2455_v53, 5  ;;  %v2456_v12 = vld [vmem:[#allocation2 + $0x48] sm:$0xe]  ;;  %v2569_v63 = vrot.slane %v2567_v40, 4  ;;  %v2272_v4 = vor.u32 %v2271_v33, %v2268_v37  ;;  %v2568_v24 = vsel %vm11326_vm9, %v10319_v54, %v2567_v40  ;;  %v1369_v46 = vpop.permute.xlu1 %1368  ;;  %v1703_v54 = vpop.permute.xlu0 %1702 }
 0x120   : > { %1435 = vst.msk [vmem:[#allocation4 + $0x60] sm:$0xf] %vm1410_vm14, %v1363_v51  ;;  %v3410_v5 = vld [vmem:[#allocation2 + $0x1c] sm:$0xf]  ;;  %v2574_v44 = vrot.slane %v2457_v2, 5  ;;  %v12255_v11 = vrot.slane %v2275_v27, 5  ;;  %2335 = vrot.lane.b32.xlu1 %v2072_v38, %s11163_s25 }
 0x121   : > { %v2281_v59 = vrot.slane %v2279_v60, 4  ;;  %v2458_v17 = vld [vmem:[#allocation2 + $0x50] sm:$0x1]  ;;  %v1925_v19 = vld [vmem:[#allocation2 + $0xbc] sm:$0x1]  ;;  %v2299_v15 = vshll.u32 %v1927_v20, 16  ;;  %v2571_v34 = vsel %vm11326_vm9, %v2569_v63, %v2570_v62  ;;  %2665 = vrot.lane.b32.xlu0 %v2568_v24, %s11162_s24 }
 0x122   : > { %v2303_v3 = vshrl.u32 %v1927_v20, 16  ;;  %v11102_v18 = vld [vmem:[#allocation4] sm:$0xff]   ;;  %v10320_v21 = vrot.slane %v2456_v12, 9  ;;  %v2292_v29 = vrot.slane %v2290_v57, 4  ;;  %v2295_v56 = vrot.slane %v2293_v39, 5 }
 0x123   : > { %v2779_v8 = vld [vmem:[#allocation4 + $0x8] sm:$0xf]  ;;  %1436 = vst.msk [vmem:[#allocation4 + $0x64] sm:$0xf] %vm1410_vm14, %v1365_v6  ;;  %v1899_v47 = vld [vmem:[#allocation2 + $0x54] sm:$0xf]  ;;  %10836 = vmatprep.mubr.msk.bf16.mxu0 %vm2897_vm2, %v11102_v18  ;;  %v2282_v28 = vor.u32 %v2281_v59, %v12255_v11  ;;  %v1705_v38 = vpop.permute.xlu1 %1704  ;;  %v1331_v18 = vpop.permute.xlu0 %1330 }
 0x124   : > { %3441 = vst.msk [vmem:[#allocation4] sm:$0xf] %vm226_vm0, %v3409_v52  ;;  %3442 = vst.msk [vmem:[#allocation4 + $0x4] sm:$0xf] %vm226_vm0, %v3410_v5  ;;  %v3412_v42 = vld [vmem:[#allocation2 + $0x28] sm:$0xf]  ;;  %v2575_v2 = vsel %vm11326_vm9, %v10320_v21, %v2574_v44  ;;  %v2296_v37 = vor.u32 %v2295_v56, %v2292_v29  ;;  %2667 = vrot.lane.b32.xlu1 %v2571_v34, %s11162_s24 }
 0x125   : > { %3443 = vst.msk [vmem:[#allocation4 + $0x8] sm:$0xf] %vm226_vm0, %v3411_v61  ;;  %v2577_v22 = vrot.slane %v2458_v17, 5  ;;  %v2285_v32 = vshll.u32 %v1925_v19, 16  ;;  %v2576_v35 = vrot.slane %v2574_v44, 4  ;;  %v2273_v40 = vrot.slane %v2272_v4, 4  ;;  %2669 = vrot.lane.b32.xlu0 %v2575_v2, %s11162_s24 }
 0x126   : > { %1437 = vst.msk [vmem:[#allocation4 + $0x68] sm:$0xf] %vm1410_vm14, %v1367_v25  ;;  %v12273_v53 = vrot.slane %v2299_v15, 5  ;;  %v2305_v27 = vrot.slane %v2303_v3, 4  ;;  %v1900_v60 = vld [vmem:[#allocation2 + $0x58] sm:$0xf] }
 0x127   : > { %v2780_v43 = vld [vmem:[#allocation4 + $0xc] sm:$0xf]  ;;  %v1928_v33 = vld [vmem:[#allocation2 + $0xc8] sm:$0x1]  ;;  %v2074_v49 = vshrl.u32 %v1899_v47, 16  ;;  %v2077_v36 = vshll.u32 %v1899_v47, 16  ;;  %v2578_v62 = vsel %vm11326_vm9, %v2576_v35, %v2577_v22  ;;  %v2278_v17 = vsel %vm11339_vm10, %v2273_v40, %v12255_v11  ;;  %v1333_v35 = vpop.permute.xlu1 %1332 }
 0x128   : > { %3444 = vst.msk [vmem:[#allocation4 + $0xc] sm:$0xf] %vm226_vm0, %v3412_v42  ;;  %v10334_v52 = vcombine.low %v2779_v8, %v2780_v43  ;;  %v12279_v20 = vld [vmem:[#allocation2 + $0xb8] sm:$0xf]  ;;  %v2283_v57 = vrot.slane %v2282_v28, 4  ;;  %v2287_v39 = vrot.slane %v2285_v32, 5  ;;  %v2306_v12 = vor.u32 %v2305_v27, %v12273_v53  ;;  %2671 = vrot.lane.b32.xlu1 %v2578_v62, %s11162_s24 }
 0x129   : > { %1438 = vst.msk [vmem:[#allocation4 + $0x6c] sm:$0xf] %vm1410_vm14, %v1369_v46  ;;  %v2083_v61 = vshll.u32 %v1900_v60, 16  ;;  %v1902_v51 = vld [vmem:[#allocation2 + $0x60] sm:$0xf]  ;;  %v2309_v5 = vshll.u32 %v1928_v33, 16  ;;  %2369 = vrot.lane.b32.xlu0 %v2278_v17, %s11163_s25  ;;  %v1707_v46 = vpop.permute.xlu0 %1706 }
 0x12a   : > { %1775 = vst.msk [vmem:[#allocation4 + $0x60] sm:$0xf] %vm1750_vm15, %v1703_v54  ;;  %10837 = vmatmul.mubr.msk.bf16.vlgmr.msra.gmra.mxu0 %vm2897_vm2, %v10334_v52  ;;  %v2087_v63 = vshrl.u32 %v1900_v60, 16  ;;  %v843_v44 = vld [vmem:[#allocation2 + $0xa8] sm:$0xf]  ;;  %v2297_v4 = vrot.slane %v2296_v37, 4  ;;  %v2288_v11 = vsel %vm11339_vm10, %v2283_v57, %v2287_v39 }
 0x12b   : > { %v844_v59 = vld [vmem:[#allocation2 + $0xac] sm:$0xf]  ;;  %v2483_v19 = vld [vmem:[#allocation2 + $0xb4] sm:$0xe]  ;;  %v2076_v15 = vrot.slane %v2074_v49, 4  ;;  %v2079_v3 = vrot.slane %v2077_v36, 5 }
 0x12c   : > { %875 = vst.msk [vmem:[#allocation4 + $0x70] sm:$0xf] %vm226_vm0, %v843_v44  ;;  %876 = vst.msk [vmem:[#allocation4 + $0x74] sm:$0xf] %vm226_vm0, %v844_v59  ;;  %v1841_v6 = vld [vmem:[#allocation2 + $0x9c] sm:$0xf]  ;;  %v2302_v40 = vsel %vm11339_vm10, %v2297_v4, %v12273_v53  ;;  %2371 = vrot.lane.b32.xlu1 %v2288_v11, %s11163_s25 }
 0x12d   : > { %1776 = vst.msk [vmem:[#allocation4 + $0x64] sm:$0xf] %vm1750_vm15, %v1705_v38  ;;  %v2637_v24 = vrot.slane %v12279_v20, 5  ;;  %v2485_v21 = vld [vmem:[#allocation2 + $0xbc] sm:$0x1]  ;;  %v12299_v56 = vrot.slane %v2083_v61, 5  ;;  %v2080_v60 = vor.u32 %v2079_v3, %v2076_v15  ;;  %2373 = vrot.lane.b32.xlu0 %v2302_v40, %s11163_s25  ;;  %v1709_v61 = vpop.permute.xlu1 %1708 }
 0x12e   : > { %v1901_v29 = vld [vmem:[#allocation2 + $0x5c] sm:$0x1]  ;;  %1419 = vst.msk [vmem:[#allocation4 + $0x20] sm:$0xf] %vm1410_vm14, %v1331_v18  ;;  %v1903_v8 = vld [vmem:[#allocation2 + $0x64] sm:$0xf] }
 0x12f   : > { %v2098_v25 = vshrl.u32 %v1902_v51, 16  ;;  %v845_v47 = vld [vmem:[#allocation2 + $0xb4] sm:$0xf]  ;;  %v2307_v42 = vrot.slane %v2306_v12, 4  ;;  %v2311_v34 = vrot.slane %v2309_v5, 5  ;;  %v2089_v22 = vrot.slane %v2087_v63, 4  ;;  %v2354_v5 = vpop.permute.xlu0 %2353 }
 0x130   : > { %v2101_v28 = vshll.u32 %v1902_v51, 16  ;;  %877 = vst.msk [vmem:[#allocation4 + $0x78] sm:$0xf] %vm226_vm0, %v845_v47  ;;  %v846_v32 = vld [vmem:[#allocation2 + $0xb8] sm:$0xf]  ;;  %v10329_v27 = vrot.slane %v2483_v19, 9 }
 0x131   : > { %878 = vst.msk [vmem:[#allocation4 + $0x7c] sm:$0xf] %vm226_vm0, %v846_v32  ;;  %v12307_v43 = vld [vmem:[#allocation4 + $0x60] sm:$0xf]  ;;  %v2107_v2 = vshll.u32 %v1903_v8, 16  ;;  %v2111_v37 = vshrl.u32 %v1903_v8, 16  ;;  %v2312_v52 = vsel %vm11339_vm10, %v2307_v42, %v2311_v34  ;;  %v2090_v54 = vor.u32 %v2089_v22, %v12299_v56 }
 0x132   : > { %1420 = vst.msk [vmem:[#allocation4 + $0x24] sm:$0xf] %vm1410_vm14, %v1333_v35  ;;  %v1842_v33 = vld [vmem:[#allocation2 + $0xa0] sm:$0xf]  ;;  %v2639_v49 = vrot.slane %v2637_v24, 4  ;;  %v2640_v53 = vrot.slane %v2485_v21, 5  ;;  %v2638_v51 = vsel %vm11326_vm9, %v10329_v27, %v2637_v24  ;;  %2375 = vrot.lane.b32.xlu1 %v2312_v52, %s11163_s25  ;;  %v2356_v21 = vpop.permute.xlu1 %2355 }
 0x133   : > { %1873 = vst.msk [vmem:[#allocation4 + $0x60] sm:$0xf] %vm226_vm0, %v1841_v6  ;;  %v2093_v36 = vshll.u32 %v1901_v29, 16  ;;  %v2100_v20 = vrot.slane %v2098_v25, 4  ;;  %v2103_v57 = vrot.slane %v2101_v28, 5  ;;  %v2081_v62 = vrot.slane %v2080_v60, 4  ;;  %2705 = vrot.lane.b32.xlu0 %v2638_v51, %s11162_s24  ;;  %v1335_v47 = vpop.permute.xlu0 %1334 }
 0x134   : > { %1777 = vst.msk [vmem:[#allocation4 + $0x68] sm:$0xf] %vm1750_vm15, %v1707_v46  ;;  %v12317_v39 = vld [vmem:[#allocation4 + $0x64] sm:$0xf]  ;;  %v2487_v12 = vld [vmem:[#allocation2 + $0xc4] sm:$0xf]  ;;  %v2641_v17 = vsel %vm11326_vm9, %v2639_v49, %v2640_v53 }
 0x135   : > { %1874 = vst.msk [vmem:[#allocation4 + $0x64] sm:$0xf] %vm226_vm0, %v1842_v33  ;;  %v2486_v63 = vld [vmem:[#allocation2 + $0xc0] sm:$0xe]  ;;  %v12323_v44 = vrot.slane %v2107_v2, 5  ;;  %v2113_v59 = vrot.slane %v2111_v37, 4  ;;  %v2104_v24 = vor.u32 %v2103_v57, %v2100_v20  ;;  %v2086_v29 = vsel %vm11339_vm10, %v2081_v62, %v12299_v56 }
 0x136   : > { %1778 = vst.msk [vmem:[#allocation4 + $0x6c] sm:$0xf] %vm1750_vm15, %v1709_v61  ;;  %v827_v38 = vld [vmem:[#allocation2 + $0x48] sm:$0xf]  ;;  %v828_v19 = vld [vmem:[#allocation2 + $0x4c] sm:$0xf]  ;;  %2707 = vrot.lane.b32.xlu1 %v2641_v17, %s11162_s24  ;;  %v1337_v2 = vpop.permute.xlu1 %1336 }
 0x137   : > { %2429 = vst.msk [vmem:[#allocation4 + $0x50] sm:$0xf] %vm1410_vm14, %v2354_v5  ;;  %v1904_v4 = vld [vmem:[#allocation2 + $0x68] sm:$0x1]  ;;  %v2091_v3 = vrot.slane %v2090_v54, 4  ;;  %v2095_v6 = vrot.slane %v2093_v36, 5  ;;  %v2114_v42 = vor.u32 %v2113_v59, %v12323_v44  ;;  %2337 = vrot.lane.b32.xlu0 %v2086_v29, %s11163_s25  ;;  %v1671_v36 = vpop.permute.xlu0 %1670 }
 0x138   : > { %859 = vst.msk [vmem:[#allocation4 + $0x30] sm:$0xf] %vm226_vm0, %v827_v38  ;;  %v1843_v15 = vld [vmem:[#allocation2 + $0xa8] sm:$0xf]  ;;  %v2644_v18 = vrot.slane %v2487_v12, 5  ;;  %v10330_v11 = vrot.slane %v2486_v63, 9 }
 0x139   : > { %860 = vst.msk [vmem:[#allocation4 + $0x34] sm:$0xf] %vm226_vm0, %v828_v19  ;;  %v2488_v8 = vld [vmem:[#allocation2 + $0xc8] sm:$0x1]  ;;  %v2117_v34 = vshll.u32 %v1904_v4, 16  ;;  %v2096_v56 = vsel %vm11339_vm10, %v2091_v3, %v2095_v6  ;;  %v2105_v27 = vrot.slane %v2104_v24, 4 }
 0x13a   : > { %2430 = vst.msk [vmem:[#allocation4 + $0x54] sm:$0xf] %vm1410_vm14, %v2356_v21  ;;  %v3473_v22 = vld [vmem:[#allocation2 + $0x18] sm:$0xf]  ;;  %v1844_v28 = vld [vmem:[#allocation2 + $0xac] sm:$0xf]  ;;  %v2645_v37 = vsel %vm11326_vm9, %v10330_v11, %v2644_v18  ;;  %2339 = vrot.lane.b32.xlu1 %v2096_v56, %s11163_s25  ;;  %v1673_v19 = vpop.permute.xlu1 %1672 }
 0x13b   : > { %v12335_v25 = vld [vmem:[#allocation4 + $0x68] sm:$0xf]  ;;  %1421 = vst.msk [vmem:[#allocation4 + $0x28] sm:$0xf] %vm1410_vm14, %v1335_v47  ;;  %v2459_v32 = vld [vmem:[#allocation2 + $0x54] sm:$0xe]  ;;  %2709 = vrot.lane.b32.xlu0 %v2645_v37, %s11162_s24  ;;  %v2110_v63 = vsel %vm11339_vm10, %v2105_v27, %v12323_v44  ;;  %v2358_v21 = vpop.permute.xlu0 %2357 }
 0x13c   : > { %1875 = vst.msk [vmem:[#allocation4 + $0x68] sm:$0xf] %vm226_vm0, %v1843_v15  ;;  %v2646_v35 = vrot.slane %v2644_v18, 4  ;;  %v2647_v40 = vrot.slane %v2488_v8, 5  ;;  %v2460_v60 = vld [vmem:[#allocation2 + $0x58] sm:$0xf] }
 0x13d   : > { %v12345_v46 = vld [vmem:[#allocation4 + $0x6c] sm:$0xf]  ;;  %v3522_v49 = vshrl.u32 %v3473_v22, 16  ;;  %v3525_v53 = vshll.u32 %v3473_v22, 16  ;;  %1422 = vst.msk [vmem:[#allocation4 + $0x2c] sm:$0xf] %vm1410_vm14, %v1337_v2 }
 0x13e   : > { %v3474_v33 = vld [vmem:[#allocation2 + $0x1c] sm:$0xf]  ;;  %1876 = vst.msk [vmem:[#allocation4 + $0x6c] sm:$0xf] %vm226_vm0, %v1844_v28  ;;  %v2115_v52 = vrot.slane %v2114_v42, 4  ;;  %v2119_v54 = vrot.slane %v2117_v34, 5  ;;  %v2648_v5 = vsel %vm11326_vm9, %v2646_v35, %v2647_v40  ;;  %v2360_v56 = vpop.permute.xlu1 %2359 }
 0x13f   : > { %v2461_v20 = vld [vmem:[#allocation2 + $0x5c] sm:$0x1]  ;;  %v3476_v57 = vld [vmem:[#allocation2 + $0x24] sm:$0xf]  ;;  %1759 = vst.msk [vmem:[#allocation4 + $0x20] sm:$0xf] %vm1750_vm15, %v1671_v36  ;;  %2711 = vrot.lane.b32.xlu1 %v2648_v5, %s11162_s24  ;;  %2341 = vrot.lane.b32.xlu0 %v2110_v63, %s11163_s25 }
 0x140   : > { %v10321_v61 = vrot.slane %v2459_v32, 9  ;;  %v2581_v51 = vrot.slane %v2460_v60, 5  ;;  %v2462_v62 = vld [vmem:[#allocation2 + $0x60] sm:$0xe]  ;;  %v2463_v12 = vld [vmem:[#allocation2 + $0x64] sm:$0xf]  ;;  %v2120_v29 = vsel %vm11339_vm10, %v2115_v52, %v2119_v54 }
 0x141   : > { %v3531_v59 = vshll.u32 %v3474_v33, 16  ;;  %v3535_v38 = vshrl.u32 %v3474_v33, 16  ;;  %v3477_v17 = vld [vmem:[#allocation2 + $0x28] sm:$0xf]  ;;  %v829_v4 = vld [vmem:[#allocation2 + $0x54] sm:$0xf] }
 0x142   : > { %v3524_v15 = vrot.slane %v3522_v49, 4  ;;  %v3527_v3 = vrot.slane %v3525_v53, 5  ;;  %v3546_v6 = vshrl.u32 %v3476_v57, 16  ;;  %v3549_v18 = vshll.u32 %v3476_v57, 16  ;;  %861 = vst.msk [vmem:[#allocation4 + $0x38] sm:$0xf] %vm226_vm0, %v829_v4  ;;  %v2690_v49 = vpop.permute.xlu0 %2689  ;;  %v2692_v5 = vpop.permute.xlu1 %2691 }
 0x143   : > { %v830_v24 = vld [vmem:[#allocation2 + $0x58] sm:$0xf]  ;;  %1760 = vst.msk [vmem:[#allocation4 + $0x24] sm:$0xf] %vm1750_vm15, %v1673_v19  ;;  %v2583_v44 = vrot.slane %v2581_v51, 4  ;;  %v2584_v11 = vrot.slane %v2461_v20, 5  ;;  %v2582_v35 = vsel %vm11326_vm9, %v10321_v61, %v2581_v51  ;;  %2343 = vrot.lane.b32.xlu1 %v2120_v29, %s11163_s25 }
 0x144   : > { %862 = vst.msk [vmem:[#allocation4 + $0x3c] sm:$0xf] %vm226_vm0, %v830_v24  ;;  %v3555_v8 = vshll.u32 %v3477_v17, 16  ;;  %v3559_v47 = vshrl.u32 %v3477_v17, 16  ;;  %v1825_v42 = vld [vmem:[#allocation2 + $0x3c] sm:$0xf]  ;;  %v3528_v27 = vor.u32 %v3527_v3, %v3524_v15  ;;  %2673 = vrot.lane.b32.xlu0 %v2582_v35, %s11162_s24 }
 0x145   : > { %2431 = vst.msk [vmem:[#allocation4 + $0x58] sm:$0xf] %vm1410_vm14, %v2358_v21  ;;  %v10322_v34 = vrot.slane %v2462_v62, 9  ;;  %v2588_v22 = vrot.slane %v2463_v12, 5  ;;  %v12367_v28 = vrot.slane %v3531_v59, 5  ;;  %v3537_v32 = vrot.slane %v3535_v38, 4 }
 0x146   : > { %v2464_v40 = vld [vmem:[#allocation2 + $0x68] sm:$0x1]  ;;  %v3475_v60 = vld [vmem:[#allocation2 + $0x20] sm:$0x1]  ;;  %v3548_v2 = vrot.slane %v3546_v6, 4  ;;  %v3551_v37 = vrot.slane %v3549_v18, 5  ;;  %v2585_v36 = vsel %vm11326_vm9, %v2583_v44, %v2584_v11  ;;  %v1675_v17 = vpop.permute.xlu0 %1674 }
 0x147   : > { %v12371_v33 = vld [vmem:[#allocation4 + $0x20] sm:$0xf]  ;;  %2432 = vst.msk [vmem:[#allocation4 + $0x5c] sm:$0xf] %vm1410_vm14, %v2360_v56  ;;  %v1826_v53 = vld [vmem:[#allocation2 + $0x40] sm:$0xf]  ;;  %v3538_v61 = vor.u32 %v3537_v32, %v12367_v28  ;;  %v2589_v63 = vsel %vm11326_vm9, %v10322_v34, %v2588_v22  ;;  %2675 = vrot.lane.b32.xlu1 %v2585_v36, %s11162_s24 }
 0x148   : > { %1857 = vst.msk [vmem:[#allocation4 + $0x20] sm:$0xf] %vm226_vm0, %v1825_v42  ;;  %v12379_v52 = vrot.slane %v3555_v8, 5  ;;  %v3561_v54 = vrot.slane %v3559_v47, 4  ;;  %v2590_v20 = vrot.slane %v2588_v22, 4  ;;  %v2591_v57 = vrot.slane %v2464_v40, 5  ;;  %2677 = vrot.lane.b32.xlu0 %v2589_v63, %s11162_s24  ;;  %v1677_v8 = vpop.permute.xlu1 %1676 }
 0x149   : > { %2765 = vst.msk [vmem:[#allocation4 + $0x50] sm:$0xf] %vm1750_vm15, %v2690_v49  ;;  %v3541_v51 = vshll.u32 %v3475_v60, 16  ;;  %v3478_v62 = vld [vmem:[#allocation2 + $0x2c] sm:$0x1]  ;;  %v3529_v59 = vrot.slane %v3528_v27, 4  ;;  %v3552_v38 = vor.u32 %v3551_v37, %v3548_v2 }
 0x14a   : > { %v12383_v12 = vld [vmem:[#allocation4 + $0x24] sm:$0xf]  ;;  %2766 = vst.msk [vmem:[#allocation4 + $0x54] sm:$0xf] %vm1750_vm15, %v2692_v5  ;;  %v3479_v4 = vld [vmem:[#allocation2 + $0x30] sm:$0xf]  ;;  %v3562_v15 = vor.u32 %v3561_v54, %v12379_v52  ;;  %v2592_v18 = vsel %vm11326_vm9, %v2590_v20, %v2591_v57  ;;  %v2322_v40 = vpop.permute.xlu0 %2321 }
 0x14b   : > { %1858 = vst.msk [vmem:[#allocation4 + $0x24] sm:$0xf] %vm226_vm0, %v1826_v53  ;;  %v3429_v19 = vld [vmem:[#allocation2 + $0x90] sm:$0xf]  ;;  %v3565_v3 = vshll.u32 %v3478_v62, 16  ;;  %v3539_v24 = vrot.slane %v3538_v61, 4  ;;  %v3534_v47 = vsel %vm11339_vm10, %v3529_v59, %v12367_v28  ;;  %2679 = vrot.lane.b32.xlu1 %v2592_v18, %s11162_s24 }
 0x14c   : > { %1761 = vst.msk [vmem:[#allocation4 + $0x28] sm:$0xf] %vm1750_vm15, %v1675_v17  ;;  %v12392_v6 = vld [vmem:[#allocation2 + $0x1c] sm:$0xf]  ;;  %v3543_v21 = vrot.slane %v3541_v51, 5  ;;  %v3553_v42 = vrot.slane %v3552_v38, 4  ;;  %3905 = vrot.lane.b32.xlu0 %v3534_v47, %s11163_s25  ;;  %v2324_v62 = vpop.permute.xlu1 %2323 }
 0x14d   : > { %v4033_v29 = vld [vmem:[#allocation2 + $0x18] sm:$0xe]  ;;  %v3480_v44 = vld [vmem:[#allocation2 + $0x34] sm:$0xf]  ;;  %v3570_v34 = vshrl.u32 %v3479_v4, 16  ;;  %v3573_v22 = vshll.u32 %v3479_v4, 16 }
 0x14e   : > { %v3430_v11 = vld [vmem:[#allocation2 + $0x94] sm:$0xf]  ;;  %v3482_v32 = vld [vmem:[#allocation2 + $0x3c] sm:$0xf]  ;;  %v1827_v35 = vld [vmem:[#allocation2 + $0x48] sm:$0xf]  ;;  %v3544_v53 = vsel %vm11339_vm10, %v3539_v24, %v3543_v21  ;;  %v3558_v5 = vsel %vm11339_vm10, %v3553_v42, %v12379_v52 }
 0x14f   : > { %1762 = vst.msk [vmem:[#allocation4 + $0x2c] sm:$0xf] %vm1750_vm15, %v1677_v8  ;;  %v4131_v27 = vrot.slane %v12392_v6, 5  ;;  %v3563_v60 = vrot.slane %v3562_v15, 4  ;;  %v3567_v2 = vrot.slane %v3565_v3, 5  ;;  %v3579_v37 = vshll.u32 %v3480_v44, 16  ;;  %3907 = vrot.lane.b32.xlu1 %v3544_v53, %s11163_s25 }
 0x150   : > { %v2797_v56 = vld [vmem:[#allocation4 + $0x50] sm:$0xf]  ;;  %2413 = vst.msk [vmem:[#allocation4 + $0x10] sm:$0xf] %vm1410_vm14, %v2322_v40  ;;  %v3583_v49 = vshrl.u32 %v3480_v44, 16  ;;  %v10399_v36 = vrot.slane %v4033_v29, 9  ;;  %3909 = vrot.lane.b32.xlu0 %v3558_v5, %s11163_s25 }
 0x151   : > { %3461 = vst.msk [vmem:[#allocation4 + $0x50] sm:$0xf] %vm226_vm0, %v3429_v19  ;;  %v4035_v28 = vld [vmem:[#allocation2 + $0x20] sm:$0x1]  ;;  %v4037_v54 = vld [vmem:[#allocation2 + $0x28] sm:$0xf]  ;;  %v2694_v19 = vpop.permute.xlu0 %2693  ;;  %v3568_v52 = vsel %vm11339_vm10, %v3563_v60, %v3567_v2 }
 0x152   : > { %v3594_v20 = vshrl.u32 %v3482_v32, 16  ;;  %v3597_v57 = vshll.u32 %v3482_v32, 16  ;;  %v2798_v61 = vld [vmem:[#allocation4 + $0x54] sm:$0xf]  ;;  %v1828_v51 = vld [vmem:[#allocation2 + $0x4c] sm:$0xf]  ;;  %v4132_v32 = vsel %vm11326_vm9, %v10399_v36, %v4131_v27 }
 0x153   : > { %v3572_v63 = vrot.slane %v3570_v34, 4  ;;  %v3575_v59 = vrot.slane %v3573_v22, 5  ;;  %v3483_v38 = vld [vmem:[#allocation2 + $0x40] sm:$0xf]  ;;  %3462 = vst.msk [vmem:[#allocation4 + $0x54] sm:$0xf] %vm226_vm0, %v3430_v11  ;;  %v10343_v4 = vcombine.low %v2797_v56, %v2798_v61  ;;  %v2696_v22 = vpop.permute.xlu1 %2695  ;;  %3911 = vrot.lane.b32.xlu1 %v3568_v52, %s11163_s25 }
 0x154   : > { %v12412_v17 = vld [vmem:[#allocation4 + $0x28] sm:$0xf]  ;;  %2414 = vst.msk [vmem:[#allocation4 + $0x14] sm:$0xf] %vm1410_vm14, %v2324_v62  ;;  %v4133_v15 = vrot.slane %v4131_v27, 4  ;;  %v4134_v3 = vrot.slane %v4035_v28, 5  ;;  %4241 = vrot.lane.b32.xlu0 %v4132_v32, %s11162_s24 }
 0x155   : > { %v4036_v6 = vld [vmem:[#allocation2 + $0x24] sm:$0xe]  ;;  %1859 = vst.msk [vmem:[#allocation4 + $0x28] sm:$0xf] %vm226_vm0, %v1827_v35  ;;  %v4138_v18 = vrot.slane %v4037_v54, 5  ;;  %v12420_v21 = vrot.slane %v3579_v37, 5  ;;  %10856 = vmatprep.mubr.msk.bf16.mxu1 %vm2897_vm2, %v10343_v4  ;;  %v3576_v35 = vor.u32 %v3575_v59, %v3572_v63  ;;  %v2326_v40 = vpop.permute.xlu0 %2325 }
 0x156   : > { %2767 = vst.msk [vmem:[#allocation4 + $0x58] sm:$0xf] %vm1750_vm15, %v2694_v19  ;;  %v4038_v24 = vld [vmem:[#allocation2 + $0x2c] sm:$0x1]  ;;  %v3585_v29 = vrot.slane %v3583_v49, 4  ;;  %v3596_v11 = vrot.slane %v3594_v20, 4  ;;  %v4135_v60 = vsel %vm11326_vm9, %v4133_v15, %v4134_v3 }
 0x157   : > { %v3481_v44 = vld [vmem:[#allocation2 + $0x38] sm:$0x1]  ;;  %v3599_v8 = vrot.slane %v3597_v57, 5  ;;  %v3603_v47 = vshll.u32 %v3483_v38, 16  ;;  %v3607_v42 = vshrl.u32 %v3483_v38, 16  ;;  %v10400_v56 = vrot.slane %v4036_v6, 9  ;;  %v2328_v57 = vpop.permute.xlu1 %2327  ;;  %4243 = vrot.lane.b32.xlu1 %v4135_v60, %s11162_s24 }
 0x158   : > { %v12424_v34 = vld [vmem:[#allocation4 + $0x2c] sm:$0xf]  ;;  %2768 = vst.msk [vmem:[#allocation4 + $0x5c] sm:$0xf] %vm1750_vm15, %v2696_v22  ;;  %v4141_v2 = vrot.slane %v4038_v24, 5  ;;  %v3586_v28 = vor.u32 %v3585_v29, %v12420_v21  ;;  %v3589_v37 = vshll.u32 %v3481_v44, 16 }
 0x159   : > { %1860 = vst.msk [vmem:[#allocation4 + $0x2c] sm:$0xf] %vm226_vm0, %v1828_v51  ;;  %v3484_v49 = vld [vmem:[#allocation2 + $0x44] sm:$0x1]  ;;  %v3431_v27 = vld [vmem:[#allocation2 + $0x9c] sm:$0xf]  ;;  %v3600_v36 = vor.u32 %v3599_v8, %v3596_v11  ;;  %v4139_v61 = vsel %vm11326_vm9, %v10400_v56, %v4138_v18  ;;  %v2658_v5 = vpop.permute.xlu0 %2657 }
 0x15a   : > { %2415 = vst.msk [vmem:[#allocation4 + $0x18] sm:$0xf] %vm1410_vm14, %v2326_v40  ;;  %v4140_v53 = vrot.slane %v4138_v18, 4  ;;  %v12436_v54 = vrot.slane %v3603_v47, 5  ;;  %v3609_v20 = vrot.slane %v3607_v42, 4  ;;  %v3577_v51 = vrot.slane %v3576_v35, 4  ;;  %4245 = vrot.lane.b32.xlu0 %v4139_v61, %s11162_s24 }
 0x15b   : > { %2416 = vst.msk [vmem:[#allocation4 + $0x1c] sm:$0xf] %vm1410_vm14, %v2328_v57  ;;  %v3613_v63 = vshll.u32 %v3484_v49, 16  ;;  %v3485_v59 = vld [vmem:[#allocation2 + $0x48] sm:$0xf]  ;;  %v3587_v4 = vrot.slane %v3586_v28, 4  ;;  %v2660_v29 = vpop.permute.xlu1 %2659 }
 0x15c   : > { %v3432_v38 = vld [vmem:[#allocation2 + $0xa0] sm:$0xf]  ;;  %2749 = vst.msk [vmem:[#allocation4 + $0x10] sm:$0xf] %vm1750_vm15, %v2658_v5  ;;  %v3591_v19 = vrot.slane %v3589_v37, 5  ;;  %v4142_v15 = vsel %vm11326_vm9, %v4140_v53, %v4141_v2  ;;  %v3601_v3 = vrot.slane %v3600_v36, 4  ;;  %v3610_v6 = vor.u32 %v3609_v20, %v12436_v54 }
 0x15d   : > { %v2799_v62 = vld [vmem:[#allocation4 + $0x58] sm:$0xf]  ;;  %v4039_v52 = vld [vmem:[#allocation2 + $0x30] sm:$0xe]  ;;  %v4040_v18 = vld [vmem:[#allocation2 + $0x34] sm:$0xf]  ;;  %v3582_v44 = vsel %vm11339_vm10, %v3577_v51, %v12420_v21  ;;  %v2662_v32 = vpop.permute.xlu0 %2661  ;;  %4247 = vrot.lane.b32.xlu1 %v4142_v15, %s11162_s24 }
 0x15e   : > { %3463 = vst.msk [vmem:[#allocation4 + $0x58] sm:$0xf] %vm226_vm0, %v3431_v27  ;;  %v3486_v11 = vld [vmem:[#allocation2 + $0x4c] sm:$0xf]  ;;  %v3618_v8 = vshrl.u32 %v3485_v59, 16  ;;  %v3621_v47 = vshll.u32 %v3485_v59, 16  ;;  %v3592_v40 = vsel %vm11339_vm10, %v3587_v4, %v3591_v19  ;;  %3913 = vrot.lane.b32.xlu0 %v3582_v44, %s11163_s25  ;;  %v3606_v37 = vsel %vm11339_vm10, %v3601_v3, %v12436_v54 }
 0x15f   : > { %v2800_v24 = vld [vmem:[#allocation4 + $0x5c] sm:$0xf]  ;;  %v3413_v42 = vld [vmem:[#allocation2 + $0x30] sm:$0xf]  ;;  %2750 = vst.msk [vmem:[#allocation4 + $0x14] sm:$0xf] %vm1750_vm15, %v2660_v29  ;;  %v2664_v20 = vpop.permute.xlu1 %2663 }
 0x160   : > { %3464 = vst.msk [vmem:[#allocation4 + $0x5c] sm:$0xf] %vm226_vm0, %v3432_v38  ;;  %v10344_v22 = vcombine.low %v2799_v62, %v2800_v24  ;;  %v3615_v56 = vrot.slane %v3613_v63, 5  ;;  %v3488_v35 = vld [vmem:[#allocation2 + $0x54] sm:$0xf]  ;;  %v10401_v21 = vrot.slane %v4039_v52, 9 }
 0x161   : > { %2751 = vst.msk [vmem:[#allocation4 + $0x18] sm:$0xf] %vm1750_vm15, %v2662_v32  ;;  %v4145_v60 = vrot.slane %v4040_v18, 5  ;;  %v4041_v2 = vld [vmem:[#allocation2 + $0x38] sm:$0x1]  ;;  %v3611_v49 = vrot.slane %v3610_v6, 4  ;;  %v1371_v38 = vpop.permute.xlu0 %1370  ;;  %3915 = vrot.lane.b32.xlu1 %v3592_v40, %s11163_s25 }
 0x162   : > { %v12457_v28 = vld [vmem:[#allocation2 + $0x3c] sm:$0xe]  ;;  %10857 = vmatmul.mubr.msk.bf16.gmra.mxu1 %vm2897_vm2, %v10344_v22  ;;  %v3627_v27 = vshll.u32 %v3486_v11, 16  ;;  %v3631_v53 = vshrl.u32 %v3486_v11, 16  ;;  %v3489_v36 = vld [vmem:[#allocation2 + $0x58] sm:$0xf]  ;;  %3917 = vrot.lane.b32.xlu0 %v3606_v37, %s11163_s25 }
 0x163   : > { %v4043_v57 = vld [vmem:[#allocation2 + $0x40] sm:$0xf]  ;;  %v3620_v61 = vrot.slane %v3618_v8, 4  ;;  %v3623_v51 = vrot.slane %v3621_v47, 5  ;;  %v3642_v62 = vshrl.u32 %v3488_v35, 16  ;;  %v3645_v5 = vshll.u32 %v3488_v35, 16  ;;  %v1373_v8 = vpop.permute.xlu1 %1372 }
 0x164   : > { %v2781_v63 = vld [vmem:[#allocation4 + $0x10] sm:$0xf]  ;;  %v3414_v59 = vld [vmem:[#allocation2 + $0x34] sm:$0xf]  ;;  %2752 = vst.msk [vmem:[#allocation4 + $0x1c] sm:$0xf] %vm1750_vm15, %v2664_v20  ;;  %v3616_v52 = vsel %vm11339_vm10, %v3611_v49, %v3615_v56  ;;  %v4146_v47 = vsel %vm11326_vm9, %v10401_v21, %v4145_v60 }
 0x165   : > { %v4148_v4 = vrot.slane %v4041_v2, 5  ;;  %3445 = vst.msk [vmem:[#allocation4 + $0x10] sm:$0xf] %vm226_vm0, %v3413_v42  ;;  %v3415_v19 = vld [vmem:[#allocation2 + $0x3c] sm:$0xf]  ;;  %v4147_v54 = vrot.slane %v4145_v60, 4  ;;  %v3624_v42 = vor.u32 %v3623_v51, %v3620_v61  ;;  %v1375_v2 = vpop.permute.xlu0 %1374  ;;  %3919 = vrot.lane.b32.xlu1 %v3616_v52, %s11163_s25 }
 0x166   : > { %1439 = vst.msk [vmem:[#allocation4 + $0x70] sm:$0xf] %vm1410_vm14, %v1371_v38  ;;  %v10402_v15 = vrot.slane %v12457_v28, 9  ;;  %v3651_v3 = vshll.u32 %v3489_v36, 16  ;;  %v3655_v6 = vshrl.u32 %v3489_v36, 16  ;;  %v4152_v18 = vrot.slane %v4043_v57, 5  ;;  %4249 = vrot.lane.b32.xlu0 %v4146_v47, %s11162_s24 }
 0x167   : > { %v4044_v24 = vld [vmem:[#allocation2 + $0x44] sm:$0x1]  ;;  %v12472_v29 = vrot.slane %v3627_v27, 5  ;;  %v3633_v44 = vrot.slane %v3631_v53, 4  ;;  %v3487_v22 = vld [vmem:[#allocation2 + $0x50] sm:$0x1]  ;;  %v4149_v21 = vsel %vm11326_vm9, %v4147_v54, %v4148_v4  ;;  %v1377_v61 = vpop.permute.xlu1 %1376 }
 0x168   : > { %v2782_v11 = vld [vmem:[#allocation4 + $0x14] sm:$0xf]  ;;  %v3644_v32 = vrot.slane %v3642_v62, 4  ;;  %v3647_v35 = vrot.slane %v3645_v5, 5  ;;  %v2783_v40 = vld [vmem:[#allocation4 + $0x18] sm:$0xf]  ;;  %v4153_v51 = vsel %vm11326_vm9, %v10402_v15, %v4152_v18 }
 0x169   : > { %3446 = vst.msk [vmem:[#allocation4 + $0x14] sm:$0xf] %vm226_vm0, %v3414_v59  ;;  %v10335_v56 = vcombine.low %v2781_v63, %v2782_v11  ;;  %3447 = vst.msk [vmem:[#allocation4 + $0x18] sm:$0xf] %vm226_vm0, %v3415_v19  ;;  %v3416_v28 = vld [vmem:[#allocation2 + $0x40] sm:$0xf]  ;;  %v3634_v53 = vor.u32 %v3633_v44, %v12472_v29  ;;  %v1711_v59 = vpop.permute.xlu0 %1710  ;;  %4251 = vrot.lane.b32.xlu1 %v4149_v21, %s11162_s24 }
 0x16a   : > { %1440 = vst.msk [vmem:[#allocation4 + $0x74] sm:$0xf] %vm1410_vm14, %v1373_v8  ;;  %1441 = vst.msk [vmem:[#allocation4 + $0x78] sm:$0xf] %vm1410_vm14, %v1375_v2  ;;  %v12483_v60 = vrot.slane %v3651_v3, 5  ;;  %v3657_v37 = vrot.slane %v3655_v6, 4  ;;  %v3648_v5 = vor.u32 %v3647_v35, %v3644_v32  ;;  %4253 = vrot.lane.b32.xlu0 %v4153_v51, %s11162_s24 }
 0x16b   : > { %10840 = vmatprep.mubr.msk.bf16.mxu0 %vm2897_vm2, %v10335_v56  ;;  %v4154_v49 = vrot.slane %v4152_v18, 4  ;;  %v4155_v27 = vrot.slane %v4044_v24, 5  ;;  %v3637_v36 = vshll.u32 %v3487_v22, 16  ;;  %v3490_v20 = vld [vmem:[#allocation2 + $0x5c] sm:$0x1]  ;;  %v3625_v62 = vrot.slane %v3624_v42, 4  ;;  %v1713_v24 = vpop.permute.xlu1 %1712 }
 0x16c   : > { %v2784_v57 = vld [vmem:[#allocation4 + $0x1c] sm:$0xf]  ;;  %1442 = vst.msk [vmem:[#allocation4 + $0x7c] sm:$0xf] %vm1410_vm14, %v1377_v61  ;;  %v3491_v38 = vld [vmem:[#allocation2 + $0x60] sm:$0xf]  ;;  %v3658_v4 = vor.u32 %v3657_v37, %v12483_v60 }
 0x16d   : > { %3448 = vst.msk [vmem:[#allocation4 + $0x1c] sm:$0xf] %vm226_vm0, %v3416_v28  ;;  %v10336_v63 = vcombine.low %v2783_v40, %v2784_v57  ;;  %v3661_v19 = vshll.u32 %v3490_v20, 16  ;;  %v12495_v54 = vld [vmem:[#allocation2 + $0x48] sm:$0xe]  ;;  %v4156_v15 = vsel %vm11326_vm9, %v4154_v49, %v4155_v27  ;;  %v3635_v6 = vrot.slane %v3634_v53, 4  ;;  %v1339_v32 = vpop.permute.xlu0 %1338 }
 0x16e   : > { %1779 = vst.msk [vmem:[#allocation4 + $0x70] sm:$0xf] %vm1750_vm15, %v1711_v59  ;;  %v12497_v3 = vld [vmem:[#allocation2 + $0x4c] sm:$0xf]  ;;  %v3639_v52 = vrot.slane %v3637_v36, 5  ;;  %v3630_v44 = vsel %vm11339_vm10, %v3625_v62, %v12472_v29  ;;  %v3649_v11 = vrot.slane %v3648_v5, 4  ;;  %4255 = vrot.lane.b32.xlu1 %v4156_v15, %s11162_s24 }
 0x16f   : > { %10841 = vmatmul.mubr.msk.bf16.gmra.mxu0 %vm2897_vm2, %v10336_v63  ;;  %v3492_v18 = vld [vmem:[#allocation2 + $0x64] sm:$0xf]  ;;  %v3666_v8 = vshrl.u32 %v3491_v38, 16  ;;  %v3669_v47 = vshll.u32 %v3491_v38, 16  ;;  %v3494_v42 = vld [vmem:[#allocation2 + $0x6c] sm:$0xf]  ;;  %3921 = vrot.lane.b32.xlu0 %v3630_v44, %s11163_s25  ;;  %v1341_v57 = vpop.permute.xlu1 %1340 }
 0x170   : > { %v1845_v22 = vld [vmem:[#allocation2 + $0xb4] sm:$0xf]  ;;  %1780 = vst.msk [vmem:[#allocation4 + $0x74] sm:$0xf] %vm1750_vm15, %v1713_v24  ;;  %v10403_v35 = vrot.slane %v12495_v54, 9  ;;  %v4159_v40 = vrot.slane %v12497_v3, 5  ;;  %v3640_v49 = vsel %vm11339_vm10, %v3635_v6, %v3639_v52  ;;  %v3654_v61 = vsel %vm11339_vm10, %v3649_v11, %v12483_v60 }
 0x171   : > { %v4047_v56 = vld [vmem:[#allocation2 + $0x50] sm:$0x1]  ;;  %1423 = vst.msk [vmem:[#allocation4 + $0x30] sm:$0xf] %vm1410_vm14, %v1339_v32  ;;  %v3659_v2 = vrot.slane %v3658_v4, 4  ;;  %v3663_v28 = vrot.slane %v3661_v19, 5  ;;  %v1715_v38 = vpop.permute.xlu0 %1714 }
 0x172   : > { %v12511_v29 = vld [vmem:[#allocation2 + $0x58] sm:$0xf]  ;;  %v3675_v21 = vshll.u32 %v3492_v18, 16  ;;  %v3679_v37 = vshrl.u32 %v3492_v18, 16  ;;  %v3495_v27 = vld [vmem:[#allocation2 + $0x70] sm:$0xf]  ;;  %3923 = vrot.lane.b32.xlu1 %v3640_v49, %s11163_s25 }
 0x173   : > { %v3690_v53 = vshrl.u32 %v3494_v42, 16  ;;  %v3693_v36 = vshll.u32 %v3494_v42, 16  ;;  %v11103_v20 = vld [vmem:[%s15919_s1] sm:$0x3f]   ;;  %v4162_v51 = vrot.slane %v4047_v56, 5  ;;  %v3668_v62 = vrot.slane %v3666_v8, 4  ;;  %3925 = vrot.lane.b32.xlu0 %v3654_v61, %s11163_s25  ;;  %v1717_v42 = vpop.permute.xlu1 %1716 }
 0x174   : > { %v3671_v5 = vrot.slane %v3669_v47, 5  ;;  %v11104_v63 = vld [vmem:[%s15919_s1 + $0x10] sm:$0x3f]   ;;  %1424 = vst.msk [vmem:[#allocation4 + $0x34] sm:$0xf] %vm1410_vm14, %v1341_v57  ;;  %v4161_v4 = vrot.slane %v4159_v40, 4  ;;  %11082 = vmatprep.subr.msk.bf16.mxu1 %vm2946_vm1, %v11103_v20  ;;  %v3664_v3 = vsel %vm11339_vm10, %v3659_v2, %v3663_v28 }
 0x175   : > { %v12525_v59 = vld [vmem:[#allocation4 + $0x70] sm:$0xf]  ;;  %v4048_v19 = vld [vmem:[#allocation2 + $0x54] sm:$0xe]  ;;  %v4166_v54 = vrot.slane %v12511_v29, 5  ;;  %v3699_v15 = vshll.u32 %v3495_v27, 16  ;;  %11083 = vmatprep.subr.msk.bf16.mxu0 %vm2946_vm1, %v11104_v63  ;;  %v2362_v29 = vpop.permute.xlu0 %2361 }
 0x176   : > { %1877 = vst.msk [vmem:[#allocation4 + $0x70] sm:$0xf] %vm226_vm0, %v1845_v22  ;;  %v1846_v60 = vld [vmem:[#allocation2 + $0xb8] sm:$0xf]  ;;  %v3703_v6 = vshrl.u32 %v3495_v27, 16  ;;  %v3245_v52 = vsel %vm2946_vm1, %v11103_v20, 0  ;;  %v4160_v22 = vsel %vm11326_vm9, %v10403_v35, %v4159_v40  ;;  %v3672_v56 = vor.u32 %v3671_v5, %v3668_v62  ;;  %3927 = vrot.lane.b32.xlu1 %v3664_v3, %s11163_s25 }
 0x177   : > { %1781 = vst.msk [vmem:[#allocation4 + $0x78] sm:$0xf] %vm1750_vm15, %v1715_v38  ;;  %v4050_v18 = vld [vmem:[#allocation2 + $0x5c] sm:$0x1]  ;;  %v12538_v24 = vrot.slane %v3675_v21, 5  ;;  %v3681_v44 = vrot.slane %v3679_v37, 4  ;;  %10869 = vmatpush3.bf16.msra.mxu1 %v3245_v52  ;;  %v4163_v21 = vsel %vm11326_vm9, %v4161_v4, %v4162_v51  ;;  %4257 = vrot.lane.b32.xlu0 %v4160_v22, %s11162_s24  ;;  %v2364_v61 = vpop.permute.xlu1 %2363 }
 0x178   : > { %v3692_v11 = vrot.slane %v3690_v53, 4  ;;  %v3695_v8 = vrot.slane %v3693_v36, 5  ;;  %v12540_v47 = vld [vmem:[#allocation4 + $0x74] sm:$0xf]  ;;  %v10404_v32 = vrot.slane %v4048_v19, 9  ;;  %v4538_v28 = vsel %vm2946_vm1, %v11104_v63, 0 }
 0x179   : > { %v3493_v2 = vld [vmem:[#allocation2 + $0x68] sm:$0x1]  ;;  %1878 = vst.msk [vmem:[#allocation4 + $0x74] sm:$0xf] %vm226_vm0, %v1846_v60  ;;  %10903 = vmatpush3.bf16.msra.mxu0 %v4538_v28  ;;  %v4169_v37 = vrot.slane %v4050_v18, 5  ;;  %v12551_v35 = vrot.slane %v3699_v15, 5  ;;  %v3682_v53 = vor.u32 %v3681_v44, %v12538_v24  ;;  %v1343_v51 = vpop.permute.xlu0 %1342 }
 0x17a   : > { %1782 = vst.msk [vmem:[#allocation4 + $0x7c] sm:$0xf] %vm1750_vm15, %v1717_v42  ;;  %v3705_v40 = vrot.slane %v3703_v6, 4  ;;  %v1847_v49 = vld [vmem:[#allocation2 + $0xc0] sm:$0xf]  ;;  %v4168_v27 = vrot.slane %v4166_v54, 4  ;;  %v3696_v20 = vor.u32 %v3695_v8, %v3692_v11  ;;  %v4167_v62 = vsel %vm11326_vm9, %v10404_v32, %v4166_v54  ;;  %4259 = vrot.lane.b32.xlu1 %v4163_v21, %s11162_s24 }
 0x17b   : > { %2433 = vst.msk [vmem:[#allocation4 + $0x60] sm:$0xf] %vm1410_vm14, %v2362_v29  ;;  %v3685_v36 = vshll.u32 %v3493_v2, 16  ;;  %v3496_v57 = vld [vmem:[#allocation2 + $0x74] sm:$0x1]  ;;  %v3673_v5 = vrot.slane %v3672_v56, 4  ;;  %4261 = vrot.lane.b32.xlu0 %v4167_v62, %s11162_s24  ;;  %v1345_v11 = vpop.permute.xlu1 %1344 }
 0x17c   : > { %2434 = vst.msk [vmem:[#allocation4 + $0x64] sm:$0xf] %vm1410_vm14, %v2364_v61  ;;  %v3497_v38 = vld [vmem:[#allocation2 + $0x78] sm:$0xf]  ;;  %v1848_v4 = vld [vmem:[#allocation2 + $0xc4] sm:$0xf]  ;;  %v3706_v19 = vor.u32 %v3705_v40, %v12551_v35  ;;  %v4170_v54 = vsel %vm11326_vm9, %v4168_v27, %v4169_v37 }
 0x17d   : > { %1425 = vst.msk [vmem:[#allocation4 + $0x38] sm:$0xf] %vm1410_vm14, %v1343_v51  ;;  %v3709_v60 = vshll.u32 %v3496_v57, 16  ;;  %v4052_v3 = vld [vmem:[#allocation2 + $0x64] sm:$0xf]  ;;  %v3683_v15 = vrot.slane %v3682_v53, 4  ;;  %v3678_v8 = vsel %vm11339_vm10, %v3673_v5, %v12538_v24  ;;  %v1679_v56 = vpop.permute.xlu0 %1678 }
 0x17e   : > { %v12557_v63 = vld [vmem:[#allocation4 + $0x78] sm:$0xf]  ;;  %v3687_v6 = vrot.slane %v3685_v36, 5  ;;  %v3697_v52 = vrot.slane %v3696_v20, 4  ;;  %v4051_v18 = vld [vmem:[#allocation2 + $0x60] sm:$0xe]  ;;  %4263 = vrot.lane.b32.xlu1 %v4170_v54, %s11162_s24 }
 0x17f   : > { %15943 = vst [vmem:[#allocation7_spill] sm:$0xff] %v12557_v63  ;;  %1879 = vst.msk [vmem:[#allocation4 + $0x78] sm:$0xf] %vm226_vm0, %v1847_v49  ;;  %v3498_v42 = vld [vmem:[#allocation2 + $0x7c] sm:$0xf]  ;;  %v3714_v22 = vshrl.u32 %v3497_v38, 16  ;;  %3929 = vrot.lane.b32.xlu0 %v3678_v8, %s11163_s25  ;;  %v1681_v57 = vpop.permute.xlu1 %1680 }
 0x180   : > { %v3717_v32 = vshll.u32 %v3497_v38, 16  ;;  %1426 = vst.msk [vmem:[#allocation4 + $0x3c] sm:$0xf] %vm1410_vm14, %v1345_v11  ;;  %v4173_v2 = vrot.slane %v4052_v3, 5  ;;  %v3500_v28 = vld [vmem:[#allocation2 + $0x84] sm:$0xf]  ;;  %v3688_v24 = vsel %vm11339_vm10, %v3683_v15, %v3687_v6  ;;  %v3702_v49 = vsel %vm11339_vm10, %v3697_v52, %v12551_v35 }
 0x181   : > { %v12567_v44 = vld [vmem:[#allocation4 + $0x7c] sm:$0xf]  ;;  %1763 = vst.msk [vmem:[#allocation4 + $0x30] sm:$0xf] %vm1750_vm15, %v1679_v56  ;;  %v3707_v29 = vrot.slane %v3706_v19, 4  ;;  %v3711_v21 = vrot.slane %v3709_v60, 5  ;;  %v2366_v19 = vpop.permute.xlu0 %2365 }
 0x182   : > { %1880 = vst.msk [vmem:[#allocation4 + $0x7c] sm:$0xf] %vm226_vm0, %v1848_v4  ;;  %v10405_v37 = vrot.slane %v4051_v18, 9  ;;  %v4053_v40 = vld [vmem:[#allocation2 + $0x68] sm:$0x1]  ;;  %v3723_v36 = vshll.u32 %v3498_v42, 16  ;;  %3931 = vrot.lane.b32.xlu1 %v3688_v24, %s11163_s25 }
 0x183   : > { %v4054_v27 = vld [vmem:[#allocation2 + $0x6c] sm:$0xe]  ;;  %v4055_v53 = vld [vmem:[#allocation2 + $0x70] sm:$0xf]  ;;  %v3727_v20 = vshrl.u32 %v3498_v42, 16  ;;  %v3716_v61 = vrot.slane %v3714_v22, 4  ;;  %v3712_v35 = vsel %vm11339_vm10, %v3707_v29, %v3711_v21  ;;  %3933 = vrot.lane.b32.xlu0 %v3702_v49, %s11163_s25  ;;  %v2368_v42 = vpop.permute.xlu1 %2367 }
 0x184   : > { %v3719_v62 = vrot.slane %v3717_v32, 5  ;;  %v3501_v5 = vld [vmem:[#allocation2 + $0x88] sm:$0xf]  ;;  %v3738_v51 = vshrl.u32 %v3500_v28, 16  ;;  %v3741_v38 = vshll.u32 %v3500_v28, 16  ;;  %v4175_v60 = vrot.slane %v4173_v2, 4 }
 0x185   : > { %v1829_v4 = vld [vmem:[#allocation2 + $0x54] sm:$0xf]  ;;  %1764 = vst.msk [vmem:[#allocation4 + $0x34] sm:$0xf] %vm1750_vm15, %v1681_v57  ;;  %v4176_v3 = vrot.slane %v4053_v40, 5  ;;  %v10406_v15 = vrot.slane %v4054_v27, 9  ;;  %v4174_v22 = vsel %vm11326_vm9, %v10405_v37, %v4173_v2  ;;  %v2698_v29 = vpop.permute.xlu0 %2697 }
 0x186   : > { %v4056_v54 = vld [vmem:[#allocation2 + $0x74] sm:$0x1]  ;;  %2435 = vst.msk [vmem:[#allocation4 + $0x68] sm:$0xf] %vm1410_vm14, %v2366_v19  ;;  %v4180_v6 = vrot.slane %v4055_v53, 5  ;;  %v12588_v52 = vrot.slane %v3723_v36, 5  ;;  %v3720_v32 = vor.u32 %v3719_v62, %v3716_v61  ;;  %3935 = vrot.lane.b32.xlu1 %v3712_v35, %s11163_s25 }
 0x187   : > { %v3729_v18 = vrot.slane %v3727_v20, 4  ;;  %v3747_v11 = vshll.u32 %v3501_v5, 16  ;;  %v3751_v8 = vshrl.u32 %v3501_v5, 16  ;;  %v3499_v56 = vld [vmem:[#allocation2 + $0x80] sm:$0x1]  ;;  %v3740_v28 = vrot.slane %v3738_v51, 4  ;;  %4265 = vrot.lane.b32.xlu0 %v4174_v22, %s11162_s24  ;;  %v2700_v62 = vpop.permute.xlu1 %2699 }
 0x188   : > { %v3743_v40 = vrot.slane %v3741_v38, 5  ;;  %v12592_v24 = vld [vmem:[#allocation4 + $0x30] sm:$0xf]  ;;  %2436 = vst.msk [vmem:[#allocation4 + $0x6c] sm:$0xf] %vm1410_vm14, %v2368_v42  ;;  %v4177_v49 = vsel %vm11326_vm9, %v4175_v60, %v4176_v3  ;;  %v4182_v2 = vrot.slane %v4180_v6, 4  ;;  %v4181_v5 = vsel %vm11326_vm9, %v10406_v15, %v4180_v6 }
 0x189   : > { %1861 = vst.msk [vmem:[#allocation4 + $0x30] sm:$0xf] %vm226_vm0, %v1829_v4  ;;  %v1830_v21 = vld [vmem:[#allocation2 + $0x58] sm:$0xf]  ;;  %v4183_v37 = vrot.slane %v4056_v54, 5  ;;  %v3730_v27 = vor.u32 %v3729_v18, %v12588_v52  ;;  %v3733_v53 = vshll.u32 %v3499_v56, 16  ;;  %v1683_v4 = vpop.permute.xlu0 %1682 }
 0x18a   : > { %2769 = vst.msk [vmem:[#allocation4 + $0x60] sm:$0xf] %vm1750_vm15, %v2698_v29  ;;  %v12602_v36 = vrot.slane %v3747_v11, 5  ;;  %v3502_v20 = vld [vmem:[#allocation2 + $0x8c] sm:$0x1]  ;;  %v3753_v57 = vrot.slane %v3751_v8, 4  ;;  %v3744_v38 = vor.u32 %v3743_v40, %v3740_v28  ;;  %4267 = vrot.lane.b32.xlu1 %v4177_v49, %s11162_s24 }
 0x18b   : > { %v3721_v51 = vrot.slane %v3720_v32, 4  ;;  %2770 = vst.msk [vmem:[#allocation4 + $0x64] sm:$0xf] %vm1750_vm15, %v2700_v62  ;;  %v3503_v19 = vld [vmem:[#allocation2 + $0x90] sm:$0xf]  ;;  %v3757_v3 = vshll.u32 %v3502_v20, 16  ;;  %4269 = vrot.lane.b32.xlu0 %v4181_v5, %s11162_s24  ;;  %v4184_v35 = vsel %vm11326_vm9, %v4182_v2, %v4183_v37  ;;  %v1685_v22 = vpop.permute.xlu1 %1684 }
 0x18c   : > { %v12604_v61 = vld [vmem:[#allocation4 + $0x34] sm:$0xf]  ;;  %v3433_v60 = vld [vmem:[#allocation2 + $0xa8] sm:$0xf]  ;;  %1765 = vst.msk [vmem:[#allocation4 + $0x38] sm:$0xf] %vm1750_vm15, %v1683_v4  ;;  %v3754_v18 = vor.u32 %v3753_v57, %v12602_v36 }
 0x18d   : > { %1862 = vst.msk [vmem:[#allocation4 + $0x34] sm:$0xf] %vm226_vm0, %v1830_v21  ;;  %v12612_v54 = vld [vmem:[#allocation2 + $0x7c] sm:$0xf]  ;;  %v3731_v15 = vrot.slane %v3730_v27, 4  ;;  %v3735_v6 = vrot.slane %v3733_v53, 5  ;;  %v3726_v32 = vsel %vm11339_vm10, %v3721_v51, %v12588_v52  ;;  %v2330_v2 = vpop.permute.xlu0 %2329 }
 0x18e   : > { %v4057_v11 = vld [vmem:[#allocation2 + $0x78] sm:$0xe]  ;;  %v3504_v8 = vld [vmem:[#allocation2 + $0x94] sm:$0xf]  ;;  %v3434_v42 = vld [vmem:[#allocation2 + $0xac] sm:$0xf]  ;;  %4271 = vrot.lane.b32.xlu1 %v4184_v35, %s11162_s24 }
 0x18f   : > { %v3745_v56 = vrot.slane %v3744_v38, 4  ;;  %v3762_v28 = vshrl.u32 %v3503_v19, 16  ;;  %v3765_v40 = vshll.u32 %v3503_v19, 16  ;;  %v3506_v29 = vld [vmem:[#allocation2 + $0x9c] sm:$0xf]  ;;  %v4187_v37 = vrot.slane %v12612_v54, 5  ;;  %3937 = vrot.lane.b32.xlu0 %v3726_v32, %s11163_s25 }
 0x190   : > { %v1831_v49 = vld [vmem:[#allocation2 + $0x60] sm:$0xf]  ;;  %1766 = vst.msk [vmem:[#allocation4 + $0x3c] sm:$0xf] %vm1750_vm15, %v1685_v22  ;;  %v3759_v27 = vrot.slane %v3757_v3, 5  ;;  %v10407_v53 = vrot.slane %v4057_v11, 9  ;;  %v3736_v62 = vsel %vm11339_vm10, %v3731_v15, %v3735_v6 }
 0x191   : > { %v2801_v21 = vld [vmem:[#allocation4 + $0x60] sm:$0xf]  ;;  %2417 = vst.msk [vmem:[#allocation4 + $0x20] sm:$0xf] %vm1410_vm14, %v2330_v2  ;;  %v4059_v52 = vld [vmem:[#allocation2 + $0x80] sm:$0x1]  ;;  %v3750_v54 = vsel %vm11339_vm10, %v3745_v56, %v12602_v36  ;;  %v2702_v6 = vpop.permute.xlu0 %2701 }
 0x192   : > { %3465 = vst.msk [vmem:[#allocation4 + $0x60] sm:$0xf] %vm226_vm0, %v3433_v60  ;;  %v3771_v20 = vshll.u32 %v3504_v8, 16  ;;  %v3775_v57 = vshrl.u32 %v3504_v8, 16  ;;  %v3755_v5 = vrot.slane %v3754_v18, 4  ;;  %v3786_v38 = vshrl.u32 %v3506_v29, 16  ;;  %v2332_v60 = vpop.permute.xlu1 %2331  ;;  %3939 = vrot.lane.b32.xlu1 %v3736_v62, %s11163_s25 }
 0x193   : > { %v3507_v51 = vld [vmem:[#allocation2 + $0xa0] sm:$0xf]  ;;  %v3789_v4 = vshll.u32 %v3506_v29, 16  ;;  %v2802_v19 = vld [vmem:[#allocation4 + $0x64] sm:$0xf]  ;;  %v3764_v35 = vrot.slane %v3762_v28, 4  ;;  %3941 = vrot.lane.b32.xlu0 %v3750_v54, %s11163_s25 }
 0x194   : > { %v4061_v3 = vld [vmem:[#allocation2 + $0x88] sm:$0xf]  ;;  %v3767_v11 = vrot.slane %v3765_v40, 5  ;;  %3466 = vst.msk [vmem:[#allocation4 + $0x64] sm:$0xf] %vm226_vm0, %v3434_v42  ;;  %v10345_v15 = vcombine.low %v2801_v21, %v2802_v19  ;;  %v4189_v18 = vrot.slane %v4187_v37, 4  ;;  %v3760_v40 = vsel %vm11339_vm10, %v3755_v5, %v3759_v27 }
 0x195   : > { %v12633_v8 = vld [vmem:[#allocation4 + $0x38] sm:$0xf]  ;;  %2418 = vst.msk [vmem:[#allocation4 + $0x24] sm:$0xf] %vm1410_vm14, %v2332_v60  ;;  %v4190_v22 = vrot.slane %v4059_v52, 5  ;;  %v12639_v36 = vrot.slane %v3771_v20, 5  ;;  %v4188_v20 = vsel %vm11326_vm9, %v10407_v53, %v4187_v37  ;;  %v2334_v54 = vpop.permute.xlu0 %2333 }
 0x196   : > { %v4060_v32 = vld [vmem:[#allocation2 + $0x84] sm:$0xe]  ;;  %1863 = vst.msk [vmem:[#allocation4 + $0x38] sm:$0xf] %vm226_vm0, %v1831_v49  ;;  %v3777_v56 = vrot.slane %v3775_v57, 4  ;;  %v3795_v42 = vshll.u32 %v3507_v51, 16  ;;  %10860 = vmatprep.mubr.msk.bf16.mxu1 %vm2897_vm2, %v10345_v15  ;;  %v2704_v62 = vpop.permute.xlu1 %2703  ;;  %3943 = vrot.lane.b32.xlu1 %v3760_v40, %s11163_s25 }
 0x197   : > { %v1832_v29 = vld [vmem:[#allocation2 + $0x64] sm:$0xf]  ;;  %2771 = vst.msk [vmem:[#allocation4 + $0x68] sm:$0xf] %vm1750_vm15, %v2702_v6  ;;  %v3799_v28 = vshrl.u32 %v3507_v51, 16  ;;  %v4194_v21 = vrot.slane %v4061_v3, 5  ;;  %v3768_v51 = vor.u32 %v3767_v11, %v3764_v35  ;;  %4273 = vrot.lane.b32.xlu0 %v4188_v20, %s11162_s24  ;;  %v4191_v37 = vsel %vm11326_vm9, %v4189_v18, %v4190_v22 }
 0x198   : > { %v3505_v2 = vld [vmem:[#allocation2 + $0x98] sm:$0x1]  ;;  %v3788_v49 = vrot.slane %v3786_v38, 4  ;;  %v3791_v52 = vrot.slane %v3789_v4, 5  ;;  %v12645_v19 = vld [vmem:[#allocation4 + $0x3c] sm:$0xf]  ;;  %v3778_v27 = vor.u32 %v3777_v56, %v12639_v36 }
 0x199   : > { %v10408_v57 = vrot.slane %v4060_v32, 9  ;;  %v4062_v60 = vld [vmem:[#allocation2 + $0x8c] sm:$0x1]  ;;  %1864 = vst.msk [vmem:[#allocation4 + $0x3c] sm:$0xf] %vm226_vm0, %v1832_v29  ;;  %v3781_v5 = vshll.u32 %v3505_v2, 16 }
 0x19a   : > { %2772 = vst.msk [vmem:[#allocation4 + $0x6c] sm:$0xf] %vm1750_vm15, %v2704_v62  ;;  %v12654_v38 = vrot.slane %v3795_v42, 5  ;;  %v3801_v4 = vrot.slane %v3799_v28, 4  ;;  %v3435_v3 = vld [vmem:[#allocation2 + $0xb4] sm:$0xf]  ;;  %v3792_v11 = vor.u32 %v3791_v52, %v3788_v49  ;;  %v2336_v6 = vpop.permute.xlu1 %2335  ;;  %v2666_v42 = vpop.permute.xlu0 %2665  ;;  %4275 = vrot.lane.b32.xlu1 %v4191_v37, %s11162_s24 }
 0x19b   : > { %2419 = vst.msk [vmem:[#allocation4 + $0x28] sm:$0xf] %vm1410_vm14, %v2334_v54  ;;  %v4196_v53 = vrot.slane %v4194_v21, 4  ;;  %v4197_v35 = vrot.slane %v4062_v60, 5  ;;  %v3508_v15 = vld [vmem:[#allocation2 + $0xa4] sm:$0x1]  ;;  %v4195_v32 = vsel %vm11326_vm9, %v10408_v57, %v4194_v21 }
 0x19c   : > { %v3769_v29 = vrot.slane %v3768_v51, 4  ;;  %v3436_v40 = vld [vmem:[#allocation2 + $0xb8] sm:$0xf]  ;;  %2420 = vst.msk [vmem:[#allocation4 + $0x2c] sm:$0xf] %vm1410_vm14, %v2336_v6  ;;  %v3779_v18 = vrot.slane %v3778_v27, 4  ;;  %v3802_v2 = vor.u32 %v3801_v4, %v12654_v38  ;;  %4277 = vrot.lane.b32.xlu0 %v4195_v32, %s11162_s24 }
 0x19d   : > { %v3509_v28 = vld [vmem:[#allocation2 + $0xa8] sm:$0xf]  ;;  %2753 = vst.msk [vmem:[#allocation4 + $0x20] sm:$0xf] %vm1750_vm15, %v2666_v42  ;;  %v3783_v22 = vrot.slane %v3781_v5, 5  ;;  %v3805_v49 = vshll.u32 %v3508_v15, 16  ;;  %v4198_v21 = vsel %vm11326_vm9, %v4196_v53, %v4197_v35 }
 0x19e   : > { %v2803_v56 = vld [vmem:[#allocation4 + $0x68] sm:$0xf]  ;;  %v4064_v52 = vld [vmem:[#allocation2 + $0x94] sm:$0xf]  ;;  %v3793_v62 = vrot.slane %v3792_v11, 4  ;;  %v2668_v60 = vpop.permute.xlu1 %2667  ;;  %v3774_v51 = vsel %vm11339_vm10, %v3769_v29, %v12639_v36  ;;  %v3810_v54 = vshrl.u32 %v3509_v28, 16  ;;  %v2670_v37 = vpop.permute.xlu0 %2669  ;;  %4279 = vrot.lane.b32.xlu1 %v4198_v21, %s11162_s24 }
 0x19f   : > { %3467 = vst.msk [vmem:[#allocation4 + $0x68] sm:$0xf] %vm226_vm0, %v3435_v3  ;;  %v3510_v20 = vld [vmem:[#allocation2 + $0xac] sm:$0xf]  ;;  %v3813_v27 = vshll.u32 %v3509_v28, 16  ;;  %v4201_v53 = vrot.slane %v4064_v52, 5  ;;  %v3784_v35 = vsel %vm11339_vm10, %v3779_v18, %v3783_v22 }
 0x1a0   : > { %v3512_v5 = vld [vmem:[#allocation2 + $0xb4] sm:$0xf]  ;;  %v3417_v4 = vld [vmem:[#allocation2 + $0x48] sm:$0xf]  ;;  %2754 = vst.msk [vmem:[#allocation4 + $0x24] sm:$0xf] %vm1750_vm15, %v2668_v60  ;;  %3945 = vrot.lane.b32.xlu0 %v3774_v51, %s11163_s25  ;;  %v3798_v18 = vsel %vm11339_vm10, %v3793_v62, %v12654_v38 }
 0x1a1   : > { %v2804_v57 = vld [vmem:[#allocation4 + $0x6c] sm:$0xf]  ;;  %v4063_v15 = vld [vmem:[#allocation2 + $0x90] sm:$0xe]  ;;  %2755 = vst.msk [vmem:[#allocation4 + $0x28] sm:$0xf] %vm1750_vm15, %v2670_v37 }
 0x1a2   : > { %3468 = vst.msk [vmem:[#allocation4 + $0x6c] sm:$0xf] %vm226_vm0, %v3436_v40  ;;  %v10346_v3 = vcombine.low %v2803_v56, %v2804_v57  ;;  %v3803_v36 = vrot.slane %v3802_v2, 4  ;;  %v3807_v11 = vrot.slane %v3805_v49, 5  ;;  %v4065_v6 = vld [vmem:[#allocation2 + $0x98] sm:$0x1]  ;;  %v2672_v21 = vpop.permute.xlu1 %2671  ;;  %v2370_v60 = vpop.permute.xlu0 %2369  ;;  %3947 = vrot.lane.b32.xlu1 %v3784_v35, %s11163_s25 }
 0x1a3   : > { %v12678_v32 = vld [vmem:[#allocation2 + $0xa0] sm:$0xf]  ;;  %v3819_v29 = vshll.u32 %v3510_v20, 16  ;;  %v3823_v56 = vshrl.u32 %v3510_v20, 16  ;;  %v3513_v40 = vld [vmem:[#allocation2 + $0xb8] sm:$0xf] }
 0x1a4   : > { %10861 = vmatmul.mubr.msk.bf16.gmra.mxu1 %vm2897_vm2, %v10346_v3  ;;  %v3834_v42 = vshrl.u32 %v3512_v5, 16  ;;  %v3837_v28 = vshll.u32 %v3512_v5, 16  ;;  %v3418_v52 = vld [vmem:[#allocation2 + $0x4c] sm:$0xf]  ;;  %v10409_v22 = vrot.slane %v4063_v15, 9  ;;  %v3812_v2 = vrot.slane %v3810_v54, 4  ;;  %3949 = vrot.lane.b32.xlu0 %v3798_v18, %s11163_s25 }
 0x1a5   : > { %v3815_v49 = vrot.slane %v3813_v27, 5  ;;  %v2785_v57 = vld [vmem:[#allocation4 + $0x20] sm:$0xf]  ;;  %2756 = vst.msk [vmem:[#allocation4 + $0x2c] sm:$0xf] %vm1750_vm15, %v2672_v21  ;;  %v4203_v3 = vrot.slane %v4201_v53, 4  ;;  %v3808_v38 = vsel %vm11339_vm10, %v3803_v36, %v3807_v11 }
 0x1a6   : > { %v4204_v51 = vrot.slane %v4065_v6, 5  ;;  %v4066_v37 = vld [vmem:[#allocation2 + $0x9c] sm:$0xe]  ;;  %3449 = vst.msk [vmem:[#allocation4 + $0x20] sm:$0xf] %vm226_vm0, %v3417_v4  ;;  %v4208_v62 = vrot.slane %v12678_v32, 5  ;;  %v2372_v31 = vpop.permute.xlu1 %2371  ;;  %v4202_v35 = vsel %vm11326_vm9, %v10409_v22, %v4201_v53  ;;  %3951 = vrot.lane.b32.xlu1 %v3808_v38, %s11163_s25 }
 0x1a7   : > { %v3419_v20 = vld [vmem:[#allocation2 + $0x54] sm:$0xf]  ;;  %2437 = vst.msk [vmem:[#allocation4 + $0x70] sm:$0xf] %vm1410_vm14, %v2370_v60  ;;  %v3843_v54 = vshll.u32 %v3513_v40, 16  ;;  %v3847_v27 = vshrl.u32 %v3513_v40, 16  ;;  %v3816_v36 = vor.u32 %v3815_v49, %v3812_v2 }
 0x1a8   : > { %v12693_v5 = vrot.slane %v3819_v29, 5  ;;  %v3511_v15 = vld [vmem:[#allocation2 + $0xb0] sm:$0x1]  ;;  %v3825_v6 = vrot.slane %v3823_v56, 4  ;;  %v3836_v21 = vrot.slane %v3834_v42, 4  ;;  %v3839_v4 = vrot.slane %v3837_v28, 5  ;;  %v2374_v29 = vpop.permute.xlu0 %2373  ;;  %4281 = vrot.lane.b32.xlu0 %v4202_v35, %s11162_s24 }
 0x1a9   : > { %v2786_v0 = vld [vmem:[#allocation4 + $0x24] sm:$0xf]  ;;  %v10410_v60 = vrot.slane %v4066_v37, 9  ;;  %v4068_v63 = vld [vmem:[#allocation2 + $0xa4] sm:$0x1]  ;;  %v4205_v53 = vsel %vm11326_vm9, %v4203_v3, %v4204_v51  ;;  %v3829_v40 = vshll.u32 %v3511_v15, 16 }
 0x1aa   : > { %3450 = vst.msk [vmem:[#allocation4 + $0x24] sm:$0xf] %vm226_vm0, %v3418_v52  ;;  %v2787_v11 = vld [vmem:[#allocation4 + $0x28] sm:$0xf]  ;;  %v10337_v32 = vcombine.low %v2785_v57, %v2786_v0  ;;  %v12704_v42 = vrot.slane %v3843_v54, 5  ;;  %v3849_v28 = vrot.slane %v3847_v27, 4  ;;  %v3826_v52 = vor.u32 %v3825_v6, %v12693_v5  ;;  %v2376_v49 = vpop.permute.xlu1 %2375  ;;  %4283 = vrot.lane.b32.xlu1 %v4205_v53, %s11162_s24 }
 0x1ab   : > { %2438 = vst.msk [vmem:[#allocation4 + $0x74] sm:$0xf] %vm1410_vm14, %v2372_v31  ;;  %v3420_v56 = vld [vmem:[#allocation2 + $0x58] sm:$0xf]  ;;  %2439 = vst.msk [vmem:[#allocation4 + $0x78] sm:$0xf] %vm1410_vm14, %v2374_v29  ;;  %v3840_v18 = vor.u32 %v3839_v4, %v3836_v21  ;;  %v4209_v57 = vsel %vm11326_vm9, %v10410_v60, %v4208_v62 }
 0x1ac   : > { %3451 = vst.msk [vmem:[#allocation4 + $0x28] sm:$0xf] %vm226_vm0, %v3419_v20  ;;  %10844 = vmatprep.mubr.msk.bf16.mxu0 %vm2897_vm2, %v10337_v32  ;;  %v4210_v0 = vrot.slane %v4208_v62, 4  ;;  %v4211_v31 = vrot.slane %v4068_v63, 5  ;;  %v3514_v22 = vld [vmem:[#allocation2 + $0xbc] sm:$0x1]  ;;  %v2706_v37 = vpop.permute.xlu0 %2705  ;;  %v3850_v38 = vor.u32 %v3849_v28, %v12704_v42  ;;  %4285 = vrot.lane.b32.xlu0 %v4209_v57, %s11162_s24 }
 0x1ad   : > { %v2788_v2 = vld [vmem:[#allocation4 + $0x2c] sm:$0xf]  ;;  %v3817_v3 = vrot.slane %v3816_v36, 4  ;;  %2440 = vst.msk [vmem:[#allocation4 + $0x7c] sm:$0xf] %vm1410_vm14, %v2376_v49  ;;  %v3831_v63 = vrot.slane %v3829_v40, 5 }
 0x1ae   : > { %3452 = vst.msk [vmem:[#allocation4 + $0x2c] sm:$0xf] %vm226_vm0, %v3420_v56  ;;  %v10338_v51 = vcombine.low %v2787_v11, %v2788_v2  ;;  %v3515_v20 = vld [vmem:[#allocation2 + $0xc0] sm:$0xf]  ;;  %v3853_v54 = vshll.u32 %v3514_v22, 16  ;;  %v4212_v62 = vsel %vm11326_vm9, %v4210_v0, %v4211_v31  ;;  %v3827_v27 = vrot.slane %v3826_v52, 4  ;;  %v2708_v4 = vpop.permute.xlu1 %2707 }
 0x1af   : > { %2773 = vst.msk [vmem:[#allocation4 + $0x70] sm:$0xf] %vm1750_vm15, %v2706_v37  ;;  %v3841_v15 = vrot.slane %v3840_v18, 4  ;;  %v4069_v6 = vld [vmem:[#allocation2 + $0xa8] sm:$0xe]  ;;  %v3822_v35 = vsel %vm11339_vm10, %v3817_v3, %v12693_v5  ;;  %v3858_v36 = vshrl.u32 %v3515_v20, 16  ;;  %4287 = vrot.lane.b32.xlu1 %v4212_v62, %s11162_s24 }
 0x1b0   : > { %10845 = vmatmul.mubr.msk.bf16.gmra.mxu0 %vm2897_vm2, %v10338_v51  ;;  %v4070_v21 = vld [vmem:[#allocation2 + $0xac] sm:$0xf]  ;;  %v3516_v60 = vld [vmem:[#allocation2 + $0xc4] sm:$0xf]  ;;  %v3861_v11 = vshll.u32 %v3515_v20, 16  ;;  %v2338_v29 = vpop.permute.xlu0 %2337  ;;  %v3851_v53 = vrot.slane %v3850_v38, 4  ;;  %3953 = vrot.lane.b32.xlu0 %v3822_v35, %s11163_s25  ;;  %v3832_v5 = vsel %vm11339_vm10, %v3827_v27, %v3831_v63 }
 0x1b1   : > { %v3437_v32 = vld [vmem:[#allocation2 + $0xc0] sm:$0xf]  ;;  %2774 = vst.msk [vmem:[#allocation4 + $0x74] sm:$0xf] %vm1750_vm15, %v2708_v4  ;;  %v3518_v56 = vld [vmem:[#allocation2 + $0xcc] sm:$0xf]  ;;  %v3846_v52 = vsel %vm11339_vm10, %v3841_v15, %v12704_v42 }
 0x1b2   : > { %2421 = vst.msk [vmem:[#allocation4 + $0x30] sm:$0xf] %vm1410_vm14, %v2338_v29  ;;  %v3855_v40 = vrot.slane %v3853_v54, 5  ;;  %v10411_v28 = vrot.slane %v4069_v6, 9  ;;  %v4215_v0 = vrot.slane %v4070_v21, 5  ;;  %v3867_v2 = vshll.u32 %v3516_v60, 16  ;;  %v2340_v57 = vpop.permute.xlu1 %2339 }
 0x1b3   : > { %v4071_v31 = vld [vmem:[#allocation2 + $0xb0] sm:$0x1]  ;;  %v12732_v18 = vld [vmem:[#allocation2 + $0xb4] sm:$0xe]  ;;  %v12734_v22 = vld [vmem:[#allocation2 + $0xb8] sm:$0xf]  ;;  %3955 = vrot.lane.b32.xlu1 %v3832_v5, %s11163_s25 }
 0x1b4   : > { %v3871_v49 = vshrl.u32 %v3516_v60, 16  ;;  %v12736_v3 = vrot.slane %v3858_v36, 4  ;;  %v12738_v51 = vrot.slane %v3861_v11, 5  ;;  %v12740_v37 = vld [vmem:[#allocation2 + $0xd0] sm:$0xf]  ;;  %v3882_v20 = vshrl.u32 %v3518_v56, 16  ;;  %v2710_v42 = vpop.permute.xlu0 %2709  ;;  %3957 = vrot.lane.b32.xlu0 %v3846_v52, %s11163_s25 }
 0x1b5   : > { %v3885_v38 = vshll.u32 %v3518_v56, 16  ;;  %2422 = vst.msk [vmem:[#allocation4 + $0x34] sm:$0xf] %vm1410_vm14, %v2340_v57  ;;  %v4218_v54 = vrot.slane %v4071_v31, 5  ;;  %v3438_v62 = vld [vmem:[#allocation2 + $0xc4] sm:$0xf]  ;;  %v3856_v27 = vsel %vm11339_vm10, %v3851_v53, %v3855_v40  ;;  %v4216_v56 = vsel %vm11326_vm9, %v10411_v28, %v4215_v0 }
 0x1b6   : > { %v12742_v63 = vld [vmem:[#allocation4 + $0x70] sm:$0xf]  ;;  %2775 = vst.msk [vmem:[#allocation4 + $0x78] sm:$0xf] %vm1750_vm15, %v2710_v42  ;;  %v4217_v15 = vrot.slane %v4215_v0, 4  ;;  %v10412_v6 = vrot.slane %v12732_v18, 9  ;;  %v2712_v29 = vpop.permute.xlu1 %2711  ;;  %v3864_v53 = vor.u32 %v12738_v51, %v12736_v3 }
 0x1b7   : > { %3469 = vst.msk [vmem:[#allocation4 + $0x70] sm:$0xf] %vm226_vm0, %v3437_v32  ;;  %v4222_v21 = vrot.slane %v12734_v22, 5  ;;  %v12753_v4 = vld [vmem:[#allocation2 + $0xbc] sm:$0x1]  ;;  %v12755_v35 = vrot.slane %v3867_v2, 5  ;;  %3959 = vrot.lane.b32.xlu1 %v3856_v27, %s11163_s25 }
 0x1b8   : > { %v12757_v60 = vrot.slane %v3871_v49, 4  ;;  %v3891_v36 = vshll.u32 %v12740_v37, 16  ;;  %v3895_v11 = vshrl.u32 %v12740_v37, 16  ;;  %v2806_v32 = vld [vmem:[#allocation4 + $0x74] sm:$0xf]  ;;  %v12767_v31 = vrot.slane %v3882_v20, 4  ;;  %v2342_v2 = vpop.permute.xlu0 %2341  ;;  %4289 = vrot.lane.b32.xlu0 %v4216_v56, %s11162_s24 }
 0x1b9   : > { %v12765_v40 = vld [vmem:[#allocation2 + $0xc8] sm:$0x1]  ;;  %v12769_v5 = vrot.slane %v3885_v38, 5  ;;  %3470 = vst.msk [vmem:[#allocation4 + $0x74] sm:$0xf] %vm226_vm0, %v3438_v62  ;;  %v10347_v52 = vcombine.low %v12742_v63, %v2806_v32  ;;  %v4219_v28 = vsel %vm11326_vm9, %v4217_v15, %v4218_v54  ;;  %v4224_v0 = vrot.slane %v4222_v21, 4 }
 0x1ba   : > { %2776 = vst.msk [vmem:[#allocation4 + $0x7c] sm:$0xf] %vm1750_vm15, %v2712_v29  ;;  %v3439_v49 = vld [vmem:[#allocation2 + $0xcc] sm:$0xf]  ;;  %v4225_v57 = vrot.slane %v12753_v4, 5  ;;  %v15944_v3 = vmov 0   ;;  %v3874_v51 = vor.u32 %v12757_v60, %v12755_v35  ;;  %v2344_v42 = vpop.permute.xlu1 %2343  ;;  %v4223_v54 = vsel %vm11326_vm9, %v10412_v6, %v4222_v21 }
 0x1bb   : > { %2423 = vst.msk [vmem:[#allocation4 + $0x38] sm:$0xf] %vm1410_vm14, %v2342_v2  ;;  %10864 = vmatprep.mubr.msk.bf16.mxu1 %vm2897_vm2, %v10347_v52  ;;  %v3877_v37 = vshll.u32 %v12765_v40, 16  ;;  %v12858_v20 = vrot.slane %v3891_v36, 5  ;;  %v3520_v38 = vld [vmem:[#allocation2 + $0xd4] sm:$0x1]  ;;  %v3888_v27 = vor.u32 %v12769_v5, %v12767_v31  ;;  %4291 = vrot.lane.b32.xlu1 %v4219_v28, %s11162_s24  ;;  %v10366_v5 = vcombine.low %v11778_v10, %v11997_v14 }
 0x1bc   : > { %283 = vst.msk [vmem:[#allocation3] sm:$0xf] %vm282_vm3, %v15944_v3  ;;  %284 = vst.msk [vmem:[#allocation3 + $0x4] sm:$0xf] %vm282_vm3, %v15944_v3  ;;  %v3897_v63 = vrot.slane %v3895_v11, 4  ;;  %v3865_v62 = vrot.slane %v3864_v53, 4  ;;  %v2674_v4 = vpop.permute.xlu0 %2673  ;;  %v4226_v18 = vsel %vm11326_vm9, %v4224_v0, %v4225_v57  ;;  %4293 = vrot.lane.b32.xlu0 %v4223_v54, %s11162_s24 }
 0x1bd   : > { %287 = vst.msk [vmem:[#allocation3 + $0xc] sm:$0xf] %vm282_vm3, %v15944_v3  ;;  %288 = vst.msk [vmem:[#allocation3 + $0x10] sm:$0xf] %vm282_vm3, %v15944_v3  ;;  %v2807_v15 = vld [vmem:[#allocation4 + $0x78] sm:$0xf] }
 0x1be   : > { %290 = vst.msk [vmem:[#allocation3 + $0x18] sm:$0xf] %vm282_vm3, %v15944_v3  ;;  %291 = vst.msk [vmem:[#allocation3 + $0x1c] sm:$0xf] %vm282_vm3, %v15944_v3  ;;  %v3440_v60 = vld [vmem:[#allocation2 + $0xd0] sm:$0xf]  ;;  %v3898_v36 = vor.u32 %v3897_v63, %v12858_v20  ;;  %v2676_v29 = vpop.permute.xlu1 %2675  ;;  %v3870_v56 = vsel %vm11339_vm10, %v3865_v62, %v12755_v35 }
 0x1bf   : > { %293 = vst.msk [vmem:[#allocation3 + $0x24] sm:$0xf] %vm282_vm3, %v15944_v3  ;;  %294 = vst.msk [vmem:[#allocation3 + $0x28] sm:$0xf] %vm282_vm3, %v15944_v3  ;;  %v3901_v22 = vshll.u32 %v3520_v38, 16  ;;  %v3875_v6 = vrot.slane %v3874_v51, 4  ;;  %4295 = vrot.lane.b32.xlu1 %v4226_v18, %s11162_s24 }
 0x1c0   : > { %296 = vst.msk [vmem:[#allocation3 + $0x30] sm:$0xf] %vm282_vm3, %v15944_v3  ;;  %297 = vst.msk [vmem:[#allocation3 + $0x34] sm:$0xf] %vm282_vm3, %v15944_v3  ;;  %v3879_v21 = vrot.slane %v3877_v37, 5  ;;  %v3889_v53 = vrot.slane %v3888_v27, 4  ;;  %v2678_v31 = vpop.permute.xlu0 %2677  ;;  %3961 = vrot.lane.b32.xlu0 %v3870_v56, %s11163_s25 }
 0x1c1   : > { %299 = vst.msk [vmem:[#allocation3 + $0x3c] sm:$0xf] %vm282_vm3, %v15944_v3  ;;  %300 = vst.msk [vmem:[#allocation3 + $0x40] sm:$0xf] %vm282_vm3, %v15944_v3  ;;  %v12876_v11 = vld [vmem:[#allocation2 + $0xc4] sm:$0xf] }
 0x1c2   : > { %302 = vst.msk [vmem:[#allocation3 + $0x48] sm:$0xf] %vm282_vm3, %v15944_v3  ;;  %303 = vst.msk [vmem:[#allocation3 + $0x4c] sm:$0xf] %vm282_vm3, %v15944_v3  ;;  %v2808_v32 = vld [vmem:[#allocation4 + $0x7c] sm:$0xf]  ;;  %v3880_v51 = vsel %vm11339_vm10, %v3875_v6, %v3879_v21  ;;  %v3894_v54 = vsel %vm11339_vm10, %v3889_v53, %v12858_v20 }
 0x1c3   : > { %305 = vst.msk [vmem:[#allocation3 + $0x54] sm:$0xf] %vm282_vm3, %v15944_v3  ;;  %306 = vst.msk [vmem:[#allocation3 + $0x58] sm:$0xf] %vm282_vm3, %v15944_v3  ;;  %v3421_v35 = vld [vmem:[#allocation2 + $0x60] sm:$0xf]  ;;  %v10348_v40 = vcombine.low %v2807_v15, %v2808_v32  ;;  %3963 = vrot.lane.b32.xlu1 %v3880_v51, %s11163_s25 }
 0x1c4   : > { %308 = vst.msk [vmem:[#allocation3 + $0x60] sm:$0xf] %vm282_vm3, %v15944_v3  ;;  %309 = vst.msk [vmem:[#allocation3 + $0x64] sm:$0xf] %vm282_vm3, %v15944_v3  ;;  %v5434_v52 = vld [vmem:[#allocation3] sm:$0xf]  ;;  %v3906_v15 = vpop.permute.xlu0 %3905  ;;  %3965 = vrot.lane.b32.xlu0 %v3894_v54, %s11163_s25 }
 0x1c5   : > { %311 = vst.msk [vmem:[#allocation3 + $0x6c] sm:$0xf] %vm282_vm3, %v15944_v3  ;;  %312 = vst.msk [vmem:[#allocation3 + $0x70] sm:$0xf] %vm282_vm3, %v15944_v3  ;;  %v5435_v2 = vld [vmem:[#allocation3 + $0x4] sm:$0xf]  ;;  %10865 = vmatmul.mubr.msk.bf16.gmra.mxu1 %vm2897_vm2, %v10348_v40 }
 0x1c6   : > { %314 = vst.msk [vmem:[#allocation3 + $0x78] sm:$0xf] %vm282_vm3, %v15944_v3  ;;  %315 = vst.msk [vmem:[#allocation3 + $0x7c] sm:$0xf] %vm282_vm3, %v15944_v3  ;;  %v4075_v28 = vld [vmem:[#allocation2 + $0xc0] sm:$0xe]  ;;  %10870 = vmatprep.mubr.msk.bf16.mxu1 %vm2897_vm2, %v10366_v5 }
 0x1c7   : > { %317 = vst.msk [vmem:[#allocation3 + $0x84] sm:$0xf] %vm282_vm3, %v15944_v3  ;;  %318 = vst.msk [vmem:[#allocation3 + $0x88] sm:$0xf] %vm282_vm3, %v15944_v3  ;;  %v4229_v0 = vrot.slane %v12876_v11, 5  ;;  %v5483_v57 = vshrl.u32 %v5434_v52, 16 }
 0x1c8   : > { %320 = vst.msk [vmem:[#allocation3 + $0x90] sm:$0xf] %vm282_vm3, %v15944_v3  ;;  %321 = vst.msk [vmem:[#allocation3 + $0x94] sm:$0xf] %vm282_vm3, %v15944_v3  ;;  %v3899_v10 = vrot.slane %v3898_v36, 4  ;;  %v5492_v37 = vshll.u32 %v5435_v2, 16 }
 0x1c9   : > { %323 = vst.msk [vmem:[#allocation3 + $0x9c] sm:$0xf] %vm282_vm3, %v15944_v3  ;;  %324 = vst.msk [vmem:[#allocation3 + $0xa0] sm:$0xf] %vm282_vm3, %v15944_v3  ;;  %v4077_v14 = vld [vmem:[#allocation2 + $0xc8] sm:$0x1] }
 0x1ca   : > { %326 = vst.msk [vmem:[#allocation3 + $0xa8] sm:$0xf] %vm282_vm3, %v15944_v3  ;;  %327 = vst.msk [vmem:[#allocation3 + $0xac] sm:$0xf] %vm282_vm3, %v15944_v3  ;;  %v5496_v38 = vshrl.u32 %v5435_v2, 16  ;;  %v4231_v6 = vrot.slane %v4229_v0, 4  ;;  %v3910_v2 = vpop.permute.xlu0 %3909 }
 0x1cb   : > { %329 = vst.msk [vmem:[#allocation3 + $0xb4] sm:$0xf] %vm282_vm3, %v15944_v3  ;;  %330 = vst.msk [vmem:[#allocation3 + $0xb8] sm:$0xf] %vm282_vm3, %v15944_v3  ;;  %v3422_v63 = vld [vmem:[#allocation2 + $0x64] sm:$0xf] }
 0x1cc   : > { %332 = vst.msk [vmem:[#allocation3 + $0xc0] sm:$0xf] %vm282_vm3, %v15944_v3  ;;  %333 = vst.msk [vmem:[#allocation3 + $0xc4] sm:$0xf] %vm282_vm3, %v15944_v3  ;;  %v4079_v62 = vld [vmem:[#allocation2 + $0xd0] sm:$0xf] }
 0x1cd   : > { %335 = vst.msk [vmem:[#allocation3 + $0xcc] sm:$0xf] %vm282_vm3, %v15944_v3  ;;  %336 = vst.msk [vmem:[#allocation3 + $0xd0] sm:$0xf] %vm282_vm3, %v15944_v3  ;;  %v4232_v21 = vrot.slane %v4077_v14, 5  ;;  %v4236_v11 = vrot.slane %v4079_v62, 5 }
 0x1ce   : > { %2424 = vst.msk [vmem:[#allocation4 + $0x3c] sm:$0xf] %vm1410_vm14, %v2344_v42  ;;  %v2680_v42 = vpop.permute.xlu1 %2679  ;;  %4001 = vst.msk [vmem:[#allocation4] sm:$0xf] %vm1410_vm14, %v3906_v15  ;;  %v4078_v36 = vld [vmem:[#allocation2 + $0xcc] sm:$0xe] }
 0x1cf   : > { %3471 = vst.msk [vmem:[#allocation4 + $0x78] sm:$0xf] %vm226_vm0, %v3439_v49  ;;  %3472 = vst.msk [vmem:[#allocation4 + $0x7c] sm:$0xf] %vm226_vm0, %v3440_v60  ;;  %v3903_v49 = vrot.slane %v3901_v22, 5  ;;  %v5485_v60 = vrot.slane %v5483_v57, 4 }
 0x1d0   : > { %2757 = vst.msk [vmem:[#allocation4 + $0x30] sm:$0xf] %vm1750_vm15, %v2674_v4  ;;  %2758 = vst.msk [vmem:[#allocation4 + $0x34] sm:$0xf] %vm1750_vm15, %v2676_v29  ;;  %v10413_v4 = vrot.slane %v4075_v28, 9  ;;  %v5494_v29 = vrot.slane %v5492_v37, 5 }
 0x1d1   : > { %286 = vst.msk [vmem:[#allocation3 + $0x8] sm:$0x1] %vm285_vm4, %v15944_v3  ;;  %289 = vst.msk [vmem:[#allocation3 + $0x14] sm:$0x1] %vm285_vm4, %v15944_v3  ;;  %v3423_v22 = vld [vmem:[#allocation2 + $0x6c] sm:$0xf]  ;;  %v3904_v20 = vsel %vm11339_vm10, %v3899_v10, %v3903_v49 }
 0x1d2   : > { %292 = vst.msk [vmem:[#allocation3 + $0x20] sm:$0x1] %vm285_vm4, %v15944_v3  ;;  %295 = vst.msk [vmem:[#allocation3 + $0x2c] sm:$0x1] %vm285_vm4, %v15944_v3  ;;  %v4080_v32 = vld [vmem:[#allocation2 + $0xd4] sm:$0x1]  ;;  %v3908_v40 = vpop.permute.xlu1 %3907  ;;  %v4230_v49 = vsel %vm11326_vm9, %v10413_v4, %v4229_v0  ;;  %3967 = vrot.lane.b32.xlu1 %v3904_v20, %s11163_s25  ;;  %v4233_v0 = vsel %vm11326_vm9, %v4231_v6, %v4232_v21 }
 0x1d3   : > { %298 = vst.msk [vmem:[#allocation3 + $0x38] sm:$0x1] %vm285_vm4, %v15944_v3  ;;  %301 = vst.msk [vmem:[#allocation3 + $0x44] sm:$0x1] %vm285_vm4, %v15944_v3  ;;  %v5498_v56 = vrot.slane %v5496_v38, 4  ;;  %v10414_v28 = vrot.slane %v4078_v36, 9  ;;  %4297 = vrot.lane.b32.xlu0 %v4230_v49, %s11162_s24 }
 0x1d4   : > { %304 = vst.msk [vmem:[#allocation3 + $0x50] sm:$0x1] %vm285_vm4, %v15944_v3  ;;  %307 = vst.msk [vmem:[#allocation3 + $0x5c] sm:$0x1] %vm285_vm4, %v15944_v3  ;;  %v4238_v51 = vrot.slane %v4236_v11, 4  ;;  %vm7452_vm5 = vcmask 195584  }
 0x1d5   : > { %310 = vst.msk [vmem:[#allocation3 + $0x68] sm:$0x1] %vm285_vm4, %v15944_v3  ;;  %313 = vst.msk [vmem:[#allocation3 + $0x74] sm:$0x1] %vm285_vm4, %v15944_v3  ;;  %v5499_v10 = vor.u32 %v5498_v56, %v5494_v29  ;;  %v5995_v54 = vld [vmem:[#allocation3] sm:$0xe] }
 0x1d6   : > { %316 = vst.msk [vmem:[#allocation3 + $0x80] sm:$0x1] %vm285_vm4, %v15944_v3  ;;  %319 = vst.msk [vmem:[#allocation3 + $0x8c] sm:$0x1] %vm285_vm4, %v15944_v3  ;;  %v3912_v38 = vpop.permute.xlu1 %3911  ;;  %4299 = vrot.lane.b32.xlu1 %v4233_v0, %s11162_s24  ;;  %v5996_v62 = vld [vmem:[#allocation3 + $0x4] sm:$0xf] }
 0x1d7   : > { %322 = vst.msk [vmem:[#allocation3 + $0x98] sm:$0x1] %vm285_vm4, %v15944_v3  ;;  %325 = vst.msk [vmem:[#allocation3 + $0xa4] sm:$0x1] %vm285_vm4, %v15944_v3  ;;  %v2789_v27 = vld [vmem:[#allocation4 + $0x30] sm:$0xf] }
 0x1d8   : > { %328 = vst.msk [vmem:[#allocation3 + $0xb0] sm:$0x1] %vm285_vm4, %v15944_v3  ;;  %331 = vst.msk [vmem:[#allocation3 + $0xbc] sm:$0x1] %vm285_vm4, %v15944_v3  ;;  %v2790_v53 = vld [vmem:[#allocation4 + $0x34] sm:$0xf] }
 0x1d9   : > { %334 = vst.msk [vmem:[#allocation3 + $0xc8] sm:$0x1] %vm285_vm4, %v15944_v3  ;;  %337 = vst.msk [vmem:[#allocation3 + $0xd4] sm:$0x1] %vm285_vm4, %v15944_v3  ;;  %v5486_v3 = vshll.u32 %v5434_v52, 16  ;;  %v10339_v52 = vcombine.low %v2789_v27, %v2790_v53  ;;  %v5500_v15 = vrot.slane %v5499_v10, 4 }
 0x1da   : > { %2759 = vst.msk [vmem:[#allocation4 + $0x38] sm:$0xf] %vm1750_vm15, %v2678_v31  ;;  %2760 = vst.msk [vmem:[#allocation4 + $0x3c] sm:$0xf] %vm1750_vm15, %v2680_v42  ;;  %v5436_v31 = vld [vmem:[#allocation3 + $0x8] sm:$0x1] }
 0x1db   : > { %v5488_v18 = vrot.slane %v5486_v3, 5  ;;  %3453 = vst.msk [vmem:[#allocation4 + $0x30] sm:$0xf] %vm226_vm0, %v3421_v35  ;;  %v10367_v35 = vcombine.low %v12011_v48, %v12019_v50  ;;  %3454 = vst.msk [vmem:[#allocation4 + $0x34] sm:$0xf] %vm226_vm0, %v3422_v63  ;;  %v10368_v48 = vcombine.low %v12155_v1, %v12169_v30  ;;  %v4239_v50 = vrot.slane %v4080_v32, 5  ;;  %10848 = vmatprep.mubr.msk.bf16.mxu0 %vm2897_vm2, %v10339_v52  ;;  %v4242_v30 = vpop.permute.xlu0 %4241 }
 0x1dc   : > { %4002 = vst.msk [vmem:[#allocation4 + $0x4] sm:$0xf] %vm1410_vm14, %v3908_v40  ;;  %v3424_v3 = vld [vmem:[#allocation2 + $0x70] sm:$0xf]  ;;  %4003 = vst.msk [vmem:[#allocation4 + $0x8] sm:$0xf] %vm1410_vm14, %v3910_v2  ;;  %v4237_v63 = vsel %vm11326_vm9, %v10414_v28, %v4236_v11  ;;  %v10370_v11 = vcombine.low %v12371_v33, %v12383_v12 }
 0x1dd   : > { %v5489_v57 = vor.u32 %v5488_v18, %v5485_v60  ;;  %10871 = vmatmul.mubr.msk.bf16.vlgmr.msra.gmra.mxu1 %vm2897_vm2, %v10367_v35  ;;  %v5502_v14 = vshll.u32 %v5436_v31, 16  ;;  %4004 = vst.msk [vmem:[#allocation4 + $0xc] sm:$0xf] %vm1410_vm14, %v3912_v38  ;;  %v4240_v27 = vsel %vm11326_vm9, %v4238_v51, %v4239_v50  ;;  %v4244_v60 = vpop.permute.xlu1 %4243  ;;  %4301 = vrot.lane.b32.xlu0 %v4237_v63, %s11162_s24  ;;  %v5997_v18 = vld [vmem:[#allocation3 + $0x8] sm:$0x1]  ;;  %v10484_v36 = vrot.slane %v5995_v54, 9 }
 0x1de   : > { %10874 = vmatprep.mubr.msk.bf16.mxu1 %vm2897_vm2, %v10368_v48  ;;  %4337 = vst.msk [vmem:[#allocation4] sm:$0xf] %vm1750_vm15, %v4242_v30  ;;  %4338 = vst.msk [vmem:[#allocation4 + $0x4] sm:$0xf] %vm1750_vm15, %v4244_v60  ;;  %v6093_v20 = vrot.slane %v5996_v62, 5  ;;  %4303 = vrot.lane.b32.xlu1 %v4240_v27, %s11162_s24  ;;  %v10371_v35 = vcombine.low %v12412_v17, %v12424_v34  ;;  %v10373_v34 = vcombine.low %v12633_v8, %v12645_v19  ;;  %vm9901_vm12 = vcmask 1041408  }
 0x1df   : > { %v5490_v42 = vrot.slane %v5489_v57, 4  ;;  %v5504_v4 = vrot.slane %v5502_v14, 5  ;;  %v4246_v6 = vpop.permute.xlu0 %4245  ;;  %v10376_v8 = vcombine.low %v12098_v45, %v12106_v55  ;;  %v10377_v45 = vcombine.low %v12118_v7, %v12123_v13 }
 0x1e0   : > { %4339 = vst.msk [vmem:[#allocation4 + $0x8] sm:$0xf] %vm1750_vm15, %v4246_v6  ;;  %v6095_v56 = vrot.slane %v6093_v20, 4  ;;  %v6094_v53 = vsel %vm11326_vm9, %v10484_v36, %v6093_v20  ;;  %v10379_v7 = vcombine.low %v12335_v25, %v12345_v46  ;;  %v15945_v46 = vld [vmem:[#allocation7_spill] sm:$0xff]  ;;  %vm9852_vm13 = vcmask 31744  }
 0x1e1   : > { %v2791_v5 = vld [vmem:[#allocation4 + $0x38] sm:$0xf]  ;;  %v2792_v37 = vld [vmem:[#allocation4 + $0x3c] sm:$0xf]  ;;  %v5495_v21 = vsel %vm11339_vm10, %v5490_v42, %v5494_v29  ;;  %v5505_v32 = vsel %vm11339_vm10, %v5500_v15, %v5504_v4 }
 0x1e2   : > { %3455 = vst.msk [vmem:[#allocation4 + $0x38] sm:$0xf] %vm226_vm0, %v3423_v22  ;;  %3456 = vst.msk [vmem:[#allocation4 + $0x3c] sm:$0xf] %vm226_vm0, %v3424_v3  ;;  %v10340_v1 = vcombine.low %v2791_v5, %v2792_v37  ;;  %v10369_v22 = vcombine.low %v12202_v26, %v12215_v16  ;;  %v6096_v26 = vrot.slane %v5997_v18, 5  ;;  %v4248_v16 = vpop.permute.xlu1 %4247  ;;  %5866 = vrot.lane.b32.xlu0 %v5495_v21, %s11162_s24  ;;  %5868 = vrot.lane.b32.xlu1 %v5505_v32, %s11162_s24  ;;  %vm5962_vm0 = vcmask 126016  }
 0x1e3   : > { %4340 = vst.msk [vmem:[#allocation4 + $0xc] sm:$0xf] %vm1750_vm15, %v4248_v16  ;;  %v3914_v29 = vpop.permute.xlu0 %3913  ;;  %v10372_v5 = vcombine.low %v12592_v24, %v12604_v61 }
 0x1e4   : > { %10849 = vmatmul.mubr.msk.bf16.gmra.mxu0 %vm2897_vm2, %v10340_v1  ;;  %4005 = vst.msk [vmem:[#allocation4 + $0x10] sm:$0xf] %vm1410_vm14, %v3914_v29  ;;  %v6097_v33 = vsel %vm11326_vm9, %v6095_v56, %v6096_v26 }
 0x1e5   : > { %10875 = vmatmul.mubr.msk.bf16.gmra.mxu1 %vm2897_vm2, %v10369_v22  ;;  %v11105_v40 = vld [vmem:[#allocation4] sm:$0xff]  }
 0x1e6   : > { %10878 = vmatprep.mubr.msk.bf16.mxu1 %vm2897_vm2, %v10370_v11  ;;  %v3916_v12 = vpop.permute.xlu1 %3915  ;;  %6203 = vrot.lane.b32.xlu0 %v6094_v53, %s11164_s7 }
 0x1e7   : > { %4006 = vst.msk [vmem:[#allocation4 + $0x14] sm:$0xf] %vm1410_vm14, %v3916_v12  ;;  %v3918_v31 = vpop.permute.xlu0 %3917  ;;  %10904 = vmatprep.mubr.msk.bf16.mxu0 %vm2897_vm2, %v11105_v40  ;;  %6205 = vrot.lane.b32.xlu1 %v6097_v33, %s11164_s7 }
 0x1e8   : > { %4007 = vst.msk [vmem:[#allocation4 + $0x18] sm:$0xf] %vm1410_vm14, %v3918_v31 }
 0x1ea   : > { %v3920_v52 = vpop.permute.xlu1 %3919  ;;  %v11106_v2 = vld [vmem:[#allocation4 + $0x8] sm:$0xff]  }
 0x1eb   : > { %4008 = vst.msk [vmem:[#allocation4 + $0x1c] sm:$0xf] %vm1410_vm14, %v3920_v52  ;;  %v4250_v49 = vpop.permute.xlu0 %4249 }
 0x1ec   : > { %10905 = vmatmul.mubr.msk.bf16.vlgmr.msra.gmra.mxu0 %vm2897_vm2, %v11106_v2  ;;  %4341 = vst.msk [vmem:[#allocation4 + $0x10] sm:$0xf] %vm1750_vm15, %v4250_v49 }
 0x1ed   : > { %10879 = vmatmul.mubr.msk.bf16.gmra.mxu1 %vm2897_vm2, %v10371_v35 }
 0x1ee   : > { %10882 = vmatprep.mubr.msk.bf16.mxu1 %vm2897_vm2, %v10372_v5  ;;  %v4252_v17 = vpop.permute.xlu1 %4251 }
 0x1ef   : > { %4342 = vst.msk [vmem:[#allocation4 + $0x14] sm:$0xf] %vm1750_vm15, %v4252_v17  ;;  %v4254_v24 = vpop.permute.xlu0 %4253  ;;  %v5370_v17 = vld [vmem:[#allocation3] sm:$0xf] }
 0x1f0   : > { %4343 = vst.msk [vmem:[#allocation4 + $0x18] sm:$0xf] %vm1750_vm15, %v4254_v24 }
 0x1f1   : > { %5402 = vst.msk [vmem:[#allocation5] sm:$0xf] %vm282_vm3, %v5370_v17 }
 0x1f2   : > { %v4256_v61 = vpop.permute.xlu1 %4255 }
 0x1f3   : > { %4344 = vst.msk [vmem:[#allocation4 + $0x1c] sm:$0xf] %vm1750_vm15, %v4256_v61  ;;  %v3922_v28 = vpop.permute.xlu0 %3921 }
 0x1f4   : > { %4009 = vst.msk [vmem:[#allocation4 + $0x20] sm:$0xf] %vm1410_vm14, %v3922_v28 }
 0x1f5   : > { %10883 = vmatmul.mubr.msk.bf16.gmra.mxu1 %vm2897_vm2, %v10373_v34 }
 0x1f6   : > { %10886 = vmatprep.mubr.msk.bf16.mxu1 %vm2897_vm2, %v11979_v58  ;;  %v3924_v57 = vpop.permute.xlu1 %3923  ;;  %v11107_v3 = vld [vmem:[#allocation4 + $0x10] sm:$0xff]  }
 0x1f7   : > { %4010 = vst.msk [vmem:[#allocation4 + $0x24] sm:$0xf] %vm1410_vm14, %v3924_v57  ;;  %v3926_v48 = vpop.permute.xlu0 %3925  ;;  %10908 = vmatprep.mubr.msk.bf16.mxu0 %vm2897_vm2, %v11107_v3 }
 0x1f8   : > { %4011 = vst.msk [vmem:[#allocation4 + $0x28] sm:$0xf] %vm1410_vm14, %v3926_v48 }
 0x1fa   : > { %v3928_v58 = vpop.permute.xlu1 %3927  ;;  %v11108_v19 = vld [vmem:[#allocation4 + $0x18] sm:$0xff]  }
 0x1fb   : > { %4012 = vst.msk [vmem:[#allocation4 + $0x2c] sm:$0xf] %vm1410_vm14, %v3928_v58  ;;  %v4258_v50 = vpop.permute.xlu0 %4257  ;;  %10909 = vmatmul.mubr.msk.bf16.gmra.mxu0 %vm2897_vm2, %v11108_v19  ;;  %v5371_v58 = vld [vmem:[#allocation3 + $0x4] sm:$0xf] }
 0x1fc   : > { %4345 = vst.msk [vmem:[#allocation4 + $0x20] sm:$0xf] %vm1750_vm15, %v4258_v50 }
 0x1fd   : > { %10887 = vmatmul.mubr.msk.bf16.gmra.mxu1 %vm2897_vm2, %v11995_v41  ;;  %v10378_v41 = vcombine.low %v12307_v43, %v12317_v39  ;;  %v10380_v43 = vcombine.low %v12525_v59, %v12540_v47  ;;  %v10381_v59 = vcombine.low %v15945_v46, %v12567_v44  ;;  %5403 = vst.msk [vmem:[#allocation5 + $0x4] sm:$0xf] %vm282_vm3, %v5371_v58 }
 0x1fe   : > { %10890 = vmatprep.mubr.msk.bf16.mxu1 %vm2897_vm2, %v10376_v8  ;;  %v4260_v0 = vpop.permute.xlu1 %4259 }
 0x1ff   : > { %4346 = vst.msk [vmem:[#allocation4 + $0x24] sm:$0xf] %vm1750_vm15, %v4260_v0  ;;  %v4262_v55 = vpop.permute.xlu0 %4261 }
 0x200   : > { %4347 = vst.msk [vmem:[#allocation4 + $0x28] sm:$0xf] %vm1750_vm15, %v4262_v55 }
 0x202   : > { %v4264_v51 = vpop.permute.xlu1 %4263 }
 0x203   : > { %4348 = vst.msk [vmem:[#allocation4 + $0x2c] sm:$0xf] %vm1750_vm15, %v4264_v51  ;;  %v3930_v10 = vpop.permute.xlu0 %3929 }
 0x204   : > { %4013 = vst.msk [vmem:[#allocation4 + $0x30] sm:$0xf] %vm1410_vm14, %v3930_v10  ;;  %v13097_v10 = vpop.f32.mrf.mxu1 }
 0x205   : > { %10891 = vmatmul.mubr.msk.bf16.gmra.mxu1 %vm2897_vm2, %v10377_v45 }
 0x206   : > { %10894 = vmatprep.mubr.msk.bf16.mxu1 %vm2897_vm2, %v10378_v41  ;;  %v3932_v14 = vpop.permute.xlu1 %3931  ;;  %v11109_v37 = vld [vmem:[#allocation4 + $0x20] sm:$0xff]  }
 0x207   : > { %4014 = vst.msk [vmem:[#allocation4 + $0x34] sm:$0xf] %vm1410_vm14, %v3932_v14  ;;  %v3934_v13 = vpop.permute.xlu0 %3933  ;;  %10912 = vmatprep.mubr.msk.bf16.mxu0 %vm2897_vm2, %v11109_v37  ;;  %v13099_v14 = vpop.f32.mrf.mxu1 }
 0x208   : > { %4015 = vst.msk [vmem:[#allocation4 + $0x38] sm:$0xf] %vm1410_vm14, %v3934_v13  ;;  %v10838_v13 = vpop.f32.mrf.mxu0 }
 0x209   : > { %v13101_v37 = vpop.f32.mrf.mxu1 }
 0x20a   : > { %v3936_v39 = vpop.permute.xlu1 %3935  ;;  %v11110_v38 = vld [vmem:[#allocation4 + $0x28] sm:$0xff]  }
 0x20b   : > { %4016 = vst.msk [vmem:[#allocation4 + $0x3c] sm:$0xf] %vm1410_vm14, %v3936_v39  ;;  %v4266_v1 = vpop.permute.xlu0 %4265  ;;  %10913 = vmatmul.mubr.msk.bf16.gmra.mxu0 %vm2897_vm2, %v11110_v38  ;;  %v2984_v39 = vpop.f32.mrf.mxu0 }
 0x20c   : > { %4349 = vst.msk [vmem:[#allocation4 + $0x30] sm:$0xf] %vm1750_vm15, %v4266_v1 }
 0x20d   : > { %10895 = vmatmul.mubr.msk.bf16.gmra.mxu1 %vm2897_vm2, %v10379_v7  ;;  %v13103_v7 = vpop.f32.mrf.mxu1  ;;  %v10839_v1 = vpop.f32.mrf.mxu0 }
 0x20e   : > { %10898 = vmatprep.mubr.msk.bf16.mxu1 %vm2897_vm2, %v10380_v43  ;;  %v4268_v25 = vpop.permute.xlu1 %4267 }
 0x20f   : > { %4350 = vst.msk [vmem:[#allocation4 + $0x34] sm:$0xf] %vm1750_vm15, %v4268_v25  ;;  %v4270_v47 = vpop.permute.xlu0 %4269  ;;  %v2987_v46 = vpop.f32.mrf.mxu0 }
 0x210   : > { %4351 = vst.msk [vmem:[#allocation4 + $0x38] sm:$0xf] %vm1750_vm15, %v4270_v47 }
 0x212   : > { %v4272_v30 = vpop.permute.xlu1 %4271 }
 0x213   : > { %4352 = vst.msk [vmem:[#allocation4 + $0x3c] sm:$0xf] %vm1750_vm15, %v4272_v30  ;;  %v3938_v63 = vpop.permute.xlu0 %3937 }
 0x214   : > { %4017 = vst.msk [vmem:[#allocation4 + $0x40] sm:$0xf] %vm1410_vm14, %v3938_v63 }
 0x215   : > { %10899 = vmatmul.mubr.msk.bf16.gmra.mxu1 %vm2897_vm2, %v10381_v59 }
 0x216   : > { %v3940_v42 = vpop.permute.xlu1 %3939  ;;  %v11111_v54 = vld [vmem:[#allocation4 + $0x30] sm:$0xff]  }
 0x217   : > { %4018 = vst.msk [vmem:[#allocation4 + $0x44] sm:$0xf] %vm1410_vm14, %v3940_v42  ;;  %v3942_v62 = vpop.permute.xlu0 %3941  ;;  %10916 = vmatprep.mubr.msk.bf16.mxu0 %vm2897_vm2, %v11111_v54 }
 0x218   : > { %4019 = vst.msk [vmem:[#allocation4 + $0x48] sm:$0xf] %vm1410_vm14, %v3942_v62 }
 0x21a   : > { %v3944_v44 = vpop.permute.xlu1 %3943  ;;  %v11112_v27 = vld [vmem:[#allocation4 + $0x38] sm:$0xff]  }
 0x21b   : > { %4020 = vst.msk [vmem:[#allocation4 + $0x4c] sm:$0xf] %vm1410_vm14, %v3944_v44  ;;  %v4274_v15 = vpop.permute.xlu0 %4273  ;;  %10917 = vmatmul.mubr.msk.bf16.gmra.mxu0 %vm2897_vm2, %v11112_v27 }
 0x21c   : > { %4353 = vst.msk [vmem:[#allocation4 + $0x40] sm:$0xf] %vm1750_vm15, %v4274_v15 }
 0x21e   : > { %v4276_v4 = vpop.permute.xlu1 %4275 }
 0x21f   : > { %4354 = vst.msk [vmem:[#allocation4 + $0x44] sm:$0xf] %vm1750_vm15, %v4276_v4  ;;  %v4278_v60 = vpop.permute.xlu0 %4277 }
 0x220   : > { %4355 = vst.msk [vmem:[#allocation4 + $0x48] sm:$0xf] %vm1750_vm15, %v4278_v60 }
 0x222   : > { %v4280_v18 = vpop.permute.xlu1 %4279  ;;  %v13105_v43 = vpop.f32.mrf.mxu1 }
 0x223   : > { %4356 = vst.msk [vmem:[#allocation4 + $0x4c] sm:$0xf] %vm1750_vm15, %v4280_v18  ;;  %v3946_v22 = vpop.permute.xlu0 %3945 }
 0x224   : > { %4021 = vst.msk [vmem:[#allocation4 + $0x50] sm:$0xf] %vm1410_vm14, %v3946_v22  ;;  %v13107_v38 = vpop.f32.mrf.mxu1 }
 0x226   : > { %v3948_v6 = vpop.permute.xlu1 %3947  ;;  %v11113_v21 = vld [vmem:[#allocation4 + $0x40] sm:$0xff]   ;;  %v13109_v25 = vpop.f32.mrf.mxu1 }
 0x227   : > { %4022 = vst.msk [vmem:[#allocation4 + $0x54] sm:$0xf] %vm1410_vm14, %v3948_v6  ;;  %v3950_v36 = vpop.permute.xlu0 %3949  ;;  %10920 = vmatprep.mubr.msk.bf16.mxu0 %vm2897_vm2, %v11113_v21 }
 0x228   : > { %4023 = vst.msk [vmem:[#allocation4 + $0x58] sm:$0xf] %vm1410_vm14, %v3950_v36  ;;  %v13111_v59 = vpop.f32.mrf.mxu1 }
 0x22a   : > { %v3952_v20 = vpop.permute.xlu1 %3951  ;;  %v11114_v11 = vld [vmem:[#allocation4 + $0x48] sm:$0xff]  }
 0x22b   : > { %4024 = vst.msk [vmem:[#allocation4 + $0x5c] sm:$0xf] %vm1410_vm14, %v3952_v20  ;;  %v4282_v32 = vpop.permute.xlu0 %4281  ;;  %10921 = vmatmul.mubr.msk.bf16.gmra.mxu0 %vm2897_vm2, %v11114_v11 }
 0x22c   : > { %4357 = vst.msk [vmem:[#allocation4 + $0x50] sm:$0xf] %vm1750_vm15, %v4282_v32 }
 0x22e   : > { %v4284_v56 = vpop.permute.xlu1 %4283 }
 0x22f   : > { %4358 = vst.msk [vmem:[#allocation4 + $0x54] sm:$0xf] %vm1750_vm15, %v4284_v56  ;;  %v4286_v26 = vpop.permute.xlu0 %4285  ;;  %v10842_v47 = vpop.f32.mrf.mxu0 }
 0x230   : > { %4359 = vst.msk [vmem:[#allocation4 + $0x58] sm:$0xf] %vm1750_vm15, %v4286_v26 }
 0x231   : > { %v3000_v63 = vpop.f32.mrf.mxu0 }
 0x232   : > { %v4288_v16 = vpop.permute.xlu1 %4287 }
 0x233   : > { %4360 = vst.msk [vmem:[#allocation4 + $0x5c] sm:$0xf] %vm1750_vm15, %v4288_v16  ;;  %v3954_v29 = vpop.permute.xlu0 %3953  ;;  %v10843_v54 = vpop.f32.mrf.mxu0 }
 0x234   : > { %4025 = vst.msk [vmem:[#allocation4 + $0x60] sm:$0xf] %vm1410_vm14, %v3954_v29 }
 0x235   : > { %v3003_v44 = vpop.f32.mrf.mxu0 }
 0x236   : > { %v3956_v53 = vpop.permute.xlu1 %3955  ;;  %v11115_v33 = vld [vmem:[#allocation4 + $0x50] sm:$0xff]  }
 0x237   : > { %4026 = vst.msk [vmem:[#allocation4 + $0x64] sm:$0xf] %vm1410_vm14, %v3956_v53  ;;  %v3958_v12 = vpop.permute.xlu0 %3957  ;;  %10924 = vmatprep.mubr.msk.bf16.mxu0 %vm2897_vm2, %v11115_v33 }
 0x238   : > { %4027 = vst.msk [vmem:[#allocation4 + $0x68] sm:$0xf] %vm1410_vm14, %v3958_v12 }
 0x23a   : > { %v3960_v40 = vpop.permute.xlu1 %3959  ;;  %v11116_v35 = vld [vmem:[#allocation4 + $0x58] sm:$0xff]  }
 0x23b   : > { %4028 = vst.msk [vmem:[#allocation4 + $0x6c] sm:$0xf] %vm1410_vm14, %v3960_v40  ;;  %v4290_v31 = vpop.permute.xlu0 %4289  ;;  %10925 = vmatmul.mubr.msk.bf16.gmra.mxu0 %vm2897_vm2, %v11116_v35 }
 0x23c   : > { %4361 = vst.msk [vmem:[#allocation4 + $0x60] sm:$0xf] %vm1750_vm15, %v4290_v31 }
 0x23e   : > { %v4292_v5 = vpop.permute.xlu1 %4291 }
 0x23f   : > { %4362 = vst.msk [vmem:[#allocation4 + $0x64] sm:$0xf] %vm1750_vm15, %v4292_v5  ;;  %v4294_v52 = vpop.permute.xlu0 %4293 }
 0x240   : > { %4363 = vst.msk [vmem:[#allocation4 + $0x68] sm:$0xf] %vm1750_vm15, %v4294_v52 }
 0x242   : > { %v4296_v2 = vpop.permute.xlu1 %4295 }
 0x243   : > { %4364 = vst.msk [vmem:[#allocation4 + $0x6c] sm:$0xf] %vm1750_vm15, %v4296_v2  ;;  %v3962_v49 = vpop.permute.xlu0 %3961  ;;  %v13136_v2 = vld [vmem:[%s15921_s3] ss:$0 sm:$0xff] }
 0x244   : > { %4029 = vst.msk [vmem:[#allocation4 + $0x70] sm:$0xf] %vm1410_vm14, %v3962_v49 }
 0x246   : > { %v3964_v34 = vpop.permute.xlu1 %3963  ;;  %v11117_v24 = vld [vmem:[#allocation4 + $0x60] sm:$0xff]  }
 0x247   : > { %4030 = vst.msk [vmem:[#allocation4 + $0x74] sm:$0xf] %vm1410_vm14, %v3964_v34  ;;  %v3966_v61 = vpop.permute.xlu0 %3965  ;;  %10928 = vmatprep.mubr.msk.bf16.mxu0 %vm2897_vm2, %v11117_v24 }
 0x248   : > { %4031 = vst.msk [vmem:[#allocation4 + $0x78] sm:$0xf] %vm1410_vm14, %v3966_v61  ;;  %v13141_v61 = vld [vmem:[%s15921_s3 + $0x1] ss:$0 sm:$0xff] }
 0x24a   : > { %v3968_v28 = vpop.permute.xlu1 %3967  ;;  %v11118_v57 = vld [vmem:[#allocation4 + $0x68] sm:$0xff]  }
 0x24b   : > { %4032 = vst.msk [vmem:[#allocation4 + $0x7c] sm:$0xf] %vm1410_vm14, %v3968_v28  ;;  %10929 = vmatmul.mubr.msk.bf16.gmra.mxu0 %vm2897_vm2, %v11118_v57  ;;  %v4298_v3 = vpop.permute.xlu0 %4297 }
 0x24c   : > { %4365 = vst.msk [vmem:[#allocation4 + $0x70] sm:$0xf] %vm1750_vm15, %v4298_v3 }
 0x24e   : > { %v4300_v48 = vpop.permute.xlu1 %4299 }
 0x24f   : > { %4366 = vst.msk [vmem:[#allocation4 + $0x74] sm:$0xf] %vm1750_vm15, %v4300_v48  ;;  %v4302_v8 = vpop.permute.xlu0 %4301 }
 0x250   : > { %4367 = vst.msk [vmem:[#allocation4 + $0x78] sm:$0xf] %vm1750_vm15, %v4302_v8 }
 0x252   : > { %v4304_v19 = vpop.permute.xlu1 %4303 }
 0x253   : > { %4368 = vst.msk [vmem:[#allocation4 + $0x7c] sm:$0xf] %vm1750_vm15, %v4304_v19 }
 0x254   : > { %v5867_v50 = vpop.permute.xlu0 %5866 }
 0x255   : > { %5963 = vst.msk [vmem:[#allocation5] sm:$0xf] %vm5962_vm0, %v5867_v50 }
 0x256   : > { %v11119_v0 = vld [vmem:[#allocation4 + $0x70] sm:$0xff]   ;;  %v5869_v45 = vpop.permute.xlu1 %5868 }
 0x257   : > { %5964 = vst.msk [vmem:[#allocation5 + $0x4] sm:$0xf] %vm5962_vm0, %v5869_v45  ;;  %10932 = vmatprep.mubr.msk.bf16.mxu0 %vm2897_vm2, %v11119_v0 }
 0x258   : > { %v6204_v55 = vpop.permute.xlu0 %6203 }
 0x259   : > { %6300 = vst.msk [vmem:[#allocation5] sm:$0xf] %vm6299_vm6, %v6204_v55 }
 0x25a   : > { %v11120_v41 = vld [vmem:[#allocation4 + $0x78] sm:$0xff]   ;;  %v6206_v51 = vpop.permute.xlu1 %6205 }
 0x25b   : > { %6301 = vst.msk [vmem:[#allocation5 + $0x4] sm:$0xf] %vm6299_vm6, %v6206_v51  ;;  %10933 = vmatmul.mubr.msk.bf16.gmra.mxu0 %vm2897_vm2, %v11120_v41 }
 0x264   : > { %v13113_v30 = vpop.f32.mrf.mxu1 }
 0x266   : > { %v13115_v42 = vpop.f32.mrf.mxu1 }
 0x268   : > { %v13117_v62 = vpop.f32.mrf.mxu1 }
 0x26a   : > { %v13119_v27 = vpop.f32.mrf.mxu1 }
 0x270   : > { %v10846_v15 = vpop.f32.mrf.mxu0 }
 0x272   : > { %v3016_v18 = vpop.f32.mrf.mxu0 }
 0x274   : > { %v10847_v21 = vpop.f32.mrf.mxu0 }
 0x276   : > { %v3019_v11 = vpop.f32.mrf.mxu0 }
 0x285   : > { %v13121_v4 = vpop.f32.mrf.mxu1 }
 0x287   : > { %v13123_v60 = vpop.f32.mrf.mxu1 }
 0x289   : > { %v13125_v22 = vpop.f32.mrf.mxu1 }
 0x28b   : > { %v13127_v6 = vpop.f32.mrf.mxu1 }
 0x29d   : > { %v10872_v36 = vpop.f32.mrf.mxu1 }
 0x29e   : > { %v3290_v5 = vadd.f32 %v10872_v36, %v10838_v13 }
 0x29f   : > { %v3281_v20 = vpop.f32.mrf.mxu1 }
 0x2a0   : > { %v3282_v17 = vadd.f32 %v3281_v20, %v2984_v39 }
 0x2a1   : > { %v10873_v32 = vpop.f32.mrf.mxu1 }
 0x2a2   : > { %v3293_v57 = vadd.f32 %v10873_v32, %v10839_v1 }
 0x2a3   : > { %v3284_v26 = vpop.f32.mrf.mxu1 }
 0x2a4   : > { %v10850_v56 = vpop.f32.mrf.mxu0  ;;  %v3285_v19 = vadd.f32 %v3284_v26, %v2987_v46 }
 0x2a5   : > { %v10876_v16 = vpop.f32.mrf.mxu1 }
 0x2a6   : > { %v13129_v29 = vpop.f32.mrf.mxu0 }
 0x2a7   : > { %v3297_v53 = vpop.f32.mrf.mxu1 }
 0x2a8   : > { %v13131_v12 = vpop.f32.mrf.mxu0 }
 0x2a9   : > { %v10877_v33 = vpop.f32.mrf.mxu1 }
 0x2aa   : > { %v3035_v31 = vpop.f32.mrf.mxu0 }
 0x2ab   : > { %v3300_v40 = vpop.f32.mrf.mxu1 }
 0x2ac   : > { %v10906_v49 = vpop.f32.mrf.mxu0 }
 0x2ad   : > { %v10880_v35 = vpop.f32.mrf.mxu1  ;;  %v4703_v24 = vadd.f32 %v10906_v49, %v3290_v5  ;;  %v3306_v49 = vadd.f32 %v10876_v16, %v10842_v47 }
 0x2ae   : > { %v4574_v28 = vpop.f32.mrf.mxu0 }
 0x2af   : > { %v3313_v52 = vpop.f32.mrf.mxu1  ;;  %v4739_v3 = vmul.f32 %v13136_v2, %v4703_v24  ;;  %v4701_v8 = vadd.f32 %v4574_v28, %v3282_v17  ;;  %v3298_v17 = vadd.f32 %v3297_v53, %v3000_v63  ;;  %v3309_v24 = vadd.f32 %v10877_v33, %v10843_v54  ;;  %v5265_v54 = vld [vmem:[#allocation3 + $0x18] sm:$0xf] }
 0x2b0   : > { %v10907_v58 = vpop.f32.mrf.mxu0 }
 0x2b1   : > { %v10881_v34 = vpop.f32.mrf.mxu1  ;;  %v4775_v50 = vadd.f32 %v13141_v61, %v4739_v3  ;;  %v4737_v0 = vmul.f32 %v13136_v2, %v4701_v8  ;;  %v4704_v55 = vadd.f32 %v10907_v58, %v3293_v57  ;;  %v13150_v58 = vadd.f32 %v3300_v40, %v3003_v44 }
 0x2b2   : > { %v4577_v41 = vpop.f32.mrf.mxu0  ;;  %v13157_v47 = vadd.f32 %v10881_v34, %v10847_v21 }
 0x2b3   : > { %v3316_v48 = vpop.f32.mrf.mxu1  ;;  %v4807_v51 = vmax.f32 %v4775_v50, 0.0  ;;  %v4773_v13 = vadd.f32 %v13141_v61, %v4737_v0  ;;  %v4740_v39 = vmul.f32 %v13136_v2, %v4704_v55  ;;  %v4702_v1 = vadd.f32 %v4577_v41, %v3285_v19 }
 0x2b4   : > { %v13152_v50 = vadd.f32 %v10880_v35, %v10846_v15  ;;  %v13154_v0 = vadd.f32 %v3313_v52, %v3016_v18  ;;  %v13165_v44 = vadd.f32 %v3316_v48, %v3019_v11  ;;  %v5256_v52 = vld [vmem:[#allocation3 + $0xc] sm:$0xf] }
 0x2b5   : > { %v10884_v45 = vpop.f32.mrf.mxu1  ;;  %v10682_v20 = vpack.c.bf16 %v4807_v51, %v4807_v51  ;;  %v4805_v32 = vmax.f32 %v4773_v13, 0.0  ;;  %v4776_v5 = vadd.f32 %v13141_v61, %v4740_v39  ;;  %v4738_v46 = vmul.f32 %v13136_v2, %v4702_v1 }
 0x2b6   : > { %v13167_v15 = vadd.f32 %v10884_v45, %v10850_v56 }
 0x2b7   : > { %v3329_v36 = vpop.f32.mrf.mxu1  ;;  %v4951_v28 = vshrl.u32 %v10682_v20, 16  ;;  %v10680_v57 = vpack.c.bf16 %v4805_v32, %v4805_v32  ;;  %v4808_v3 = vmax.f32 %v4776_v5, 0.0  ;;  %v4774_v19 = vadd.f32 %v13141_v61, %v4738_v46 }
 0x2b8   : > { %v4954_v41 = vshll.u32 %v10682_v20, 16  ;;  %v13170_v21 = vadd.f32 %v3329_v36, %v13129_v29 }
 0x2b9   : > { %v10885_v26 = vpop.f32.mrf.mxu1  ;;  %v4953_v55 = vrot.slane %v4951_v28, 7  ;;  %v4934_v51 = vshrl.u32 %v10680_v57, 16  ;;  %v10683_v13 = vpack.c.bf16 %v4808_v3, %v4808_v3  ;;  %v4806_v18 = vmax.f32 %v4774_v19, 0.0 }
 0x2ba   : > { %v4937_v33 = vshll.u32 %v10680_v57, 16  ;;  %v13173_v1 = vadd.f32 %v10885_v26, %v13131_v12  ;;  %v5269_v12 = vld [vmem:[#allocation3 + $0x20] sm:$0x1] }
 0x2bb   : > { %v3332_v8 = vpop.f32.mrf.mxu1  ;;  %v4956_v16 = vor.u32 %v4954_v41, %v4953_v55  ;;  %v4936_v53 = vrot.slane %v4934_v51, 7  ;;  %v4959_v40 = vshrl.u32 %v10683_v13, 16  ;;  %v10681_v34 = vpack.c.bf16 %v4806_v18, %v4806_v18  ;;  %v10910_v11 = vpop.f32.mrf.mxu0 }
 0x2bc   : > { %v13175_v20 = vadd.f32 %v3332_v8, %v3035_v31  ;;  %v4962_v32 = vshll.u32 %v10683_v13, 16  ;;  %v4957_v46 = vrot.slane %v4953_v55, 4  ;;  %v4707_v26 = vadd.f32 %v10910_v11, %v3306_v49 }
 0x2bd   : > { %v10888_v39 = vpop.f32.mrf.mxu1  ;;  %v5266_v56 = vsel %vm13161_vm7, %v4956_v16, %v5265_v54  ;;  %v4939_v48 = vor.u32 %v4937_v33, %v4936_v53  ;;  %v4961_v45 = vrot.slane %v4959_v40, 7  ;;  %v4942_v36 = vshrl.u32 %v10681_v34, 16  ;;  %v4590_v28 = vpop.f32.mrf.mxu0  ;;  %v5262_v16 = vld [vmem:[#allocation3 + $0x14] sm:$0x1] }
 0x2be   : > { %5267 = vst [vmem:[#allocation3 + $0x18] sm:$0xf] %v5266_v56  ;;  %v13186_v31 = vadd.f32 %v10888_v39, %v13097_v10  ;;  %v4705_v55 = vadd.f32 %v4590_v28, %v3298_v17  ;;  %v4945_v51 = vshll.u32 %v10681_v34, 16  ;;  %v4743_v54 = vmul.f32 %v13136_v2, %v4707_v26  ;;  %v13214_v26 = vld [vmem:[#allocation5] sm:$0xf] }
 0x2bf   : > { %v3345_v35 = vpop.f32.mrf.mxu1  ;;  %v5257_v57 = vsel %vm13161_vm7, %v4939_v48, %v5256_v52  ;;  %v4964_v3 = vor.u32 %v4962_v32, %v4961_v45  ;;  %v4966_v8 = vrot.slane %v4961_v45, 4  ;;  %v4944_v41 = vrot.slane %v4942_v36, 7  ;;  %v10911_v18 = vpop.f32.mrf.mxu0 }
 0x2c0   : > { %5258 = vst [vmem:[#allocation3 + $0xc] sm:$0xf] %v5257_v57  ;;  %v13191_v13 = vadd.f32 %v3345_v35, %v13099_v14  ;;  %v4741_v33 = vmul.f32 %v13136_v2, %v4705_v55  ;;  %v4708_v17 = vadd.f32 %v10911_v18, %v3309_v24  ;;  %v4940_v52 = vrot.slane %v4936_v53, 4 }
 0x2c1   : > { %v10889_v5 = vpop.f32.mrf.mxu1  ;;  %v4965_v49 = vsel %vm11347_vm11, %v4957_v46, %v4964_v3  ;;  %v5270_v39 = vsel %vm13181_vm8, %v4966_v8, %v5269_v12  ;;  %v4947_v14 = vor.u32 %v4945_v51, %v4944_v41  ;;  %v4949_v35 = vrot.slane %v4944_v41, 4  ;;  %v4593_v11 = vpop.f32.mrf.mxu0 }
 0x2c2   : > { %5268 = vst.msk [vmem:[#allocation3 + $0x1c] sm:$0xf] %vm282_vm3, %v4965_v49  ;;  %5271 = vst [vmem:[#allocation3 + $0x20] sm:$0x1] %v5270_v39  ;;  %v4779_v34 = vadd.f32 %v13141_v61, %v4743_v54  ;;  %v13202_v56 = vadd.f32 %v10889_v5, %v13101_v37  ;;  %v4777_v48 = vadd.f32 %v13141_v61, %v4741_v33 }
 0x2c3   : > { %v3348_v19 = vpop.f32.mrf.mxu1  ;;  %v4744_v45 = vmul.f32 %v13136_v2, %v4708_v17  ;;  %v4706_v46 = vadd.f32 %v4593_v11, %v13150_v58  ;;  %v4948_v24 = vsel %vm11347_vm11, %v4940_v52, %v4947_v14  ;;  %v5263_v53 = vsel %vm13181_vm8, %v4949_v35, %v5262_v16 }
 0x2c4   : > { %v4811_v12 = vmax.f32 %v4779_v34, 0.0  ;;  %v13212_v36 = vadd.f32 %v3348_v19, %v13103_v7  ;;  %5259 = vst.msk [vmem:[#allocation3 + $0x10] sm:$0xf] %vm282_vm3, %v4948_v24  ;;  %5264 = vst [vmem:[#allocation3 + $0x14] sm:$0x1] %v5263_v53  ;;  %v4809_v37 = vmax.f32 %v4777_v48, 0.0 }
 0x2c5   : > { %v10892_v40 = vpop.f32.mrf.mxu1  ;;  %v4780_v58 = vadd.f32 %v13141_v61, %v4744_v45  ;;  %v4742_v28 = vmul.f32 %v13136_v2, %v4706_v46  ;;  %v6001_v3 = vld [vmem:[#allocation3 + $0x18] sm:$0xe]  ;;  %v13242_v46 = vld [vmem:[#allocation5 + $0x4] sm:$0xf] }
 0x2c6   : > { %v13218_v5 = vadd.f32 %v10892_v40, %v13105_v43  ;;  %v13222_v8 = vld [vmem:[#allocation3 + $0x18] sm:$0xe]  ;;  %v10686_v55 = vpack.c.bf16 %v4811_v12, %v4811_v12  ;;  %v10486_v41 = vrot.slane %v6001_v3, 9  ;;  %v10684_v43 = vpack.c.bf16 %v4809_v37, %v4809_v37  ;;  %v5279_v12 = vld [vmem:[#allocation3 + $0x30] sm:$0xf] }
 0x2c7   : > { %v3361_v32 = vpop.f32.mrf.mxu1  ;;  %v13230_v51 = vld [vmem:[#allocation3 + $0x18] sm:$0xf]  ;;  %v6367_v54 = vld [vmem:[#allocation3 + $0xc] sm:$0xf]  ;;  %v4812_v18 = vmax.f32 %v4780_v58, 0.0  ;;  %v4778_v49 = vadd.f32 %v13141_v61, %v4742_v28  ;;  %v10501_v16 = vrot.slane %v13222_v8, 9 }
 0x2c8   : > { %v13225_v7 = vadd.f32 %v3361_v32, %v13107_v38  ;;  %v13234_v33 = vld [vmem:[#allocation3 + $0xc] sm:$0xe]  ;;  %v4985_v40 = vshrl.u32 %v10686_v55, 16  ;;  %v4988_v17 = vshll.u32 %v10686_v55, 16  ;;  %6399 = vst.msk [vmem:[#allocation5] sm:$0xf] %vm282_vm3, %v6367_v54 }
 0x2c9   : > { %v10893_v57 = vpop.f32.mrf.mxu1  ;;  %v4968_v52 = vshrl.u32 %v10684_v43, 16  ;;  %v10687_v14 = vpack.c.bf16 %v4812_v18, %v4812_v18  ;;  %v4810_v35 = vmax.f32 %v4778_v49, 0.0  ;;  %v6002_v11 = vld [vmem:[#allocation3 + $0x1c] sm:$0xf]  ;;  %v10485_v48 = vrot.slane %v13234_v33, 9 }
 0x2ca   : > { %v13228_v19 = vadd.f32 %v10893_v57, %v13109_v25  ;;  %v4987_v45 = vrot.slane %v4985_v40, 7  ;;  %v4971_v32 = vshll.u32 %v10684_v43, 16  ;;  %v6107_v53 = vrot.slane %v6002_v11, 5  ;;  %v5272_v54 = vld [vmem:[#allocation3 + $0x24] sm:$0xf] }
 0x2cb   : > { %v3364_v39 = vpop.f32.mrf.mxu1  ;;  %v4993_v37 = vshrl.u32 %v10687_v14, 16  ;;  %v4996_v58 = vshll.u32 %v10687_v14, 16  ;;  %v10685_v28 = vpack.c.bf16 %v4810_v35, %v4810_v35  ;;  %v6368_v18 = vld [vmem:[#allocation3 + $0x10] sm:$0xf]  ;;  %v10914_v43 = vpop.f32.mrf.mxu0  ;;  %v5283_v14 = vld [vmem:[#allocation3 + $0x38] sm:$0x1] }
 0x2cc   : > { %v13238_v38 = vadd.f32 %v3364_v39, %v13111_v59  ;;  %v4970_v59 = vrot.slane %v4968_v52, 7  ;;  %v4990_v3 = vor.u32 %v4988_v17, %v4987_v45  ;;  %v4991_v55 = vrot.slane %v4987_v45, 4  ;;  %6400 = vst.msk [vmem:[#allocation5 + $0x4] sm:$0xf] %vm282_vm3, %v6368_v18  ;;  %v5276_v25 = vld [vmem:[#allocation3 + $0x2c] sm:$0x1] }
 0x2cd   : > { %v10896_v34 = vpop.f32.mrf.mxu1  ;;  %v6108_v39 = vsel %vm11326_vm9, %v10486_v41, %v6107_v53  ;;  %v4976_v11 = vshrl.u32 %v10685_v28, 16  ;;  %v4979_v35 = vshll.u32 %v10685_v28, 16  ;;  %v4711_v45 = vadd.f32 %v10914_v43, %v13152_v50  ;;  %v4606_v41 = vpop.f32.mrf.mxu0  ;;  %v6995_v43 = vld [vmem:[#allocation3 + $0x1c] sm:$0xf] }
 0x2ce   : > { %v13245_v24 = vadd.f32 %v10896_v34, %v13113_v30  ;;  %v4973_v30 = vor.u32 %v4971_v32, %v4970_v59  ;;  %v4974_v40 = vrot.slane %v4970_v59, 4  ;;  %v4995_v34 = vrot.slane %v4993_v37, 7  ;;  %6211 = vrot.lane.b32.xlu0 %v6108_v39, %s11164_s7  ;;  %v6003_v39 = vld [vmem:[#allocation3 + $0x20] sm:$0x1] }
 0x2cf   : > { %v3377_v57 = vpop.f32.mrf.mxu1  ;;  %v5280_v17 = vsel %vm13161_vm7, %v4990_v3, %v5279_v12  ;;  %v4747_v12 = vmul.f32 %v13136_v2, %v4711_v45  ;;  %v6109_v50 = vrot.slane %v6107_v53, 4  ;;  %v10915_v3 = vpop.f32.mrf.mxu0  ;;  %v7096_v45 = vrot.slane %v6995_v43, 5 }
 0x2d0   : > { %v13248_v49 = vadd.f32 %v3377_v57, %v13115_v42  ;;  %5281 = vst [vmem:[#allocation3 + $0x30] sm:$0xf] %v5280_v17  ;;  %v5273_v32 = vsel %vm13161_vm7, %v4973_v30, %v5272_v54  ;;  %v4998_v59 = vor.u32 %v4996_v58, %v4995_v34  ;;  %v5000_v37 = vrot.slane %v4995_v34, 4 }
 0x2d1   : > { %v10897_v52 = vpop.f32.mrf.mxu1  ;;  %v4978_v57 = vrot.slane %v4976_v11, 7  ;;  %5274 = vst [vmem:[#allocation3 + $0x24] sm:$0xf] %v5273_v32  ;;  %v4609_v17 = vpop.f32.mrf.mxu0  ;;  %v6996_v32 = vld [vmem:[#allocation3 + $0x20] sm:$0x1] }
 0x2d2   : > { %v13257_v42 = vadd.f32 %v10897_v52, %v13117_v62  ;;  %v4709_v62 = vadd.f32 %v4606_v41, %v13154_v0  ;;  %v4999_v54 = vsel %vm11347_vm11, %v4991_v55, %v4998_v59  ;;  %v5284_v58 = vsel %vm13181_vm8, %v5000_v37, %v5283_v14 }
 0x2d3   : > { %v3380_v18 = vpop.f32.mrf.mxu1  ;;  %v4981_v30 = vor.u32 %v4979_v35, %v4978_v57  ;;  %v4983_v34 = vrot.slane %v4978_v57, 4  ;;  %5282 = vst.msk [vmem:[#allocation3 + $0x34] sm:$0xf] %vm282_vm3, %v4999_v54  ;;  %5285 = vst [vmem:[#allocation3 + $0x38] sm:$0x1] %v5284_v58  ;;  %v6110_v0 = vrot.slane %v6003_v39, 5  ;;  %v4712_v35 = vadd.f32 %v10915_v3, %v13157_v47 }
 0x2d4   : > { %v13264_v28 = vadd.f32 %v3380_v18, %v13119_v27  ;;  %v4783_v27 = vadd.f32 %v13141_v61, %v4747_v12  ;;  %v4745_v52 = vmul.f32 %v13136_v2, %v4709_v62  ;;  %v6000_v18 = vld [vmem:[#allocation3 + $0x14] sm:$0x1]  ;;  %v4710_v39 = vadd.f32 %v4609_v17, %v13165_v44  ;;  %v5374_v3 = vld [vmem:[#allocation3 + $0x18] sm:$0xf] }
 0x2d5   : > { %v10900_v11 = vpop.f32.mrf.mxu1  ;;  %v4982_v55 = vsel %vm11347_vm11, %v4974_v40, %v4981_v30  ;;  %v5277_v14 = vsel %vm13181_vm8, %v4983_v34, %v5276_v25  ;;  %v5999_v40 = vld [vmem:[#allocation3 + $0x10] sm:$0xf]  ;;  %v4748_v47 = vmul.f32 %v13136_v2, %v4712_v35  ;;  %v7097_v25 = vsel %vm11326_vm9, %v10501_v16, %v7096_v45  ;;  %5406 = vst.msk [vmem:[#allocation5 + $0x10] sm:$0xf] %vm282_vm3, %v5374_v3 }
 0x2d6   : > { %v13275_v53 = vadd.f32 %v10900_v11, %v13121_v4  ;;  %5275 = vst.msk [vmem:[#allocation3 + $0x28] sm:$0xf] %vm282_vm3, %v4982_v55  ;;  %5278 = vst [vmem:[#allocation3 + $0x2c] sm:$0x1] %v5277_v14  ;;  %v4815_v59 = vmax.f32 %v4783_v27, 0.0  ;;  %v4781_v37 = vadd.f32 %v13141_v61, %v4745_v52  ;;  %v6111_v4 = vsel %vm11326_vm9, %v6109_v50, %v6110_v0 }
 0x2d7   : > { %v3393_v41 = vpop.f32.mrf.mxu1  ;;  %6213 = vrot.lane.b32.xlu1 %v6111_v4, %s11164_s7  ;;  %v7098_v12 = vrot.slane %v7096_v45, 4  ;;  %v5375_v50 = vld [vmem:[#allocation3 + $0x1c] sm:$0xf]  ;;  %7203 = vrot.lane.b32.xlu0 %v7097_v25, %s11164_s7  ;;  %v7099_v54 = vrot.slane %v6996_v32, 5  ;;  %v4784_v8 = vadd.f32 %v13141_v61, %v4748_v47  ;;  %v4746_v44 = vmul.f32 %v13136_v2, %v4710_v39  ;;  %v5293_v45 = vld [vmem:[#allocation3 + $0x48] sm:$0xf] }
 0x2d8   : > { %v13287_v57 = vadd.f32 %v3393_v41, %v13123_v60  ;;  %v10690_v43 = vpack.c.bf16 %v4815_v59, %v4815_v59  ;;  %v4813_v60 = vmax.f32 %v4781_v37, 0.0  ;;  %5407 = vst.msk [vmem:[#allocation5 + $0x14] sm:$0xf] %vm282_vm3, %v5375_v50  ;;  %v6100_v16 = vrot.slane %v5999_v40, 5  ;;  %v13316_v40 = vld [vmem:[#allocation3 + $0x1c] sm:$0xf] }
 0x2d9   : > { %v10901_v62 = vpop.f32.mrf.mxu1  ;;  %v6103_v34 = vrot.slane %v6000_v18, 5  ;;  %v7100_v0 = vsel %vm11326_vm9, %v7098_v12, %v7099_v54  ;;  %v4816_v17 = vmax.f32 %v4784_v8, 0.0  ;;  %v15951_v18 = vshrl.u32 %v13230_v51, 16  ;;  %v5286_v39 = vld [vmem:[#allocation3 + $0x3c] sm:$0xf] }
 0x2da   : > { %v13298_v58 = vadd.f32 %v10901_v62, %v13125_v22  ;;  %v5019_v11 = vshrl.u32 %v10690_v43, 16  ;;  %v5022_v27 = vshll.u32 %v10690_v43, 16  ;;  %v10688_v52 = vpack.c.bf16 %v4813_v60, %v4813_v60  ;;  %v13324_v54 = vld [vmem:[#allocation3 + $0x10] sm:$0xf] }
 0x2db   : > { %v3396_v30 = vpop.f32.mrf.mxu1  ;;  %v4782_v22 = vadd.f32 %v13141_v61, %v4746_v44  ;;  %7205 = vrot.lane.b32.xlu1 %v7100_v0, %s11164_s7  ;;  %v6101_v55 = vsel %vm11326_vm9, %v10485_v48, %v6100_v16  ;;  %v6102_v59 = vrot.slane %v6100_v16, 4  ;;  %v10691_v37 = vpack.c.bf16 %v4816_v17, %v4816_v17  ;;  %v10918_v62 = vpop.f32.mrf.mxu0  ;;  %v6993_v17 = vld [vmem:[#allocation3 + $0x14] sm:$0x1] }
 0x2dc   : > { %v13313_v14 = vadd.f32 %v3396_v30, %v13127_v6  ;;  %v5021_v35 = vrot.slane %v5019_v11, 7  ;;  %v5002_v41 = vshrl.u32 %v10688_v52, 16  ;;  %v5005_v32 = vshll.u32 %v10688_v52, 16  ;;  %6207 = vrot.lane.b32.xlu0 %v6101_v55, %s11164_s7  ;;  %v6434_v30 = vld [vmem:[#allocation3 + $0x18] sm:$0xf] }
 0x2dd   : > { %v4814_v4 = vmax.f32 %v4782_v22, 0.0  ;;  %v5533_v33 = vrot.slane %v15951_v18, 4  ;;  %v5534_v47 = vshll.u32 %v13230_v51, 16  ;;  %v6104_v12 = vsel %vm11326_vm9, %v6102_v59, %v6103_v34  ;;  %v4622_v11 = vpop.f32.mrf.mxu0  ;;  %v5297_v55 = vld [vmem:[#allocation3 + $0x50] sm:$0x1] }
 0x2de   : > { %v5024_v48 = vor.u32 %v5022_v27, %v5021_v35  ;;  %v5025_v25 = vrot.slane %v5021_v35, 4  ;;  %v5004_v6 = vrot.slane %v5002_v41, 7  ;;  %v5027_v3 = vshrl.u32 %v10691_v37, 16 }
 0x2df   : > { %v5030_v50 = vshll.u32 %v10691_v37, 16  ;;  %v10689_v43 = vpack.c.bf16 %v4814_v4, %v4814_v4  ;;  %6209 = vrot.lane.b32.xlu1 %v6104_v12, %s11164_s7  ;;  %v5536_v60 = vrot.slane %v5534_v47, 5  ;;  %v5540_v16 = vshll.u32 %v13316_v40, 16  ;;  %v5290_v4 = vld [vmem:[#allocation3 + $0x44] sm:$0x1] }
 0x2e0   : > { %v5294_v8 = vsel %vm13161_vm7, %v5024_v48, %v5293_v45  ;;  %v5007_v51 = vor.u32 %v5005_v32, %v5004_v6  ;;  %v5008_v44 = vrot.slane %v5004_v6, 4  ;;  %v5029_v34 = vrot.slane %v5027_v3, 7  ;;  %v6435_v6 = vld [vmem:[#allocation3 + $0x1c] sm:$0xf]  ;;  %v10919_v3 = vpop.f32.mrf.mxu0 }
 0x2e1   : > { %5295 = vst [vmem:[#allocation3 + $0x48] sm:$0xf] %v5294_v8  ;;  %v5010_v27 = vshrl.u32 %v10689_v43, 16  ;;  %v5013_v52 = vshll.u32 %v10689_v43, 16  ;;  %v5537_v0 = vor.u32 %v5536_v60, %v5533_v33  ;;  %v5542_v35 = vrot.slane %v5540_v16, 5 }
 0x2e2   : > { %v5287_v22 = vsel %vm13161_vm7, %v5007_v51, %v5286_v39  ;;  %v5544_v41 = vshrl.u32 %v13316_v40, 16  ;;  %v7089_v45 = vrot.slane %v13324_v54, 5  ;;  %v5032_v32 = vor.u32 %v5030_v50, %v5029_v34  ;;  %v5442_v8 = vld [vmem:[#allocation3 + $0x20] sm:$0x1] }
 0x2e3   : > { %5288 = vst [vmem:[#allocation3 + $0x3c] sm:$0xf] %v5287_v22  ;;  %v5034_v59 = vrot.slane %v5029_v34, 4  ;;  %v5012_v37 = vrot.slane %v5010_v27, 7  ;;  %v5538_v18 = vrot.slane %v5537_v0, 4  ;;  %v7092_v48 = vrot.slane %v6993_v17, 5 }
 0x2e4   : > { %v7091_v47 = vrot.slane %v7089_v45, 4  ;;  %v4715_v33 = vadd.f32 %v10918_v62, %v13167_v15  ;;  %v6504_v12 = vshrl.u32 %v6434_v30, 16  ;;  %v5033_v39 = vsel %vm11347_vm11, %v5025_v25, %v5032_v32  ;;  %v6991_v27 = vld [vmem:[#allocation3 + $0xc] sm:$0xe] }
 0x2e5   : > { %v5298_v40 = vsel %vm13181_vm8, %v5034_v59, %v5297_v55  ;;  %v5015_v43 = vor.u32 %v5013_v52, %v5012_v37  ;;  %v5017_v60 = vrot.slane %v5012_v37, 4  ;;  %5296 = vst.msk [vmem:[#allocation3 + $0x4c] sm:$0xf] %vm282_vm3, %v5033_v39  ;;  %v5543_v50 = vsel %vm11339_vm10, %v5538_v18, %v5542_v35 }
 0x2e6   : > { %5299 = vst [vmem:[#allocation3 + $0x50] sm:$0x1] %v5298_v40  ;;  %v7093_v15 = vsel %vm11326_vm9, %v7091_v47, %v7092_v48  ;;  %v4751_v62 = vmul.f32 %v13136_v2, %v4715_v33  ;;  %v6506_v54 = vrot.slane %v6504_v12, 4  ;;  %5874 = vrot.lane.b32.xlu0 %v5543_v50, %s11162_s24  ;;  %v6507_v16 = vshll.u32 %v6434_v30, 16 }
 0x2e7   : > { %v5016_v25 = vsel %vm11347_vm11, %v5008_v44, %v5015_v43  ;;  %v5291_v51 = vsel %vm13181_vm8, %v5017_v60, %v5290_v4  ;;  %7201 = vrot.lane.b32.xlu1 %v7093_v15, %s11164_s7  ;;  %v6513_v34 = vshll.u32 %v6435_v6, 16  ;;  %v6517_v0 = vshrl.u32 %v6435_v6, 16  ;;  %v4625_v44 = vpop.f32.mrf.mxu0  ;;  %v5437_v60 = vld [vmem:[#allocation3 + $0xc] sm:$0xf] }
 0x2e8   : > { %5289 = vst.msk [vmem:[#allocation3 + $0x40] sm:$0xf] %vm282_vm3, %v5016_v25  ;;  %5292 = vst [vmem:[#allocation3 + $0x44] sm:$0x1] %v5291_v51  ;;  %v4787_v52 = vadd.f32 %v13141_v61, %v4751_v62  ;;  %v4713_v17 = vadd.f32 %v4622_v11, %v13170_v21  ;;  %v5546_v22 = vrot.slane %v5544_v41, 4  ;;  %v6509_v55 = vrot.slane %v6507_v16, 5 }
 0x2e9   : > { %v6515_v32 = vrot.slane %v6513_v34, 5  ;;  %v5550_v59 = vshll.u32 %v5442_v8, 16  ;;  %v4716_v37 = vadd.f32 %v10919_v3, %v13173_v1  ;;  %v10500_v47 = vrot.slane %v6991_v27, 9 }
 0x2ea   : > { %v4819_v4 = vmax.f32 %v4787_v52, 0.0  ;;  %v4749_v30 = vmul.f32 %v13136_v2, %v4713_v17  ;;  %v5547_v18 = vor.u32 %v5546_v22, %v5542_v35  ;;  %v6510_v48 = vor.u32 %v6509_v55, %v6506_v54  ;;  %v6436_v35 = vld [vmem:[#allocation3 + $0x20] sm:$0x1]  ;;  %v7003_v29 = vld [vmem:[#allocation3 + $0x3c] sm:$0xe] }
 0x2eb   : > { %v5552_v33 = vrot.slane %v5550_v59, 5  ;;  %v4752_v12 = vmul.f32 %v13136_v2, %v4716_v37  ;;  %v4714_v6 = vadd.f32 %v4625_v44, %v13175_v20  ;;  %v7090_v41 = vsel %vm11326_vm9, %v10500_v47, %v7089_v45  ;;  %v5307_v52 = vld [vmem:[#allocation3 + $0x60] sm:$0xf] }
 0x2ec   : > { %v10694_v39 = vpack.c.bf16 %v4819_v4, %v4819_v4  ;;  %v4785_v21 = vadd.f32 %v13141_v61, %v4749_v30  ;;  %v5548_v11 = vrot.slane %v5547_v18, 4  ;;  %v6511_v40 = vrot.slane %v6510_v48, 4 }
 0x2ed   : > { %v4788_v1 = vadd.f32 %v13141_v61, %v4752_v12  ;;  %v4750_v3 = vmul.f32 %v13136_v2, %v4714_v6  ;;  %v6519_v43 = vrot.slane %v6517_v0, 4  ;;  %v6523_v34 = vshll.u32 %v6436_v35, 16  ;;  %v5300_v6 = vld [vmem:[#allocation3 + $0x54] sm:$0xf] }
 0x2ee   : > { %v5053_v50 = vshrl.u32 %v10694_v39, 16  ;;  %v5056_v15 = vshll.u32 %v10694_v39, 16  ;;  %v4817_v62 = vmax.f32 %v4785_v21, 0.0  ;;  %v5553_v20 = vsel %vm11339_vm10, %v5548_v11, %v5552_v33  ;;  %v5439_v35 = vld [vmem:[#allocation3 + $0x14] sm:$0x1] }
 0x2ef   : > { %v6516_v54 = vsel %vm11339_vm10, %v6511_v40, %v6515_v32  ;;  %5876 = vrot.lane.b32.xlu1 %v5553_v20, %s11162_s24  ;;  %v4820_v45 = vmax.f32 %v4788_v1, 0.0  ;;  %v4786_v8 = vadd.f32 %v13141_v61, %v4750_v3  ;;  %v6520_v25 = vor.u32 %v6519_v43, %v6515_v32  ;;  %v5438_v32 = vld [vmem:[#allocation3 + $0x10] sm:$0xf]  ;;  %v10922_v43 = vpop.f32.mrf.mxu0 }
 0x2f0   : > { %v5055_v51 = vrot.slane %v5053_v50, 7  ;;  %6867 = vrot.lane.b32.xlu0 %v6516_v54, %s11162_s24  ;;  %v10692_v16 = vpack.c.bf16 %v4817_v62, %v4817_v62  ;;  %v5507_v27 = vshrl.u32 %v5437_v60, 16  ;;  %v5510_v44 = vshll.u32 %v5437_v60, 16  ;;  %v5304_v62 = vld [vmem:[#allocation3 + $0x5c] sm:$0x1] }
 0x2f1   : > { %v10695_v0 = vpack.c.bf16 %v4820_v45, %v4820_v45  ;;  %v4818_v17 = vmax.f32 %v4786_v8, 0.0  ;;  %v6521_v22 = vrot.slane %v6520_v25, 4  ;;  %v6525_v48 = vrot.slane %v6523_v34, 5 }
 0x2f2   : > { %v5058_v55 = vor.u32 %v5056_v15, %v5055_v51  ;;  %v5059_v59 = vrot.slane %v5055_v51, 4  ;;  %v5036_v37 = vshrl.u32 %v10692_v16, 16  ;;  %v5039_v4 = vshll.u32 %v10692_v16, 16  ;;  %v5311_v15 = vld [vmem:[#allocation3 + $0x68] sm:$0x1] }
 0x2f3   : > { %v5061_v30 = vshrl.u32 %v10695_v0, 16  ;;  %v5064_v18 = vshll.u32 %v10695_v0, 16  ;;  %v10693_v47 = vpack.c.bf16 %v4818_v17, %v4818_v17  ;;  %v5509_v39 = vrot.slane %v5507_v27, 4  ;;  %v6431_v51 = vld [vmem:[#allocation3 + $0xc] sm:$0xf] }
 0x2f4   : > { %v5308_v33 = vsel %vm13161_vm7, %v5058_v55, %v5307_v52  ;;  %v5038_v12 = vrot.slane %v5036_v37, 7  ;;  %7199 = vrot.lane.b32.xlu0 %v7090_v41, %s11164_s7  ;;  %v5512_v21 = vrot.slane %v5510_v44, 5  ;;  %v6526_v3 = vsel %vm11339_vm10, %v6521_v22, %v6525_v48  ;;  %v6432_v0 = vld [vmem:[#allocation3 + $0x10] sm:$0xf]  ;;  %v6433_v37 = vld [vmem:[#allocation3 + $0x14] sm:$0x1] }
 0x2f5   : > { %5309 = vst [vmem:[#allocation3 + $0x60] sm:$0xf] %v5308_v33  ;;  %v5063_v11 = vrot.slane %v5061_v30, 7  ;;  %v5044_v40 = vshrl.u32 %v10693_v47, 16  ;;  %v5047_v1 = vshll.u32 %v10693_v47, 16  ;;  %6869 = vrot.lane.b32.xlu1 %v6526_v3, %s11162_s24  ;;  %v5516_v54 = vshll.u32 %v5438_v32, 16 }
 0x2f6   : > { %v5041_v60 = vor.u32 %v5039_v4, %v5038_v12  ;;  %v5042_v50 = vrot.slane %v5038_v12, 4  ;;  %v5513_v20 = vor.u32 %v5512_v21, %v5509_v39  ;;  %v5520_v25 = vshrl.u32 %v5438_v32, 16  ;;  %v4638_v4 = vpop.f32.mrf.mxu0  ;;  %v5372_v30 = vld [vmem:[#allocation3 + $0xc] sm:$0xf]  ;;  %v6007_v33 = vld [vmem:[#allocation3 + $0x30] sm:$0xe] }
 0x2f7   : > { %v5066_v41 = vor.u32 %v5064_v18, %v5063_v11  ;;  %v5068_v45 = vrot.slane %v5063_v11, 4  ;;  %v5046_v8 = vrot.slane %v5044_v40, 7  ;;  %v5518_v27 = vrot.slane %v5516_v54, 5  ;;  %5404 = vst.msk [vmem:[#allocation5 + $0x8] sm:$0xf] %vm282_vm3, %v5372_v30 }
 0x2f8   : > { %v5301_v16 = vsel %vm13161_vm7, %v5041_v60, %v5300_v6  ;;  %v5514_v34 = vrot.slane %v5513_v20, 4  ;;  %v5526_v52 = vshll.u32 %v5439_v35, 16  ;;  %v5522_v47 = vrot.slane %v5520_v25, 4  ;;  %v6008_v21 = vld [vmem:[#allocation3 + $0x34] sm:$0xf]  ;;  %v10923_v54 = vpop.f32.mrf.mxu0 }
 0x2f9   : > { %5302 = vst [vmem:[#allocation3 + $0x54] sm:$0xf] %v5301_v16  ;;  %v5067_v17 = vsel %vm11347_vm11, %v5059_v59, %v5066_v41  ;;  %v5312_v22 = vsel %vm13181_vm8, %v5068_v45, %v5311_v15  ;;  %v5049_v44 = vor.u32 %v5047_v1, %v5046_v8  ;;  %v5051_v55 = vrot.slane %v5046_v8, 4  ;;  %v5373_v11 = vld [vmem:[#allocation3 + $0x10] sm:$0xf] }
 0x2fa   : > { %5310 = vst.msk [vmem:[#allocation3 + $0x64] sm:$0xf] %vm282_vm3, %v5067_v17  ;;  %5313 = vst [vmem:[#allocation3 + $0x68] sm:$0x1] %v5312_v22  ;;  %v5519_v18 = vsel %vm11339_vm10, %v5514_v34, %v5518_v27  ;;  %v5528_v48 = vrot.slane %v5526_v52, 5  ;;  %v6480_v32 = vshrl.u32 %v6431_v51, 16  ;;  %v5523_v40 = vor.u32 %v5522_v47, %v5518_v27  ;;  %v4641_v30 = vpop.f32.mrf.mxu0 }
 0x2fb   : > { %v5050_v59 = vsel %vm11347_vm11, %v5042_v50, %v5049_v44  ;;  %v5305_v12 = vsel %vm13181_vm8, %v5051_v55, %v5304_v62  ;;  %5870 = vrot.lane.b32.xlu0 %v5519_v18, %s11162_s24  ;;  %v6483_v6 = vshll.u32 %v6431_v51, 16  ;;  %v6489_v39 = vshll.u32 %v6432_v0, 16  ;;  %v6009_v60 = vld [vmem:[#allocation3 + $0x38] sm:$0x1]  ;;  %5405 = vst.msk [vmem:[#allocation5 + $0xc] sm:$0xf] %vm282_vm3, %v5373_v11 }
 0x2fc   : > { %5303 = vst.msk [vmem:[#allocation3 + $0x58] sm:$0xf] %vm282_vm3, %v5050_v59  ;;  %5306 = vst [vmem:[#allocation3 + $0x5c] sm:$0x1] %v5305_v12  ;;  %v6482_v1 = vrot.slane %v6480_v32, 4  ;;  %v6493_v3 = vshrl.u32 %v6432_v0, 16  ;;  %v4719_v62 = vadd.f32 %v10922_v43, %v13186_v31  ;;  %v4717_v27 = vadd.f32 %v4638_v4, %v13191_v13 }
 0x2fd   : > { %v6499_v35 = vshll.u32 %v6433_v37, 16  ;;  %v6485_v50 = vrot.slane %v6483_v6, 5  ;;  %v6491_v15 = vrot.slane %v6489_v39, 5  ;;  %v10488_v20 = vrot.slane %v6007_v33, 9  ;;  %v6004_v51 = vld [vmem:[#allocation3 + $0x24] sm:$0xe] }
 0x2fe   : > { %v5524_v41 = vrot.slane %v5523_v40, 4  ;;  %v6495_v45 = vrot.slane %v6493_v3, 4  ;;  %v6121_v25 = vrot.slane %v6008_v21, 5  ;;  %v4755_v34 = vmul.f32 %v13136_v2, %v4719_v62  ;;  %v6005_v0 = vld [vmem:[#allocation3 + $0x28] sm:$0xf] }
 0x2ff   : > { %v6501_v8 = vrot.slane %v6499_v35, 5  ;;  %v6486_v16 = vor.u32 %v6485_v50, %v6482_v1  ;;  %v6124_v52 = vrot.slane %v6009_v60, 5  ;;  %v5378_v17 = vld [vmem:[#allocation3 + $0x30] sm:$0xf]  ;;  %v4753_v13 = vmul.f32 %v13136_v2, %v4717_v27  ;;  %v6006_v33 = vld [vmem:[#allocation3 + $0x2c] sm:$0x1] }
 0x300   : > { %v5529_v22 = vsel %vm11339_vm10, %v5524_v41, %v5528_v48  ;;  %v6496_v44 = vor.u32 %v6495_v45, %v6491_v15  ;;  %v6122_v31 = vsel %vm11326_vm9, %v10488_v20, %v6121_v25  ;;  %v6123_v43 = vrot.slane %v6121_v25, 4  ;;  %5410 = vst.msk [vmem:[#allocation5 + $0x20] sm:$0xf] %vm282_vm3, %v5378_v17  ;;  %v5446_v21 = vld [vmem:[#allocation3 + $0x30] sm:$0xf] }
 0x301   : > { %5872 = vrot.lane.b32.xlu1 %v5529_v22, %s11162_s24  ;;  %v6487_v55 = vrot.slane %v6486_v16, 4  ;;  %v4791_v37 = vadd.f32 %v13141_v61, %v4755_v34  ;;  %v4720_v4 = vadd.f32 %v10923_v54, %v13202_v56  ;;  %v10487_v48 = vrot.slane %v6004_v51, 9  ;;  %v5447_v11 = vld [vmem:[#allocation3 + $0x34] sm:$0xf] }
 0x302   : > { %v6497_v18 = vrot.slane %v6496_v44, 4  ;;  %v6125_v47 = vsel %vm11326_vm9, %v6123_v43, %v6124_v52  ;;  %v6114_v32 = vrot.slane %v6005_v0, 5  ;;  %v4789_v6 = vadd.f32 %v13141_v61, %v4753_v13  ;;  %v5321_v0 = vld [vmem:[#allocation3 + $0x78] sm:$0xf]  ;;  %v5314_v44 = vld [vmem:[#allocation3 + $0x6c] sm:$0xf] }
 0x303   : > { %v6492_v59 = vsel %vm11339_vm10, %v6487_v55, %v6491_v15  ;;  %v4823_v12 = vmax.f32 %v4791_v37, 0.0  ;;  %v4756_v39 = vmul.f32 %v13136_v2, %v4720_v4  ;;  %v4718_v1 = vadd.f32 %v4641_v30, %v13212_v36 }
 0x304   : > { %6863 = vrot.lane.b32.xlu0 %v6492_v59, %s11162_s24  ;;  %v6502_v56 = vsel %vm11339_vm10, %v6497_v18, %v6501_v8  ;;  %v6115_v40 = vsel %vm11326_vm9, %v10487_v48, %v6114_v32  ;;  %v6116_v3 = vrot.slane %v6114_v32, 4  ;;  %v4821_v60 = vmax.f32 %v4789_v6, 0.0  ;;  %v5443_v18 = vld [vmem:[#allocation3 + $0x24] sm:$0xf]  ;;  %v5325_v32 = vld [vmem:[#allocation3 + $0x80] sm:$0x1] }
 0x305   : > { %6865 = vrot.lane.b32.xlu1 %v6502_v56, %s11162_s24  ;;  %v10698_v35 = vpack.c.bf16 %v4823_v12, %v4823_v12  ;;  %v4792_v50 = vadd.f32 %v13141_v61, %v4756_v39  ;;  %v6117_v15 = vrot.slane %v6006_v33, 5  ;;  %v4754_v62 = vmul.f32 %v13136_v2, %v4718_v1  ;;  %v5448_v12 = vld [vmem:[#allocation3 + $0x38] sm:$0x1]  ;;  %v5444_v56 = vld [vmem:[#allocation3 + $0x28] sm:$0xf] }
 0x306   : > { %v5579_v20 = vshrl.u32 %v5446_v21, 16  ;;  %v5582_v54 = vshll.u32 %v5446_v21, 16  ;;  %v5588_v41 = vshll.u32 %v5447_v11, 16  ;;  %v10696_v25 = vpack.c.bf16 %v4821_v60, %v4821_v60  ;;  %v5379_v1 = vld [vmem:[#allocation3 + $0x34] sm:$0xf] }
 0x307   : > { %v5087_v45 = vshrl.u32 %v10698_v35, 16  ;;  %v5090_v8 = vshll.u32 %v10698_v35, 16  ;;  %v4824_v51 = vmax.f32 %v4792_v50, 0.0  ;;  %v4790_v36 = vadd.f32 %v13141_v61, %v4754_v62  ;;  %v10926_v50 = vpop.f32.mrf.mxu0  ;;  %5411 = vst.msk [vmem:[#allocation5 + $0x24] sm:$0xf] %vm282_vm3, %v5379_v1 }
 0x308   : > { %6219 = vrot.lane.b32.xlu0 %v6122_v31, %s11164_s7  ;;  %v6118_v16 = vsel %vm11326_vm9, %v6116_v3, %v6117_v15  ;;  %v5581_v34 = vrot.slane %v5579_v20, 4  ;;  %v5584_v27 = vrot.slane %v5582_v54, 5  ;;  %v5070_v17 = vshrl.u32 %v10696_v25, 16  ;;  %v5376_v15 = vld [vmem:[#allocation3 + $0x24] sm:$0xf] }
 0x309   : > { %v5089_v52 = vrot.slane %v5087_v45, 7  ;;  %v5073_v2 = vshll.u32 %v10696_v25, 16  ;;  %6221 = vrot.lane.b32.xlu1 %v6125_v47, %s11164_s7  ;;  %v10699_v22 = vpack.c.bf16 %v4824_v51, %v4824_v51  ;;  %v4822_v43 = vmax.f32 %v4790_v36, 0.0  ;;  %v5377_v62 = vld [vmem:[#allocation3 + $0x28] sm:$0xf] }
 0x30a   : > { %v5585_v55 = vor.u32 %v5584_v27, %v5581_v34  ;;  %v5590_v37 = vrot.slane %v5588_v41, 5  ;;  %v5592_v13 = vshrl.u32 %v5447_v11, 16  ;;  %v13424_v61 = vrot.slane %v5070_v17, 7  ;;  %v5318_v45 = vld [vmem:[#allocation3 + $0x74] sm:$0x1] }
 0x30b   : > { %v5092_v31 = vor.u32 %v5090_v8, %v5089_v52  ;;  %v5093_v4 = vrot.slane %v5089_v52, 4  ;;  %v5095_v30 = vshrl.u32 %v10699_v22, 16  ;;  %v5098_v48 = vshll.u32 %v10699_v22, 16  ;;  %5408 = vst.msk [vmem:[#allocation5 + $0x18] sm:$0xf] %vm282_vm3, %v5376_v15 }
 0x30c   : > { %6215 = vrot.lane.b32.xlu0 %v6115_v40, %s11164_s7  ;;  %v10697_v33 = vpack.c.bf16 %v4822_v43, %v4822_v43  ;;  %v5586_v59 = vrot.slane %v5585_v55, 4  ;;  %v5594_v47 = vrot.slane %v5592_v13, 4  ;;  %v5075_v39 = vor.u32 %v5073_v2, %v13424_v61  ;;  %5409 = vst.msk [vmem:[#allocation5 + $0x1c] sm:$0xf] %vm282_vm3, %v5377_v62  ;;  %v5380_v25 = vld [vmem:[#allocation3 + $0x3c] sm:$0xf] }
 0x30d   : > { %v5322_v6 = vsel %vm13161_vm7, %v5092_v31, %v5321_v0  ;;  %v5076_v21 = vrot.slane %v13424_v61, 4  ;;  %v5097_v11 = vrot.slane %v5095_v30, 7  ;;  %6217 = vrot.lane.b32.xlu1 %v6118_v16, %s11164_s7  ;;  %v5598_v8 = vshll.u32 %v5448_v12, 16  ;;  %v5445_v27 = vld [vmem:[#allocation3 + $0x2c] sm:$0x1]  ;;  %v4654_v61 = vpop.f32.mrf.mxu0 }
 0x30e   : > { %5323 = vst [vmem:[#allocation3 + $0x78] sm:$0xf] %v5322_v6  ;;  %v5078_v3 = vshrl.u32 %v10697_v33, 16  ;;  %v5081_v35 = vshll.u32 %v10697_v33, 16  ;;  %v5591_v40 = vsel %vm11339_vm10, %v5586_v59, %v5590_v37  ;;  %v5595_v60 = vor.u32 %v5594_v47, %v5590_v37  ;;  %5412 = vst.msk [vmem:[#allocation5 + $0x28] sm:$0xf] %vm282_vm3, %v5380_v25 }
 0x30f   : > { %v5315_v20 = vsel %vm13161_vm7, %v5075_v39, %v5314_v44  ;;  %v5100_v54 = vor.u32 %v5098_v48, %v5097_v11  ;;  %v5102_v41 = vrot.slane %v5097_v11, 4  ;;  %v5555_v16 = vshrl.u32 %v5443_v18, 16  ;;  %v6010_v22 = vld [vmem:[#allocation3 + $0x3c] sm:$0xe]  ;;  %v5381_v44 = vld [vmem:[#allocation3 + $0x40] sm:$0xf] }
 0x310   : > { %5316 = vst [vmem:[#allocation3 + $0x6c] sm:$0xf] %v5315_v20  ;;  %v5080_v51 = vrot.slane %v5078_v3, 7  ;;  %5882 = vrot.lane.b32.xlu0 %v5591_v40, %s11162_s24  ;;  %v5596_v36 = vrot.slane %v5595_v60, 4  ;;  %v5558_v34 = vshll.u32 %v5443_v18, 16  ;;  %v5600_v17 = vrot.slane %v5598_v8, 5  ;;  %v10927_v60 = vpop.f32.mrf.mxu0 }
 0x311   : > { %v5101_v52 = vsel %vm11347_vm11, %v5093_v4, %v5100_v54  ;;  %v5326_v0 = vsel %vm13181_vm8, %v5102_v41, %v5325_v32  ;;  %v5564_v2 = vshll.u32 %v5444_v56, 16  ;;  %v5557_v37 = vrot.slane %v5555_v16, 4  ;;  %v13446_v31 = vld [vmem:[#allocation3 + $0x40] sm:$0xf]  ;;  %5413 = vst.msk [vmem:[#allocation5 + $0x2c] sm:$0xf] %vm282_vm3, %v5381_v44 }
 0x312   : > { %5324 = vst.msk [vmem:[#allocation3 + $0x7c] sm:$0xf] %vm282_vm3, %v5101_v52  ;;  %5327 = vst [vmem:[#allocation3 + $0x80] sm:$0x1] %v5326_v0  ;;  %v5083_v43 = vor.u32 %v5081_v35, %v5080_v51  ;;  %v5085_v55 = vrot.slane %v5080_v51, 4  ;;  %v5560_v13 = vrot.slane %v5558_v34, 5  ;;  %v5601_v4 = vsel %vm11339_vm10, %v5596_v36, %v5600_v17 }
 0x313   : > { %v5566_v30 = vrot.slane %v5564_v2, 5  ;;  %v5568_v18 = vshrl.u32 %v5444_v56, 16  ;;  %v5574_v48 = vshll.u32 %v5445_v27, 16  ;;  %v6438_v32 = vld [vmem:[#allocation3 + $0x28] sm:$0xf]  ;;  %5884 = vrot.lane.b32.xlu1 %v5601_v4, %s11162_s24  ;;  %v4723_v47 = vadd.f32 %v10926_v50, %v13218_v5 }
 0x314   : > { %v5084_v33 = vsel %vm11347_vm11, %v5076_v21, %v5083_v43  ;;  %v5319_v59 = vsel %vm13181_vm8, %v5085_v55, %v5318_v45  ;;  %v5561_v12 = vor.u32 %v5560_v13, %v5557_v37  ;;  %v6439_v6 = vld [vmem:[#allocation3 + $0x2c] sm:$0x1]  ;;  %v10489_v56 = vrot.slane %v6010_v22, 9  ;;  %v13462_v21 = vld [vmem:[%s15921_s3] ss:$0 sm:$0xff] }
 0x315   : > { %5317 = vst.msk [vmem:[#allocation3 + $0x70] sm:$0xf] %vm282_vm3, %v5084_v33  ;;  %5320 = vst [vmem:[#allocation3 + $0x74] sm:$0x1] %v5319_v59  ;;  %v5570_v39 = vrot.slane %v5568_v18, 4  ;;  %v5576_v11 = vrot.slane %v5574_v48, 5  ;;  %v4759_v35 = vmul.f32 %v13462_v21, %v4723_v47  ;;  %v4721_v40 = vadd.f32 %v4654_v61, %v13225_v7  ;;  %v4657_v61 = vpop.f32.mrf.mxu0 }
 0x316   : > { %v6128_v1 = vrot.slane %v13446_v31, 5  ;;  %v5562_v3 = vrot.slane %v5561_v12, 4  ;;  %v6537_v5 = vshll.u32 %v6438_v32, 16  ;;  %v6541_v62 = vshrl.u32 %v6438_v32, 16  ;;  %v5449_v54 = vld [vmem:[#allocation3 + $0x3c] sm:$0xf] }
 0x317   : > { %v5571_v50 = vor.u32 %v5570_v39, %v5566_v30  ;;  %v6547_v20 = vshll.u32 %v6439_v6, 16  ;;  %v13473_v45 = vld [vmem:[%s15921_s3 + $0x1] ss:$0 sm:$0xff]  ;;  %v4757_v7 = vmul.f32 %v13462_v21, %v4721_v40  ;;  %v13479_v51 = vld [vmem:[#allocation3 + $0x40] sm:$0xf]  ;;  %v4724_v27 = vadd.f32 %v10927_v60, %v13228_v19 }
 0x318   : > { %v6129_v15 = vsel %vm11326_vm9, %v10489_v56, %v6128_v1  ;;  %v5567_v41 = vsel %vm11339_vm10, %v5562_v3, %v5566_v30  ;;  %v4795_v8 = vadd.f32 %v13473_v45, %v4759_v35  ;;  %v13477_v25 = vrot.slane %v6537_v5, 5  ;;  %v6012_v47 = vld [vmem:[#allocation3 + $0x44] sm:$0x1] }
 0x319   : > { %5878 = vrot.lane.b32.xlu0 %v5567_v41, %s11162_s24  ;;  %v5572_v36 = vrot.slane %v5571_v50, 4  ;;  %v6543_v16 = vrot.slane %v6541_v62, 4  ;;  %v6549_v34 = vrot.slane %v6547_v20, 5  ;;  %v4793_v0 = vadd.f32 %v13473_v45, %v4757_v7  ;;  %v6437_v6 = vld [vmem:[#allocation3 + $0x24] sm:$0xf] }
 0x31a   : > { %v4827_v52 = vmax.f32 %v4795_v8, 0.0  ;;  %v5603_v17 = vshrl.u32 %v5449_v54, 16  ;;  %v5606_v2 = vshll.u32 %v5449_v54, 16  ;;  %v4760_v43 = vmul.f32 %v13462_v21, %v4724_v27  ;;  %v5335_v50 = vld [vmem:[#allocation3 + $0x90] sm:$0xf] }
 0x31b   : > { %v5577_v22 = vsel %vm11339_vm10, %v5572_v36, %v5576_v11  ;;  %v6544_v44 = vor.u32 %v6543_v16, %v13477_v25  ;;  %v5612_v55 = vshll.u32 %v13479_v51, 16  ;;  %v4825_v13 = vmax.f32 %v4793_v0, 0.0  ;;  %v5451_v27 = vld [vmem:[#allocation3 + $0x44] sm:$0x1] }
 0x31c   : > { %5880 = vrot.lane.b32.xlu1 %v5577_v22, %s11162_s24  ;;  %v10702_v37 = vpack.c.bf16 %v4827_v52, %v4827_v52  ;;  %v5605_v31 = vrot.slane %v5603_v17, 4  ;;  %v5608_v19 = vrot.slane %v5606_v2, 5  ;;  %v4796_v30 = vadd.f32 %v13473_v45, %v4760_v43  ;;  %v6440_v52 = vld [vmem:[#allocation3 + $0x30] sm:$0xf]  ;;  %v5339_v22 = vld [vmem:[#allocation3 + $0x98] sm:$0x1]  ;;  %v10930_v43 = vpop.f32.mrf.mxu0 }
 0x31d   : > { %6223 = vrot.lane.b32.xlu0 %v6129_v15, %s11164_s7  ;;  %v6545_v4 = vrot.slane %v6544_v44, 4  ;;  %v13492_v18 = vrot.slane %v5612_v55, 5  ;;  %v5616_v48 = vshrl.u32 %v13479_v51, 16  ;;  %v10700_v59 = vpack.c.bf16 %v4825_v13, %v4825_v13  ;;  %v5328_v51 = vld [vmem:[#allocation3 + $0x84] sm:$0xf] }
 0x31e   : > { %v5121_v32 = vshrl.u32 %v10702_v37, 16  ;;  %v5124_v33 = vshll.u32 %v10702_v37, 16  ;;  %v5609_v12 = vor.u32 %v5608_v19, %v5605_v31  ;;  %v4828_v11 = vmax.f32 %v4796_v30, 0.0  ;;  %v6441_v19 = vld [vmem:[#allocation3 + $0x34] sm:$0xf] }
 0x31f   : > { %v6550_v39 = vsel %vm11339_vm10, %v6545_v4, %v6549_v34  ;;  %v4722_v56 = vadd.f32 %v4657_v61, %v13238_v38  ;;  %v6130_v3 = vrot.slane %v6128_v1, 4  ;;  %v5104_v40 = vshrl.u32 %v10700_v59, 16 }
 0x320   : > { %v5123_v35 = vrot.slane %v5121_v32, 7  ;;  %v5107_v5 = vshll.u32 %v10700_v59, 16  ;;  %6873 = vrot.lane.b32.xlu1 %v6550_v39, %s11162_s24  ;;  %v5610_v60 = vrot.slane %v5609_v12, 4  ;;  %v10703_v15 = vpack.c.bf16 %v4828_v11, %v4828_v11  ;;  %v5382_v11 = vld [vmem:[#allocation3 + $0x48] sm:$0xf] }
 0x321   : > { %v4758_v62 = vmul.f32 %v13462_v21, %v4722_v56  ;;  %v6131_v20 = vrot.slane %v6012_v47, 5  ;;  %v6528_v54 = vshrl.u32 %v6437_v6, 16  ;;  %v13500_v7 = vrot.slane %v5104_v40, 7  ;;  %v5383_v56 = vld [vmem:[#allocation3 + $0x4c] sm:$0xf]  ;;  %v4670_v40 = vpop.f32.mrf.mxu0 }
 0x322   : > { %v5126_v41 = vor.u32 %v5124_v33, %v5123_v35  ;;  %v5127_v8 = vrot.slane %v5123_v35, 4  ;;  %v5615_v38 = vsel %vm11339_vm10, %v5610_v60, %v13492_v18  ;;  %v5129_v1 = vshrl.u32 %v10703_v15, 16  ;;  %v6442_v33 = vld [vmem:[#allocation3 + $0x38] sm:$0x1]  ;;  %5414 = vst.msk [vmem:[#allocation5 + $0x30] sm:$0xf] %vm282_vm3, %v5382_v11 }
 0x323   : > { %v5132_v36 = vshll.u32 %v10703_v15, 16  ;;  %5886 = vrot.lane.b32.xlu0 %v5615_v38, %s11162_s24  ;;  %v4794_v16 = vadd.f32 %v13473_v45, %v4758_v62  ;;  %v6132_v34 = vsel %vm11326_vm9, %v6130_v3, %v6131_v20  ;;  %v5109_v17 = vor.u32 %v5107_v5, %v13500_v7  ;;  %5415 = vst.msk [vmem:[#allocation5 + $0x34] sm:$0xf] %vm282_vm3, %v5383_v56  ;;  %v5384_v5 = vld [vmem:[#allocation3 + $0x54] sm:$0xf] }
 0x324   : > { %v5336_v0 = vsel %vm13161_vm7, %v5126_v41, %v5335_v50  ;;  %v5110_v2 = vrot.slane %v13500_v7, 4  ;;  %6225 = vrot.lane.b32.xlu1 %v6132_v34, %s11164_s7  ;;  %v6530_v44 = vrot.slane %v6528_v54, 4  ;;  %v5131_v55 = vrot.slane %v5129_v1, 7  ;;  %5416 = vst.msk [vmem:[#allocation5 + $0x38] sm:$0xf] %vm282_vm3, %v5384_v5 }
 0x325   : > { %5337 = vst [vmem:[#allocation3 + $0x90] sm:$0xf] %v5336_v0  ;;  %v4826_v37 = vmax.f32 %v4794_v16, 0.0  ;;  %v6531_v13 = vshll.u32 %v6437_v6, 16  ;;  %v5618_v31 = vrot.slane %v5616_v48, 4  ;;  %v5329_v61 = vsel %vm13161_vm7, %v5109_v17, %v5328_v51 }
 0x326   : > { %v5622_v4 = vshll.u32 %v5451_v27, 16  ;;  %v6552_v30 = vshrl.u32 %v6440_v52, 16  ;;  %v6555_v32 = vshll.u32 %v6440_v52, 16  ;;  %5330 = vst [vmem:[#allocation3 + $0x84] sm:$0xf] %v5329_v61  ;;  %v5134_v59 = vor.u32 %v5132_v36, %v5131_v55 }
 0x327   : > { %v5136_v12 = vrot.slane %v5131_v55, 4  ;;  %v10701_v47 = vpack.c.bf16 %v4826_v37, %v4826_v37  ;;  %v6533_v39 = vrot.slane %v6531_v13, 5  ;;  %v5619_v3 = vor.u32 %v5618_v31, %v13492_v18  ;;  %v5385_v18 = vld [vmem:[#allocation3 + $0x58] sm:$0xf]  ;;  %v5332_v20 = vld [vmem:[#allocation3 + $0x8c] sm:$0x1]  ;;  %v10931_v55 = vpop.f32.mrf.mxu0 }
 0x328   : > { %v5624_v35 = vrot.slane %v5622_v4, 5  ;;  %v6554_v6 = vrot.slane %v6552_v30, 4  ;;  %v6557_v48 = vrot.slane %v6555_v32, 5  ;;  %v5135_v60 = vsel %vm11347_vm11, %v5127_v8, %v5134_v59  ;;  %5417 = vst.msk [vmem:[#allocation5 + $0x3c] sm:$0xf] %vm282_vm3, %v5385_v18 }
 0x329   : > { %v5340_v50 = vsel %vm13181_vm8, %v5136_v12, %v5339_v22  ;;  %v5112_v15 = vshrl.u32 %v10701_v47, 16  ;;  %v5115_v62 = vshll.u32 %v10701_v47, 16  ;;  %5338 = vst.msk [vmem:[#allocation3 + $0x94] sm:$0xf] %vm282_vm3, %v5135_v60  ;;  %v6534_v54 = vor.u32 %v6533_v39, %v6530_v44  ;;  %v6997_v34 = vld [vmem:[#allocation3 + $0x24] sm:$0xe]  ;;  %v4673_v56 = vpop.f32.mrf.mxu0 }
 0x32a   : > { %5341 = vst [vmem:[#allocation3 + $0x98] sm:$0x1] %v5340_v50  ;;  %v5620_v41 = vrot.slane %v5619_v3, 4  ;;  %v6558_v51 = vor.u32 %v6557_v48, %v6554_v6  ;;  %v6561_v38 = vshll.u32 %v6441_v19, 16  ;;  %v6565_v8 = vshrl.u32 %v6441_v19, 16 }
 0x32b   : > { %v5114_v1 = vrot.slane %v5112_v15, 7  ;;  %v6571_v36 = vshll.u32 %v6442_v33, 16  ;;  %v4727_v16 = vadd.f32 %v10930_v43, %v13245_v24  ;;  %v6535_v27 = vrot.slane %v6534_v54, 4  ;;  %v6998_v22 = vld [vmem:[#allocation3 + $0x28] sm:$0xf] }
 0x32c   : > { %v5625_v52 = vsel %vm11339_vm10, %v5620_v41, %v5624_v35  ;;  %v6559_v0 = vrot.slane %v6558_v51, 4  ;;  %v6563_v17 = vrot.slane %v6561_v38, 5  ;;  %v6567_v13 = vrot.slane %v6565_v8, 4  ;;  %v6999_v61 = vld [vmem:[#allocation3 + $0x2c] sm:$0x1] }
 0x32d   : > { %v5117_v44 = vor.u32 %v5115_v62, %v5114_v1  ;;  %v5119_v37 = vrot.slane %v5114_v1, 4  ;;  %5888 = vrot.lane.b32.xlu1 %v5625_v52, %s11162_s24  ;;  %v6573_v31 = vrot.slane %v6571_v36, 5  ;;  %v6540_v24 = vsel %vm11339_vm10, %v6535_v27, %v13477_v25  ;;  %v7000_v30 = vld [vmem:[#allocation3 + $0x30] sm:$0xe]  ;;  %v7001_v25 = vld [vmem:[#allocation3 + $0x34] sm:$0xf] }
 0x32e   : > { %v6564_v43 = vsel %vm11339_vm10, %v6559_v0, %v6563_v17  ;;  %v4763_v19 = vmul.f32 %v13462_v21, %v4727_v16  ;;  %v10502_v4 = vrot.slane %v6997_v34, 9  ;;  %6871 = vrot.lane.b32.xlu0 %v6540_v24, %s11162_s24  ;;  %v6568_v59 = vor.u32 %v6567_v13, %v6563_v17  ;;  %v5452_v62 = vld [vmem:[#allocation3 + $0x48] sm:$0xf]  ;;  %v5453_v8 = vld [vmem:[#allocation3 + $0x4c] sm:$0xf] }
 0x32f   : > { %v5118_v32 = vsel %vm11347_vm11, %v5110_v2, %v5117_v44  ;;  %v5333_v33 = vsel %vm13181_vm8, %v5119_v37, %v5332_v20  ;;  %v7103_v12 = vrot.slane %v6998_v22, 5  ;;  %v4725_v39 = vadd.f32 %v4670_v40, %v13248_v49  ;;  %v7002_v2 = vld [vmem:[#allocation3 + $0x38] sm:$0x1]  ;;  %v5454_v0 = vld [vmem:[#allocation3 + $0x50] sm:$0x1] }
 0x330   : > { %5331 = vst.msk [vmem:[#allocation3 + $0x88] sm:$0xf] %vm282_vm3, %v5118_v32  ;;  %5334 = vst [vmem:[#allocation3 + $0x8c] sm:$0x1] %v5333_v33  ;;  %v4799_v47 = vadd.f32 %v13473_v45, %v4763_v19  ;;  %v7106_v11 = vrot.slane %v6999_v61, 5  ;;  %v4728_v7 = vadd.f32 %v10931_v55, %v13257_v42  ;;  %v6569_v3 = vrot.slane %v6568_v59, 4 }
 0x331   : > { %v7104_v35 = vsel %vm11326_vm9, %v10502_v4, %v7103_v12  ;;  %v7105_v6 = vrot.slane %v7103_v12, 4  ;;  %v10503_v48 = vrot.slane %v7000_v30, 9  ;;  %v4761_v60 = vmul.f32 %v13462_v21, %v4725_v39  ;;  %v5349_v24 = vld [vmem:[#allocation3 + $0xa8] sm:$0xf] }
 0x332   : > { %v4831_v5 = vmax.f32 %v4799_v47, 0.0  ;;  %v4764_v50 = vmul.f32 %v13462_v21, %v4728_v7  ;;  %v7110_v15 = vrot.slane %v7001_v25, 5  ;;  %6875 = vrot.lane.b32.xlu0 %v6564_v43, %s11162_s24  ;;  %v6574_v49 = vsel %vm11339_vm10, %v6569_v3, %v6573_v31  ;;  %v13568_v25 = vpop.f32.mrf.mxu0  ;;  %v5342_v47 = vld [vmem:[#allocation3 + $0x9c] sm:$0xf] }
 0x333   : > { %v7107_v42 = vsel %vm11326_vm9, %v7105_v6, %v7106_v11  ;;  %v4726_v40 = vadd.f32 %v4673_v56, %v13264_v28  ;;  %v7113_v18 = vrot.slane %v7002_v2, 5  ;;  %6877 = vrot.lane.b32.xlu1 %v6574_v49, %s11162_s24  ;;  %v4797_v54 = vadd.f32 %v13473_v45, %v4761_v60 }
 0x334   : > { %v10706_v20 = vpack.c.bf16 %v4831_v5, %v4831_v5  ;;  %v4800_v41 = vadd.f32 %v13473_v45, %v4764_v50  ;;  %v7111_v51 = vsel %vm11326_vm9, %v10503_v48, %v7110_v15  ;;  %v7112_v1 = vrot.slane %v7110_v15, 4  ;;  %v5455_v48 = vld [vmem:[#allocation3 + $0x54] sm:$0xf] }
 0x335   : > { %v4762_v38 = vmul.f32 %v13462_v21, %v4726_v40  ;;  %v5627_v36 = vshrl.u32 %v5452_v62, 16  ;;  %v5630_v16 = vshll.u32 %v5452_v62, 16  ;;  %v4829_v28 = vmax.f32 %v4797_v54, 0.0  ;;  %v5456_v62 = vld [vmem:[#allocation3 + $0x58] sm:$0xf] }
 0x336   : > { %v5155_v34 = vshrl.u32 %v10706_v20, 16  ;;  %v5158_v27 = vshll.u32 %v10706_v20, 16  ;;  %v4832_v52 = vmax.f32 %v4800_v41, 0.0  ;;  %7207 = vrot.lane.b32.xlu0 %v7104_v35, %s11164_s7  ;;  %v7114_v22 = vsel %vm11326_vm9, %v7112_v1, %v7113_v18  ;;  %v5353_v40 = vld [vmem:[#allocation3 + $0xb0] sm:$0x1]  ;;  %v4686_v41 = vpop.f32.mrf.mxu0 }
 0x337   : > { %v4798_v17 = vadd.f32 %v13473_v45, %v4762_v38  ;;  %v5629_v55 = vrot.slane %v5627_v36, 4  ;;  %v5632_v44 = vrot.slane %v5630_v16, 5  ;;  %v10704_v13 = vpack.c.bf16 %v4829_v28, %v4829_v28  ;;  %7209 = vrot.lane.b32.xlu1 %v7107_v42, %s11164_s7  ;;  %v5346_v18 = vld [vmem:[#allocation3 + $0xa4] sm:$0x1]  ;;  %v6013_v36 = vld [vmem:[#allocation3 + $0x48] sm:$0xe] }
 0x338   : > { %v5157_v37 = vrot.slane %v5155_v34, 7  ;;  %v10707_v31 = vpack.c.bf16 %v4832_v52, %v4832_v52  ;;  %v5636_v61 = vshll.u32 %v5453_v8, 16  ;;  %v5640_v4 = vshrl.u32 %v5453_v8, 16  ;;  %v6014_v16 = vld [vmem:[#allocation3 + $0x4c] sm:$0xf] }
 0x339   : > { %v4830_v43 = vmax.f32 %v4798_v17, 0.0  ;;  %v5633_v19 = vor.u32 %v5632_v44, %v5629_v55  ;;  %v5646_v30 = vshll.u32 %v5454_v0, 16  ;;  %v5138_v59 = vshrl.u32 %v10704_v13, 16  ;;  %v5457_v0 = vld [vmem:[#allocation3 + $0x5c] sm:$0x1] }
 0x33a   : > { %v5160_v32 = vor.u32 %v5158_v27, %v5157_v37  ;;  %v5161_v33 = vrot.slane %v5157_v37, 4  ;;  %v5141_v12 = vshll.u32 %v10704_v13, 16  ;;  %v5163_v39 = vshrl.u32 %v10707_v31, 16  ;;  %7211 = vrot.lane.b32.xlu0 %v7111_v51, %s11164_s7  ;;  %v6015_v37 = vld [vmem:[#allocation3 + $0x50] sm:$0x1] }
 0x33b   : > { %v5166_v11 = vshll.u32 %v10707_v31, 16  ;;  %v10705_v7 = vpack.c.bf16 %v4830_v43, %v4830_v43  ;;  %v5634_v56 = vrot.slane %v5633_v19, 4  ;;  %v5140_v3 = vrot.slane %v5138_v59, 7  ;;  %7213 = vrot.lane.b32.xlu1 %v7114_v22, %s11164_s7  ;;  %v5386_v13 = vld [vmem:[#allocation3 + $0x60] sm:$0xf]  ;;  %v10935_v19 = vpop.f32.mrf.mxu0 }
 0x33c   : > { %v5350_v2 = vsel %vm13161_vm7, %v5160_v32, %v5349_v24  ;;  %v5638_v35 = vrot.slane %v5636_v61, 5  ;;  %v5642_v6 = vrot.slane %v5640_v4, 4  ;;  %v5165_v5 = vrot.slane %v5163_v39, 7  ;;  %5418 = vst.msk [vmem:[#allocation5 + $0x40] sm:$0xf] %vm282_vm3, %v5386_v13 }
 0x33d   : > { %5351 = vst [vmem:[#allocation3 + $0xa8] sm:$0xf] %v5350_v2  ;;  %v5146_v60 = vshrl.u32 %v10705_v7, 16  ;;  %v5149_v50 = vshll.u32 %v10705_v7, 16  ;;  %v5648_v15 = vrot.slane %v5646_v30, 5  ;;  %v5143_v49 = vor.u32 %v5141_v12, %v5140_v3 }
 0x33e   : > { %v5144_v42 = vrot.slane %v5140_v3, 4  ;;  %v5639_v20 = vsel %vm11339_vm10, %v5634_v56, %v5638_v35  ;;  %v5643_v54 = vor.u32 %v5642_v6, %v5638_v35  ;;  %v5168_v51 = vor.u32 %v5166_v11, %v5165_v5  ;;  %v5387_v4 = vld [vmem:[#allocation3 + $0x64] sm:$0xf]  ;;  %v5388_v12 = vld [vmem:[#allocation3 + $0x6c] sm:$0xf] }
 0x33f   : > { %v5170_v38 = vrot.slane %v5165_v5, 4  ;;  %v5148_v1 = vrot.slane %v5146_v60, 7  ;;  %5890 = vrot.lane.b32.xlu0 %v5639_v20, %s11162_s24  ;;  %v5651_v8 = vshrl.u32 %v5455_v48, 16  ;;  %v5343_v34 = vsel %vm13161_vm7, %v5143_v49, %v5342_v47  ;;  %5419 = vst.msk [vmem:[#allocation5 + $0x44] sm:$0xf] %vm282_vm3, %v5387_v4 }
 0x340   : > { %v5644_v27 = vrot.slane %v5643_v54, 4  ;;  %v5654_v28 = vshll.u32 %v5455_v48, 16  ;;  %v5660_v52 = vshll.u32 %v5456_v62, 16  ;;  %5344 = vst [vmem:[#allocation3 + $0x9c] sm:$0xf] %v5343_v34  ;;  %v5169_v17 = vsel %vm11347_vm11, %v5161_v33, %v5168_v51  ;;  %v13604_v20 = vpop.permute.xlu0 %6211 }
 0x341   : > { %v5354_v22 = vsel %vm13181_vm8, %v5170_v38, %v5353_v40  ;;  %v5151_v55 = vor.u32 %v5149_v50, %v5148_v1  ;;  %v5153_v44 = vrot.slane %v5148_v1, 4  ;;  %5352 = vst.msk [vmem:[#allocation3 + $0xac] sm:$0xf] %vm282_vm3, %v5169_v17  ;;  %v5653_v61 = vrot.slane %v5651_v8, 4  ;;  %v5389_v47 = vld [vmem:[#allocation3 + $0x70] sm:$0xf] }
 0x342   : > { %5355 = vst [vmem:[#allocation3 + $0xb0] sm:$0x1] %v5354_v22  ;;  %v5649_v31 = vsel %vm11339_vm10, %v5644_v27, %v5648_v15  ;;  %v5656_v24 = vrot.slane %v5654_v28, 5  ;;  %v5662_v43 = vrot.slane %v5660_v52, 5  ;;  %v5664_v33 = vshrl.u32 %v5456_v62, 16 }
 0x343   : > { %v5152_v30 = vsel %vm11347_vm11, %v5144_v42, %v5151_v55  ;;  %v5347_v32 = vsel %vm13181_vm8, %v5153_v44, %v5346_v18  ;;  %5892 = vrot.lane.b32.xlu1 %v5649_v31, %s11162_s24  ;;  %v5670_v59 = vshll.u32 %v5457_v0, 16  ;;  %v4731_v11 = vadd.f32 %v13568_v25, %v13275_v53  ;;  %v6016_v2 = vld [vmem:[#allocation3 + $0x54] sm:$0xe]  ;;  %5420 = vst.msk [vmem:[#allocation5 + $0x48] sm:$0xf] %vm282_vm3, %v5388_v12  ;;  %v4689_v25 = vpop.f32.mrf.mxu0 }
 0x344   : > { %5345 = vst.msk [vmem:[#allocation3 + $0xa0] sm:$0xf] %vm282_vm3, %v5152_v30  ;;  %5348 = vst [vmem:[#allocation3 + $0xa4] sm:$0x1] %v5347_v32  ;;  %v5657_v39 = vor.u32 %v5656_v24, %v5653_v61  ;;  %v10490_v7 = vrot.slane %v6013_v36, 9  ;;  %v6135_v56 = vrot.slane %v6014_v16, 5  ;;  %v4729_v6 = vadd.f32 %v4686_v41, %v13287_v57 }
 0x345   : > { %5421 = vst.msk [vmem:[#allocation5 + $0x4c] sm:$0xf] %vm282_vm3, %v5389_v47  ;;  %v5666_v3 = vrot.slane %v5664_v33, 4  ;;  %v5672_v35 = vrot.slane %v5670_v59, 5  ;;  %v6138_v48 = vrot.slane %v6015_v37, 5  ;;  %v4767_v50 = vmul.f32 %v13462_v21, %v4731_v11 }
 0x346   : > { %v6017_v5 = vld [vmem:[#allocation3 + $0x58] sm:$0xf]  ;;  %v5658_v60 = vrot.slane %v5657_v39, 4  ;;  %v6136_v15 = vsel %vm11326_vm9, %v10490_v7, %v6135_v56  ;;  %v6137_v53 = vrot.slane %v6135_v56, 4  ;;  %v4765_v49 = vmul.f32 %v13462_v21, %v4729_v6  ;;  %v6018_v18 = vld [vmem:[#allocation3 + $0x5c] sm:$0x1] }
 0x347   : > { %v5667_v62 = vor.u32 %v5666_v3, %v5662_v43  ;;  %v4732_v42 = vadd.f32 %v10935_v19, %v13298_v58  ;;  %v10491_v40 = vrot.slane %v6016_v2, 9  ;;  %v4803_v54 = vadd.f32 %v13473_v45, %v4767_v50  ;;  %v6443_v36 = vld [vmem:[#allocation3 + $0x3c] sm:$0xf]  ;;  %v6444_v0 = vld [vmem:[#allocation3 + $0x40] sm:$0xf] }
 0x348   : > { %v5663_v57 = vsel %vm11339_vm10, %v5658_v60, %v5662_v43  ;;  %v6139_v41 = vsel %vm11326_vm9, %v6137_v53, %v6138_v48  ;;  %v6142_v51 = vrot.slane %v6017_v5, 5  ;;  %v4801_v1 = vadd.f32 %v13473_v45, %v4765_v49  ;;  %v5363_v56 = vld [vmem:[#allocation3 + $0xc0] sm:$0xf]  ;;  %v5356_v6 = vld [vmem:[#allocation3 + $0xb4] sm:$0xf] }
 0x349   : > { %5894 = vrot.lane.b32.xlu0 %v5663_v57, %s11162_s24  ;;  %v5668_v38 = vrot.slane %v5667_v62, 4  ;;  %v4768_v58 = vmul.f32 %v13462_v21, %v4732_v42  ;;  %v4730_v8 = vadd.f32 %v4689_v25, %v13313_v14  ;;  %v13615_v16 = vpop.permute.xlu1 %6213  ;;  %v4835_v34 = vmax.f32 %v4803_v54, 0.0  ;;  %v13628_v4 = vpop.permute.xlu0 %7203  ;;  %v6446_v62 = vld [vmem:[#allocation3 + $0x48] sm:$0xf]  ;;  %v6445_v57 = vld [vmem:[#allocation3 + $0x44] sm:$0x1] }
 0x34a   : > { %v6143_v27 = vsel %vm11326_vm9, %v10491_v40, %v6142_v51  ;;  %v6144_v28 = vrot.slane %v6142_v51, 4  ;;  %v6145_v52 = vrot.slane %v6018_v18, 5  ;;  %v4833_v22 = vmax.f32 %v4801_v1, 0.0  ;;  %v5367_v51 = vld [vmem:[#allocation3 + $0xc8] sm:$0x1] }
 0x34b   : > { %v5673_v17 = vsel %vm11339_vm10, %v5668_v38, %v5672_v35  ;;  %v4804_v55 = vadd.f32 %v13473_v45, %v4768_v58  ;;  %v4766_v44 = vmul.f32 %v13462_v21, %v4730_v8  ;;  %v10710_v14 = vpack.c.bf16 %v4835_v34, %v4835_v34 }
 0x34c   : > { %5896 = vrot.lane.b32.xlu1 %v5673_v17, %s11162_s24  ;;  %v6146_v37 = vsel %vm11326_vm9, %v6144_v28, %v6145_v52  ;;  %v6576_v13 = vshrl.u32 %v6443_v36, 16  ;;  %v6579_v31 = vshll.u32 %v6443_v36, 16  ;;  %v10708_v61 = vpack.c.bf16 %v4833_v22, %v4833_v22  ;;  %v6447_v28 = vld [vmem:[#allocation3 + $0x4c] sm:$0xf] }
 0x34d   : > { %6227 = vrot.lane.b32.xlu0 %v6136_v15, %s11164_s7  ;;  %v4836_v24 = vmax.f32 %v4804_v55, 0.0  ;;  %v4802_v43 = vadd.f32 %v13473_v45, %v4766_v44  ;;  %v6585_v19 = vshll.u32 %v6444_v0, 16  ;;  %v5189_v30 = vshrl.u32 %v10710_v14, 16  ;;  %v13630_v11 = vpop.permute.xlu1 %7205 }
 0x34e   : > { %v5192_v32 = vshll.u32 %v10710_v14, 16  ;;  %v6578_v21 = vrot.slane %v6576_v13, 4  ;;  %v6581_v33 = vrot.slane %v6579_v31, 5  ;;  %v5172_v59 = vshrl.u32 %v10708_v61, 16  ;;  %v13634_v54 = vpop.permute.xlu0 %6207 }
 0x34f   : > { %v5175_v12 = vshll.u32 %v10708_v61, 16  ;;  %v10711_v47 = vpack.c.bf16 %v4836_v24, %v4836_v24  ;;  %v4834_v39 = vmax.f32 %v4802_v43, 0.0  ;;  %v5191_v7 = vrot.slane %v5189_v30, 7 }
 0x350   : > { %6229 = vrot.lane.b32.xlu1 %v6139_v41, %s11164_s7  ;;  %v6582_v2 = vor.u32 %v6581_v33, %v6578_v21  ;;  %v6587_v3 = vrot.slane %v6585_v19, 5  ;;  %v6589_v45 = vshrl.u32 %v6444_v0, 16  ;;  %v5174_v35 = vrot.slane %v5172_v59, 7  ;;  %v5360_v0 = vld [vmem:[#allocation3 + $0xbc] sm:$0x1] }
 0x351   : > { %v5197_v48 = vshrl.u32 %v10711_v47, 16  ;;  %v5200_v5 = vshll.u32 %v10711_v47, 16  ;;  %6231 = vrot.lane.b32.xlu0 %v6143_v27, %s11164_s7  ;;  %v10709_v60 = vpack.c.bf16 %v4834_v39, %v4834_v39  ;;  %v5194_v50 = vor.u32 %v5192_v32, %v5191_v7  ;;  %v13644_v52 = vpop.permute.xlu1 %6209  ;;  %v6448_v19 = vld [vmem:[#allocation3 + $0x50] sm:$0x1]  ;;  %v7004_v33 = vld [vmem:[#allocation3 + $0x40] sm:$0xf] }
 0x352   : > { %v5195_v15 = vrot.slane %v5191_v7, 4  ;;  %v6583_v53 = vrot.slane %v6582_v2, 4  ;;  %v6591_v25 = vrot.slane %v6589_v45, 4  ;;  %v5177_v49 = vor.u32 %v5175_v12, %v5174_v35  ;;  %v5458_v7 = vld [vmem:[#allocation3 + $0x60] sm:$0xf] }
 0x353   : > { %v5178_v42 = vrot.slane %v5174_v35, 4  ;;  %v5199_v40 = vrot.slane %v5197_v48, 7  ;;  %v5180_v18 = vshrl.u32 %v10709_v60, 16  ;;  %v5364_v41 = vsel %vm13161_vm7, %v5194_v50, %v5363_v56  ;;  %v5459_v35 = vld [vmem:[#allocation3 + $0x64] sm:$0xf] }
 0x354   : > { %v5183_v38 = vshll.u32 %v10709_v60, 16  ;;  %6233 = vrot.lane.b32.xlu1 %v6146_v37, %s11164_s7  ;;  %v6588_v1 = vsel %vm11339_vm10, %v6583_v53, %v6587_v3  ;;  %v6592_v58 = vor.u32 %v6591_v25, %v6587_v3  ;;  %5365 = vst [vmem:[#allocation3 + $0xc0] sm:$0xf] %v5364_v41  ;;  %v5357_v8 = vsel %vm13161_vm7, %v5177_v49, %v5356_v6  ;;  %v7007_v48 = vld [vmem:[#allocation3 + $0x4c] sm:$0xf] }
 0x355   : > { %v5202_v36 = vor.u32 %v5200_v5, %v5199_v40  ;;  %v5204_v34 = vrot.slane %v5199_v40, 4  ;;  %v5182_v27 = vrot.slane %v5180_v18, 7  ;;  %6879 = vrot.lane.b32.xlu0 %v6588_v1, %s11162_s24  ;;  %5358 = vst [vmem:[#allocation3 + $0xb4] sm:$0xf] %v5357_v8  ;;  %v6595_v22 = vshll.u32 %v6445_v57, 16 }
 0x356   : > { %v6593_v17 = vrot.slane %v6592_v58, 4  ;;  %v6600_v55 = vshrl.u32 %v6446_v62, 16  ;;  %v6603_v44 = vshll.u32 %v6446_v62, 16  ;;  %v6609_v43 = vshll.u32 %v6447_v28, 16  ;;  %v5461_v53 = vld [vmem:[#allocation3 + $0x6c] sm:$0xf] }
 0x357   : > { %v5203_v14 = vsel %vm11347_vm11, %v5195_v15, %v5202_v36  ;;  %v5368_v63 = vsel %vm13181_vm8, %v5204_v34, %v5367_v51  ;;  %v5185_v37 = vor.u32 %v5183_v38, %v5182_v27  ;;  %v5187_v13 = vrot.slane %v5182_v27, 4  ;;  %v7005_v40 = vld [vmem:[#allocation3 + $0x44] sm:$0x1]  ;;  %v7006_v1 = vld [vmem:[#allocation3 + $0x48] sm:$0xe] }
 0x358   : > { %5366 = vst.msk [vmem:[#allocation3 + $0xc4] sm:$0xf] %vm282_vm3, %v5203_v14  ;;  %5369 = vst [vmem:[#allocation3 + $0xc8] sm:$0x1] %v5368_v63  ;;  %v6597_v31 = vrot.slane %v6595_v22, 5  ;;  %v6602_v61 = vrot.slane %v6600_v55, 4  ;;  %v5875_v59 = vpop.permute.xlu0 %5874 }
 0x359   : > { %v6605_v24 = vrot.slane %v6603_v44, 5  ;;  %v5186_v30 = vsel %vm11347_vm11, %v5178_v42, %v5185_v37  ;;  %v5361_v32 = vsel %vm13181_vm8, %v5187_v13, %v5360_v0  ;;  %v6613_v21 = vshrl.u32 %v6447_v28, 16  ;;  %5967 = vst.msk [vmem:[#allocation5 + $0x10] sm:$0xf] %vm5962_vm0, %v5875_v59  ;;  %v13662_v2 = vpop.permute.xlu1 %7201  ;;  %v5462_v42 = vld [vmem:[#allocation3 + $0x70] sm:$0xf] }
 0x35a   : > { %5359 = vst.msk [vmem:[#allocation3 + $0xb8] sm:$0xf] %vm282_vm3, %v5186_v30  ;;  %5362 = vst [vmem:[#allocation3 + $0xbc] sm:$0x1] %v5361_v32  ;;  %v6598_v12 = vsel %vm11339_vm10, %v6593_v17, %v6597_v31  ;;  %v6611_v39 = vrot.slane %v6609_v43, 5  ;;  %v6619_v56 = vshll.u32 %v6448_v19, 16 }
 0x35b   : > { %v6606_v47 = vor.u32 %v6605_v24, %v6602_v61  ;;  %6881 = vrot.lane.b32.xlu1 %v6598_v12, %s11162_s24  ;;  %v6615_v10 = vrot.slane %v6613_v21, 4  ;;  %6304 = vst.msk [vmem:[#allocation5 + $0x10] sm:$0xf] %vm6299_vm6, %v13604_v20  ;;  %v7117_v45 = vrot.slane %v7004_v33, 5  ;;  %v5675_v5 = vshrl.u32 %v5458_v7, 16 }
 0x35c   : > { %v10504_v50 = vrot.slane %v7003_v29, 9  ;;  %v5678_v15 = vshll.u32 %v5458_v7, 16  ;;  %v6621_v62 = vrot.slane %v6619_v56, 5  ;;  %v5684_v20 = vshll.u32 %v5459_v35, 16  ;;  %v7008_v13 = vld [vmem:[#allocation3 + $0x50] sm:$0x1] }
 0x35d   : > { %v6607_v3 = vrot.slane %v6606_v47, 4  ;;  %v6616_v6 = vor.u32 %v6615_v10, %v6611_v39  ;;  %v5677_v49 = vrot.slane %v5675_v5, 4  ;;  %v7119_v18 = vrot.slane %v7117_v45, 4  ;;  %v5460_v61 = vld [vmem:[#allocation3 + $0x68] sm:$0x1] }
 0x35e   : > { %v7124_v57 = vrot.slane %v7007_v48, 5  ;;  %v5680_v41 = vrot.slane %v5678_v15, 5  ;;  %v5688_v51 = vshrl.u32 %v5459_v35, 16  ;;  %v5686_v58 = vrot.slane %v5684_v20, 5  ;;  %v6449_v12 = vld [vmem:[#allocation3 + $0x54] sm:$0xf] }
 0x35f   : > { %v6612_v60 = vsel %vm11339_vm10, %v6607_v3, %v6611_v39  ;;  %v6617_v25 = vrot.slane %v6616_v6, 4  ;;  %v5699_v8 = vshrl.u32 %v5461_v53, 16  ;;  %v5702_v36 = vshll.u32 %v5461_v53, 16  ;;  %v5463_v39 = vld [vmem:[#allocation3 + $0x74] sm:$0x1] }
 0x360   : > { %6883 = vrot.lane.b32.xlu0 %v6612_v60, %s11162_s24  ;;  %v7118_v27 = vsel %vm11326_vm9, %v10504_v50, %v7117_v45  ;;  %v5681_v28 = vor.u32 %v5680_v41, %v5677_v49  ;;  %v5690_v0 = vrot.slane %v5688_v51, 4  ;;  %v5708_v17 = vshll.u32 %v5462_v42, 16  ;;  %v6020_v7 = vld [vmem:[#allocation3 + $0x64] sm:$0xf]  ;;  %v6450_v10 = vld [vmem:[#allocation3 + $0x58] sm:$0xf] }
 0x361   : > { %v6622_v38 = vsel %vm11339_vm10, %v6617_v25, %v6621_v62  ;;  %v5877_v34 = vpop.permute.xlu1 %5876  ;;  %v7120_v55 = vrot.slane %v7005_v40, 5  ;;  %v5701_v44 = vrot.slane %v5699_v8, 4  ;;  %v5704_v14 = vrot.slane %v5702_v36, 5  ;;  %v6452_v56 = vld [vmem:[#allocation3 + $0x60] sm:$0xf] }
 0x362   : > { %6885 = vrot.lane.b32.xlu1 %v6622_v38, %s11162_s24  ;;  %v13672_v22 = vpop.permute.xlu0 %6867  ;;  %5968 = vst.msk [vmem:[#allocation5 + $0x14] sm:$0xf] %vm5962_vm0, %v5877_v34  ;;  %v5712_v63 = vshrl.u32 %v5462_v42, 16  ;;  %v10505_v37 = vrot.slane %v7006_v1, 9  ;;  %v7126_v31 = vrot.slane %v7124_v57, 4  ;;  %v5691_v43 = vor.u32 %v5690_v0, %v5686_v58 }
 0x363   : > { %6305 = vst.msk [vmem:[#allocation5 + $0x14] sm:$0xf] %vm6299_vm6, %v13615_v16  ;;  %v7121_v24 = vsel %vm11326_vm9, %v7119_v18, %v7120_v55  ;;  %v5710_v19 = vrot.slane %v5708_v17, 5  ;;  %v5682_v21 = vrot.slane %v5681_v28, 4  ;;  %v5705_v33 = vor.u32 %v5704_v14, %v5701_v44  ;;  %v6372_v35 = vld [vmem:[#allocation3 + $0x28] sm:$0xf] }
 0x364   : > { %7215 = vrot.lane.b32.xlu0 %v7118_v27, %s11164_s7  ;;  %v5714_v30 = vrot.slane %v5712_v63, 4  ;;  %v7125_v32 = vsel %vm11326_vm9, %v10505_v37, %v7124_v57  ;;  %v7127_v16 = vrot.slane %v7008_v13, 5  ;;  %v5694_v59 = vshll.u32 %v5460_v61, 16  ;;  %v6371_v6 = vld [vmem:[#allocation3 + $0x24] sm:$0xf] }
 0x365   : > { %v5692_v3 = vrot.slane %v5691_v43, 4  ;;  %v5687_v48 = vsel %vm11339_vm10, %v5682_v21, %v5686_v58  ;;  %v5706_v5 = vrot.slane %v5705_v33, 4  ;;  %v6624_v60 = vshrl.u32 %v6449_v12, 16  ;;  %v6019_v49 = vld [vmem:[#allocation3 + $0x60] sm:$0xe] }
 0x366   : > { %7217 = vrot.lane.b32.xlu1 %v7121_v24, %s11164_s7  ;;  %v13684_v47 = vpop.permute.xlu0 %7199  ;;  %v7128_v29 = vsel %vm11326_vm9, %v7126_v31, %v7127_v16  ;;  %v5715_v45 = vor.u32 %v5714_v30, %v5710_v19  ;;  %v6627_v50 = vshll.u32 %v6449_v12, 16  ;;  %v5696_v53 = vrot.slane %v5694_v59, 5  ;;  %v6453_v41 = vld [vmem:[#allocation3 + $0x64] sm:$0xf]  ;;  %v6023_v8 = vld [vmem:[#allocation3 + $0x70] sm:$0xf] }
 0x367   : > { %v5718_v25 = vshll.u32 %v5463_v39, 16  ;;  %v6149_v62 = vrot.slane %v6020_v7, 5  ;;  %v6633_v20 = vshll.u32 %v6450_v10, 16  ;;  %v6637_v42 = vshrl.u32 %v6450_v10, 16  ;;  %v13700_v38 = vpop.permute.xlu1 %6869  ;;  %v6021_v0 = vld [vmem:[#allocation3 + $0x68] sm:$0x1] }
 0x368   : > { %7219 = vrot.lane.b32.xlu0 %v7125_v32, %s11164_s7  ;;  %v10553_v40 = vcombine.low %v13214_v26, %v13242_v46  ;;  %v5697_v18 = vsel %vm11339_vm10, %v5692_v3, %v5696_v53  ;;  %v5716_v57 = vrot.slane %v5715_v45, 4  ;;  %v6648_v51 = vshrl.u32 %v6452_v56, 16  ;;  %v6022_v37 = vld [vmem:[#allocation3 + $0x6c] sm:$0xe]  ;;  %v6024_v21 = vld [vmem:[#allocation3 + $0x74] sm:$0x1] }
 0x369   : > { %v5711_v58 = vsel %vm11339_vm10, %v5706_v5, %v5710_v19  ;;  %v6626_v36 = vrot.slane %v6624_v60, 4  ;;  %v6629_v34 = vrot.slane %v6627_v50, 5  ;;  %v6651_v26 = vshll.u32 %v6452_v56, 16  ;;  %v6451_v19 = vld [vmem:[#allocation3 + $0x5c] sm:$0x1] }
 0x36a   : > { %7221 = vrot.lane.b32.xlu1 %v7128_v29, %s11164_s7  ;;  %v13691_v15 = vld [vmem:[#allocation5 + $0x10] sm:$0xff]   ;;  %10976 = vmatprep.mubr.msk.bf16.mxu0 %vm7452_vm5, %v10553_v40  ;;  %v5720_v46 = vrot.slane %v5718_v25, 5  ;;  %v10492_v27 = vrot.slane %v6019_v49, 9  ;;  %v6151_v28 = vrot.slane %v6149_v62, 4  ;;  %v6635_v17 = vrot.slane %v6633_v20, 5 }
 0x36b   : > { %6404 = vst.msk [vmem:[#allocation5 + $0x14] sm:$0xf] %vm282_vm3, %v6372_v35  ;;  %6403 = vst.msk [vmem:[#allocation5 + $0x10] sm:$0xf] %vm282_vm3, %v6371_v6  ;;  %v6639_v55 = vrot.slane %v6637_v42, 4  ;;  %v6657_v44 = vshll.u32 %v6453_v41, 16  ;;  %v6630_v43 = vor.u32 %v6629_v34, %v6626_v36 }
 0x36c   : > { %5898 = vrot.lane.b32.xlu0 %v5687_v48, %s11162_s24  ;;  %v6661_v14 = vshrl.u32 %v6453_v41, 16  ;;  %v5721_v63 = vsel %vm11339_vm10, %v5716_v57, %v5720_v46  ;;  %v6156_v13 = vrot.slane %v6023_v8, 5  ;;  %v6650_v31 = vrot.slane %v6648_v51, 4  ;;  %v6369_v10 = vld [vmem:[#allocation3 + $0x18] sm:$0xf]  ;;  %v11122_v8 = vld [vmem:[%s15920_s2] sm:$0xff]  }
 0x36d   : > { %v5871_v1 = vpop.permute.xlu0 %5870  ;;  %v6653_v61 = vrot.slane %v6651_v26, 5  ;;  %v6150_v24 = vsel %vm11326_vm9, %v10492_v27, %v6149_v62  ;;  %v10493_v32 = vrot.slane %v6022_v37, 9  ;;  %v6640_v33 = vor.u32 %v6639_v55, %v6635_v17  ;;  %v6454_v45 = vld [vmem:[#allocation3 + $0x68] sm:$0x1]  ;;  %v13729_v5 = vld [vmem:[#allocation3 + $0x58] sm:$0xf] }
 0x36e   : > { %5900 = vrot.lane.b32.xlu1 %v5697_v18, %s11162_s24  ;;  %5965 = vst.msk [vmem:[#allocation5 + $0x8] sm:$0xf] %vm5962_vm0, %v5871_v1  ;;  %v13716_v16 = vrot.slane %v6657_v44, 5  ;;  %v6663_v59 = vrot.slane %v6661_v14, 4  ;;  %v6158_v39 = vrot.slane %v6156_v13, 4  ;;  %v6631_v29 = vrot.slane %v6630_v43, 4 }
 0x36f   : > { %6302 = vst.msk [vmem:[#allocation5 + $0x8] sm:$0xf] %vm6299_vm6, %v13634_v54  ;;  %v6152_v54 = vrot.slane %v6021_v0, 5  ;;  %v6654_v7 = vor.u32 %v6653_v61, %v6650_v31  ;;  %v6157_v56 = vsel %vm11326_vm9, %v10493_v32, %v6156_v13  ;;  %v6643_v3 = vshll.u32 %v6451_v19, 16  ;;  %v5464_v60 = vld [vmem:[#allocation3 + $0x78] sm:$0xf] }
 0x370   : > { %5902 = vrot.lane.b32.xlu0 %v5711_v58, %s11162_s24  ;;  %v6159_v48 = vrot.slane %v6024_v21, 5  ;;  %v6641_v50 = vrot.slane %v6640_v33, 4  ;;  %v6664_v53 = vor.u32 %v6663_v59, %v13716_v16  ;;  %v11121_v25 = vld [vmem:[%s15920_s2 + $0x8] ss:$0 sps:$4 sm:$0xff]   ;;  %v13745_v62 = vld [vmem:[%s15920_s2 + $0x14] ss:$0 sps:$4 sm:$0xff]  }
 0x371   : > { %v6153_v12 = vsel %vm11326_vm9, %v6151_v28, %v6152_v54  ;;  %v6655_v20 = vrot.slane %v6654_v7, 4  ;;  %v7009_v42 = vld [vmem:[#allocation3 + $0x54] sm:$0xe]  ;;  %v13756_v40 = vld [vmem:[#allocation3 + $0x64] sm:$0xf]  ;;  %v5723_v57 = vshrl.u32 %v5464_v60, 16 }
 0x372   : > { %5904 = vrot.lane.b32.xlu1 %v5721_v63, %s11162_s24  ;;  %v6160_v49 = vsel %vm11326_vm9, %v6158_v39, %v6159_v48  ;;  %v5465_v18 = vld [vmem:[#allocation3 + $0x7c] sm:$0xf]  ;;  %v5726_v41 = vshll.u32 %v5464_v60, 16  ;;  %v7131_v58 = vrot.slane %v13729_v5, 5  ;;  %vm7501_vm11 = vcmask 1043456   ;;  %v11126_v39 = vld [vmem:[%s15920_s2 + $0xc] sm:$0xff]  }
 0x373   : > { %v5873_v30 = vpop.permute.xlu1 %5872  ;;  %v6370_v51 = vld [vmem:[#allocation3 + $0x1c] sm:$0xf]  ;;  %v6665_v26 = vrot.slane %v6664_v53, 4  ;;  %v10506_v46 = vrot.slane %v7009_v42, 9  ;;  %v5468_v28 = vld [vmem:[#allocation3 + $0x88] sm:$0xf]  ;;  %11085 = vmatprep.subr.msk.bf16.mxu0 %vm7501_vm11, %v11121_v25  ;;  %11084 = vmatprep.subr.msk.bf16.mxu1 %vm7501_vm11, %v13745_v62  ;;  %v6660_v0 = vsel %vm11339_vm10, %v6655_v20, %v13716_v16 }
 0x374   : > { %6235 = vrot.lane.b32.xlu0 %v6150_v24, %s11164_s7  ;;  %5966 = vst.msk [vmem:[#allocation5 + $0xc] sm:$0xf] %vm5962_vm0, %v5873_v30  ;;  %v5736_v55 = vshrl.u32 %v5465_v18, 16  ;;  %v7804_v44 = vsel %vm7501_vm11, %v11121_v25, 0  ;;  %v7011_v14 = vld [vmem:[#allocation3 + $0x5c] sm:$0x1] }
 0x375   : > { %6303 = vst.msk [vmem:[#allocation5 + $0xc] sm:$0xf] %vm6299_vm6, %v13644_v52  ;;  %v5725_v63 = vrot.slane %v5723_v57, 4  ;;  %v5728_v37 = vrot.slane %v5726_v41, 5  ;;  %10973 = vmatpush3.bf16.msra.mxu0 %v7804_v44  ;;  %v7133_v43 = vrot.slane %v7131_v58, 4  ;;  %v7138_v54 = vrot.slane %v13756_v40, 5 }
 0x376   : > { %6237 = vrot.lane.b32.xlu1 %v6153_v12, %s11164_s7  ;;  %v13726_v35 = vld [vmem:[#allocation5 + $0x8] sm:$0xf]  ;;  %v6864_v6 = vpop.permute.xlu0 %6863  ;;  %v5756_v19 = vshll.u32 %v5468_v28, 16  ;;  %10974 = vmatprep.subr.bf16.mxu0 %v11122_v8  ;;  %v5760_v30 = vshrl.u32 %v5468_v28, 16  ;;  %v5738_v59 = vrot.slane %v5736_v55, 4 }
 0x377   : > { %6401 = vst.msk [vmem:[#allocation5 + $0x8] sm:$0xf] %vm282_vm3, %v6369_v10  ;;  %v6866_v52 = vpop.permute.xlu1 %6865  ;;  %v7012_v33 = vld [vmem:[#allocation3 + $0x60] sm:$0xe]  ;;  %v5729_v7 = vor.u32 %v5728_v37, %v5725_v63  ;;  %v5466_v5 = vld [vmem:[#allocation3 + $0x80] sm:$0x1] }
 0x378   : > { %6239 = vrot.lane.b32.xlu0 %v6157_v56, %s11164_s7  ;;  %6959 = vst.msk [vmem:[#allocation5] sm:$0xf] %vm5962_vm0, %v6864_v6  ;;  %6961 = vst.msk [vmem:[#allocation5 + $0x8] sm:$0xf] %vm5962_vm0, %v13672_v22  ;;  %v6636_v22 = vsel %vm11339_vm10, %v6631_v29, %v6635_v17  ;;  %v5732_v17 = vshll.u32 %v5465_v18, 16  ;;  %v10507_v48 = vrot.slane %v7012_v33, 9 }
 0x379   : > { %7295 = vst.msk [vmem:[#allocation5] sm:$0xf] %vm6299_vm6, %v13684_v47  ;;  %7297 = vst.msk [vmem:[#allocation5 + $0x8] sm:$0xf] %vm6299_vm6, %v13628_v4  ;;  %v6645_v47 = vrot.slane %v6643_v3, 5  ;;  %v6667_v4 = vshll.u32 %v6454_v45, 16  ;;  %10975 = vmatpush3.bf16.msra.mxu0 %v11122_v8 }
 0x37a   : > { %6960 = vst.msk [vmem:[#allocation5 + $0x4] sm:$0xf] %vm5962_vm0, %v6866_v52  ;;  %6241 = vrot.lane.b32.xlu1 %v6160_v49, %s11164_s7  ;;  %v13758_v1 = vpop.permute.xlu0 %6219  ;;  %v13790_v16 = vrot.slane %v5732_v17, 5  ;;  %v5390_v3 = vld [vmem:[#allocation3 + $0x78] sm:$0xf]  ;;  %v7134_v45 = vrot.slane %v7011_v14, 5  ;;  %v7139_v20 = vsel %vm11326_vm9, %v10507_v48, %v7138_v54 }
 0x37b   : > { %7296 = vst.msk [vmem:[#allocation5 + $0x4] sm:$0xf] %vm6299_vm6, %v13662_v2  ;;  %v5467_v2 = vld [vmem:[#allocation3 + $0x84] sm:$0xf]  ;;  %v13765_v36 = vpop.permute.xlu1 %6221  ;;  %v6646_v34 = vsel %vm11339_vm10, %v6641_v50, %v6645_v47  ;;  %v6669_v24 = vrot.slane %v6667_v4, 5  ;;  %v13805_v60 = vrot.slane %v5756_v19, 5 }
 0x37c   : > { %6887 = vrot.lane.b32.xlu0 %v6636_v22, %s11162_s24  ;;  %v6335_v27 = vld [vmem:[#allocation5 + $0xc] sm:$0xf]  ;;  %v5747_v13 = vshrl.u32 %v5467_v2, 16  ;;  %v5750_v31 = vshll.u32 %v5467_v2, 16  ;;  %v7014_v6 = vld [vmem:[#allocation3 + $0x68] sm:$0x1]  ;;  %v7135_v50 = vsel %vm11326_vm9, %v7133_v43, %v7134_v45  ;;  %v5739_v25 = vor.u32 %v5738_v59, %v13790_v16 }
 0x37d   : > { %6402 = vst.msk [vmem:[#allocation5 + $0xc] sm:$0xf] %vm282_vm3, %v6370_v51  ;;  %v6670_v21 = vsel %vm11339_vm10, %v6665_v26, %v6669_v24  ;;  %v10554_v12 = vcombine.low %v13726_v35, %v6335_v27  ;;  %v7503_v35 = vsel %vm7501_vm11, %v13745_v62, 0  ;;  %5422 = vst.msk [vmem:[#allocation5 + $0x50] sm:$0xf] %vm282_vm3, %v5390_v3  ;;  %v5762_v52 = vrot.slane %v5760_v30, 4 }
 0x37e   : > { %6889 = vrot.lane.b32.xlu1 %v6646_v34, %s11162_s24  ;;  %6962 = vst.msk [vmem:[#allocation5 + $0xc] sm:$0xf] %vm5962_vm0, %v13700_v38  ;;  %v13780_v61 = vpop.permute.xlu0 %6215  ;;  %v5749_v10 = vrot.slane %v5747_v13, 4  ;;  %v5752_v56 = vrot.slane %v5750_v31, 5  ;;  %10937 = vmatpush3.bf16.msra.mxu1 %v7503_v35  ;;  %v7140_v53 = vrot.slane %v7138_v54, 4  ;;  %v5730_v42 = vrot.slane %v5729_v7, 4 }
 0x37f   : > { %7298 = vst.msk [vmem:[#allocation5 + $0xc] sm:$0xf] %vm6299_vm6, %v13630_v11  ;;  %v13786_v32 = vpop.permute.xlu1 %6217  ;;  %v7132_v11 = vsel %vm11326_vm9, %v10506_v46, %v7131_v58  ;;  %10977 = vmatmul.mubr.msk.bf16.vlgmr.msra.gmra.mxu0 %vm7452_vm5, %v10554_v12  ;;  %v6455_v62 = vld [vmem:[#allocation3 + $0x6c] sm:$0xf]  ;;  %10938 = vmatprep.subr.bf16.mxu1 %v11126_v39  ;;  %v5391_v49 = vld [vmem:[#allocation3 + $0x7c] sm:$0xf] }
 0x380   : > { %6891 = vrot.lane.b32.xlu0 %v6660_v0, %s11162_s24  ;;  %v5753_v22 = vor.u32 %v5752_v56, %v5749_v10  ;;  %v5469_v47 = vld [vmem:[#allocation3 + $0x8c] sm:$0x1]  ;;  %10980 = vmatprep.mubr.msk.bf16.mxu0 %vm7452_vm5, %v13691_v15  ;;  %5423 = vst.msk [vmem:[#allocation5 + $0x54] sm:$0xf] %vm282_vm3, %v5391_v49  ;;  %v7141_v18 = vrot.slane %v7014_v6, 5  ;;  %v5742_v57 = vshll.u32 %v5466_v5, 16  ;;  %v5735_v26 = vsel %vm11339_vm10, %v5730_v42, %v13790_v16 }
 0x381   : > { %v5392_v51 = vld [vmem:[#allocation3 + $0x84] sm:$0xf]  ;;  %v6026_v4 = vld [vmem:[#allocation3 + $0x7c] sm:$0xf]  ;;  %v5393_v15 = vld [vmem:[#allocation3 + $0x88] sm:$0xf] }
 0x382   : > { %v11125_v38 = vld [vmem:[#allocation5] sm:$0xff]   ;;  %6893 = vrot.lane.b32.xlu1 %v6670_v21, %s11162_s24  ;;  %v5883_v29 = vpop.permute.xlu0 %5882  ;;  %10939 = vmatpush3.bf16.msra.mxu1 %v11126_v39  ;;  %5424 = vst.msk [vmem:[#allocation5 + $0x58] sm:$0xf] %vm282_vm3, %v5392_v51  ;;  %v7142_v58 = vsel %vm11326_vm9, %v7140_v53, %v7141_v18  ;;  %v5740_v2 = vrot.slane %v5739_v25, 4  ;;  %v5766_v8 = vshll.u32 %v5469_v47, 16  ;;  %v5754_v46 = vrot.slane %v5753_v22, 4 }
 0x383   : > { %5971 = vst.msk [vmem:[#allocation5 + $0x20] sm:$0xf] %vm5962_vm0, %v5883_v29  ;;  %10940 = vmatprep.mubr.msk.bf16.mxu1 %vm7452_vm5, %v11125_v38  ;;  %v6456_v34 = vld [vmem:[#allocation3 + $0x70] sm:$0xf]  ;;  %v6675_v27 = vshll.u32 %v6455_v62, 16  ;;  %v5744_v0 = vrot.slane %v5742_v57, 5 }
 0x384   : > { %7223 = vrot.lane.b32.xlu0 %v7132_v11, %s11164_s7  ;;  %6308 = vst.msk [vmem:[#allocation5 + $0x20] sm:$0xf] %vm6299_vm6, %v13758_v1  ;;  %v5763_v1 = vor.u32 %v5762_v52, %v13805_v60  ;;  %v6458_v28 = vld [vmem:[#allocation3 + $0x78] sm:$0xf]  ;;  %v6163_v17 = vrot.slane %v6026_v4, 5  ;;  %v6681_v63 = vshll.u32 %v6456_v34, 16  ;;  %v5759_v19 = vsel %vm11339_vm10, %v5754_v46, %v13805_v60 }
 0x385   : > { %v5885_v40 = vpop.permute.xlu1 %5884  ;;  %5425 = vst.msk [vmem:[#allocation5 + $0x5c] sm:$0xf] %vm282_vm3, %v5393_v15  ;;  %v6025_v14 = vld [vmem:[#allocation3 + $0x78] sm:$0xe]  ;;  %v6685_v37 = vshrl.u32 %v6456_v34, 16  ;;  %v5745_v13 = vsel %vm11339_vm10, %v5740_v2, %v5744_v0  ;;  %v6696_v43 = vshrl.u32 %v6458_v28, 16 }
 0x386   : > { %7225 = vrot.lane.b32.xlu1 %v7135_v50, %s11164_s7  ;;  %5972 = vst.msk [vmem:[#allocation5 + $0x24] sm:$0xf] %vm5962_vm0, %v5885_v40  ;;  %v11127_v41 = vld [vmem:[#allocation5 + $0x8] sm:$0xff]   ;;  %v5764_v44 = vrot.slane %v5763_v1, 4  ;;  %v6029_v24 = vld [vmem:[#allocation3 + $0x88] sm:$0xf] }
 0x387   : > { %6309 = vst.msk [vmem:[#allocation5 + $0x24] sm:$0xf] %vm6299_vm6, %v13765_v36  ;;  %v6672_v36 = vshrl.u32 %v6455_v62, 16  ;;  %10941 = vmatmul.mubr.msk.bf16.vlgmr.msra.gmra.mxu1 %vm7452_vm5, %v11127_v41  ;;  %v6027_v31 = vld [vmem:[#allocation3 + $0x80] sm:$0x1]  ;;  %v6699_v54 = vshll.u32 %v6458_v28, 16 }
 0x388   : > { %7227 = vrot.lane.b32.xlu0 %v7139_v20, %s11164_s7  ;;  %v5768_v30 = vrot.slane %v5766_v8, 5  ;;  %v6677_v21 = vrot.slane %v6675_v27, 5  ;;  %v6459_v33 = vld [vmem:[#allocation3 + $0x7c] sm:$0xf]  ;;  %v10494_v59 = vrot.slane %v6025_v14, 9  ;;  %v6165_v12 = vrot.slane %v6163_v17, 4 }
 0x389   : > { %v6674_v38 = vrot.slane %v6672_v36, 4  ;;  %v6375_v11 = vld [vmem:[#allocation3 + $0x3c] sm:$0xf]  ;;  %v6170_v7 = vrot.slane %v6029_v24, 5  ;;  %v6683_v10 = vrot.slane %v6681_v63, 5  ;;  %v6687_v56 = vrot.slane %v6685_v37, 4 }
 0x38a   : > { %7229 = vrot.lane.b32.xlu1 %v7142_v58, %s11164_s7  ;;  %v6376_v3 = vld [vmem:[#allocation3 + $0x40] sm:$0xf]  ;;  %v6028_v45 = vld [vmem:[#allocation3 + $0x84] sm:$0xe]  ;;  %v6698_v6 = vrot.slane %v6696_v43, 4  ;;  %v6701_v35 = vrot.slane %v6699_v54, 5  ;;  %v6164_v60 = vsel %vm11326_vm9, %v10494_v59, %v6163_v17 }
 0x38b   : > { %v5879_v55 = vpop.permute.xlu0 %5878  ;;  %v6705_v48 = vshll.u32 %v6459_v33, 16  ;;  %v6709_v5 = vshrl.u32 %v6459_v33, 16  ;;  %v6166_v52 = vrot.slane %v6027_v31, 5  ;;  %v6678_v50 = vor.u32 %v6677_v21, %v6674_v38  ;;  %v6030_v49 = vld [vmem:[#allocation3 + $0x8c] sm:$0x1] }
 0x38c   : > { %5906 = vrot.lane.b32.xlu0 %v5735_v26, %s11162_s24  ;;  %5969 = vst.msk [vmem:[#allocation5 + $0x18] sm:$0xf] %vm5962_vm0, %v5879_v55  ;;  %v10495_v62 = vrot.slane %v6028_v45, 9  ;;  %v6688_v20 = vor.u32 %v6687_v56, %v6683_v10  ;;  %v6172_v42 = vrot.slane %v6170_v7, 4  ;;  %v6702_v22 = vor.u32 %v6701_v35, %v6698_v6  ;;  %v6373_v1 = vld [vmem:[#allocation3 + $0x30] sm:$0xf] }
 0x38d   : > { %6306 = vst.msk [vmem:[#allocation5 + $0x18] sm:$0xf] %vm6299_vm6, %v13780_v61  ;;  %v5769_v61 = vsel %vm11339_vm10, %v5764_v44, %v5768_v30  ;;  %v6167_v25 = vsel %vm11326_vm9, %v6165_v12, %v6166_v52  ;;  %v6707_v47 = vrot.slane %v6705_v48, 5  ;;  %v6711_v40 = vrot.slane %v6709_v5, 4  ;;  %v6374_v4 = vld [vmem:[#allocation3 + $0x34] sm:$0xf] }
 0x38e   : > { %5908 = vrot.lane.b32.xlu1 %v5745_v13, %s11162_s24  ;;  %v5881_v16 = vpop.permute.xlu1 %5880  ;;  %v11129_v29 = vld [vmem:[#allocation5 + $0x20] sm:$0xff]   ;;  %v6171_v57 = vsel %vm11326_vm9, %v10495_v62, %v6170_v7  ;;  %v6679_v41 = vrot.slane %v6678_v50, 4  ;;  %v6173_v15 = vrot.slane %v6030_v49, 5  ;;  %v5470_v58 = vld [vmem:[#allocation3 + $0x90] sm:$0xf]  ;;  %v6689_v8 = vrot.slane %v6688_v20, 4 }
 0x38f   : > { %5970 = vst.msk [vmem:[#allocation5 + $0x1c] sm:$0xf] %vm5962_vm0, %v5881_v16  ;;  %v6224_v39 = vpop.permute.xlu0 %6223  ;;  %v6460_v34 = vld [vmem:[#allocation3 + $0x80] sm:$0x1]  ;;  %v6703_v46 = vrot.slane %v6702_v22, 4  ;;  %v6712_v36 = vor.u32 %v6711_v40, %v6707_v47  ;;  %v5771_v14 = vshrl.u32 %v5470_v58, 16 }
 0x390   : > { %5910 = vrot.lane.b32.xlu0 %v5759_v19, %s11162_s24  ;;  %6307 = vst.msk [vmem:[#allocation5 + $0x1c] sm:$0xf] %vm6299_vm6, %v13786_v32  ;;  %v6457_v32 = vld [vmem:[#allocation3 + $0x74] sm:$0x1]  ;;  %v6174_v26 = vsel %vm11326_vm9, %v6172_v42, %v6173_v15  ;;  %v7016_v27 = vld [vmem:[#allocation3 + $0x70] sm:$0xf]  ;;  %v6684_v17 = vsel %vm11339_vm10, %v6679_v41, %v6683_v10 }
 0x391   : > { %6407 = vst.msk [vmem:[#allocation5 + $0x20] sm:$0xf] %vm282_vm3, %v6375_v11  ;;  %6408 = vst.msk [vmem:[#allocation5 + $0x24] sm:$0xf] %vm282_vm3, %v6376_v3  ;;  %v6691_v51 = vshll.u32 %v6457_v32, 16  ;;  %v5774_v63 = vshll.u32 %v5470_v58, 16  ;;  %v6708_v30 = vsel %vm11339_vm10, %v6703_v46, %v6707_v47 }
 0x392   : > { %5912 = vrot.lane.b32.xlu1 %v5769_v61, %s11162_s24  ;;  %v6874_v53 = vpop.permute.xlu1 %6873  ;;  %v5394_v0 = vld [vmem:[#allocation3 + $0x90] sm:$0xf]  ;;  %v5471_v44 = vld [vmem:[#allocation3 + $0x94] sm:$0xf]  ;;  %v6715_v37 = vshll.u32 %v6460_v34, 16  ;;  %v7145_v43 = vrot.slane %v7016_v27, 5 }
 0x393   : > { %6964 = vst.msk [vmem:[#allocation5 + $0x14] sm:$0xf] %vm5962_vm0, %v6874_v53  ;;  %v6693_v55 = vrot.slane %v6691_v51, 5  ;;  %v7015_v13 = vld [vmem:[#allocation3 + $0x6c] sm:$0xe]  ;;  %v6713_v38 = vrot.slane %v6712_v36, 4 }
 0x394   : > { %6243 = vrot.lane.b32.xlu0 %v6164_v60, %s11164_s7  ;;  %5426 = vst.msk [vmem:[#allocation5 + $0x60] sm:$0xf] %vm282_vm3, %v5394_v0  ;;  %v5473_v31 = vld [vmem:[#allocation3 + $0x9c] sm:$0xf]  ;;  %v5474_v19 = vld [vmem:[#allocation3 + $0xa0] sm:$0xf] }
 0x395   : > { %v5887_v18 = vpop.permute.xlu0 %5886  ;;  %v6694_v24 = vsel %vm11339_vm10, %v6689_v8, %v6693_v55  ;;  %v7019_v54 = vld [vmem:[#allocation3 + $0x7c] sm:$0xf]  ;;  %v5780_v21 = vshll.u32 %v5471_v44, 16  ;;  %v5784_v33 = vshrl.u32 %v5471_v44, 16  ;;  %v5395_v16 = vld [vmem:[#allocation3 + $0x94] sm:$0xf] }
 0x396   : > { %6245 = vrot.lane.b32.xlu1 %v6167_v25, %s11164_s7  ;;  %5973 = vst.msk [vmem:[#allocation5 + $0x28] sm:$0xf] %vm5962_vm0, %v5887_v18  ;;  %v6226_v28 = vpop.permute.xlu1 %6225  ;;  %v5773_v59 = vrot.slane %v5771_v14, 4  ;;  %v5776_v12 = vrot.slane %v5774_v63, 5  ;;  %v5798_v11 = vshll.u32 %v5473_v31, 16  ;;  %v6717_v61 = vrot.slane %v6715_v37, 5 }
 0x397   : > { %6310 = vst.msk [vmem:[#allocation5 + $0x28] sm:$0xf] %vm6299_vm6, %v6224_v39  ;;  %v11128_v2 = vld [vmem:[#allocation5 + $0x18] sm:$0xff]   ;;  %v5795_v39 = vshrl.u32 %v5473_v31, 16  ;;  %v10508_v10 = vrot.slane %v7015_v13, 9  ;;  %v5804_v3 = vshll.u32 %v5474_v19, 16 }
 0x398   : > { %6247 = vrot.lane.b32.xlu0 %v6171_v57, %s11164_s7  ;;  %6405 = vst.msk [vmem:[#allocation5 + $0x18] sm:$0xf] %vm282_vm3, %v6373_v1  ;;  %6406 = vst.msk [vmem:[#allocation5 + $0x1c] sm:$0xf] %vm282_vm3, %v6374_v4  ;;  %10981 = vmatmul.mubr.msk.bf16.gmra.mxu0 %vm7452_vm5, %v11128_v2  ;;  %v7017_v56 = vld [vmem:[#allocation3 + $0x74] sm:$0x1]  ;;  %v6718_v6 = vsel %vm11339_vm10, %v6713_v38, %v6717_v61  ;;  %v5777_v53 = vor.u32 %v5776_v12, %v5773_v59 }
 0x399   : > { %10984 = vmatprep.mubr.msk.bf16.mxu0 %vm7452_vm5, %v11129_v29  ;;  %5427 = vst.msk [vmem:[#allocation5 + $0x64] sm:$0xf] %vm282_vm3, %v5395_v16  ;;  %v7147_v29 = vrot.slane %v7145_v43, 4  ;;  %v5808_v45 = vshrl.u32 %v5474_v19, 16  ;;  %v7018_v35 = vld [vmem:[#allocation3 + $0x78] sm:$0xe]  ;;  %v7146_v50 = vsel %vm11326_vm9, %v10508_v10, %v7145_v43 }
 0x39a   : > { %6249 = vrot.lane.b32.xlu1 %v6174_v26, %s11164_s7  ;;  %v7152_v48 = vrot.slane %v7019_v54, 5  ;;  %v5782_v5 = vrot.slane %v5780_v21, 5  ;;  %v5786_v52 = vrot.slane %v5784_v33, 4  ;;  %v5797_v32 = vrot.slane %v5795_v39, 4  ;;  %v7020_v49 = vld [vmem:[#allocation3 + $0x80] sm:$0x1] }
 0x39b   : > { %v5800_v25 = vrot.slane %v5798_v11, 5  ;;  %v7148_v62 = vrot.slane %v7017_v56, 5  ;;  %v10509_v20 = vrot.slane %v7018_v35, 9  ;;  %v5472_v42 = vld [vmem:[#allocation3 + $0x98] sm:$0x1]  ;;  %v13891_v22 = vrot.slane %v5804_v3, 5 }
 0x39c   : > { %6895 = vrot.lane.b32.xlu0 %v6684_v17, %s11162_s24  ;;  %v5810_v47 = vrot.slane %v5808_v45, 4  ;;  %v7154_v18 = vrot.slane %v7152_v48, 4  ;;  %v5787_v57 = vor.u32 %v5786_v52, %v5782_v5  ;;  %v6461_v51 = vld [vmem:[#allocation3 + $0x84] sm:$0xf]  ;;  %v5396_v1 = vld [vmem:[#allocation3 + $0x9c] sm:$0xf] }
 0x39d   : > { %v7149_v40 = vsel %vm11326_vm9, %v7147_v29, %v7148_v62  ;;  %v7153_v4 = vsel %vm11326_vm9, %v10509_v20, %v7152_v48  ;;  %v5778_v15 = vrot.slane %v5777_v53, 4  ;;  %v5801_v58 = vor.u32 %v5800_v25, %v5797_v32  ;;  %v5475_v2 = vld [vmem:[#allocation3 + $0xa4] sm:$0x1]  ;;  %5428 = vst.msk [vmem:[#allocation5 + $0x68] sm:$0xf] %vm282_vm3, %v5396_v1 }
 0x39e   : > { %6897 = vrot.lane.b32.xlu1 %v6694_v24, %s11162_s24  ;;  %v5397_v34 = vld [vmem:[#allocation3 + $0xa0] sm:$0xf]  ;;  %v7155_v26 = vrot.slane %v7020_v49, 5  ;;  %v5790_v46 = vshll.u32 %v5472_v42, 16  ;;  %v13902_v36 = vld [vmem:[#allocation3 + $0x94] sm:$0xf] }
 0x39f   : > { %v5889_v7 = vpop.permute.xlu1 %5888  ;;  %v6377_v27 = vld [vmem:[#allocation3 + $0x48] sm:$0xf]  ;;  %5429 = vst.msk [vmem:[#allocation5 + $0x6c] sm:$0xf] %vm282_vm3, %v5397_v34  ;;  %v6378_v17 = vld [vmem:[#allocation3 + $0x4c] sm:$0xf]  ;;  %v5783_v13 = vsel %vm11339_vm10, %v5778_v15, %v5782_v5 }
 0x3a0   : > { %6899 = vrot.lane.b32.xlu0 %v6708_v30, %s11162_s24  ;;  %5974 = vst.msk [vmem:[#allocation5 + $0x2c] sm:$0xf] %vm5962_vm0, %v5889_v7  ;;  %v6872_v60 = vpop.permute.xlu0 %6871  ;;  %v7156_v55 = vsel %vm11326_vm9, %v7154_v18, %v7155_v26  ;;  %v5788_v44 = vrot.slane %v5787_v57, 4  ;;  %v5814_v14 = vshll.u32 %v5475_v2, 16  ;;  %v6462_v37 = vld [vmem:[#allocation3 + $0x88] sm:$0xf] }
 0x3a1   : > { %6311 = vst.msk [vmem:[#allocation5 + $0x2c] sm:$0xf] %vm6299_vm6, %v6226_v28  ;;  %v5811_v28 = vor.u32 %v5810_v47, %v13891_v22  ;;  %v5802_v31 = vrot.slane %v5801_v58, 4  ;;  %v6720_v43 = vshrl.u32 %v6461_v51, 16  ;;  %v6723_v54 = vshll.u32 %v6461_v51, 16 }
 0x3a2   : > { %6901 = vrot.lane.b32.xlu1 %v6718_v6, %s11162_s24  ;;  %6963 = vst.msk [vmem:[#allocation5 + $0x10] sm:$0xf] %vm5962_vm0, %v6872_v60  ;;  %v6464_v19 = vld [vmem:[#allocation3 + $0x90] sm:$0xf]  ;;  %v5792_v30 = vrot.slane %v5790_v46, 5  ;;  %v6177_v21 = vrot.slane %v13902_v36, 5 }
 0x3a3   : > { %v6031_v38 = vld [vmem:[#allocation3 + $0x90] sm:$0xe]  ;;  %v5812_v33 = vrot.slane %v5811_v28, 4  ;;  %v6729_v16 = vshll.u32 %v6462_v37, 16  ;;  %v6733_v59 = vshrl.u32 %v6462_v37, 16  ;;  %v6744_v7 = vshrl.u32 %v6464_v19, 16 }
 0x3a4   : > { %7231 = vrot.lane.b32.xlu0 %v7146_v50, %s11164_s7  ;;  %v6876_v41 = vpop.permute.xlu0 %6875  ;;  %v5398_v12 = vld [vmem:[#allocation3 + $0xa8] sm:$0xf]  ;;  %v5793_v39 = vsel %vm11339_vm10, %v5788_v44, %v5792_v30  ;;  %v6035_v11 = vld [vmem:[#allocation3 + $0xa0] sm:$0xf]  ;;  %v6747_v10 = vshll.u32 %v6464_v19, 16  ;;  %v5807_v29 = vsel %vm11339_vm10, %v5802_v31, %v13891_v22  ;;  %v5816_v3 = vrot.slane %v5814_v14, 5 }
 0x3a5   : > { %6965 = vst.msk [vmem:[#allocation5 + $0x18] sm:$0xf] %vm5962_vm0, %v6876_v41  ;;  %v6878_v8 = vpop.permute.xlu1 %6877  ;;  %v5399_v56 = vld [vmem:[#allocation3 + $0xac] sm:$0xf]  ;;  %v6722_v6 = vrot.slane %v6720_v43, 4  ;;  %v6725_v35 = vrot.slane %v6723_v54, 5 }
 0x3a6   : > { %7233 = vrot.lane.b32.xlu1 %v7149_v40, %s11164_s7  ;;  %6966 = vst.msk [vmem:[#allocation5 + $0x1c] sm:$0xf] %vm5962_vm0, %v6878_v8  ;;  %v6465_v48 = vld [vmem:[#allocation3 + $0x94] sm:$0xf]  ;;  %v10496_v5 = vrot.slane %v6031_v38, 9  ;;  %v6179_v50 = vrot.slane %v6177_v21, 4  ;;  %v5817_v53 = vsel %vm11339_vm10, %v5812_v33, %v5816_v3 }
 0x3a7   : > { %5430 = vst.msk [vmem:[#allocation5 + $0x70] sm:$0xf] %vm282_vm3, %v5398_v12  ;;  %5431 = vst.msk [vmem:[#allocation5 + $0x74] sm:$0xf] %vm282_vm3, %v5399_v56  ;;  %v7972_v60 = vld [vmem:[#allocation3 + $0x30] sm:$0xf] }
 0x3a8   : > { %7235 = vrot.lane.b32.xlu0 %v7153_v4, %s11164_s7  ;;  %v11130_v0 = vld [vmem:[#allocation5 + $0x28] sm:$0xff]   ;;  %v7208_v63 = vpop.permute.xlu0 %7207  ;;  %v6033_v52 = vld [vmem:[#allocation3 + $0x98] sm:$0x1]  ;;  %v6034_v32 = vld [vmem:[#allocation3 + $0x9c] sm:$0xe]  ;;  %v6184_v25 = vrot.slane %v6035_v11, 5  ;;  %v6178_v57 = vsel %vm11326_vm9, %v10496_v5, %v6177_v21  ;;  %v6726_v4 = vor.u32 %v6725_v35, %v6722_v6 }
 0x3a9   : > { %6409 = vst.msk [vmem:[#allocation5 + $0x28] sm:$0xf] %vm282_vm3, %v6377_v27  ;;  %6410 = vst.msk [vmem:[#allocation5 + $0x2c] sm:$0xf] %vm282_vm3, %v6378_v17  ;;  %v7210_v24 = vpop.permute.xlu1 %7209  ;;  %10985 = vmatmul.mubr.msk.bf16.gmra.mxu0 %vm7452_vm5, %v11130_v0  ;;  %v6731_v62 = vrot.slane %v6729_v16, 5  ;;  %v6735_v49 = vrot.slane %v6733_v59, 4 }
 0x3aa   : > { %7237 = vrot.lane.b32.xlu1 %v7156_v55, %s11164_s7  ;;  %7299 = vst.msk [vmem:[#allocation5 + $0x10] sm:$0xf] %vm6299_vm6, %v7208_v63  ;;  %7300 = vst.msk [vmem:[#allocation5 + $0x14] sm:$0xf] %vm6299_vm6, %v7210_v24  ;;  %v6746_v22 = vrot.slane %v6744_v7, 4  ;;  %v6749_v47 = vrot.slane %v6747_v10, 5 }
 0x3ab   : > { %v6753_v40 = vshll.u32 %v6465_v48, 16  ;;  %v6757_v18 = vshrl.u32 %v6465_v48, 16  ;;  %v6180_v41 = vrot.slane %v6033_v52, 5  ;;  %v7973_v51 = vld [vmem:[#allocation3 + $0x34] sm:$0xf]  ;;  %v10497_v2 = vrot.slane %v6034_v32, 9 }
 0x3ac   : > { %5914 = vrot.lane.b32.xlu0 %v5783_v13, %s11162_s24  ;;  %v7212_v61 = vpop.permute.xlu0 %7211  ;;  %v6036_v8 = vld [vmem:[#allocation3 + $0xa4] sm:$0x1]  ;;  %v6186_v34 = vrot.slane %v6184_v25, 4  ;;  %v6463_v26 = vld [vmem:[#allocation3 + $0x8c] sm:$0x1]  ;;  %v6736_v27 = vor.u32 %v6735_v49, %v6731_v62  ;;  %v6750_v0 = vor.u32 %v6749_v47, %v6746_v22  ;;  %v6727_v37 = vrot.slane %v6726_v4, 4 }
 0x3ad   : > { %7301 = vst.msk [vmem:[#allocation5 + $0x18] sm:$0xf] %vm6299_vm6, %v7212_v61  ;;  %v7214_v45 = vpop.permute.xlu1 %7213  ;;  %v6181_v58 = vsel %vm11326_vm9, %v6179_v50, %v6180_v41  ;;  %v7974_v46 = vld [vmem:[#allocation3 + $0x3c] sm:$0xf]  ;;  %v6755_v17 = vrot.slane %v6753_v40, 5  ;;  %v6759_v55 = vrot.slane %v6757_v18, 4  ;;  %v6185_v44 = vsel %vm11326_vm9, %v10497_v2, %v6184_v25 }
 0x3ae   : > { %5916 = vrot.lane.b32.xlu1 %v5793_v39, %s11162_s24  ;;  %7302 = vst.msk [vmem:[#allocation5 + $0x1c] sm:$0xf] %vm6299_vm6, %v7214_v45  ;;  %v7975_v14 = vld [vmem:[#allocation3 + $0x40] sm:$0xf]  ;;  %v6187_v13 = vrot.slane %v6036_v8, 5  ;;  %v6739_v31 = vshll.u32 %v6463_v26, 16  ;;  %v6732_v16 = vsel %vm11339_vm10, %v6727_v37, %v6731_v62 }
 0x3af   : > { %v5476_v43 = vld [vmem:[#allocation3 + $0xa8] sm:$0xf]  ;;  %v6466_v54 = vld [vmem:[#allocation3 + $0x98] sm:$0x1]  ;;  %v5477_v19 = vld [vmem:[#allocation3 + $0xac] sm:$0xf]  ;;  %v6760_v33 = vor.u32 %v6759_v55, %v6755_v17 }
 0x3b0   : > { %5918 = vrot.lane.b32.xlu0 %v5807_v29, %s11162_s24  ;;  %v6188_v30 = vsel %vm11326_vm9, %v6186_v34, %v6187_v13  ;;  %v6737_v38 = vrot.slane %v6736_v27, 4  ;;  %v6751_v21 = vrot.slane %v6750_v0, 4  ;;  %v7022_v59 = vld [vmem:[#allocation3 + $0x88] sm:$0xf]  ;;  %v5819_v12 = vshrl.u32 %v5476_v43, 16 }
 0x3b1   : > { %v7331_v20 = vld [vmem:[#allocation5 + $0x10] sm:$0xf]  ;;  %v5891_v42 = vpop.permute.xlu0 %5890  ;;  %v7332_v1 = vld [vmem:[#allocation5 + $0x14] sm:$0xf]  ;;  %v5822_v39 = vshll.u32 %v5476_v43, 16  ;;  %v6741_v61 = vrot.slane %v6739_v31, 5 }
 0x3b2   : > { %5920 = vrot.lane.b32.xlu1 %v5817_v53, %s11162_s24  ;;  %8004 = vst.msk [vmem:[#allocation5 + $0x10] sm:$0xf] %vm282_vm3, %v7972_v60  ;;  %8005 = vst.msk [vmem:[#allocation5 + $0x14] sm:$0xf] %vm282_vm3, %v7973_v51  ;;  %v10521_v15 = vcombine.low %v7331_v20, %v7332_v1  ;;  %v5479_v11 = vld [vmem:[#allocation3 + $0xb4] sm:$0xf]  ;;  %v6756_v6 = vsel %vm11339_vm10, %v6751_v21, %v6755_v17 }
 0x3b3   : > { %5975 = vst.msk [vmem:[#allocation5 + $0x30] sm:$0xf] %vm5962_vm0, %v5891_v42  ;;  %v6763_v7 = vshll.u32 %v6466_v54, 16  ;;  %v5828_v56 = vshll.u32 %v5477_v19, 16  ;;  %v5832_v29 = vshrl.u32 %v5477_v19, 16  ;;  %v6742_v45 = vsel %vm11339_vm10, %v6737_v38, %v6741_v61 }
 0x3b4   : > { %6251 = vrot.lane.b32.xlu0 %v6178_v57, %s11164_s7  ;;  %v7333_v36 = vld [vmem:[#allocation5 + $0x18] sm:$0xf]  ;;  %10944 = vmatprep.mubr.msk.bf16.mxu1 %vm7452_vm5, %v10521_v15  ;;  %v5400_v3 = vld [vmem:[#allocation3 + $0xb4] sm:$0xf]  ;;  %v6761_v35 = vrot.slane %v6760_v33, 4  ;;  %v7159_v5 = vrot.slane %v7022_v59, 5 }
 0x3b5   : > { %v5893_v28 = vpop.permute.xlu1 %5892  ;;  %8006 = vst.msk [vmem:[#allocation5 + $0x18] sm:$0xf] %vm282_vm3, %v7974_v46  ;;  %v7334_v63 = vld [vmem:[#allocation5 + $0x1c] sm:$0xf]  ;;  %5432 = vst.msk [vmem:[#allocation5 + $0x78] sm:$0xf] %vm282_vm3, %v5400_v3 }
 0x3b6   : > { %6253 = vrot.lane.b32.xlu1 %v6181_v58, %s11164_s7  ;;  %5976 = vst.msk [vmem:[#allocation5 + $0x34] sm:$0xf] %vm5962_vm0, %v5893_v28  ;;  %v10522_v24 = vcombine.low %v7333_v36, %v7334_v63  ;;  %v7021_v48 = vld [vmem:[#allocation3 + $0x84] sm:$0xe]  ;;  %v5480_v60 = vld [vmem:[#allocation3 + $0xb8] sm:$0xf] }
 0x3b7   : > { %8007 = vst.msk [vmem:[#allocation5 + $0x1c] sm:$0xf] %vm282_vm3, %v7975_v14  ;;  %v7025_v50 = vld [vmem:[#allocation3 + $0x94] sm:$0xf]  ;;  %v5821_v53 = vrot.slane %v5819_v12, 4  ;;  %v5824_v32 = vrot.slane %v5822_v39, 5 }
 0x3b8   : > { %6255 = vrot.lane.b32.xlu0 %v6185_v44, %s11164_s7  ;;  %10945 = vmatmul.mubr.msk.bf16.gmra.mxu1 %vm7452_vm5, %v10522_v24  ;;  %v5843_v25 = vshrl.u32 %v5479_v11, 16  ;;  %v5846_v62 = vshll.u32 %v5479_v11, 16  ;;  %v6765_v49 = vrot.slane %v6763_v7, 5  ;;  %v13964_v42 = vrot.slane %v5828_v56, 5  ;;  %v5401_v47 = vld [vmem:[#allocation3 + $0xb8] sm:$0xf] }
 0x3b9   : > { %v5834_v22 = vrot.slane %v5832_v29, 4  ;;  %v10510_v40 = vrot.slane %v7021_v48, 9  ;;  %v7023_v18 = vld [vmem:[#allocation3 + $0x8c] sm:$0x1]  ;;  %v5852_v57 = vshll.u32 %v5480_v60, 16  ;;  %v5856_v41 = vshrl.u32 %v5480_v60, 16 }
 0x3ba   : > { %6257 = vrot.lane.b32.xlu1 %v6188_v30, %s11164_s7  ;;  %5433 = vst.msk [vmem:[#allocation5 + $0x7c] sm:$0xf] %vm282_vm3, %v5401_v47  ;;  %v6766_v51 = vsel %vm11339_vm10, %v6761_v35, %v6765_v49  ;;  %v7161_v1 = vrot.slane %v7159_v5, 4  ;;  %v7024_v4 = vld [vmem:[#allocation3 + $0x90] sm:$0xe]  ;;  %v7166_v15 = vrot.slane %v7025_v50, 5  ;;  %v5825_v8 = vor.u32 %v5824_v32, %v5821_v53 }
 0x3bb   : > { %v5895_v10 = vpop.permute.xlu0 %5894  ;;  %v7160_v58 = vsel %vm11326_vm9, %v10510_v40, %v7159_v5  ;;  %v5478_v34 = vld [vmem:[#allocation3 + $0xb0] sm:$0x1]  ;;  %v5845_v26 = vrot.slane %v5843_v25, 4  ;;  %v5848_v46 = vrot.slane %v5846_v62, 5  ;;  %v7162_v36 = vrot.slane %v7023_v18, 5 }
 0x3bc   : > { %6903 = vrot.lane.b32.xlu0 %v6732_v16, %s11162_s24  ;;  %5977 = vst.msk [vmem:[#allocation5 + $0x38] sm:$0xf] %vm5962_vm0, %v5895_v10  ;;  %v7026_v27 = vld [vmem:[#allocation3 + $0x98] sm:$0x1]  ;;  %v5835_v0 = vor.u32 %v5834_v22, %v13964_v42  ;;  %v10511_v17 = vrot.slane %v7024_v4, 9  ;;  %v13977_v55 = vrot.slane %v5852_v57, 5 }
 0x3bd   : > { %v5858_v44 = vrot.slane %v5856_v41, 4  ;;  %v6467_v14 = vld [vmem:[#allocation3 + $0x9c] sm:$0xf]  ;;  %v7163_v63 = vsel %vm11326_vm9, %v7161_v1, %v7162_v36  ;;  %v6379_v37 = vld [vmem:[#allocation3 + $0x54] sm:$0xf]  ;;  %v7168_v13 = vrot.slane %v7166_v15, 4  ;;  %v5849_v30 = vor.u32 %v5848_v46, %v5845_v26 }
 0x3be   : > { %6905 = vrot.lane.b32.xlu1 %v6742_v45, %s11162_s24  ;;  %v5897_v52 = vpop.permute.xlu1 %5896  ;;  %v5838_v31 = vshll.u32 %v5478_v34, 16  ;;  %v13981_v24 = vld [vmem:[#allocation3 + $0xac] sm:$0xf]  ;;  %v7167_v43 = vsel %vm11326_vm9, %v10511_v17, %v7166_v15  ;;  %v5826_v19 = vrot.slane %v5825_v8, 4  ;;  %v5481_v38 = vld [vmem:[#allocation3 + $0xbc] sm:$0x1] }
 0x3bf   : > { %5978 = vst.msk [vmem:[#allocation5 + $0x3c] sm:$0xf] %vm5962_vm0, %v5897_v52  ;;  %v6228_v20 = vpop.permute.xlu0 %6227  ;;  %v6468_v21 = vld [vmem:[#allocation3 + $0xa0] sm:$0xf]  ;;  %v7169_v16 = vrot.slane %v7026_v27, 5  ;;  %v5836_v59 = vrot.slane %v5835_v0, 4  ;;  %v5859_v7 = vor.u32 %v5858_v44, %v13977_v55 }
 0x3c0   : > { %6907 = vrot.lane.b32.xlu0 %v6756_v6, %s11162_s24  ;;  %6312 = vst.msk [vmem:[#allocation5 + $0x30] sm:$0xf] %vm6299_vm6, %v6228_v20  ;;  %v6768_v39 = vshrl.u32 %v6467_v14, 16  ;;  %v6771_v11 = vshll.u32 %v6467_v14, 16  ;;  %v6380_v61 = vld [vmem:[#allocation3 + $0x58] sm:$0xf]  ;;  %v5831_v5 = vsel %vm11339_vm10, %v5826_v19, %v13964_v42 }
 0x3c1   : > { %v6470_v10 = vld [vmem:[#allocation3 + $0xa8] sm:$0xf]  ;;  %v6471_v56 = vld [vmem:[#allocation3 + $0xac] sm:$0xf]  ;;  %v7170_v29 = vsel %vm11326_vm9, %v7168_v13, %v7169_v16  ;;  %v5840_v3 = vrot.slane %v5838_v31, 5  ;;  %v6777_v6 = vshll.u32 %v6468_v21, 16 }
 0x3c2   : > { %6909 = vrot.lane.b32.xlu1 %v6766_v51, %s11162_s24  ;;  %v6230_v2 = vpop.permute.xlu1 %6229  ;;  %v13993_v45 = vld [vmem:[#allocation3 + $0xb8] sm:$0xf]  ;;  %v6781_v35 = vshrl.u32 %v6468_v21, 16  ;;  %v5850_v60 = vrot.slane %v5849_v30, 4  ;;  %v5862_v52 = vshll.u32 %v5481_v38, 16  ;;  %v6191_v50 = vrot.slane %v13981_v24, 5 }
 0x3c3   : > { %6313 = vst.msk [vmem:[#allocation5 + $0x34] sm:$0xf] %vm6299_vm6, %v6230_v2  ;;  %v6232_v28 = vpop.permute.xlu0 %6231  ;;  %v6381_v53 = vld [vmem:[#allocation3 + $0x60] sm:$0xf]  ;;  %v5841_v25 = vsel %vm11339_vm10, %v5836_v59, %v5840_v3  ;;  %v6770_v49 = vrot.slane %v6768_v39, 4  ;;  %v6773_v20 = vrot.slane %v6771_v11, 5 }
 0x3c4   : > { %7239 = vrot.lane.b32.xlu0 %v7160_v58, %s11164_s7  ;;  %6314 = vst.msk [vmem:[#allocation5 + $0x38] sm:$0xf] %vm6299_vm6, %v6232_v28  ;;  %v6382_v22 = vld [vmem:[#allocation3 + $0x64] sm:$0xf]  ;;  %v5860_v42 = vrot.slane %v5859_v7, 4  ;;  %v6198_v40 = vrot.slane %v13993_v45, 5  ;;  %v5855_v8 = vsel %vm11339_vm10, %v5850_v60, %v13977_v55 }
 0x3c5   : > { %v6037_v47 = vld [vmem:[#allocation3 + $0xa8] sm:$0xe]  ;;  %v6792_v18 = vshrl.u32 %v6470_v10, 16  ;;  %v6795_v57 = vshll.u32 %v6470_v10, 16  ;;  %v6039_v51 = vld [vmem:[#allocation3 + $0xb0] sm:$0x1]  ;;  %v6774_v28 = vor.u32 %v6773_v20, %v6770_v49 }
 0x3c6   : > { %7241 = vrot.lane.b32.xlu1 %v7163_v63, %s11164_s7  ;;  %v6234_v54 = vpop.permute.xlu1 %6233  ;;  %v14007_v1 = vrot.slane %v6777_v6, 5  ;;  %v6783_v4 = vrot.slane %v6781_v35, 4  ;;  %v6801_v15 = vshll.u32 %v6471_v56, 16  ;;  %v6805_v58 = vshrl.u32 %v6471_v56, 16  ;;  %v6469_v26 = vld [vmem:[#allocation3 + $0xa4] sm:$0x1] }
 0x3c7   : > { %v6344_v33 = vld [vmem:[#allocation5 + $0x30] sm:$0xf]  ;;  %6315 = vst.msk [vmem:[#allocation5 + $0x3c] sm:$0xf] %vm6299_vm6, %v6234_v54  ;;  %v6880_v12 = vpop.permute.xlu0 %6879  ;;  %v5864_v34 = vrot.slane %v5862_v52, 5  ;;  %v10498_v46 = vrot.slane %v6037_v47, 9 }
 0x3c8   : > { %7243 = vrot.lane.b32.xlu0 %v7167_v43, %s11164_s7  ;;  %6411 = vst.msk [vmem:[#allocation5 + $0x30] sm:$0xf] %vm282_vm3, %v6379_v37  ;;  %v6040_v27 = vld [vmem:[#allocation3 + $0xb4] sm:$0xe]  ;;  %v6472_v0 = vld [vmem:[#allocation3 + $0xb0] sm:$0x1]  ;;  %v6784_v31 = vor.u32 %v6783_v4, %v14007_v1 }
 0x3c9   : > { %6967 = vst.msk [vmem:[#allocation5 + $0x20] sm:$0xf] %vm5962_vm0, %v6880_v12  ;;  %v5865_v17 = vsel %vm11339_vm10, %v5860_v42, %v5864_v34  ;;  %v6193_v44 = vrot.slane %v6191_v50, 4  ;;  %v6042_v14 = vld [vmem:[#allocation3 + $0xbc] sm:$0x1]  ;;  %v6794_v63 = vrot.slane %v6792_v18, 4  ;;  %v6192_v19 = vsel %vm11326_vm9, %v10498_v46, %v6191_v50 }
 0x3ca   : > { %v6345_v48 = vld [vmem:[#allocation5 + $0x34] sm:$0xf]  ;;  %7245 = vrot.lane.b32.xlu1 %v7170_v29, %s11164_s7  ;;  %v6797_v37 = vrot.slane %v6795_v57, 5  ;;  %v6200_v55 = vrot.slane %v6198_v40, 4  ;;  %v14020_v24 = vrot.slane %v6801_v15, 5  ;;  %v6807_v43 = vrot.slane %v6805_v58, 4 }
 0x3cb   : > { %6412 = vst.msk [vmem:[#allocation5 + $0x34] sm:$0xf] %vm282_vm3, %v6380_v61  ;;  %v6346_v32 = vld [vmem:[#allocation5 + $0x38] sm:$0xf]  ;;  %v10559_v62 = vcombine.low %v6344_v33, %v6345_v48  ;;  %v7028_v54 = vld [vmem:[#allocation3 + $0xa0] sm:$0xf] }
 0x3cc   : > { %5922 = vrot.lane.b32.xlu0 %v5831_v5, %s11162_s24  ;;  %6413 = vst.msk [vmem:[#allocation5 + $0x38] sm:$0xf] %vm282_vm3, %v6381_v53  ;;  %v6194_v30 = vrot.slane %v6039_v51, 5  ;;  %v6787_v38 = vshll.u32 %v6469_v26, 16  ;;  %v7027_v21 = vld [vmem:[#allocation3 + $0x9c] sm:$0xe]  ;;  %v6798_v7 = vor.u32 %v6797_v37, %v6794_v63  ;;  %v6808_v35 = vor.u32 %v6807_v43, %v14020_v24 }
 0x3cd   : > { %v6882_v41 = vpop.permute.xlu1 %6881  ;;  %10988 = vmatprep.mubr.msk.bf16.mxu0 %vm7452_vm5, %v10559_v62  ;;  %v10499_v33 = vrot.slane %v6040_v27, 9  ;;  %v6201_v16 = vrot.slane %v6042_v14, 5  ;;  %v6775_v59 = vrot.slane %v6774_v28, 4  ;;  %v6811_v12 = vshll.u32 %v6472_v0, 16  ;;  %v6473_v39 = vld [vmem:[#allocation3 + $0xb4] sm:$0xf] }
 0x3ce   : > { %v6347_v2 = vld [vmem:[#allocation5 + $0x3c] sm:$0xf]  ;;  %5924 = vrot.lane.b32.xlu1 %v5841_v25, %s11162_s24  ;;  %6968 = vst.msk [vmem:[#allocation5 + $0x24] sm:$0xf] %vm5962_vm0, %v6882_v41  ;;  %v6195_v61 = vsel %vm11326_vm9, %v6193_v44, %v6194_v30  ;;  %v7173_v10 = vrot.slane %v7028_v54, 5  ;;  %v14034_v6 = vrot.slane %v6784_v31, 4 }
 0x3cf   : > { %6414 = vst.msk [vmem:[#allocation5 + $0x3c] sm:$0xf] %vm282_vm3, %v6382_v22  ;;  %v10560_v36 = vcombine.low %v6346_v32, %v6347_v2  ;;  %v6474_v56 = vld [vmem:[#allocation3 + $0xb8] sm:$0xf]  ;;  %v6199_v3 = vsel %vm11326_vm9, %v10499_v33, %v6198_v40  ;;  %v6202_v45 = vsel %vm11326_vm9, %v6200_v55, %v6201_v16  ;;  %v7029_v48 = vld [vmem:[#allocation3 + $0xa4] sm:$0x1]  ;;  %v6780_v25 = vsel %vm11339_vm10, %v6775_v59, %v14007_v1 }
 0x3d0   : > { %5926 = vrot.lane.b32.xlu0 %v5855_v8, %s11162_s24  ;;  %v14037_v5 = vld [vmem:[#allocation3 + $0xac] sm:$0xf]  ;;  %v6789_v60 = vrot.slane %v6787_v38, 5  ;;  %v10512_v52 = vrot.slane %v7027_v21, 9  ;;  %v14041_v50 = vld [vmem:[#allocation3 + $0xa8] sm:$0xe] }
 0x3d1   : > { %10989 = vmatmul.mubr.msk.bf16.gmra.mxu0 %vm7452_vm5, %v10560_v36  ;;  %v6816_v53 = vshrl.u32 %v6473_v39, 16  ;;  %v6819_v32 = vshll.u32 %v6473_v39, 16  ;;  %v14047_v62 = vrot.slane %v6811_v12, 5  ;;  %v6825_v49 = vshll.u32 %v6474_v56, 16  ;;  %v6476_v22 = vld [vmem:[#allocation3 + $0xc0] sm:$0xf] }
 0x3d2   : > { %v6884_v13 = vpop.permute.xlu0 %6883  ;;  %5928 = vrot.lane.b32.xlu1 %v5865_v17, %s11162_s24  ;;  %v6829_v20 = vshrl.u32 %v6474_v56, 16  ;;  %v14049_v42 = vld [vmem:[#allocation3 + $0x18] sm:$0xf]  ;;  %v6799_v40 = vrot.slane %v6798_v7, 4  ;;  %v14053_v18 = vsel %vm11326_vm9, %v10512_v52, %v7173_v10  ;;  %v7176_v57 = vrot.slane %v7029_v48, 5 }
 0x3d3   : > { %6969 = vst.msk [vmem:[#allocation5 + $0x28] sm:$0xf] %vm5962_vm0, %v6884_v13  ;;  %v7180_v41 = vrot.slane %v14037_v5, 5  ;;  %v14056_v51 = vld [vmem:[#allocation3 + $0xb0] sm:$0x1]  ;;  %v6790_v15 = vsel %vm11339_vm10, %v14034_v6, %v6789_v60  ;;  %v14062_v58 = vrot.slane %v6808_v35, 4 }
 0x3d4   : > { %6259 = vrot.lane.b32.xlu0 %v6192_v19, %s11164_s7  ;;  %v6886_v11 = vpop.permute.xlu1 %6885  ;;  %v6477_v4 = vld [vmem:[#allocation3 + $0xc4] sm:$0xf]  ;;  %v7175_v2 = vrot.slane %v7173_v10, 4  ;;  %v10513_v8 = vrot.slane %v14041_v50, 9  ;;  %v14065_v34 = vld [vmem:[#allocation3 + $0xbc] sm:$0x1]  ;;  %v6804_v43 = vsel %vm11339_vm10, %v6799_v40, %v14020_v24 }
 0x3d5   : > { %6970 = vst.msk [vmem:[#allocation5 + $0x2c] sm:$0xf] %vm5962_vm0, %v6886_v11  ;;  %v14069_v26 = vrot.slane %v6816_v53, 4  ;;  %v14071_v46 = vrot.slane %v6819_v32, 5  ;;  %v6840_v36 = vshrl.u32 %v6476_v22, 16  ;;  %v6843_v27 = vshll.u32 %v6476_v22, 16 }
 0x3d6   : > { %v7216_v29 = vpop.permute.xlu0 %7215  ;;  %6261 = vrot.lane.b32.xlu1 %v6195_v61, %s11164_s7  ;;  %v14073_v28 = vld [vmem:[#allocation3 + $0xc8] sm:$0x1]  ;;  %v7968_v0 = vld [vmem:[#allocation3 + $0x18] sm:$0xf]  ;;  %v14076_v44 = vrot.slane %v6825_v49, 5  ;;  %v14078_v14 = vrot.slane %v6829_v20, 4  ;;  %v6814_v16 = vsel %vm11339_vm10, %v14062_v58, %v14047_v62  ;;  %v14096_v24 = vsel %vm11326_vm9, %v7175_v2, %v7176_v57 }
 0x3d7   : > { %7303 = vst.msk [vmem:[#allocation5 + $0x20] sm:$0xf] %vm6299_vm6, %v7216_v29  ;;  %v7976_v17 = vld [vmem:[#allocation3 + $0x48] sm:$0xf]  ;;  %v6849_v63 = vshll.u32 %v6477_v4, 16  ;;  %v6853_v37 = vshrl.u32 %v6477_v4, 16  ;;  %v14110_v7 = vsel %vm11326_vm9, %v10513_v8, %v7180_v41  ;;  %v6822_v10 = vor.u32 %v14071_v46, %v14069_v26 }
 0x3d8   : > { %6263 = vrot.lane.b32.xlu0 %v6199_v3, %s11164_s7  ;;  %v7218_v47 = vpop.permute.xlu1 %7217  ;;  %v14080_v13 = vld [vmem:[#allocation3 + $0x1c] sm:$0xf]  ;;  %8000 = vst.msk [vmem:[#allocation5] sm:$0xf] %vm282_vm3, %v7968_v0  ;;  %v7182_v54 = vrot.slane %v7180_v41, 4  ;;  %v8081_v19 = vshrl.u32 %v14049_v42, 16  ;;  %v6832_v35 = vor.u32 %v14078_v14, %v14076_v44 }
 0x3d9   : > { %7304 = vst.msk [vmem:[#allocation5 + $0x24] sm:$0xf] %vm6299_vm6, %v7218_v47  ;;  %v7969_v55 = vld [vmem:[#allocation3 + $0x1c] sm:$0xf]  ;;  %v8084_v30 = vshll.u32 %v14049_v42, 16  ;;  %v7183_v59 = vrot.slane %v14056_v51, 5 }
 0x3da   : > { %v7220_v1 = vpop.permute.xlu0 %7219  ;;  %6265 = vrot.lane.b32.xlu1 %v6202_v45, %s11164_s7  ;;  %8001 = vst.msk [vmem:[#allocation5 + $0x4] sm:$0xf] %vm282_vm3, %v7969_v55  ;;  %v7970_v38 = vld [vmem:[#allocation3 + $0x24] sm:$0xf]  ;;  %v6835_v12 = vshll.u32 %v14065_v34, 16  ;;  %v6842_v56 = vrot.slane %v6840_v36, 4 }
 0x3db   : > { %7305 = vst.msk [vmem:[#allocation5 + $0x28] sm:$0xf] %vm6299_vm6, %v7220_v1  ;;  %v14100_v39 = vld [vmem:[#allocation3 + $0xb4] sm:$0xe]  ;;  %v14102_v11 = vld [vmem:[#allocation3 + $0x24] sm:$0xf] }
 0x3dc   : > { %6911 = vrot.lane.b32.xlu0 %v6780_v25, %s11162_s24  ;;  %v7222_v31 = vpop.permute.xlu1 %7221  ;;  %8002 = vst.msk [vmem:[#allocation5 + $0x8] sm:$0xf] %vm282_vm3, %v7970_v38  ;;  %v7977_v61 = vld [vmem:[#allocation3 + $0x4c] sm:$0xf]  ;;  %v6845_v29 = vrot.slane %v6843_v27, 5  ;;  %v14119_v48 = vrot.slane %v6849_v63, 5  ;;  %v14129_v25 = vsel %vm11326_vm9, %v7182_v54, %v7183_v59 }
 0x3dd   : > { %7306 = vst.msk [vmem:[#allocation5 + $0x2c] sm:$0xf] %vm6299_vm6, %v7222_v31  ;;  %v14114_v3 = vld [vmem:[#allocation3 + $0xb8] sm:$0xf]  ;;  %v7971_v45 = vld [vmem:[#allocation3 + $0x28] sm:$0xf] }
 0x3de   : > { %v7335_v21 = vld [vmem:[#allocation5 + $0x20] sm:$0xf]  ;;  %v5899_v33 = vpop.permute.xlu0 %5898  ;;  %6913 = vrot.lane.b32.xlu1 %v6790_v15, %s11162_s24  ;;  %v7978_v6 = vld [vmem:[#allocation3 + $0x54] sm:$0xf]  ;;  %v6855_v5 = vrot.slane %v6853_v37, 4  ;;  %v6859_v60 = vshll.u32 %v14073_v28, 16  ;;  %v6846_v1 = vor.u32 %v6845_v29, %v6842_v56 }
 0x3df   : > { %8008 = vst.msk [vmem:[#allocation5 + $0x20] sm:$0xf] %vm282_vm3, %v7976_v17  ;;  %v14122_v52 = vld [vmem:[#allocation3 + $0xbc] sm:$0x1]  ;;  %v14124_v50 = vld [vmem:[#allocation3 + $0xc4] sm:$0xf] }
 0x3e0   : > { %5979 = vst.msk [vmem:[#allocation5 + $0x40] sm:$0xf] %vm5962_vm0, %v5899_v33  ;;  %6915 = vrot.lane.b32.xlu0 %v6804_v43, %s11162_s24  ;;  %v7336_v53 = vld [vmem:[#allocation5 + $0x24] sm:$0xf]  ;;  %v5901_v32 = vpop.permute.xlu1 %5900  ;;  %v14131_v62 = vrot.slane %v8081_v19, 4  ;;  %v14133_v49 = vrot.slane %v8084_v30, 5  ;;  %v6856_v34 = vor.u32 %v6855_v5, %v14119_v48 }
 0x3e1   : > { %8003 = vst.msk [vmem:[#allocation5 + $0xc] sm:$0xf] %vm282_vm3, %v7971_v45  ;;  %v8090_v20 = vshll.u32 %v14080_v13, 16  ;;  %8009 = vst.msk [vmem:[#allocation5 + $0x24] sm:$0xf] %vm282_vm3, %v7977_v61  ;;  %v10523_v47 = vcombine.low %v7335_v21, %v7336_v53  ;;  %v14138_v40 = vrot.slane %v6835_v12, 5 }
 0x3e2   : > { %v7337_v22 = vld [vmem:[#allocation5 + $0x28] sm:$0xf]  ;;  %5980 = vst.msk [vmem:[#allocation5 + $0x44] sm:$0xf] %vm5962_vm0, %v5901_v32  ;;  %v5903_v42 = vpop.permute.xlu0 %5902  ;;  %v10514_v57 = vrot.slane %v14100_v39, 9  ;;  %v8094_v41 = vshrl.u32 %v14080_v13, 16  ;;  %6917 = vrot.lane.b32.xlu1 %v6814_v16, %s11162_s24  ;;  %v8087_v63 = vor.u32 %v14133_v49, %v14131_v62 }
 0x3e3   : > { %8010 = vst.msk [vmem:[#allocation5 + $0x28] sm:$0xf] %vm282_vm3, %v7978_v6  ;;  %v7979_v51 = vld [vmem:[#allocation3 + $0x58] sm:$0xf]  ;;  %v6823_v4 = vrot.slane %v6822_v10, 4  ;;  %v8105_v58 = vshrl.u32 %v14102_v11, 16  ;;  %10948 = vmatprep.mubr.msk.bf16.mxu1 %vm7452_vm5, %v10523_v47 }
 0x3e4   : > { %5981 = vst.msk [vmem:[#allocation5 + $0x48] sm:$0xf] %vm5962_vm0, %v5903_v42  ;;  %v8036_v15 = vld [vmem:[#allocation3 + $0x28] sm:$0xf]  ;;  %v8108_v2 = vshll.u32 %v14102_v11, 16  ;;  %7247 = vrot.lane.b32.xlu0 %v14053_v18, %s11164_s7  ;;  %v14150_v8 = vrot.slane %v6832_v35, 4  ;;  %v5905_v0 = vpop.permute.xlu1 %5904 }
 0x3e5   : > { %v14153_v26 = vrot.slane %v6859_v60, 5  ;;  %v7187_v46 = vrot.slane %v14114_v3, 5  ;;  %v7036_v36 = vld [vmem:[#allocation3 + $0xc0] sm:$0xe]  ;;  %v8034_v27 = vld [vmem:[#allocation3 + $0x20] sm:$0x1]  ;;  %v6828_v33 = vsel %vm11339_vm10, %v6823_v4, %v14076_v44 }
 0x3e6   : > { %v7338_v28 = vld [vmem:[#allocation5 + $0x2c] sm:$0xf]  ;;  %v7190_v17 = vrot.slane %v14122_v52, 5  ;;  %v7194_v14 = vrot.slane %v14124_v50, 5  ;;  %v14160_v18 = vrot.slane %v8090_v20, 5  ;;  %v6236_v37 = vpop.permute.xlu0 %6235  ;;  %v8096_v55 = vrot.slane %v8094_v41, 4  ;;  %7249 = vrot.lane.b32.xlu1 %v14096_v24, %s11164_s7 }
 0x3e7   : > { %8011 = vst.msk [vmem:[#allocation5 + $0x2c] sm:$0xf] %vm282_vm3, %v7979_v51  ;;  %v10524_v13 = vcombine.low %v7337_v22, %v7338_v28  ;;  %v8114_v31 = vshll.u32 %v8036_v15, 16  ;;  %v8118_v43 = vshrl.u32 %v8036_v15, 16  ;;  %v8037_v54 = vld [vmem:[#allocation3 + $0x2c] sm:$0x1]  ;;  %v14179_v24 = vsel %vm11326_vm9, %v10514_v57, %v7187_v46 }
 0x3e8   : > { %5982 = vst.msk [vmem:[#allocation5 + $0x4c] sm:$0xf] %vm5962_vm0, %v5905_v0  ;;  %v14167_v19 = vrot.slane %v6846_v1, 4  ;;  %v10515_v30 = vrot.slane %v7036_v36, 9  ;;  %v8107_v38 = vrot.slane %v8105_v58, 4  ;;  %v8110_v21 = vrot.slane %v8108_v2, 5  ;;  %7251 = vrot.lane.b32.xlu0 %v14110_v7, %s11164_s7  ;;  %v6238_v11 = vpop.permute.xlu1 %6237 }
 0x3e9   : > { %6316 = vst.msk [vmem:[#allocation5 + $0x40] sm:$0xf] %vm6299_vm6, %v6236_v37  ;;  %10949 = vmatmul.mubr.msk.bf16.gmra.mxu1 %vm7452_vm5, %v10524_v13  ;;  %v14175_v16 = vrot.slane %v6856_v34, 4  ;;  %v7189_v59 = vrot.slane %v7187_v46, 4  ;;  %v7038_v12 = vld [vmem:[#allocation3 + $0xc8] sm:$0x1]  ;;  %v6838_v61 = vsel %vm11339_vm10, %v14150_v8, %v14138_v40  ;;  %v8097_v45 = vor.u32 %v8096_v55, %v14160_v18 }
 0x3ea   : > { %v8593_v39 = vld [vmem:[#allocation3 + $0x1c] sm:$0xf]  ;;  %v7196_v7 = vrot.slane %v7194_v14, 4  ;;  %v8100_v10 = vshll.u32 %v8034_v27, 16  ;;  %v8124_v56 = vshll.u32 %v8037_v54, 16  ;;  %v6240_v44 = vpop.permute.xlu0 %6239  ;;  %v14186_v3 = vrot.slane %v8087_v63, 4  ;;  %7253 = vrot.lane.b32.xlu1 %v14129_v25, %s11164_s7 }
 0x3eb   : > { %v8038_v29 = vld [vmem:[#allocation3 + $0x30] sm:$0xf]  ;;  %6317 = vst.msk [vmem:[#allocation5 + $0x44] sm:$0xf] %vm6299_vm6, %v6238_v11  ;;  %v14189_v6 = vrot.slane %v8114_v31, 5  ;;  %v14191_v35 = vrot.slane %v8118_v43, 4  ;;  %v6852_v60 = vsel %vm11339_vm10, %v14167_v19, %v14119_v48  ;;  %v8111_v50 = vor.u32 %v8110_v21, %v8107_v38 }
 0x3ec   : > { %v8592_v5 = vld [vmem:[#allocation3 + $0x18] sm:$0xe]  ;;  %6318 = vst.msk [vmem:[#allocation5 + $0x48] sm:$0xf] %vm6299_vm6, %v6240_v44  ;;  %v7197_v52 = vrot.slane %v7038_v12, 5  ;;  %v8690_v53 = vrot.slane %v8593_v39, 5  ;;  %6919 = vrot.lane.b32.xlu0 %v6828_v33, %s11162_s24  ;;  %v6862_v49 = vsel %vm11339_vm10, %v14175_v16, %v14153_v26  ;;  %v14207_v25 = vsel %vm11326_vm9, %v7189_v59, %v7190_v17  ;;  %v6242_v47 = vpop.permute.xlu1 %6241 }
 0x3ed   : > { %v8594_v32 = vld [vmem:[#allocation3 + $0x20] sm:$0x1]  ;;  %v6383_v62 = vld [vmem:[#allocation3 + $0x6c] sm:$0xf]  ;;  %v14211_v20 = vsel %vm11326_vm9, %v10515_v30, %v7194_v14  ;;  %v14213_v48 = vld [vmem:[#allocation3 + $0x28] sm:$0xf]  ;;  %v8093_v2 = vsel %vm11339_vm10, %v14186_v3, %v14160_v18  ;;  %v8121_v34 = vor.u32 %v14191_v35, %v14189_v6 }
 0x3ee   : > { %v8039_v22 = vld [vmem:[#allocation3 + $0x34] sm:$0xf]  ;;  %v8129_v42 = vshrl.u32 %v8038_v29, 16  ;;  %v14217_v40 = vsel %vm11326_vm9, %v7196_v7, %v7197_v52  ;;  %v14219_v57 = vrot.slane %v8100_v10, 5  ;;  %v10587_v41 = vrot.slane %v8592_v5, 9  ;;  %v6888_v58 = vpop.permute.xlu0 %6887  ;;  %6921 = vrot.lane.b32.xlu1 %v6838_v61, %s11162_s24 }
 0x3ef   : > { %v14221_v51 = vld [vmem:[#allocation3 + $0x24] sm:$0xe]  ;;  %v8132_v4 = vshll.u32 %v8038_v29, 16  ;;  %v8041_v1 = vld [vmem:[#allocation3 + $0x3c] sm:$0xf]  ;;  %v14228_v8 = vrot.slane %v8097_v45, 4 }
 0x3f0   : > { %v6348_v15 = vld [vmem:[#allocation5 + $0x40] sm:$0xf]  ;;  %6319 = vst.msk [vmem:[#allocation5 + $0x4c] sm:$0xf] %vm6299_vm6, %v6242_v47  ;;  %v14232_v26 = vrot.slane %v8124_v56, 5  ;;  %v14237_v27 = vrot.slane %v8111_v50, 4  ;;  %v14241_v28 = vsel %vm11326_vm9, %v10587_v41, %v8690_v53  ;;  %6923 = vrot.lane.b32.xlu0 %v6852_v60, %s11162_s24  ;;  %v6890_v54 = vpop.permute.xlu1 %6889 }
 0x3f1   : > { %v8042_v46 = vld [vmem:[#allocation3 + $0x40] sm:$0xf]  ;;  %6415 = vst.msk [vmem:[#allocation5 + $0x40] sm:$0xf] %vm282_vm3, %v6383_v62  ;;  %v6384_v36 = vld [vmem:[#allocation3 + $0x70] sm:$0xf]  ;;  %v8103_v39 = vsel %vm11339_vm10, %v14228_v8, %v14219_v57 }
 0x3f2   : > { %6971 = vst.msk [vmem:[#allocation5 + $0x30] sm:$0xf] %vm5962_vm0, %v6888_v58  ;;  %v8692_v0 = vrot.slane %v8690_v53, 4  ;;  %v8693_v17 = vrot.slane %v8594_v32, 5  ;;  %v14243_v14 = vld [vmem:[#allocation3 + $0x2c] sm:$0x1]  ;;  %v6892_v59 = vpop.permute.xlu0 %6891  ;;  %6925 = vrot.lane.b32.xlu1 %v6862_v49, %s11162_s24  ;;  %v8117_v10 = vsel %vm11339_vm10, %v14237_v27, %v14189_v6 }
 0x3f3   : > { %v8697_v63 = vrot.slane %v14213_v48, 5  ;;  %v14247_v37 = vrot.slane %v8129_v42, 4  ;;  %v8138_v13 = vshll.u32 %v8039_v22, 16  ;;  %v8142_v55 = vshrl.u32 %v8039_v22, 16  ;;  %v14249_v31 = vld [vmem:[#allocation3 + $0x38] sm:$0x1] }
 0x3f4   : > { %v6349_v43 = vld [vmem:[#allocation5 + $0x44] sm:$0xf]  ;;  %v8134_v19 = vrot.slane %v8132_v4, 5  ;;  %v8153_v30 = vshrl.u32 %v8041_v1, 16  ;;  %v8156_v38 = vshll.u32 %v8041_v1, 16  ;;  %v8162_v21 = vshll.u32 %v8042_v46, 16  ;;  %7255 = vrot.lane.b32.xlu0 %v14179_v24, %s11164_s7  ;;  %v6894_v49 = vpop.permute.xlu1 %6893 }
 0x3f5   : > { %6416 = vst.msk [vmem:[#allocation5 + $0x44] sm:$0xf] %vm282_vm3, %v6384_v36  ;;  %v6385_v33 = vld [vmem:[#allocation3 + $0x78] sm:$0xf]  ;;  %v6350_v16 = vld [vmem:[#allocation5 + $0x48] sm:$0xf]  ;;  %v10561_v12 = vcombine.low %v6348_v15, %v6349_v43  ;;  %v14269_v29 = vsel %vm11326_vm9, %v8692_v0, %v8693_v17 }
 0x3f6   : > { %6972 = vst.msk [vmem:[#allocation5 + $0x34] sm:$0xf] %vm5962_vm0, %v6890_v54  ;;  %v10588_v11 = vrot.slane %v14221_v51, 9  ;;  %v8166_v61 = vshrl.u32 %v8042_v46, 16  ;;  %v6386_v7 = vld [vmem:[#allocation3 + $0x7c] sm:$0xf]  ;;  %v8135_v48 = vor.u32 %v8134_v19, %v14247_v37  ;;  %v7224_v24 = vpop.permute.xlu0 %7223  ;;  %7257 = vrot.lane.b32.xlu1 %v14207_v25, %s11164_s7 }
 0x3f7   : > { %6417 = vst.msk [vmem:[#allocation5 + $0x48] sm:$0xf] %vm282_vm3, %v6385_v33  ;;  %v14265_v56 = vrot.slane %v8121_v34, 4  ;;  %v8700_v44 = vrot.slane %v14243_v14, 5  ;;  %v8043_v45 = vld [vmem:[#allocation3 + $0x44] sm:$0x1]  ;;  %10992 = vmatprep.mubr.msk.bf16.mxu0 %vm7452_vm5, %v10561_v12 }
 0x3f8   : > { %6973 = vst.msk [vmem:[#allocation5 + $0x38] sm:$0xf] %vm5962_vm0, %v6892_v59  ;;  %v14272_v35 = vld [vmem:[#allocation3 + $0x34] sm:$0xf]  ;;  %v8044_v5 = vld [vmem:[#allocation3 + $0x48] sm:$0xf]  ;;  %v14294_v34 = vsel %vm11326_vm9, %v10588_v11, %v8697_v63  ;;  %7259 = vrot.lane.b32.xlu0 %v14211_v20, %s11164_s7 }
 0x3f9   : > { %v8699_v60 = vrot.slane %v8697_v63, 4  ;;  %v14277_v52 = vrot.slane %v8138_v13, 5  ;;  %v8144_v50 = vrot.slane %v8142_v55, 4  ;;  %v8148_v53 = vshll.u32 %v14249_v31, 16  ;;  %v8045_v32 = vld [vmem:[#allocation3 + $0x4c] sm:$0xf]  ;;  %v7226_v55 = vpop.permute.xlu1 %7225 }
 0x3fa   : > { %v6351_v62 = vld [vmem:[#allocation5 + $0x4c] sm:$0xf]  ;;  %v8155_v22 = vrot.slane %v8153_v30, 4  ;;  %v8158_v42 = vrot.slane %v8156_v38, 5  ;;  %v14281_v47 = vrot.slane %v8162_v21, 5  ;;  %v8168_v51 = vrot.slane %v8166_v61, 4  ;;  %v7228_v20 = vpop.permute.xlu0 %7227  ;;  %7261 = vrot.lane.b32.xlu1 %v14217_v40, %s11164_s7 }
 0x3fb   : > { %6418 = vst.msk [vmem:[#allocation5 + $0x4c] sm:$0xf] %vm282_vm3, %v6386_v7  ;;  %v10562_v41 = vcombine.low %v6350_v16, %v6351_v62  ;;  %v8598_v4 = vld [vmem:[#allocation3 + $0x30] sm:$0xe]  ;;  %v8177_v1 = vshrl.u32 %v8044_v5, 16  ;;  %v8180_v15 = vshll.u32 %v8044_v5, 16  ;;  %v8127_v58 = vsel %vm11339_vm10, %v14265_v56, %v14232_v26 }
 0x3fc   : > { %6974 = vst.msk [vmem:[#allocation5 + $0x3c] sm:$0xf] %vm5962_vm0, %v6894_v49  ;;  %v14296_v46 = vld [vmem:[#allocation3 + $0x40] sm:$0xf]  ;;  %v8186_v36 = vshll.u32 %v8045_v32, 16  ;;  %v8190_v0 = vshrl.u32 %v8045_v32, 16  ;;  %v14303_v25 = vsel %vm11326_vm9, %v8699_v60, %v8700_v44  ;;  %v8145_v17 = vor.u32 %v8144_v50, %v14277_v52  ;;  %8464 = vrot.lane.b32.xlu0 %v8093_v2, %s11162_s24 }
 0x3fd   : > { %7307 = vst.msk [vmem:[#allocation5 + $0x30] sm:$0xf] %vm6299_vm6, %v7224_v24  ;;  %10993 = vmatmul.mubr.msk.bf16.gmra.mxu0 %vm7452_vm5, %v10562_v41  ;;  %v8172_v14 = vshll.u32 %v8043_v45, 16  ;;  %v8704_v37 = vrot.slane %v14272_v35, 5  ;;  %v8600_v63 = vld [vmem:[#allocation3 + $0x38] sm:$0x1]  ;;  %v8159_v54 = vor.u32 %v8158_v42, %v8155_v22  ;;  %v8169_v38 = vor.u32 %v8168_v51, %v14281_v47 }
 0x3fe   : > { %v8047_v13 = vld [vmem:[#allocation3 + $0x54] sm:$0xf]  ;;  %v14307_v31 = vrot.slane %v8135_v48, 4  ;;  %v14309_v43 = vrot.slane %v8148_v53, 5  ;;  %v10589_v19 = vrot.slane %v8598_v4, 9  ;;  %v8711_v21 = vrot.slane %v14296_v46, 5  ;;  %v7230_v53 = vpop.permute.xlu1 %7229  ;;  %v5907_v18 = vpop.permute.xlu0 %5906  ;;  %8466 = vrot.lane.b32.xlu1 %v8103_v39, %s11162_s24 }
 0x3ff   : > { %v14311_v30 = vld [vmem:[#allocation3 + $0x3c] sm:$0xe]  ;;  %7308 = vst.msk [vmem:[#allocation5 + $0x34] sm:$0xf] %vm6299_vm6, %v7226_v55  ;;  %v8179_v33 = vrot.slane %v8177_v1, 4  ;;  %v8182_v16 = vrot.slane %v8180_v15, 5 }
 0x400   : > { %v8048_v59 = vld [vmem:[#allocation3 + $0x58] sm:$0xf]  ;;  %7309 = vst.msk [vmem:[#allocation5 + $0x38] sm:$0xf] %vm6299_vm6, %v7228_v20  ;;  %v14319_v12 = vld [vmem:[#allocation3 + $0x44] sm:$0x1]  ;;  %v14339_v62 = vsel %vm11326_vm9, %v10589_v19, %v8704_v37  ;;  %v8141_v3 = vsel %vm11339_vm10, %v14307_v31, %v14277_v52  ;;  %8468 = vrot.lane.b32.xlu0 %v8117_v10, %s11162_s24 }
 0x401   : > { %v14321_v11 = vrot.slane %v8186_v36, 5  ;;  %v14323_v61 = vrot.slane %v8190_v0, 4  ;;  %v8201_v7 = vshrl.u32 %v8047_v13, 16  ;;  %v8204_v44 = vshll.u32 %v8047_v13, 16  ;;  %v7980_v45 = vld [vmem:[#allocation3 + $0x60] sm:$0xf] }
 0x402   : > { %v14331_v35 = vrot.slane %v8145_v17, 4  ;;  %v14333_v40 = vrot.slane %v8172_v14, 5  ;;  %v8706_v5 = vrot.slane %v8704_v37, 4  ;;  %v8707_v60 = vrot.slane %v8600_v63, 5  ;;  %v8046_v50 = vld [vmem:[#allocation3 + $0x50] sm:$0x1]  ;;  %v5909_v55 = vpop.permute.xlu1 %5908  ;;  %8470 = vrot.lane.b32.xlu1 %v8127_v58, %s11162_s24 }
 0x403   : > { %v14335_v32 = vrot.slane %v8159_v54, 4  ;;  %v8210_v49 = vshll.u32 %v8048_v59, 16  ;;  %v8214_v48 = vshrl.u32 %v8048_v59, 16  ;;  %v8049_v22 = vld [vmem:[#allocation3 + $0x5c] sm:$0x1]  ;;  %v14346_v2 = vrot.slane %v8169_v38, 4 }
 0x404   : > { %v7339_v42 = vld [vmem:[#allocation5 + $0x30] sm:$0xf]  ;;  %7310 = vst.msk [vmem:[#allocation5 + $0x3c] sm:$0xf] %vm6299_vm6, %v7230_v53  ;;  %v10590_v24 = vrot.slane %v14311_v30, 9  ;;  %v8183_v41 = vor.u32 %v8182_v16, %v8179_v33  ;;  %v8713_v1 = vrot.slane %v8711_v21, 4  ;;  %v8193_v15 = vor.u32 %v14323_v61, %v14321_v11  ;;  %v5911_v30 = vpop.permute.xlu0 %5910  ;;  %8800 = vrot.lane.b32.xlu0 %v14241_v28, %s11164_s7 }
 0x405   : > { %v14349_v51 = vld [vmem:[#allocation3 + $0x4c] sm:$0xf]  ;;  %8012 = vst.msk [vmem:[#allocation5 + $0x30] sm:$0xf] %vm282_vm3, %v7980_v45  ;;  %v7981_v4 = vld [vmem:[#allocation3 + $0x64] sm:$0xf]  ;;  %v8151_v57 = vsel %vm11339_vm10, %v14331_v35, %v14309_v43  ;;  %v14382_v8 = vsel %vm11326_vm9, %v8706_v5, %v8707_v60  ;;  %v8165_v6 = vsel %vm11339_vm10, %v14335_v32, %v14281_v47 }
 0x406   : > { %5983 = vst.msk [vmem:[#allocation5 + $0x50] sm:$0xf] %vm5962_vm0, %v5907_v18  ;;  %v14361_v46 = vrot.slane %v8201_v7, 4  ;;  %v14363_v36 = vrot.slane %v8204_v44, 5  ;;  %v14368_v0 = vld [vmem:[%s15920_s2 + $0x20] ss:$0 sps:$4 sm:$0xff]   ;;  %v14399_v38 = vsel %vm11326_vm9, %v10590_v24, %v8711_v21  ;;  %v8175_v21 = vsel %vm11339_vm10, %v14346_v2, %v14333_v40  ;;  %8802 = vrot.lane.b32.xlu1 %v14269_v29, %s11164_s7 }
 0x407   : > { %v7982_v17 = vld [vmem:[#allocation3 + $0x6c] sm:$0xf]  ;;  %v8714_v39 = vrot.slane %v14319_v12, 5  ;;  %v8196_v14 = vshll.u32 %v8046_v50, 16  ;;  %v8604_v37 = vld [vmem:[#allocation3 + $0x48] sm:$0xe]  ;;  %11086 = vmatprep.subr.msk.bf16.mxu1 %vm7501_vm11, %v14368_v0 }
 0x408   : > { %v8050_v63 = vld [vmem:[#allocation3 + $0x60] sm:$0xf]  ;;  %v7340_v13 = vld [vmem:[#allocation5 + $0x34] sm:$0xf]  ;;  %v14389_v27 = vrot.slane %v8210_v49, 5  ;;  %v14391_v10 = vrot.slane %v8214_v48, 4  ;;  %v8207_v44 = vor.u32 %v14363_v36, %v14361_v46  ;;  %v5913_v49 = vpop.permute.xlu1 %5912  ;;  %v6244_v28 = vpop.permute.xlu0 %6243  ;;  %8804 = vrot.lane.b32.xlu0 %v14294_v34, %s11164_s7 }
 0x409   : > { %v8220_v54 = vshll.u32 %v8049_v22, 16  ;;  %8013 = vst.msk [vmem:[#allocation5 + $0x34] sm:$0xf] %vm282_vm3, %v7981_v4  ;;  %v7341_v19 = vld [vmem:[#allocation5 + $0x38] sm:$0xf]  ;;  %v10525_v20 = vcombine.low %v7339_v42, %v7340_v13  ;;  %v14401_v33 = vrot.slane %v8183_v41, 4  ;;  %v14418_v61 = vsel %vm11326_vm9, %v8713_v1, %v8714_v39 }
 0x40a   : > { %5984 = vst.msk [vmem:[#allocation5 + $0x54] sm:$0xf] %vm5962_vm0, %v5909_v55  ;;  %v8718_v16 = vrot.slane %v14349_v51, 5  ;;  %v8051_v59 = vld [vmem:[#allocation3 + $0x64] sm:$0xf]  ;;  %v14420_v7 = vrot.slane %v8193_v15, 4  ;;  %v8217_v48 = vor.u32 %v14391_v10, %v14389_v27  ;;  %8806 = vrot.lane.b32.xlu1 %v14303_v25, %s11164_s7 }
 0x40b   : > { %8014 = vst.msk [vmem:[#allocation5 + $0x38] sm:$0xf] %vm282_vm3, %v7982_v17  ;;  %v7983_v12 = vld [vmem:[#allocation3 + $0x70] sm:$0xf]  ;;  %v14424_v5 = vld [vmem:[#allocation3 + $0x58] sm:$0xf]  ;;  %10952 = vmatprep.mubr.msk.bf16.mxu1 %vm7452_vm5, %v10525_v20  ;;  %v8189_v51 = vsel %vm11339_vm10, %v14401_v33, %v14321_v11 }
 0x40c   : > { %5985 = vst.msk [vmem:[#allocation5 + $0x58] sm:$0xf] %vm5962_vm0, %v5911_v30  ;;  %v8606_v45 = vld [vmem:[#allocation3 + $0x50] sm:$0x1]  ;;  %v14429_v26 = vrot.slane %v8196_v14, 5  ;;  %v10591_v56 = vrot.slane %v8604_v37, 9  ;;  %8472 = vrot.lane.b32.xlu0 %v8141_v3, %s11162_s24 }
 0x40d   : > { %v8225_v58 = vshrl.u32 %v8050_v63, 16  ;;  %v8228_v60 = vshll.u32 %v8050_v63, 16  ;;  %v8053_v50 = vld [vmem:[#allocation3 + $0x6c] sm:$0xf]  ;;  %v7342_v53 = vld [vmem:[#allocation5 + $0x3c] sm:$0xf] }
 0x40e   : > { %v14433_v22 = vrot.slane %v8220_v54, 5  ;;  %v14435_v42 = vld [vmem:[#allocation3 + $0x54] sm:$0xe]  ;;  %v8234_v18 = vshll.u32 %v8051_v59, 16  ;;  %v8238_v24 = vshrl.u32 %v8051_v59, 16  ;;  %v10526_v41 = vcombine.low %v7341_v19, %v7342_v53  ;;  %v6246_v54 = vpop.permute.xlu1 %6245  ;;  %v6248_v59 = vpop.permute.xlu0 %6247  ;;  %8474 = vrot.lane.b32.xlu1 %v8151_v57, %s11162_s24 }
 0x40f   : > { %8015 = vst.msk [vmem:[#allocation5 + $0x3c] sm:$0xf] %vm282_vm3, %v7983_v12  ;;  %v14445_v4 = vsel %vm11326_vm9, %v10591_v56, %v8718_v16  ;;  %v8720_v1 = vrot.slane %v8718_v16, 4  ;;  %v14447_v15 = vld [vmem:[#allocation3 + $0x5c] sm:$0x1]  ;;  %v8199_v36 = vsel %vm11339_vm10, %v14420_v7, %v14429_v26  ;;  %v14456_v17 = vrot.slane %v8207_v44, 4 }
 0x410   : > { %5986 = vst.msk [vmem:[#allocation5 + $0x5c] sm:$0xf] %vm5962_vm0, %v5913_v49  ;;  %v8054_v46 = vld [vmem:[#allocation3 + $0x70] sm:$0xf]  ;;  %v8721_v39 = vrot.slane %v8606_v45, 5  ;;  %v8725_v14 = vrot.slane %v14424_v5, 5  ;;  %10953 = vmatmul.mubr.msk.bf16.gmra.mxu1 %vm7452_vm5, %v10526_v41  ;;  %8476 = vrot.lane.b32.xlu0 %v8165_v6, %s11162_s24 }
 0x411   : > { %6320 = vst.msk [vmem:[#allocation5 + $0x50] sm:$0xf] %vm6299_vm6, %v6244_v28  ;;  %v8056_v37 = vld [vmem:[#allocation3 + $0x78] sm:$0xf]  ;;  %v8227_v63 = vrot.slane %v8225_v58, 4  ;;  %v8230_v29 = vrot.slane %v8228_v60, 5  ;;  %v8213_v56 = vsel %vm11339_vm10, %v14456_v17, %v14389_v27 }
 0x412   : > { %v8052_v13 = vld [vmem:[#allocation3 + $0x68] sm:$0x1]  ;;  %v8249_v55 = vshrl.u32 %v8053_v50, 16  ;;  %v8252_v10 = vshll.u32 %v8053_v50, 16  ;;  %v14462_v19 = vrot.slane %v8234_v18, 5  ;;  %v8240_v30 = vrot.slane %v8238_v24, 4  ;;  %v6250_v41 = vpop.permute.xlu1 %6249  ;;  %v6896_v31 = vpop.permute.xlu0 %6895  ;;  %8478 = vrot.lane.b32.xlu1 %v8175_v21, %s11162_s24 }
 0x413   : > { %v8258_v20 = vshll.u32 %v8054_v46, 16  ;;  %v8262_v16 = vshrl.u32 %v8054_v46, 16  ;;  %6321 = vst.msk [vmem:[#allocation5 + $0x54] sm:$0xf] %vm6299_vm6, %v6246_v54  ;;  %v14465_v12 = vrot.slane %v8217_v48, 4  ;;  %v10592_v44 = vrot.slane %v14435_v42, 9 }
 0x414   : > { %v8055_v45 = vld [vmem:[#allocation3 + $0x74] sm:$0x1]  ;;  %v8273_v34 = vshrl.u32 %v8056_v37, 16  ;;  %v8276_v5 = vshll.u32 %v8056_v37, 16  ;;  %6322 = vst.msk [vmem:[#allocation5 + $0x58] sm:$0xf] %vm6299_vm6, %v6248_v59  ;;  %v14486_v25 = vsel %vm11326_vm9, %v8720_v1, %v8721_v39  ;;  %v8231_v48 = vor.u32 %v8230_v29, %v8227_v63  ;;  %8808 = vrot.lane.b32.xlu0 %v14339_v62, %s11164_s7 }
 0x415   : > { %v8727_v58 = vrot.slane %v8725_v14, 4  ;;  %v8728_v60 = vrot.slane %v14447_v15, 5  ;;  %v8244_v50 = vshll.u32 %v8052_v13, 16  ;;  %v14476_v53 = vld [vmem:[#allocation3 + $0x60] sm:$0xe]  ;;  %v8251_v42 = vrot.slane %v8249_v55, 4 }
 0x416   : > { %v6387_v49 = vld [vmem:[#allocation3 + $0x84] sm:$0xf]  ;;  %v8254_v18 = vrot.slane %v8252_v10, 5  ;;  %v8057_v28 = vld [vmem:[#allocation3 + $0x7c] sm:$0xf]  ;;  %v8241_v15 = vor.u32 %v8240_v30, %v14462_v19  ;;  %v14489_v46 = vrot.slane %v8258_v20, 5  ;;  %v14502_v1 = vsel %vm11326_vm9, %v10592_v44, %v8725_v14  ;;  %v6900_v32 = vpop.permute.xlu0 %6899  ;;  %8810 = vrot.lane.b32.xlu1 %v14382_v8, %s11164_s7 }
 0x417   : > { %v8611_v24 = vld [vmem:[#allocation3 + $0x64] sm:$0xf]  ;;  %v14491_v37 = vrot.slane %v8262_v16, 4  ;;  %v8268_v13 = vshll.u32 %v8055_v45, 16  ;;  %v14493_v54 = vld [vmem:[#allocation3 + $0x68] sm:$0x1]  ;;  %v14516_v14 = vsel %vm11326_vm9, %v8727_v58, %v8728_v60 }
 0x418   : > { %v6352_v52 = vld [vmem:[#allocation5 + $0x50] sm:$0xf]  ;;  %6323 = vst.msk [vmem:[#allocation5 + $0x5c] sm:$0xf] %vm6299_vm6, %v6250_v41  ;;  %v14504_v39 = vld [vmem:[#allocation3 + $0x6c] sm:$0xe]  ;;  %v8255_v35 = vor.u32 %v8254_v18, %v8251_v42  ;;  %8812 = vrot.lane.b32.xlu0 %v14399_v38, %s11164_s7 }
 0x419   : > { %v8275_v63 = vrot.slane %v8273_v34, 4  ;;  %v8278_v29 = vrot.slane %v8276_v5, 5  ;;  %6419 = vst.msk [vmem:[#allocation5 + $0x50] sm:$0xf] %vm282_vm3, %v6387_v49  ;;  %v6388_v55 = vld [vmem:[#allocation3 + $0x88] sm:$0xf]  ;;  %v6898_v5 = vpop.permute.xlu1 %6897  ;;  %v8265_v60 = vor.u32 %v14491_v37, %v14489_v46 }
 0x41a   : > { %6975 = vst.msk [vmem:[#allocation5 + $0x40] sm:$0xf] %vm5962_vm0, %v6896_v31  ;;  %v14518_v10 = vrot.slane %v8244_v50, 5  ;;  %v14520_v30 = vld [vmem:[#allocation3 + $0x70] sm:$0xf]  ;;  %v8282_v20 = vshll.u32 %v8057_v28, 16  ;;  %8814 = vrot.lane.b32.xlu1 %v14418_v61, %s11164_s7 }
 0x41b   : > { %v8286_v16 = vshrl.u32 %v8057_v28, 16  ;;  %v6389_v59 = vld [vmem:[#allocation3 + $0x90] sm:$0xf]  ;;  %v14528_v43 = vrot.slane %v8231_v48, 4  ;;  %v10593_v57 = vrot.slane %v14476_v53, 9  ;;  %v8732_v44 = vrot.slane %v8611_v24, 5 }
 0x41c   : > { %v8059_v45 = vld [vmem:[#allocation3 + $0x84] sm:$0xf]  ;;  %v6353_v34 = vld [vmem:[#allocation5 + $0x54] sm:$0xf]  ;;  %v14531_v58 = vrot.slane %v8241_v15, 4  ;;  %v14535_v50 = vrot.slane %v8268_v13, 5  ;;  %v8279_v42 = vor.u32 %v8278_v29, %v8275_v63  ;;  %8480 = vrot.lane.b32.xlu0 %v8189_v51, %s11162_s24 }
 0x41d   : > { %v8735_v49 = vrot.slane %v14493_v54, 5  ;;  %6420 = vst.msk [vmem:[#allocation5 + $0x54] sm:$0xf] %vm282_vm3, %v6388_v55  ;;  %v6354_v47 = vld [vmem:[#allocation5 + $0x58] sm:$0xf]  ;;  %v10563_v6 = vcombine.low %v6352_v52, %v6353_v34  ;;  %v10594_v53 = vrot.slane %v14504_v39, 9  ;;  %v14563_v2 = vsel %vm11326_vm9, %v10593_v57, %v8732_v44  ;;  %v6902_v63 = vpop.permute.xlu1 %6901 }
 0x41e   : > { %6976 = vst.msk [vmem:[#allocation5 + $0x44] sm:$0xf] %vm5962_vm0, %v6898_v5  ;;  %v8739_v48 = vrot.slane %v14520_v30, 5  ;;  %v8060_v18 = vld [vmem:[#allocation3 + $0x88] sm:$0xf]  ;;  %v14550_v28 = vrot.slane %v8282_v20, 5  ;;  %v7232_v20 = vpop.permute.xlu0 %7231  ;;  %8482 = vrot.lane.b32.xlu1 %v8199_v36, %s11162_s24 }
 0x41f   : > { %6421 = vst.msk [vmem:[#allocation5 + $0x58] sm:$0xf] %vm282_vm3, %v6389_v59  ;;  %v6390_v24 = vld [vmem:[#allocation3 + $0x94] sm:$0xf]  ;;  %v8058_v41 = vld [vmem:[#allocation3 + $0x80] sm:$0x1]  ;;  %10996 = vmatprep.mubr.msk.bf16.mxu0 %vm7452_vm5, %v10563_v6 }
 0x420   : > { %6977 = vst.msk [vmem:[#allocation5 + $0x48] sm:$0xf] %vm5962_vm0, %v6900_v32  ;;  %v8288_v15 = vrot.slane %v8286_v16, 4  ;;  %v8297_v37 = vshrl.u32 %v8059_v45, 16  ;;  %v8300_v13 = vshll.u32 %v8059_v45, 16  ;;  %v14559_v40 = vrot.slane %v8255_v35, 4  ;;  %8484 = vrot.lane.b32.xlu0 %v8213_v56, %s11162_s24 }
 0x421   : > { %v8734_v21 = vrot.slane %v8732_v44, 4  ;;  %v8615_v52 = vld [vmem:[#allocation3 + $0x74] sm:$0x1]  ;;  %v8061_v31 = vld [vmem:[#allocation3 + $0x8c] sm:$0x1]  ;;  %v14569_v29 = vrot.slane %v8265_v60, 4  ;;  %v14592_v6 = vsel %vm11326_vm9, %v10594_v53, %v8739_v48 }
 0x422   : > { %v6355_v39 = vld [vmem:[#allocation5 + $0x5c] sm:$0xf]  ;;  %v8306_v55 = vshll.u32 %v8060_v18, 16  ;;  %v8310_v30 = vshrl.u32 %v8060_v18, 16  ;;  %6978 = vst.msk [vmem:[#allocation5 + $0x4c] sm:$0xf] %vm5962_vm0, %v6902_v63  ;;  %v8289_v45 = vor.u32 %v8288_v15, %v14550_v28 }
 0x423   : > { %6422 = vst.msk [vmem:[#allocation5 + $0x5c] sm:$0xf] %vm282_vm3, %v6390_v24  ;;  %v10564_v16 = vcombine.low %v6354_v47, %v6355_v39  ;;  %v8741_v59 = vrot.slane %v8739_v48, 4  ;;  %v14573_v35 = vrot.slane %v8279_v42, 4  ;;  %v8292_v57 = vshll.u32 %v8058_v41, 16  ;;  %v7234_v41 = vpop.permute.xlu1 %7233  ;;  %v11132_v62 = vld [vmem:[%s15920_s2 + $0x18] sm:$0xff]  }
 0x424   : > { %v8617_v44 = vld [vmem:[#allocation3 + $0x7c] sm:$0xf]  ;;  %7311 = vst.msk [vmem:[#allocation5 + $0x40] sm:$0xf] %vm6299_vm6, %v7232_v20  ;;  %v8299_v34 = vrot.slane %v8297_v37, 4  ;;  %v8302_v5 = vrot.slane %v8300_v13, 5  ;;  %v14588_v8 = vsel %vm11326_vm9, %v8734_v21, %v8735_v49  ;;  %v7236_v21 = vpop.permute.xlu0 %7235  ;;  %8816 = vrot.lane.b32.xlu0 %v14445_v4, %s11164_s7 }
 0x425   : > { %v8316_v60 = vshll.u32 %v8061_v31, 16  ;;  %v8616_v32 = vld [vmem:[#allocation3 + $0x78] sm:$0xe]  ;;  %10997 = vmatmul.mubr.msk.bf16.gmra.mxu0 %vm7452_vm5, %v10564_v16  ;;  %v8742_v42 = vrot.slane %v8615_v52, 5  ;;  %v14594_v18 = vld [vmem:[#allocation3 + $0x80] sm:$0x1] }
 0x426   : > { %v8062_v24 = vld [vmem:[#allocation3 + $0x90] sm:$0xf]  ;;  %v14600_v15 = vrot.slane %v8306_v55, 5  ;;  %v8312_v37 = vrot.slane %v8310_v30, 4  ;;  %v8746_v13 = vrot.slane %v8617_v44, 5  ;;  %v14611_v52 = vrot.slane %v8292_v57, 5 }
 0x427   : > { %v8063_v49 = vld [vmem:[#allocation3 + $0x94] sm:$0xf]  ;;  %7312 = vst.msk [vmem:[#allocation5 + $0x44] sm:$0xf] %vm6299_vm6, %v7234_v41  ;;  %v14605_v53 = vsel %vm11326_vm9, %v8741_v59, %v8742_v42  ;;  %v10595_v31 = vrot.slane %v8616_v32, 9  ;;  %v14618_v55 = vrot.slane %v8289_v45, 4  ;;  %v8303_v30 = vor.u32 %v8302_v5, %v8299_v34  ;;  %v7238_v34 = vpop.permute.xlu1 %7237 }
 0x428   : > { %v14613_v39 = vld [vmem:[#allocation3 + $0x88] sm:$0xf]  ;;  %v8065_v63 = vld [vmem:[#allocation3 + $0x9c] sm:$0xf]  ;;  %7313 = vst.msk [vmem:[#allocation5 + $0x48] sm:$0xf] %vm6299_vm6, %v7236_v21  ;;  %v8313_v5 = vor.u32 %v8312_v37, %v14600_v15  ;;  %v5915_v11 = vpop.permute.xlu0 %5914  ;;  %8820 = vrot.lane.b32.xlu0 %v14502_v1, %s11164_s7 }
 0x429   : > { %v14620_v20 = vrot.slane %v8316_v60, 5  ;;  %v8066_v59 = vld [vmem:[#allocation3 + $0xa0] sm:$0xf]  ;;  %v7984_v44 = vld [vmem:[#allocation3 + $0x78] sm:$0xf]  ;;  %v8321_v61 = vshrl.u32 %v8062_v24, 16  ;;  %v14639_v33 = vsel %vm11326_vm9, %v10595_v31, %v8746_v13 }
 0x42a   : > { %v14629_v57 = vld [vmem:[#allocation3 + $0x84] sm:$0xe]  ;;  %v8324_v32 = vshll.u32 %v8062_v24, 16  ;;  %v8330_v45 = vshll.u32 %v8063_v49, 16  ;;  %v8334_v42 = vshrl.u32 %v8063_v49, 16  ;;  %v8748_v60 = vrot.slane %v8746_v13, 4 }
 0x42b   : > { %v8753_v41 = vrot.slane %v14613_v39, 5  ;;  %v8345_v21 = vshrl.u32 %v8065_v63, 16  ;;  %v9803_v48 = vld [vmem:[%s15922_s4] sm:$0x3]  ;;  %v7343_v38 = vld [vmem:[#allocation5 + $0x40] sm:$0xf] }
 0x42c   : > { %7314 = vst.msk [vmem:[#allocation5 + $0x4c] sm:$0xf] %vm6299_vm6, %v7238_v34  ;;  %v14641_v51 = vld [vmem:[#allocation3 + $0x8c] sm:$0x1]  ;;  %v14643_v24 = vld [vmem:[#allocation3 + $0x98] sm:$0x1]  ;;  %v5917_v34 = vpop.permute.xlu1 %5916  ;;  %11087 = vmatprep.subr.msk.bf16.mxu0 %vm9901_vm12, %v9803_v48  ;;  %v5919_v56 = vpop.permute.xlu0 %5918 }
 0x42d   : > { %v8348_v37 = vshll.u32 %v8065_v63, 16  ;;  %v8354_v49 = vshll.u32 %v8066_v59, 16  ;;  %v8358_v47 = vshrl.u32 %v8066_v59, 16  ;;  %8016 = vst.msk [vmem:[#allocation5 + $0x40] sm:$0xf] %vm282_vm3, %v7984_v44  ;;  %v14656_v13 = vrot.slane %v8303_v30, 4 }
 0x42e   : > { %v7985_v54 = vld [vmem:[#allocation3 + $0x7c] sm:$0xf]  ;;  %5987 = vst.msk [vmem:[#allocation5 + $0x60] sm:$0xf] %vm5962_vm0, %v5915_v11  ;;  %v10596_v31 = vrot.slane %v14629_v57, 9  ;;  %v9102_v59 = vsel %vm7501_vm11, %v14368_v0, 0 }
 0x42f   : > { %v14659_v63 = vld [vmem:[#allocation3 + $0xa4] sm:$0x1]  ;;  %v14669_v7 = vrot.slane %v8321_v61, 4  ;;  %v14671_v26 = vrot.slane %v8324_v32, 5  ;;  %v14673_v36 = vrot.slane %v8330_v45, 5  ;;  %v14675_v30 = vrot.slane %v8334_v42, 4  ;;  %11009 = vmatpush3.bf16.msra.mxu1 %v9102_v59 }
 0x430   : > { %v7986_v44 = vld [vmem:[#allocation3 + $0x84] sm:$0xf]  ;;  %v14677_v57 = vld [vmem:[#allocation3 + $0xa8] sm:$0xf]  ;;  %v7344_v0 = vld [vmem:[#allocation5 + $0x44] sm:$0xf]  ;;  %11010 = vmatprep.subr.bf16.mxu1 %v11132_v62  ;;  %v5921_v59 = vpop.permute.xlu1 %5920 }
 0x431   : > { %v14679_v11 = vrot.slane %v8313_v5, 4  ;;  %v8755_v16 = vrot.slane %v8753_v41, 4  ;;  %v14683_v3 = vrot.slane %v8345_v21, 4  ;;  %v9903_v27 = vsel %vm9901_vm12, %v9803_v48, 0  ;;  %8017 = vst.msk [vmem:[#allocation5 + $0x44] sm:$0xf] %vm282_vm3, %v7985_v54 }
 0x432   : > { %v7345_v17 = vld [vmem:[#allocation5 + $0x48] sm:$0xf]  ;;  %5988 = vst.msk [vmem:[#allocation5 + $0x64] sm:$0xf] %vm5962_vm0, %v5917_v34  ;;  %v10527_v61 = vcombine.low %v7343_v38, %v7344_v0  ;;  %v8350_v32 = vrot.slane %v8348_v37, 5  ;;  %v14687_v45 = vrot.slane %v8354_v49, 5  ;;  %11045 = vmatpush3.bf16.msra.mxu0 %v9903_v27  ;;  %v15952_v54 = vsel %vm11339_vm10, %v14465_v12, %v14433_v22 }
 0x433   : > { %v8360_v42 = vrot.slane %v8358_v47, 4  ;;  %8018 = vst.msk [vmem:[#allocation5 + $0x48] sm:$0xf] %vm282_vm3, %v7986_v44  ;;  %v7987_v5 = vld [vmem:[#allocation3 + $0x88] sm:$0xf]  ;;  %8486 = vrot.lane.b32.xlu1 %v15952_v54, %s11162_s24  ;;  %v15953_v47 = vrot.slane %v14594_v18, 5  ;;  %v8327_v12 = vor.u32 %v14671_v26, %v14669_v7  ;;  %v8337_v18 = vor.u32 %v14675_v30, %v14673_v36  ;;  %11011 = vmatpush3.bf16.msra.mxu1 %v11132_v62  ;;  %v6252_v30 = vpop.permute.xlu0 %6251 }
 0x434   : > { %5989 = vst.msk [vmem:[#allocation5 + $0x68] sm:$0xf] %vm5962_vm0, %v5919_v56  ;;  %v8756_v21 = vrot.slane %v14641_v51, 5  ;;  %v8340_v37 = vshll.u32 %v14643_v24, 16  ;;  %10956 = vmatprep.mubr.msk.bf16.mxu1 %vm7452_vm5, %v10527_v61  ;;  %v8622_v51 = vld [vmem:[#allocation3 + $0x90] sm:$0xe]  ;;  %v14729_v44 = vsel %vm11326_vm9, %v10596_v31, %v8753_v41  ;;  %v8351_v39 = vor.u32 %v8350_v32, %v14683_v3 }
 0x435   : > { %v14705_v48 = vsel %vm11326_vm9, %v8748_v60, %v15953_v47  ;;  %v8364_v60 = vshll.u32 %v14659_v63, 16  ;;  %v8069_v24 = vld [vmem:[#allocation3 + $0xac] sm:$0xf]  ;;  %v7346_v49 = vld [vmem:[#allocation5 + $0x4c] sm:$0xf]  ;;  %v8369_v26 = vshrl.u32 %v14677_v57, 16  ;;  %v8361_v41 = vor.u32 %v8360_v42, %v14687_v45 }
 0x436   : > { %v8623_v7 = vld [vmem:[#allocation3 + $0x94] sm:$0xf]  ;;  %v8372_v63 = vshll.u32 %v14677_v57, 16  ;;  %8019 = vst.msk [vmem:[#allocation5 + $0x4c] sm:$0xf] %vm282_vm3, %v7987_v5  ;;  %v10528_v0 = vcombine.low %v7345_v17, %v7346_v49  ;;  %v14737_v34 = vsel %vm11326_vm9, %v8755_v16, %v8756_v21  ;;  %v14746_v62 = vrot.slane %v8340_v37, 5  ;;  %v6254_v5 = vpop.permute.xlu1 %6253 }
 0x437   : > { %5990 = vst.msk [vmem:[#allocation5 + $0x6c] sm:$0xf] %vm5962_vm0, %v5921_v59  ;;  %v14741_v31 = vld [vmem:[#allocation3 + $0x98] sm:$0x1]  ;;  %v8071_v27 = vld [vmem:[#allocation3 + $0xb4] sm:$0xf]  ;;  %8818 = vrot.lane.b32.xlu1 %v14486_v25, %s11164_s7 }
 0x438   : > { %6324 = vst.msk [vmem:[#allocation5 + $0x60] sm:$0xf] %vm6299_vm6, %v6252_v30  ;;  %v10597_v57 = vrot.slane %v8622_v51, 9  ;;  %v14748_v17 = vld [vmem:[#allocation3 + $0xa0] sm:$0xf]  ;;  %v8378_v56 = vshll.u32 %v8069_v24, 16  ;;  %10957 = vmatmul.mubr.msk.bf16.gmra.mxu1 %vm7452_vm5, %v10528_v0  ;;  %v15954_v0 = vsel %vm11339_vm10, %v14528_v43, %v14462_v19 }
 0x439   : > { %v8382_v16 = vshrl.u32 %v8069_v24, 16  ;;  %v14753_v3 = vrot.slane %v8327_v12, 4  ;;  %v14755_v61 = vrot.slane %v8337_v18, 4  ;;  %v14757_v32 = vrot.slane %v8364_v60, 5  ;;  %v8072_v42 = vld [vmem:[#allocation3 + $0xb8] sm:$0xf]  ;;  %v6256_v24 = vpop.permute.xlu0 %6255  ;;  %8488 = vrot.lane.b32.xlu0 %v15954_v0, %s11162_s24 }
 0x43a   : > { %v8760_v25 = vrot.slane %v8623_v7, 5  ;;  %v14759_v54 = vld [vmem:[#allocation3 + $0x9c] sm:$0xe]  ;;  %v8371_v47 = vrot.slane %v8369_v26, 4  ;;  %v8374_v21 = vrot.slane %v8372_v63, 5  ;;  %v8393_v37 = vshrl.u32 %v8071_v27, 16  ;;  %v6258_v19 = vpop.permute.xlu1 %6257 }
 0x43b   : > { %v8396_v51 = vshll.u32 %v8071_v27, 16  ;;  %6325 = vst.msk [vmem:[#allocation5 + $0x64] sm:$0xf] %vm6299_vm6, %v6254_v5  ;;  %v14762_v49 = vrot.slane %v8351_v39, 4  ;;  %v14764_v1 = vrot.slane %v8361_v41, 4  ;;  %v8763_v12 = vrot.slane %v14741_v31, 5  ;;  %8822 = vrot.lane.b32.xlu1 %v14516_v14, %s11164_s7 }
 0x43c   : > { %v8767_v18 = vrot.slane %v14748_v17, 5  ;;  %6326 = vst.msk [vmem:[#allocation5 + $0x68] sm:$0xf] %vm6299_vm6, %v6256_v24  ;;  %v8627_v60 = vld [vmem:[#allocation3 + $0xa4] sm:$0x1]  ;;  %v14771_v59 = vrot.slane %v8378_v56, 5  ;;  %v14789_v41 = vsel %vm11326_vm9, %v10597_v57, %v8760_v25  ;;  %v8375_v56 = vor.u32 %v8374_v21, %v8371_v47 }
 0x43d   : > { %v8384_v7 = vrot.slane %v8382_v16, 4  ;;  %v8402_v26 = vshll.u32 %v8072_v42, 16  ;;  %v8406_v63 = vshrl.u32 %v8072_v42, 16  ;;  %v6391_v30 = vld [vmem:[#allocation3 + $0x9c] sm:$0xf]  ;;  %v10598_v31 = vrot.slane %v14759_v54, 9  ;;  %v6904_v0 = vpop.permute.xlu0 %6903 }
 0x43e   : > { %v8070_v27 = vld [vmem:[#allocation3 + $0xb0] sm:$0x1]  ;;  %v8074_v17 = vld [vmem:[#allocation3 + $0xc0] sm:$0xf]  ;;  %v8762_v43 = vrot.slane %v8760_v25, 4  ;;  %v14792_v16 = vrot.slane %v8393_v37, 4  ;;  %v15955_v37 = vsel %vm11339_vm10, %v14531_v58, %v14518_v10 }
 0x43f   : > { %v14794_v42 = vrot.slane %v8396_v51, 5  ;;  %v8075_v5 = vld [vmem:[#allocation3 + $0xc4] sm:$0xf]  ;;  %v6356_v24 = vld [vmem:[#allocation5 + $0x60] sm:$0xf]  ;;  %v8769_v54 = vrot.slane %v8767_v18, 4  ;;  %8490 = vrot.lane.b32.xlu1 %v15955_v37, %s11162_s24  ;;  %v8385_v51 = vor.u32 %v8384_v7, %v14771_v59 }
 0x440   : > { %6327 = vst.msk [vmem:[#allocation5 + $0x6c] sm:$0xf] %vm6299_vm6, %v6258_v19  ;;  %v8770_v47 = vrot.slane %v8627_v60, 5  ;;  %v8073_v21 = vld [vmem:[#allocation3 + $0xbc] sm:$0x1]  ;;  %v8388_v19 = vshll.u32 %v8070_v27, 16 }
 0x441   : > { %6423 = vst.msk [vmem:[#allocation5 + $0x60] sm:$0xf] %vm282_vm3, %v6391_v30  ;;  %v14814_v57 = vrot.slane %v8402_v26, 5  ;;  %v14816_v25 = vrot.slane %v8406_v63, 4  ;;  %v8629_v60 = vld [vmem:[#allocation3 + $0xac] sm:$0xf]  ;;  %v15956_v30 = vsel %vm11339_vm10, %v14559_v40, %v14489_v46  ;;  %v6906_v26 = vpop.permute.xlu1 %6905  ;;  %v14826_v63 = vsel %vm11326_vm9, %v8762_v43, %v8763_v12  ;;  %v6908_v40 = vpop.permute.xlu0 %6907 }
 0x442   : > { %6979 = vst.msk [vmem:[#allocation5 + $0x50] sm:$0xf] %vm5962_vm0, %v6904_v0  ;;  %v6393_v39 = vld [vmem:[#allocation3 + $0xa8] sm:$0xf]  ;;  %8492 = vrot.lane.b32.xlu0 %v15956_v30, %s11162_s24  ;;  %v8417_v58 = vshrl.u32 %v8074_v17, 16  ;;  %v8420_v37 = vshll.u32 %v8074_v17, 16  ;;  %v8399_v22 = vor.u32 %v14794_v42, %v14792_v16  ;;  %v14840_v12 = vsel %vm11326_vm9, %v8769_v54, %v8770_v47 }
 0x443   : > { %v8628_v10 = vld [vmem:[#allocation3 + $0xa8] sm:$0xe]  ;;  %v8426_v0 = vshll.u32 %v8075_v5, 16  ;;  %v8430_v14 = vshrl.u32 %v8075_v5, 16  ;;  %v6392_v7 = vld [vmem:[#allocation3 + $0xa0] sm:$0xf]  ;;  %v14836_v5 = vsel %vm11326_vm9, %v10598_v31, %v8767_v18  ;;  %v15957_v42 = vsel %vm11339_vm10, %v14569_v29, %v14535_v50 }
 0x444   : > { %v6357_v27 = vld [vmem:[#allocation5 + $0x64] sm:$0xf]  ;;  %v14828_v4 = vrot.slane %v8375_v56, 4  ;;  %v8412_v38 = vshll.u32 %v8073_v21, 16  ;;  %v6358_v46 = vld [vmem:[#allocation5 + $0x68] sm:$0xf]  ;;  %8494 = vrot.lane.b32.xlu1 %v15957_v42, %s11162_s24 }
 0x445   : > { %6424 = vst.msk [vmem:[#allocation5 + $0x64] sm:$0xf] %vm282_vm3, %v6392_v7  ;;  %v10565_v17 = vcombine.low %v6356_v24, %v6357_v27  ;;  %v8774_v43 = vrot.slane %v8629_v60, 5  ;;  %v8630_v56 = vld [vmem:[#allocation3 + $0xb0] sm:$0x1]  ;;  %v14852_v18 = vrot.slane %v8385_v51, 4  ;;  %v8409_v24 = vor.u32 %v14816_v25, %v14814_v57 }
 0x446   : > { %6980 = vst.msk [vmem:[#allocation5 + $0x54] sm:$0xf] %vm5962_vm0, %v6906_v26  ;;  %v14842_v30 = vld [vmem:[#allocation3 + $0xb8] sm:$0xf]  ;;  %v6394_v16 = vld [vmem:[#allocation3 + $0xac] sm:$0xf]  ;;  %8824 = vrot.lane.b32.xlu0 %v14563_v2, %s11164_s7 }
 0x447   : > { %6425 = vst.msk [vmem:[#allocation5 + $0x68] sm:$0xf] %vm282_vm3, %v6393_v39  ;;  %v14854_v31 = vrot.slane %v8388_v19, 5  ;;  %v10599_v54 = vrot.slane %v8628_v10, 9  ;;  %v8077_v47 = vld [vmem:[#allocation3 + $0xcc] sm:$0xf]  ;;  %11000 = vmatprep.mubr.msk.bf16.mxu0 %vm7452_vm5, %v10565_v17  ;;  %v6910_v19 = vpop.permute.xlu1 %6909 }
 0x448   : > { %6981 = vst.msk [vmem:[#allocation5 + $0x58] sm:$0xf] %vm5962_vm0, %v6908_v40  ;;  %v8631_v39 = vld [vmem:[#allocation3 + $0xb4] sm:$0xe]  ;;  %v8419_v21 = vrot.slane %v8417_v58, 4  ;;  %v8422_v50 = vrot.slane %v8420_v37, 5  ;;  %v7240_v58 = vpop.permute.xlu0 %7239  ;;  %8826 = vrot.lane.b32.xlu1 %v14588_v8, %s11164_s7 }
 0x449   : > { %v14861_v29 = vrot.slane %v8426_v0, 5  ;;  %v8432_v60 = vrot.slane %v8430_v14, 4  ;;  %v8078_v51 = vld [vmem:[#allocation3 + $0xd0] sm:$0xf]  ;;  %v6359_v7 = vld [vmem:[#allocation5 + $0x6c] sm:$0xf] }
 0x44a   : > { %v14867_v10 = vrot.slane %v8399_v22, 4  ;;  %v14869_v27 = vrot.slane %v8412_v38, 5  ;;  %v8781_v2 = vrot.slane %v14842_v30, 5  ;;  %6426 = vst.msk [vmem:[#allocation5 + $0x6c] sm:$0xf] %vm282_vm3, %v6394_v16  ;;  %v10566_v14 = vcombine.low %v6358_v46, %v6359_v7  ;;  %8828 = vrot.lane.b32.xlu0 %v14592_v6, %s11164_s7 }
 0x44b   : > { %6982 = vst.msk [vmem:[#allocation5 + $0x5c] sm:$0xf] %vm5962_vm0, %v6910_v19  ;;  %v8776_v37 = vrot.slane %v8774_v43, 4  ;;  %v8076_v0 = vld [vmem:[#allocation3 + $0xc8] sm:$0x1]  ;;  %v8441_v26 = vshrl.u32 %v8077_v47, 16  ;;  %v14879_v38 = vsel %vm11326_vm9, %v10599_v54, %v8774_v43  ;;  %v8423_v42 = vor.u32 %v8422_v50, %v8419_v21 }
 0x44c   : > { %v8444_v40 = vshll.u32 %v8077_v47, 16  ;;  %7315 = vst.msk [vmem:[#allocation5 + $0x50] sm:$0xf] %vm6299_vm6, %v7240_v58  ;;  %15958 = vst [vmem:[#allocation7_spill] sm:$0xff] %v14879_v38  ;;  %v8777_v22 = vrot.slane %v8630_v56, 5  ;;  %v8450_v30 = vshll.u32 %v8078_v51, 16  ;;  %11001 = vmatmul.mubr.msk.bf16.gmra.mxu0 %vm7452_vm5, %v10566_v14  ;;  %v8433_v43 = vor.u32 %v8432_v60, %v14861_v29  ;;  %v7242_v56 = vpop.permute.xlu1 %7241  ;;  %8830 = vrot.lane.b32.xlu1 %v14605_v53, %s11164_s7 }
 0x44d   : > { %v8633_v17 = vld [vmem:[#allocation3 + $0xbc] sm:$0x1]  ;;  %v8454_v16 = vshrl.u32 %v8078_v51, 16  ;;  %v14888_v46 = vrot.slane %v8409_v24, 4  ;;  %v8079_v54 = vld [vmem:[#allocation3 + $0xd4] sm:$0x1]  ;;  %v7244_v24 = vpop.permute.xlu0 %7243 }
 0x44e   : > { %v10600_v51 = vrot.slane %v8631_v39, 9  ;;  %v8783_v7 = vrot.slane %v8781_v2, 4  ;;  %v8436_v6 = vshll.u32 %v8076_v0, 16  ;;  %v14895_v19 = vld [vmem:[#allocation3 + $0xc0] sm:$0xe]  ;;  %v14902_v21 = vsel %vm11326_vm9, %v8776_v37, %v8777_v22 }
 0x44f   : > { %v14897_v58 = vld [vmem:[#allocation3 + $0xc4] sm:$0xf]  ;;  %7316 = vst.msk [vmem:[#allocation5 + $0x54] sm:$0xf] %vm6299_vm6, %v7242_v56  ;;  %15959 = vst [vmem:[#allocation6_spill] sm:$0xff] %v14902_v21  ;;  %v8784_v50 = vrot.slane %v8633_v17, 5  ;;  %v15962_v17 = vsel %vm11339_vm10, %v14573_v35, %v14550_v28 }
 0x450   : > { %v8443_v60 = vrot.slane %v8441_v26, 4  ;;  %v8446_v14 = vrot.slane %v8444_v40, 5  ;;  %v14904_v8 = vld [vmem:[#allocation3 + $0xc8] sm:$0x1]  ;;  %v14906_v47 = vld [vmem:[#allocation3 + $0xd0] sm:$0xf]  ;;  %v14913_v0 = vsel %vm11326_vm9, %v10600_v51, %v8781_v2  ;;  %8496 = vrot.lane.b32.xlu0 %v15962_v17, %s11162_s24  ;;  %v7246_v51 = vpop.permute.xlu1 %7245 }
 0x451   : > { %15960 = vst [vmem:[#allocation8_spill] sm:$0xff] %v14906_v47  ;;  %v9371_v39 = vld [vmem:[#allocation2 + $0xc] sm:$0xf]  ;;  %7317 = vst.msk [vmem:[#allocation5 + $0x58] sm:$0xf] %vm6299_vm6, %v7244_v24  ;;  %v14915_v56 = vrot.slane %v8450_v30, 5  ;;  %v14936_v24 = vsel %vm11326_vm9, %v8783_v7, %v8784_v50  ;;  %v15966_v7 = vsel %vm11339_vm10, %v14618_v55, %v14611_v52 }
 0x452   : > { %15961 = vst [vmem:[#allocation9_spill] sm:$0xff] %v14913_v0  ;;  %v8456_v37 = vrot.slane %v8454_v16, 4  ;;  %v8460_v22 = vshll.u32 %v8079_v54, 16  ;;  %v9372_v26 = vld [vmem:[#allocation2 + $0x10] sm:$0xf]  ;;  %v14927_v2 = vrot.slane %v8423_v42, 4  ;;  %v5923_v42 = vpop.permute.xlu0 %5922  ;;  %8498 = vrot.lane.b32.xlu1 %v15966_v7, %s11162_s24 }
 0x453   : > { %v7988_v40 = vld [vmem:[#allocation3 + $0x90] sm:$0xf]  ;;  %v14929_v30 = vrot.slane %v8433_v43, 4  ;;  %v14932_v54 = vld [vmem:[#allocation3 + $0xd4] sm:$0x1]  ;;  %v14938_v28 = vrot.slane %v8436_v6, 5  ;;  %v8447_v43 = vor.u32 %v8446_v14, %v8443_v60 }
 0x454   : > { %15964 = vst [vmem:[#allocation11_spill] sm:$0xff] %v14932_v54  ;;  %v9420_v35 = vshrl.u32 %v9371_v39, 16  ;;  %v9423_v17 = vshll.u32 %v9371_v39, 16  ;;  %v9374_v25 = vld [vmem:[#allocation2 + $0x18] sm:$0xf]  ;;  %v9429_v16 = vshll.u32 %v9372_v26, 16  ;;  %v8457_v6 = vor.u32 %v8456_v37, %v14915_v56 }
 0x455   : > { %15963 = vst [vmem:[#allocation10_spill] sm:$0xff] %v14929_v30  ;;  %15965 = vst [vmem:[#allocation12_spill] sm:$0xff] %v14938_v28  ;;  %v7347_v0 = vld [vmem:[#allocation5 + $0x50] sm:$0xf]  ;;  %v9433_v21 = vshrl.u32 %v9372_v26, 16  ;;  %v14951_v50 = vrot.slane %v8460_v22, 5 }
 0x456   : > { %7318 = vst.msk [vmem:[#allocation5 + $0x5c] sm:$0xf] %vm6299_vm6, %v7246_v51  ;;  %v7989_v38 = vld [vmem:[#allocation3 + $0x94] sm:$0xf]  ;;  %v9375_v39 = vld [vmem:[#allocation2 + $0x1c] sm:$0xf]  ;;  %v5927_v55 = vpop.permute.xlu0 %5926 }
 0x457   : > { %8020 = vst.msk [vmem:[#allocation5 + $0x50] sm:$0xf] %vm282_vm3, %v7988_v40  ;;  %15967 = vst [vmem:[#allocation13_spill] sm:$0xff] %v14951_v50  ;;  %v7990_v26 = vld [vmem:[#allocation3 + $0x9c] sm:$0xf]  ;;  %v15968_v40 = vsel %vm11339_vm10, %v14656_v13, %v14600_v15  ;;  %v15969_v37 = vrot.slane %v14897_v58, 5 }
 0x458   : > { %5991 = vst.msk [vmem:[#allocation5 + $0x70] sm:$0xf] %vm5962_vm0, %v5923_v42  ;;  %8500 = vrot.lane.b32.xlu0 %v15968_v40, %s11162_s24  ;;  %v14974_v42 = vld [vmem:[#allocation2 + $0x14] sm:$0x1]  ;;  %v9377_v15 = vld [vmem:[#allocation2 + $0x24] sm:$0xf]  ;;  %v5925_v40 = vpop.permute.xlu1 %5924 }
 0x459   : > { %v14971_v22 = vrot.slane %v15969_v37, 4  ;;  %v9378_v13 = vld [vmem:[#allocation2 + $0x28] sm:$0xf]  ;;  %v7348_v7 = vld [vmem:[#allocation5 + $0x54] sm:$0xf]  ;;  %v9422_v60 = vrot.slane %v9420_v35, 4 }
 0x45a   : > { %v9425_v53 = vrot.slane %v9423_v17, 5  ;;  %v9444_v52 = vshrl.u32 %v9374_v25, 16  ;;  %v9447_v14 = vshll.u32 %v9374_v25, 16  ;;  %8021 = vst.msk [vmem:[#allocation5 + $0x54] sm:$0xf] %vm282_vm3, %v7989_v38  ;;  %v10529_v37 = vcombine.low %v7347_v0, %v7348_v7 }
 0x45b   : > { %v7349_v50 = vld [vmem:[#allocation5 + $0x58] sm:$0xf]  ;;  %5992 = vst.msk [vmem:[#allocation5 + $0x74] sm:$0xf] %vm5962_vm0, %v5925_v40  ;;  %v14978_v28 = vrot.slane %v8447_v43, 4  ;;  %v14980_v51 = vrot.slane %v9429_v16, 5  ;;  %v15970_v25 = vsel %vm11339_vm10, %v14679_v11, %v14620_v20 }
 0x45c   : > { %v9435_v54 = vrot.slane %v9433_v21, 4  ;;  %8022 = vst.msk [vmem:[#allocation5 + $0x58] sm:$0xf] %vm282_vm3, %v7990_v26  ;;  %v7991_v30 = vld [vmem:[#allocation3 + $0xa0] sm:$0xf]  ;;  %8502 = vrot.lane.b32.xlu1 %v15970_v25, %s11162_s24  ;;  %v14990_v38 = vrot.slane %v8457_v6, 4  ;;  %10960 = vmatprep.mubr.msk.bf16.mxu1 %vm7452_vm5, %v10529_v37  ;;  %v5929_v6 = vpop.permute.xlu1 %5928  ;;  %v9426_v40 = vor.u32 %v9425_v53, %v9422_v60 }
 0x45d   : > { %5993 = vst.msk [vmem:[#allocation5 + $0x78] sm:$0xf] %vm5962_vm0, %v5927_v55  ;;  %v15972_v0 = vrot.slane %v14906_v47, 5  ;;  %v9453_v16 = vshll.u32 %v9375_v39, 16  ;;  %v9457_v21 = vshrl.u32 %v9375_v39, 16  ;;  %8832 = vrot.lane.b32.xlu0 %v14639_v33, %s11164_s7  ;;  %v9468_v43 = vshrl.u32 %v9377_v15, 16  ;;  %v6260_v39 = vpop.permute.xlu0 %6259 }
 0x45e   : > { %15971 = vst [vmem:[#allocation14_spill] sm:$0xff] %v14990_v38  ;;  %v9380_v17 = vld [vmem:[#allocation2 + $0x30] sm:$0xf]  ;;  %v9471_v26 = vshll.u32 %v9377_v15, 16  ;;  %v9477_v20 = vshll.u32 %v9378_v13, 16  ;;  %v9481_v11 = vshrl.u32 %v9378_v13, 16  ;;  %v9436_v15 = vor.u32 %v9435_v54, %v14980_v51 }
 0x45f   : > { %v14994_v35 = vrot.slane %v15972_v0, 4  ;;  %v9381_v7 = vld [vmem:[#allocation2 + $0x34] sm:$0xf]  ;;  %v7350_v55 = vld [vmem:[#allocation5 + $0x5c] sm:$0xf]  ;;  %v9439_v25 = vshll.u32 %v14974_v42, 16 }
 0x460   : > { %v15000_v0 = vrot.slane %v9444_v52, 4  ;;  %8023 = vst.msk [vmem:[#allocation5 + $0x5c] sm:$0xf] %vm282_vm3, %v7991_v30  ;;  %v10530_v33 = vcombine.low %v7349_v50, %v7350_v55  ;;  %v15006_v37 = vld [vmem:[#allocation3 + $0xcc] sm:$0xe]  ;;  %v9492_v47 = vshrl.u32 %v9380_v17, 16  ;;  %8834 = vrot.lane.b32.xlu1 %v14705_v48, %s11164_s7 }
 0x461   : > { %15973 = vst [vmem:[#allocation15_spill] sm:$0xff] %v14994_v35  ;;  %v15002_v35 = vrot.slane %v9447_v14, 5  ;;  %5994 = vst.msk [vmem:[#allocation5 + $0x7c] sm:$0xf] %vm5962_vm0, %v5929_v6  ;;  %v9376_v13 = vld [vmem:[#allocation2 + $0x20] sm:$0x1]  ;;  %8836 = vrot.lane.b32.xlu0 %v14729_v44, %s11164_s7 }
 0x462   : > { %v9495_v38 = vshll.u32 %v9380_v17, 16  ;;  %6328 = vst.msk [vmem:[#allocation5 + $0x70] sm:$0xf] %vm6299_vm6, %v6260_v39  ;;  %v15012_v53 = vrot.slane %v9453_v16, 5  ;;  %v9459_v60 = vrot.slane %v9457_v21, 4  ;;  %v9501_v30 = vshll.u32 %v9381_v7, 16  ;;  %10961 = vmatmul.mubr.msk.bf16.gmra.mxu1 %vm7452_vm5, %v10530_v33  ;;  %v6262_v17 = vpop.permute.xlu1 %6261 }
 0x463   : > { %v9505_v14 = vshrl.u32 %v9381_v7, 16  ;;  %v9470_v50 = vrot.slane %v9468_v43, 4  ;;  %v9473_v54 = vrot.slane %v9471_v26, 5  ;;  %v15017_v52 = vrot.slane %v9477_v20, 5  ;;  %v9379_v6 = vld [vmem:[#allocation2 + $0x2c] sm:$0x1]  ;;  %v6264_v7 = vpop.permute.xlu0 %6263 }
 0x464   : > { %v9483_v42 = vrot.slane %v9481_v11, 4  ;;  %v15020_v55 = vrot.slane %v9426_v40, 4  ;;  %v15022_v16 = vrot.slane %v9439_v25, 5  ;;  %v9463_v21 = vshll.u32 %v9376_v13, 16  ;;  %6329 = vst.msk [vmem:[#allocation5 + $0x74] sm:$0xf] %vm6299_vm6, %v6262_v17  ;;  %8838 = vrot.lane.b32.xlu1 %v14737_v34, %s11164_s7 }
 0x465   : > { %v15974_v39 = vrot.slane %v14897_v58, 5  ;;  %v15975_v44 = vrot.slane %v14895_v19, 9  ;;  %v15976_v26 = vrot.slane %v14904_v8, 5  ;;  %v9494_v11 = vrot.slane %v9492_v47, 4  ;;  %v9383_v25 = vld [vmem:[#allocation2 + $0x3c] sm:$0xf] }
 0x466   : > { %v9497_v40 = vrot.slane %v9495_v38, 5  ;;  %v9384_v33 = vld [vmem:[#allocation2 + $0x40] sm:$0xf]  ;;  %6330 = vst.msk [vmem:[#allocation5 + $0x78] sm:$0xf] %vm6299_vm6, %v6264_v7  ;;  %v9437_v19 = vrot.slane %v9436_v15, 4  ;;  %v9450_v58 = vor.u32 %v15002_v35, %v15000_v0  ;;  %v15977_v47 = vsel %vm11339_vm10, %v14753_v3, %v14673_v36 }
 0x467   : > { %v15031_v43 = vsel %vm11326_vm9, %v15975_v44, %v15974_v39  ;;  %v15038_v20 = vsel %vm11326_vm9, %v14971_v22, %v15976_v26  ;;  %v9382_v13 = vld [vmem:[#allocation2 + $0x38] sm:$0x1]  ;;  %v15045_v8 = vrot.slane %v9501_v30, 5  ;;  %v9507_v17 = vrot.slane %v9505_v14, 4  ;;  %8504 = vrot.lane.b32.xlu0 %v15977_v47, %s11162_s24  ;;  %v6395_v7 = vld [vmem:[#allocation3 + $0xb4] sm:$0xf]  ;;  %v6266_v39 = vpop.permute.xlu1 %6265  ;;  %v6912_v26 = vpop.permute.xlu0 %6911 }
 0x468   : > { %v9460_v22 = vor.u32 %v9459_v60, %v15012_v53  ;;  %v9474_v34 = vor.u32 %v9473_v54, %v9470_v50  ;;  %v9484_v38 = vor.u32 %v9483_v42, %v15017_v52  ;;  %v9487_v15 = vshll.u32 %v9379_v6, 16  ;;  %6331 = vst.msk [vmem:[#allocation5 + $0x7c] sm:$0xf] %vm6299_vm6, %v6266_v39  ;;  %v6396_v60 = vld [vmem:[#allocation3 + $0xb8] sm:$0xf] }
 0x469   : > { %v9516_v35 = vshrl.u32 %v9383_v25, 16  ;;  %v9519_v0 = vshll.u32 %v9383_v25, 16  ;;  %v9525_v30 = vshll.u32 %v9384_v33, 16  ;;  %v9529_v44 = vshrl.u32 %v9384_v33, 16  ;;  %v6360_v14 = vld [vmem:[#allocation5 + $0x70] sm:$0xf] }
 0x46a   : > { %v15056_v48 = vrot.slane %v9463_v21, 5  ;;  %v9498_v36 = vor.u32 %v9497_v40, %v9494_v11  ;;  %v9511_v3 = vshll.u32 %v9382_v13, 16  ;;  %6427 = vst.msk [vmem:[#allocation5 + $0x70] sm:$0xf] %vm282_vm3, %v6395_v7  ;;  %v15978_v50 = vsel %vm11339_vm10, %v14755_v61, %v14746_v62  ;;  %v9385_v11 = vld [vmem:[#allocation2 + $0x44] sm:$0x1] }
 0x46b   : > { %8506 = vrot.lane.b32.xlu1 %v15978_v50, %s11162_s24  ;;  %6983 = vst.msk [vmem:[#allocation5 + $0x60] sm:$0xf] %vm5962_vm0, %v6912_v26  ;;  %v9432_v54 = vsel %vm11339_vm10, %v15020_v55, %v14980_v51  ;;  %v9442_v42 = vsel %vm11339_vm10, %v9437_v19, %v15022_v16  ;;  %v15073_v21 = vrot.slane %v9450_v58, 4  ;;  %v9508_v6 = vor.u32 %v9507_v17, %v15045_v8  ;;  %v9386_v40 = vld [vmem:[#allocation2 + $0x48] sm:$0xf]  ;;  %v6914_v19 = vpop.permute.xlu1 %6913 }
 0x46c   : > { %v15979_v62 = vsel %vm11339_vm10, %v14762_v49, %v14687_v45  ;;  %v15082_v61 = vrot.slane %v9460_v22, 4  ;;  %v15084_v51 = vrot.slane %v9474_v34, 4  ;;  %v15086_v55 = vrot.slane %v9484_v38, 4  ;;  %v9387_v25 = vld [vmem:[#allocation2 + $0x4c] sm:$0xf]  ;;  %v6916_v22 = vpop.permute.xlu0 %6915 }
 0x46d   : > { %8508 = vrot.lane.b32.xlu0 %v15979_v62, %s11162_s24  ;;  %v15088_v16 = vrot.slane %v9487_v15, 5  ;;  %v6361_v33 = vld [vmem:[#allocation5 + $0x74] sm:$0xf]  ;;  %v9518_v58 = vrot.slane %v9516_v35, 4  ;;  %v9521_v13 = vrot.slane %v9519_v0, 5  ;;  %v15090_v17 = vrot.slane %v9525_v30, 5 }
 0x46e   : > { %v9531_v47 = vrot.slane %v9529_v44, 4  ;;  %6428 = vst.msk [vmem:[#allocation5 + $0x74] sm:$0xf] %vm282_vm3, %v6396_v60  ;;  %v6397_v45 = vld [vmem:[#allocation3 + $0xc0] sm:$0xf]  ;;  %v10567_v34 = vcombine.low %v6360_v14, %v6361_v33  ;;  %v10642_v38 = vcombine.low %v9432_v54, %v9442_v42  ;;  %v15094_v7 = vrot.slane %v9498_v36, 4 }
 0x46f   : > { %v6362_v49 = vld [vmem:[#allocation5 + $0x78] sm:$0xf]  ;;  %6984 = vst.msk [vmem:[#allocation5 + $0x64] sm:$0xf] %vm5962_vm0, %v6914_v19  ;;  %v15096_v15 = vrot.slane %v9511_v3, 5  ;;  %v15980_v39 = vsel %vm11339_vm10, %v14764_v1, %v14757_v32  ;;  %v9509_v35 = vrot.slane %v9508_v6, 4  ;;  %v9456_v26 = vsel %vm11339_vm10, %v15073_v21, %v15012_v53  ;;  %v6918_v50 = vpop.permute.xlu1 %6917 }
 0x470   : > { %6429 = vst.msk [vmem:[#allocation5 + $0x78] sm:$0xf] %vm282_vm3, %v6397_v45  ;;  %8510 = vrot.lane.b32.xlu1 %v15980_v39, %s11162_s24  ;;  %v9535_v0 = vshll.u32 %v9385_v11, 16  ;;  %v9540_v30 = vshrl.u32 %v9386_v40, 16  ;;  %v9543_v44 = vshll.u32 %v9386_v40, 16  ;;  %11004 = vmatprep.mubr.msk.bf16.mxu0 %vm7452_vm5, %v10567_v34  ;;  %v9466_v32 = vsel %vm11339_vm10, %v15082_v61, %v15056_v48  ;;  %v7248_v48 = vpop.permute.xlu0 %7247 }
 0x471   : > { %6985 = vst.msk [vmem:[#allocation5 + $0x68] sm:$0xf] %vm5962_vm0, %v6916_v22  ;;  %v9389_v14 = vld [vmem:[#allocation2 + $0x54] sm:$0xf]  ;;  %8840 = vrot.lane.b32.xlu0 %v14789_v41, %s11164_s7  ;;  %v9549_v1 = vshll.u32 %v9387_v25, 16  ;;  %v9553_v36 = vshrl.u32 %v9387_v25, 16  ;;  %v9480_v41 = vsel %vm11339_vm10, %v15084_v51, %v15017_v52  ;;  %v9490_v53 = vsel %vm11339_vm10, %v15086_v55, %v15088_v16 }
 0x472   : > { %v6398_v3 = vld [vmem:[#allocation3 + $0xc4] sm:$0xf]  ;;  %v6363_v60 = vld [vmem:[#allocation5 + $0x7c] sm:$0xf]  ;;  %v9522_v54 = vor.u32 %v9521_v13, %v9518_v58  ;;  %v9532_v42 = vor.u32 %v9531_v47, %v15090_v17  ;;  %v9390_v21 = vld [vmem:[#allocation2 + $0x58] sm:$0xf]  ;;  %v9504_v52 = vsel %vm11339_vm10, %v15094_v7, %v15045_v8  ;;  %v9514_v61 = vsel %vm11339_vm10, %v9509_v35, %v15096_v15 }
 0x473   : > { %6430 = vst.msk [vmem:[#allocation5 + $0x7c] sm:$0xf] %vm282_vm3, %v6398_v3  ;;  %v10568_v6 = vcombine.low %v6362_v49, %v6363_v60  ;;  %v9564_v11 = vshrl.u32 %v9389_v14, 16  ;;  %v9567_v40 = vshll.u32 %v9389_v14, 16  ;;  %v9392_v62 = vld [vmem:[#allocation2 + $0x60] sm:$0xf]  ;;  %v7250_v13 = vpop.permute.xlu1 %7249  ;;  %v15981_v14 = vsel %vm11339_vm10, %v14828_v4, %v14771_v59 }
 0x474   : > { %6986 = vst.msk [vmem:[#allocation5 + $0x6c] sm:$0xf] %vm5962_vm0, %v6918_v50  ;;  %8842 = vrot.lane.b32.xlu1 %v14826_v63, %s11164_s7  ;;  %v15138_v51 = vrot.slane %v9535_v0, 5  ;;  %v9542_v55 = vrot.slane %v9540_v30, 4  ;;  %v9545_v16 = vrot.slane %v9543_v44, 5  ;;  %v15143_v33 = vrot.slane %v9549_v1, 5  ;;  %v7252_v34 = vpop.permute.xlu0 %7251 }
 0x475   : > { %7319 = vst.msk [vmem:[#allocation5 + $0x60] sm:$0xf] %vm6299_vm6, %v7248_v48  ;;  %v9393_v25 = vld [vmem:[#allocation2 + $0x64] sm:$0xf]  ;;  %11005 = vmatmul.mubr.msk.bf16.gmra.mxu0 %vm7452_vm5, %v10568_v6  ;;  %8844 = vrot.lane.b32.xlu0 %v14836_v5, %s11164_s7  ;;  %v9388_v8 = vld [vmem:[#allocation2 + $0x50] sm:$0x1]  ;;  %v10643_v0 = vcombine.low %v9456_v26, %v9466_v32  ;;  %v10644_v30 = vcombine.low %v9480_v41, %v9490_v53 }
 0x476   : > { %v9555_v63 = vrot.slane %v9553_v36, 4  ;;  %v9573_v19 = vshll.u32 %v9390_v21, 16  ;;  %v9577_v58 = vshrl.u32 %v9390_v21, 16  ;;  %11046 = vmatprep.mubr.msk.bf16.mxu0 %vm9852_vm13, %v10642_v38  ;;  %v9523_v47 = vrot.slane %v9522_v54, 4  ;;  %7320 = vst.msk [vmem:[#allocation5 + $0x64] sm:$0xf] %vm6299_vm6, %v7250_v13 }
 0x477   : > { %v9533_v45 = vrot.slane %v9532_v42, 4  ;;  %v9588_v49 = vshrl.u32 %v9392_v62, 16  ;;  %v9591_v22 = vshll.u32 %v9392_v62, 16  ;;  %v9391_v7 = vld [vmem:[#allocation2 + $0x5c] sm:$0x1]  ;;  %v9566_v15 = vrot.slane %v9564_v11, 4  ;;  %v7254_v32 = vpop.permute.xlu1 %7253 }
 0x478   : > { %v9569_v39 = vrot.slane %v9567_v40, 5  ;;  %v9597_v5 = vshll.u32 %v9393_v25, 16  ;;  %v9601_v35 = vshrl.u32 %v9393_v25, 16  ;;  %8846 = vrot.lane.b32.xlu1 %v14840_v12, %s11164_s7  ;;  %7321 = vst.msk [vmem:[#allocation5 + $0x68] sm:$0xf] %vm6299_vm6, %v7252_v34  ;;  %v15150_v38 = vcombine.low %v9504_v52, %v9514_v61  ;;  %v6920_v59 = vpop.permute.xlu0 %6919 }
 0x479   : > { %v9559_v44 = vshll.u32 %v9388_v8, 16  ;;  %8512 = vrot.lane.b32.xlu0 %v15981_v14, %s11162_s24  ;;  %v9546_v1 = vor.u32 %v9545_v16, %v9542_v55  ;;  %v9556_v36 = vor.u32 %v9555_v63, %v15143_v33  ;;  %v15159_v3 = vrot.slane %v9573_v19, 5  ;;  %v9395_v60 = vld [vmem:[#allocation2 + $0x6c] sm:$0xf]  ;;  %v9396_v50 = vld [vmem:[#allocation2 + $0x70] sm:$0xf] }
 0x47a   : > { %v9579_v12 = vrot.slane %v9577_v58, 4  ;;  %v7992_v26 = vld [vmem:[#allocation3 + $0xa8] sm:$0xf]  ;;  %v9528_v41 = vsel %vm11339_vm10, %v9523_v47, %v15090_v17  ;;  %v9583_v53 = vshll.u32 %v9391_v7, 16  ;;  %v15164_v54 = vrot.slane %v9588_v49, 4 }
 0x47b   : > { %v9593_v42 = vrot.slane %v9591_v22, 5  ;;  %7322 = vst.msk [vmem:[#allocation5 + $0x6c] sm:$0xf] %vm6299_vm6, %v7254_v32  ;;  %v9538_v21 = vsel %vm11339_vm10, %v9533_v45, %v15138_v51  ;;  %v9570_v48 = vor.u32 %v9569_v39, %v9566_v15  ;;  %v9394_v6 = vld [vmem:[#allocation2 + $0x68] sm:$0x1]  ;;  %v15170_v52 = vrot.slane %v9597_v5, 5  ;;  %v6922_v58 = vpop.permute.xlu1 %6921 }
 0x47c   : > { %v7351_v4 = vld [vmem:[#allocation5 + $0x60] sm:$0xf]  ;;  %v9603_v11 = vrot.slane %v9601_v35, 4  ;;  %v15982_v17 = vsel %vm11339_vm10, %v14852_v18, %v14854_v31  ;;  %6987 = vst.msk [vmem:[#allocation5 + $0x70] sm:$0xf] %vm5962_vm0, %v6920_v59  ;;  %v9612_v40 = vshrl.u32 %v9395_v60, 16  ;;  %v15983_v25 = vsel %vm11339_vm10, %v14867_v10, %v14814_v57  ;;  %v6924_v34 = vpop.permute.xlu0 %6923 }
 0x47d   : > { %8024 = vst.msk [vmem:[#allocation5 + $0x60] sm:$0xf] %vm282_vm3, %v7992_v26  ;;  %8514 = vrot.lane.b32.xlu1 %v15982_v17, %s11162_s24  ;;  %v9615_v62 = vshll.u32 %v9395_v60, 16  ;;  %v9621_v61 = vshll.u32 %v9396_v50, 16  ;;  %v9625_v51 = vshrl.u32 %v9396_v50, 16  ;;  %8516 = vrot.lane.b32.xlu0 %v15983_v25, %s11162_s24  ;;  %v15189_v18 = vrot.slane %v9546_v1, 4 }
 0x47e   : > { %v15180_v55 = vld [vmem:[#allocation2 + $0x78] sm:$0xf]  ;;  %v7993_v16 = vld [vmem:[#allocation3 + $0xac] sm:$0xf]  ;;  %11047 = vmatmul.mubr.msk.bf16.vlgmr.msra.gmra.mxu0 %vm9852_vm13, %v10643_v0  ;;  %v15191_v31 = vrot.slane %v9556_v36, 4  ;;  %v15193_v8 = vrot.slane %v9559_v44, 5  ;;  %v9580_v63 = vor.u32 %v9579_v12, %v15159_v3  ;;  %v15197_v13 = vcombine.low %v9528_v41, %v9538_v21  ;;  %v15236_v21 = vpop.f32.mrf.mxu0 }
 0x47f   : > { %v7352_v19 = vld [vmem:[#allocation5 + $0x64] sm:$0xf]  ;;  %11050 = vmatprep.mubr.msk.bf16.mxu0 %vm9852_vm13, %v10644_v30  ;;  %v15199_v47 = vrot.slane %v9583_v53, 5  ;;  %v9594_v57 = vor.u32 %v9593_v42, %v15164_v54  ;;  %v9607_v10 = vshll.u32 %v9394_v6, 16  ;;  %v9399_v45 = vld [vmem:[#allocation2 + $0x7c] sm:$0xf]  ;;  %v9604_v39 = vor.u32 %v9603_v11, %v15170_v52  ;;  %v6926_v41 = vpop.permute.xlu1 %6925 }
 0x480   : > { %8025 = vst.msk [vmem:[#allocation5 + $0x64] sm:$0xf] %vm282_vm3, %v7993_v16  ;;  %v7994_v49 = vld [vmem:[#allocation3 + $0xb4] sm:$0xf]  ;;  %v7353_v22 = vld [vmem:[#allocation5 + $0x68] sm:$0xf]  ;;  %v10531_v7 = vcombine.low %v7351_v4, %v7352_v19  ;;  %v15984_v0 = vsel %vm11339_vm10, %v14888_v46, %v14869_v27  ;;  %v9552_v53 = vsel %vm11339_vm10, %v15189_v18, %v15143_v33  ;;  %v9562_v54 = vsel %vm11339_vm10, %v15191_v31, %v15193_v8 }
 0x481   : > { %6988 = vst.msk [vmem:[#allocation5 + $0x74] sm:$0xf] %vm5962_vm0, %v6922_v58  ;;  %v15204_v15 = vrot.slane %v9570_v48, 4  ;;  %v9636_v5 = vshrl.u32 %v15180_v55, 16  ;;  %v7995_v35 = vld [vmem:[#allocation3 + $0xb8] sm:$0xf]  ;;  %8518 = vrot.lane.b32.xlu1 %v15984_v0, %s11162_s24  ;;  %v7256_v48 = vpop.permute.xlu0 %7255  ;;  %v8453_v58 = vsel %vm11339_vm10, %v14978_v28, %v14915_v56 }
 0x482   : > { %8026 = vst.msk [vmem:[#allocation5 + $0x68] sm:$0xf] %vm282_vm3, %v7994_v49  ;;  %v9397_v30 = vld [vmem:[#allocation2 + $0x74] sm:$0x1]  ;;  %v9614_v44 = vrot.slane %v9612_v40, 4  ;;  %v9617_v14 = vrot.slane %v9615_v62, 5  ;;  %10964 = vmatprep.mubr.msk.bf16.mxu1 %vm7452_vm5, %v10531_v7  ;;  %v15257_v49 = vpop.f32.mrf.mxu0 }
 0x483   : > { %6989 = vst.msk [vmem:[#allocation5 + $0x78] sm:$0xf] %vm5962_vm0, %v6924_v34  ;;  %v15216_v1 = vrot.slane %v9621_v61, 5  ;;  %v9627_v36 = vrot.slane %v9625_v51, 4  ;;  %v15985_v12 = vld [vmem:[#allocation7_spill] sm:$0xff]  ;;  %v15221_v60 = vrot.slane %v9580_v63, 4  ;;  %v7258_v19 = vpop.permute.xlu1 %7257  ;;  %v9576_v34 = vsel %vm11339_vm10, %v15204_v15, %v15159_v3 }
 0x484   : > { %8848 = vrot.lane.b32.xlu0 %v15985_v12, %s11164_s7  ;;  %v9639_v50 = vshll.u32 %v15180_v55, 16  ;;  %v9645_v26 = vshll.u32 %v9399_v45, 16  ;;  %v9649_v27 = vshrl.u32 %v9399_v45, 16  ;;  %v9401_v46 = vld [vmem:[#allocation2 + $0x84] sm:$0xf]  ;;  %v15232_v42 = vrot.slane %v9594_v57, 4 }
 0x485   : > { %v7354_v32 = vld [vmem:[#allocation5 + $0x6c] sm:$0xf]  ;;  %v15234_v4 = vrot.slane %v9607_v10, 5  ;;  %v9400_v59 = vld [vmem:[#allocation2 + $0x80] sm:$0x1]  ;;  %v9605_v11 = vrot.slane %v9604_v39, 4  ;;  %v9618_v61 = vor.u32 %v9617_v14, %v9614_v44  ;;  %v9628_v51 = vor.u32 %v9627_v36, %v15216_v1  ;;  %v15288_v39 = vpop.f32.mrf.mxu1 }
 0x486   : > { %8027 = vst.msk [vmem:[#allocation5 + $0x6c] sm:$0xf] %vm282_vm3, %v7995_v35  ;;  %v10532_v6 = vcombine.low %v7353_v22, %v7354_v32  ;;  %v9631_v33 = vshll.u32 %v9397_v30, 16  ;;  %v15240_v17 = vrot.slane %v9636_v5, 4  ;;  %v9402_v40 = vld [vmem:[#allocation2 + $0x88] sm:$0xf]  ;;  %11051 = vmatmul.mubr.msk.bf16.gmra.mxu0 %vm9852_vm13, %v15150_v38  ;;  %v10647_v57 = vcombine.low %v9552_v53, %v9562_v54  ;;  %v7260_v22 = vpop.permute.xlu0 %7259 }
 0x487   : > { %6990 = vst.msk [vmem:[#allocation5 + $0x7c] sm:$0xf] %vm5962_vm0, %v6926_v41  ;;  %v15986_v62 = vld [vmem:[#allocation6_spill] sm:$0xff]  ;;  %v9660_v55 = vshrl.u32 %v9401_v46, 16  ;;  %v9663_v16 = vshll.u32 %v9401_v46, 16  ;;  %v15987_v25 = vld [vmem:[#allocation9_spill] sm:$0xff]  ;;  %11054 = vmatprep.mubr.msk.bf16.mxu0 %vm9852_vm13, %v15197_v13  ;;  %v9586_v56 = vsel %vm11339_vm10, %v15221_v60, %v15199_v47  ;;  %v9600_v28 = vsel %vm11339_vm10, %v15232_v42, %v15170_v52  ;;  %v7262_v14 = vpop.permute.xlu1 %7261 }
 0x488   : > { %8850 = vrot.lane.b32.xlu1 %v15986_v62, %s11164_s7  ;;  %7323 = vst.msk [vmem:[#allocation5 + $0x70] sm:$0xf] %vm6299_vm6, %v7256_v48  ;;  %10965 = vmatmul.mubr.msk.bf16.gmra.mxu1 %vm7452_vm5, %v10532_v6  ;;  %v9641_v18 = vrot.slane %v9639_v50, 5  ;;  %v15249_v31 = vrot.slane %v9645_v26, 5  ;;  %v9651_v8 = vrot.slane %v9649_v27, 4  ;;  %v9655_v63 = vshll.u32 %v9400_v59, 16 }
 0x489   : > { %8852 = vrot.lane.b32.xlu0 %v15987_v25, %s11164_s7  ;;  %v9669_v10 = vshll.u32 %v9402_v40, 16  ;;  %v9673_v45 = vshrl.u32 %v9402_v40, 16  ;;  %7324 = vst.msk [vmem:[#allocation5 + $0x74] sm:$0xf] %vm6299_vm6, %v7258_v19  ;;  %v9610_v38 = vsel %vm11339_vm10, %v9605_v11, %v15234_v4  ;;  %v15277_v13 = vld [vmem:[#allocation2 + $0x90] sm:$0xf]  ;;  %v15988_v5 = vsel %vm11339_vm10, %v14927_v2, %v14861_v29  ;;  %v15310_v2 = vpop.f32.mrf.mxu0  ;;  %v15340_v25 = vpop.f32.mrf.mxu1 }
 0x48a   : > { %7325 = vst.msk [vmem:[#allocation5 + $0x78] sm:$0xf] %vm6299_vm6, %v7260_v22  ;;  %v15282_v3 = vrot.slane %v9618_v61, 4  ;;  %v15284_v7 = vrot.slane %v9631_v33, 5  ;;  %v15286_v47 = vrot.slane %v9660_v55, 4  ;;  %v9665_v15 = vrot.slane %v9663_v16, 5  ;;  %v8465_v27 = vpop.permute.xlu0 %8464 }
 0x48b   : > { %v7996_v52 = vld [vmem:[#allocation3 + $0xc0] sm:$0xf]  ;;  %v9642_v35 = vor.u32 %v9641_v18, %v15240_v17  ;;  %v9652_v0 = vor.u32 %v9651_v8, %v15249_v31  ;;  %v15300_v30 = vrot.slane %v9655_v63, 5  ;;  %v9405_v44 = vld [vmem:[#allocation2 + $0x94] sm:$0xf]  ;;  %v15304_v12 = vrot.slane %v9669_v10, 5 }
 0x48c   : > { %8854 = vrot.lane.b32.xlu1 %v14936_v24, %s11164_s7  ;;  %v15296_v24 = vrot.slane %v9628_v51, 4  ;;  %v15302_v36 = vld [vmem:[#allocation2 + $0x8c] sm:$0x1]  ;;  %v15306_v60 = vrot.slane %v9673_v45, 4  ;;  %v9684_v50 = vshrl.u32 %v15277_v13, 16  ;;  %v9687_v29 = vshll.u32 %v15277_v13, 16 }
 0x48d   : > { %8520 = vrot.lane.b32.xlu0 %v15988_v5, %s11162_s24  ;;  %7326 = vst.msk [vmem:[#allocation5 + $0x7c] sm:$0xf] %vm6299_vm6, %v7262_v14  ;;  %v15989_v46 = vld [vmem:[#allocation13_spill] sm:$0xff]  ;;  %v15990_v32 = vld [vmem:[#allocation14_spill] sm:$0xff]  ;;  %v15991_v53 = vld [vmem:[#allocation8_spill] sm:$0xff]  ;;  %v15993_v42 = vrot.slane %v15006_v37, 9  ;;  %v10648_v59 = vcombine.low %v9576_v34, %v9586_v56  ;;  %v15325_v48 = vcombine.low %v9600_v28, %v9610_v38  ;;  %v9624_v37 = vsel %vm11339_vm10, %v15282_v3, %v15216_v1  ;;  %v8467_v1 = vpop.permute.xlu1 %8466  ;;  %v15349_v38 = vpop.f32.mrf.mxu0 }
 0x48e   : > { %v8463_v41 = vsel %vm11339_vm10, %v15990_v32, %v15989_v46  ;;  %v15992_v54 = vrot.slane %v15991_v53, 5  ;;  %v9407_v6 = vld [vmem:[#allocation2 + $0x9c] sm:$0xf]  ;;  %v9408_v11 = vld [vmem:[#allocation2 + $0xa0] sm:$0xf]  ;;  %v15994_v40 = vld [vmem:[#allocation10_spill] sm:$0xff]  ;;  %v9666_v51 = vor.u32 %v9665_v15, %v15286_v47  ;;  %v9634_v18 = vsel %vm11339_vm10, %v15296_v24, %v15284_v7  ;;  %11055 = vmatmul.mubr.msk.bf16.gmra.mxu0 %vm9852_vm13, %v10647_v57  ;;  %v8469_v13 = vpop.permute.xlu0 %8468 }
 0x48f   : > { %v7355_v26 = vld [vmem:[#allocation5 + $0x70] sm:$0xf]  ;;  %v7997_v33 = vld [vmem:[#allocation3 + $0xc4] sm:$0xf]  ;;  %v7998_v17 = vld [vmem:[#allocation3 + $0xcc] sm:$0xf]  ;;  %11058 = vmatprep.mubr.msk.bf16.mxu0 %vm9852_vm13, %v10648_v59  ;;  %v9676_v7 = vor.u32 %v15306_v60, %v15304_v12  ;;  %v10650_v14 = vcombine.low %v9624_v37, %v9634_v18 }
 0x490   : > { %v15323_v4 = vsel %vm11326_vm9, %v15993_v42, %v15992_v54  ;;  %8028 = vst.msk [vmem:[#allocation5 + $0x70] sm:$0xf] %vm282_vm3, %v7996_v52  ;;  %v15995_v62 = vld [vmem:[#allocation12_spill] sm:$0xff]  ;;  %v9693_v55 = vshll.u32 %v9405_v44, 16  ;;  %v9697_v16 = vshrl.u32 %v9405_v44, 16  ;;  %v9643_v8 = vrot.slane %v9642_v35, 4  ;;  %v10982_v44 = vpop.f32.mrf.mxu0 }
 0x491   : > { %v15996_v61 = vsel %vm11339_vm10, %v15994_v40, %v15995_v62  ;;  %8560 = vst.msk [vmem:[#allocation5] sm:$0xf] %vm5962_vm0, %v8465_v27  ;;  %8524 = vrot.lane.b32.xlu0 %v8453_v58, %s11162_s24  ;;  %v9653_v63 = vrot.slane %v9652_v0, 4  ;;  %v9679_v19 = vshll.u32 %v15302_v36, 16  ;;  %v9406_v10 = vld [vmem:[#allocation2 + $0x98] sm:$0x1]  ;;  %v15363_v0 = vpop.f32.mrf.mxu1  ;;  %v8471_v46 = vpop.permute.xlu1 %8470 }
 0x492   : > { %8522 = vrot.lane.b32.xlu1 %v15996_v61, %s11162_s24  ;;  %v7356_v45 = vld [vmem:[#allocation5 + $0x74] sm:$0xf]  ;;  %v9708_v22 = vshrl.u32 %v9407_v6, 16  ;;  %v9711_v34 = vshll.u32 %v9407_v6, 16  ;;  %v9717_v56 = vshll.u32 %v9408_v11, 16  ;;  %v9721_v28 = vshrl.u32 %v9408_v11, 16 }
 0x493   : > { %8029 = vst.msk [vmem:[#allocation5 + $0x74] sm:$0xf] %vm282_vm3, %v7997_v33  ;;  %v7357_v58 = vld [vmem:[#allocation5 + $0x78] sm:$0xf]  ;;  %v10533_v3 = vcombine.low %v7355_v26, %v7356_v45  ;;  %v9686_v47 = vrot.slane %v9684_v50, 4  ;;  %v9689_v57 = vrot.slane %v9687_v29, 5  ;;  %v9648_v36 = vsel %vm11339_vm10, %v9643_v8, %v15249_v31 }
 0x494   : > { %8561 = vst.msk [vmem:[#allocation5 + $0x4] sm:$0xf] %vm5962_vm0, %v8467_v1  ;;  %v7999_v15 = vld [vmem:[#allocation3 + $0xd0] sm:$0xf]  ;;  %8562 = vst.msk [vmem:[#allocation5 + $0x8] sm:$0xf] %vm5962_vm0, %v8469_v13  ;;  %v9658_v60 = vsel %vm11339_vm10, %v9653_v63, %v15300_v30 }
 0x495   : > { %8030 = vst.msk [vmem:[#allocation5 + $0x78] sm:$0xf] %vm282_vm3, %v7998_v17  ;;  %v15359_v52 = vrot.slane %v9666_v51, 4  ;;  %v15361_v5 = vrot.slane %v9693_v55, 5  ;;  %v9699_v24 = vrot.slane %v9697_v16, 4  ;;  %v9703_v35 = vshll.u32 %v9406_v10, 16  ;;  %10968 = vmatprep.mubr.msk.bf16.mxu1 %vm7452_vm5, %v10533_v3  ;;  %8856 = vrot.lane.b32.xlu0 %v15031_v43, %s11164_s7  ;;  %v8801_v43 = vpop.permute.xlu0 %8800  ;;  %v15391_v51 = vpop.f32.mrf.mxu1 }
 0x496   : > { %8526 = vrot.lane.b32.xlu1 %v8463_v41, %s11162_s24  ;;  %v9409_v50 = vld [vmem:[#allocation2 + $0xa4] sm:$0x1]  ;;  %v9410_v29 = vld [vmem:[#allocation2 + $0xa8] sm:$0xf]  ;;  %v9411_v26 = vld [vmem:[#allocation2 + $0xac] sm:$0xf]  ;;  %v9690_v6 = vor.u32 %v9689_v57, %v9686_v47  ;;  %v15386_v40 = vcombine.low %v9648_v36, %v9658_v60  ;;  %v7856_v55 = vpop.f32.mrf.mxu0  ;;  %v8803_v63 = vpop.permute.xlu1 %8802  ;;  %11059 = vmatmul.mubr.msk.bf16.gmra.mxu0 %vm9852_vm13, %v15325_v48 }
 0x497   : > { %v7358_v27 = vld [vmem:[#allocation5 + $0x7c] sm:$0xf]  ;;  %v9710_v32 = vrot.slane %v9708_v22, 4  ;;  %v9713_v41 = vrot.slane %v9711_v34, 5  ;;  %v15374_v53 = vrot.slane %v9717_v56, 5  ;;  %v9723_v54 = vrot.slane %v9721_v28, 4  ;;  %v10946_v22 = vpop.f32.mrf.mxu1  ;;  %11062 = vmatprep.mubr.msk.bf16.mxu0 %vm9852_vm13, %v10650_v14 }
 0x498   : > { %8031 = vst.msk [vmem:[#allocation5 + $0x7c] sm:$0xf] %vm282_vm3, %v7999_v15  ;;  %v10534_v31 = vcombine.low %v7357_v58, %v7358_v27  ;;  %v9677_v42 = vrot.slane %v9676_v7, 4  ;;  %v9681_v59 = vrot.slane %v9679_v19, 5  ;;  %v15997_v30 = vld [vmem:[#allocation11_spill] sm:$0xff]  ;;  %v9700_v62 = vor.u32 %v9699_v24, %v15361_v5  ;;  %v10983_v7 = vpop.f32.mrf.mxu0 }
 0x499   : > { %8563 = vst.msk [vmem:[#allocation5 + $0xc] sm:$0xf] %vm5962_vm0, %v8471_v46  ;;  %v15998_v11 = vrot.slane %v15997_v30, 5  ;;  %v15999_v33 = vld [vmem:[#allocation15_spill] sm:$0xff]  ;;  %v15389_v61 = vrot.slane %v9703_v35, 5  ;;  %8860 = vrot.lane.b32.xlu0 %v15323_v4, %s11164_s7  ;;  %v9732_v16 = vshrl.u32 %v9410_v29, 16  ;;  %v9672_v19 = vsel %vm11339_vm10, %v15359_v52, %v15304_v12  ;;  %v8805_v4 = vpop.permute.xlu0 %8804  ;;  %v7555_v47 = vpop.f32.mrf.mxu1 }
 0x49a   : > { %8858 = vrot.lane.b32.xlu1 %v15038_v20, %s11164_s7  ;;  %8896 = vst.msk [vmem:[#allocation5] sm:$0xf] %vm6299_vm6, %v8801_v43  ;;  %v9413_v37 = vld [vmem:[#allocation2 + $0xb4] sm:$0xf]  ;;  %10969 = vmatmul.mubr.msk.bf16.gmra.mxu1 %vm7452_vm5, %v10534_v31  ;;  %v9727_v20 = vshll.u32 %v9409_v50, 16  ;;  %v9735_v18 = vshll.u32 %v9410_v29, 16  ;;  %v9714_v10 = vor.u32 %v9713_v41, %v9710_v32  ;;  %v9724_v45 = vor.u32 %v9723_v54, %v15374_v53  ;;  %v8807_v35 = vpop.permute.xlu1 %8806 }
 0x49b   : > { %v8799_v17 = vsel %vm11326_vm9, %v15999_v33, %v15998_v11  ;;  %v9741_v9 = vshll.u32 %v9411_v26, 16  ;;  %v9414_v8 = vld [vmem:[#allocation2 + $0xb8] sm:$0xf]  ;;  %v9745_v1 = vshrl.u32 %v9411_v26, 16  ;;  %8897 = vst.msk [vmem:[#allocation5 + $0x4] sm:$0xf] %vm6299_vm6, %v8803_v63  ;;  %v9682_v34 = vsel %vm11339_vm10, %v9677_v42, %v9681_v59  ;;  %v10947_v26 = vpop.f32.mrf.mxu1  ;;  %v7859_v59 = vpop.f32.mrf.mxu0 }
 0x49c   : > { %v9691_v56 = vrot.slane %v9690_v6, 4  ;;  %v9756_v48 = vshrl.u32 %v9413_v37, 16  ;;  %v9759_v28 = vshll.u32 %v9413_v37, 16  ;;  %8898 = vst.msk [vmem:[#allocation5 + $0x8] sm:$0xf] %vm6299_vm6, %v8805_v4  ;;  %v15409_v12 = vadd.f32 %v10982_v44, %v10946_v22 }
 0x49d   : > { %v9701_v58 = vrot.slane %v9700_v62, 4  ;;  %v9765_v13 = vshll.u32 %v9414_v8, 16  ;;  %v9769_v3 = vshrl.u32 %v9414_v8, 16  ;;  %v9729_v57 = vrot.slane %v9727_v20, 5  ;;  %v9412_v50 = vld [vmem:[#allocation2 + $0xb0] sm:$0x1]  ;;  %v8473_v44 = vpop.permute.xlu0 %8472  ;;  %v7558_v6 = vpop.f32.mrf.mxu1 }
 0x49e   : > { %8862 = vrot.lane.b32.xlu1 %v8799_v17, %s11164_s7  ;;  %v9734_v15 = vrot.slane %v9732_v16, 4  ;;  %v9737_v52 = vrot.slane %v9735_v18, 5  ;;  %v15411_v24 = vrot.slane %v9741_v9, 5  ;;  %v15413_v14 = vadd.f32 %v7856_v55, %v7555_v47  ;;  %8899 = vst.msk [vmem:[#allocation5 + $0xc] sm:$0xf] %vm6299_vm6, %v8807_v35  ;;  %v8475_v37 = vpop.permute.xlu1 %8474  ;;  %11063 = vmatmul.mubr.msk.bf16.gmra.mxu0 %vm9852_vm13, %v15386_v40 }
 0x49f   : > { %v9715_v36 = vrot.slane %v9714_v10, 4  ;;  %v9725_v60 = vrot.slane %v9724_v45, 4  ;;  %v9747_v29 = vrot.slane %v9745_v1, 4  ;;  %v10652_v27 = vcombine.low %v9672_v19, %v9682_v34  ;;  %8564 = vst.msk [vmem:[#allocation5 + $0x10] sm:$0xf] %vm5962_vm0, %v8473_v44 }
 0x4a0   : > { %v9758_v46 = vrot.slane %v9756_v48, 4  ;;  %v9761_v32 = vrot.slane %v9759_v28, 5  ;;  %v15417_v41 = vadd.f32 %v10983_v7, %v10947_v26  ;;  %v15419_v54 = vrot.slane %v9765_v13, 5  ;;  %v9416_v31 = vld [vmem:[#allocation2 + $0xc0] sm:$0xf] }
 0x4a1   : > { %v9771_v43 = vrot.slane %v9769_v3, 4  ;;  %v9417_v42 = vld [vmem:[#allocation2 + $0xc4] sm:$0xf]  ;;  %v9696_v30 = vsel %vm11339_vm10, %v9691_v56, %v15361_v5  ;;  %v9706_v11 = vsel %vm11339_vm10, %v9701_v58, %v15389_v61  ;;  %v9738_v33 = vor.u32 %v9737_v52, %v9734_v15  ;;  %v9415_v62 = vld [vmem:[#allocation2 + $0xbc] sm:$0x1]  ;;  %v8477_v61 = vpop.permute.xlu0 %8476  ;;  %11066 = vmatprep.mubr.msk.bf16.mxu0 %vm9852_vm13, %v10652_v27 }
 0x4a2   : > { %v9751_v17 = vshll.u32 %v9412_v50, 16  ;;  %v11133_v55 = vld [vmem:[#allocation5] sm:$0xff]   ;;  %v15427_v20 = vadd.f32 %v7859_v59, %v7558_v6  ;;  %v9720_v16 = vsel %vm11339_vm10, %v9715_v36, %v15374_v53  ;;  %v9730_v5 = vsel %vm11339_vm10, %v9725_v60, %v9729_v57  ;;  %8565 = vst.msk [vmem:[#allocation5 + $0x14] sm:$0xf] %vm5962_vm0, %v8475_v37  ;;  %8566 = vst.msk [vmem:[#allocation5 + $0x18] sm:$0xf] %vm5962_vm0, %v8477_v61  ;;  %v8479_v1 = vpop.permute.xlu1 %8478 }
 0x4a3   : > { %v9748_v18 = vor.u32 %v9747_v29, %v15411_v24  ;;  %v9780_v9 = vshrl.u32 %v9416_v31, 16  ;;  %v9783_v8 = vshll.u32 %v9416_v31, 16  ;;  %v9789_v63 = vshll.u32 %v9417_v42, 16  ;;  %11012 = vmatprep.mubr.msk.bf16.mxu1 %vm7452_vm5, %v11133_v55  ;;  %8567 = vst.msk [vmem:[#allocation5 + $0x1c] sm:$0xf] %vm5962_vm0, %v8479_v1 }
 0x4a4   : > { %v9793_v19 = vshrl.u32 %v9417_v42, 16  ;;  %v9762_v40 = vor.u32 %v9761_v32, %v9758_v46  ;;  %v9772_v53 = vor.u32 %v9771_v43, %v15419_v54  ;;  %v9775_v10 = vshll.u32 %v9415_v62, 16  ;;  %v9418_v52 = vld [vmem:[#allocation2 + $0xc8] sm:$0x1] }
 0x4a5   : > { %v10653_v45 = vcombine.low %v9696_v30, %v9706_v11  ;;  %v11134_v4 = vld [vmem:[#allocation5 + $0x8] sm:$0xff]   ;;  %v10654_v22 = vcombine.low %v9720_v16, %v9730_v5  ;;  %v9739_v34 = vrot.slane %v9738_v33, 4  ;;  %v9749_v56 = vrot.slane %v9748_v18, 4  ;;  %v8809_v28 = vpop.permute.xlu0 %8808 }
 0x4a6   : > { %v9753_v48 = vrot.slane %v9751_v17, 5  ;;  %v9782_v58 = vrot.slane %v9780_v9, 4  ;;  %v9785_v13 = vrot.slane %v9783_v8, 5  ;;  %v9791_v3 = vrot.slane %v9789_v63, 5  ;;  %8900 = vst.msk [vmem:[#allocation5 + $0x10] sm:$0xf] %vm6299_vm6, %v8809_v28  ;;  %11013 = vmatmul.mubr.msk.bf16.vlgmr.msra.gmra.mxu1 %vm7452_vm5, %v11134_v4  ;;  %v8811_v35 = vpop.permute.xlu1 %8810  ;;  %v10986_v9 = vpop.f32.mrf.mxu0 }
 0x4a7   : > { %v9795_v7 = vrot.slane %v9793_v19, 4  ;;  %v9763_v47 = vrot.slane %v9762_v40, 4  ;;  %v9773_v57 = vrot.slane %v9772_v53, 4  ;;  %v9777_v15 = vrot.slane %v9775_v10, 5  ;;  %11067 = vmatmul.mubr.msk.bf16.gmra.mxu0 %vm9852_vm13, %v10653_v45  ;;  %8901 = vst.msk [vmem:[#allocation5 + $0x14] sm:$0xf] %vm6299_vm6, %v8811_v35 }
 0x4a8   : > { %v9744_v36 = vsel %vm11339_vm10, %v9739_v34, %v15411_v24  ;;  %11070 = vmatprep.mubr.msk.bf16.mxu0 %vm9852_vm13, %v10654_v22  ;;  %v9754_v50 = vsel %vm11339_vm10, %v9749_v56, %v9753_v48  ;;  %v9786_v29 = vor.u32 %v9785_v13, %v9782_v58  ;;  %v9799_v26 = vshll.u32 %v9418_v52, 16  ;;  %v7872_v40 = vpop.f32.mrf.mxu0 }
 0x4a9   : > { %v8813_v60 = vpop.permute.xlu0 %8812  ;;  %v9796_v44 = vor.u32 %v9795_v7, %v9791_v3  ;;  %v9768_v27 = vsel %vm11339_vm10, %v9763_v47, %v15419_v54  ;;  %v9778_v24 = vsel %vm11339_vm10, %v9773_v57, %v9777_v15  ;;  %v10655_v32 = vcombine.low %v9744_v36, %v9754_v50  ;;  %v10950_v1 = vpop.f32.mrf.mxu1 }
 0x4aa   : > { %8902 = vst.msk [vmem:[#allocation5 + $0x18] sm:$0xf] %vm6299_vm6, %v8813_v60  ;;  %v8815_v46 = vpop.permute.xlu1 %8814  ;;  %v10656_v31 = vcombine.low %v9768_v27, %v9778_v24  ;;  %v9787_v42 = vrot.slane %v9786_v29, 4  ;;  %v9801_v6 = vrot.slane %v9799_v26, 5  ;;  %v10987_v4 = vpop.f32.mrf.mxu0  ;;  %v15484_v22 = vadd.f32 %v10986_v9, %v10950_v1 }
 0x4ab   : > { %8903 = vst.msk [vmem:[#allocation5 + $0x1c] sm:$0xf] %vm6299_vm6, %v8815_v46  ;;  %v9797_v59 = vrot.slane %v9796_v44, 4  ;;  %v7571_v56 = vpop.f32.mrf.mxu1  ;;  %vm10202_vm9 = vcmask 64512  }
 0x4ac   : > { %v9792_v33 = vsel %vm11339_vm10, %v9787_v42, %v9791_v3  ;;  %v15487_v28 = vadd.f32 %v7872_v40, %v7571_v56  ;;  %v7875_v13 = vpop.f32.mrf.mxu0 }
 0x4ad   : > { %v8481_v43 = vpop.permute.xlu0 %8480  ;;  %v9802_v17 = vsel %vm11339_vm10, %v9797_v59, %v9801_v6  ;;  %v10951_v58 = vpop.f32.mrf.mxu1 }
 0x4ae   : > { %8568 = vst.msk [vmem:[#allocation5 + $0x20] sm:$0xf] %vm5962_vm0, %v8481_v43  ;;  %v8483_v30 = vpop.permute.xlu1 %8482  ;;  %v11135_v11 = vld [vmem:[#allocation5 + $0x10] sm:$0xff]   ;;  %v10657_v55 = vcombine.low %v9792_v33, %v9802_v17  ;;  %v15490_v3 = vadd.f32 %v10987_v4, %v10951_v58  ;;  %v10990_v46 = vpop.f32.mrf.mxu0 }
 0x4af   : > { %11071 = vmatmul.mubr.msk.bf16.gmra.mxu0 %vm9852_vm13, %v10655_v32  ;;  %8569 = vst.msk [vmem:[#allocation5 + $0x24] sm:$0xf] %vm5962_vm0, %v8483_v30  ;;  %11016 = vmatprep.mubr.msk.bf16.mxu1 %vm7452_vm5, %v11135_v11  ;;  %v7574_v47 = vpop.f32.mrf.mxu1 }
 0x4b0   : > { %11074 = vmatprep.mubr.msk.bf16.mxu0 %vm9852_vm13, %v10656_v31  ;;  %v15493_v15 = vadd.f32 %v7875_v13, %v7574_v47  ;;  %v7888_v42 = vpop.f32.mrf.mxu0 }
 0x4b1   : > { %v8485_v54 = vpop.permute.xlu0 %8484 }
 0x4b2   : > { %8570 = vst.msk [vmem:[#allocation5 + $0x28] sm:$0xf] %vm5962_vm0, %v8485_v54  ;;  %v8487_v62 = vpop.permute.xlu1 %8486  ;;  %v11136_v37 = vld [vmem:[#allocation5 + $0x18] sm:$0xff]   ;;  %v10991_v54 = vpop.f32.mrf.mxu0 }
 0x4b3   : > { %8571 = vst.msk [vmem:[#allocation5 + $0x2c] sm:$0xf] %vm5962_vm0, %v8487_v62  ;;  %11017 = vmatmul.mubr.msk.bf16.gmra.mxu1 %vm7452_vm5, %v11136_v37 }
 0x4b5   : > { %v8817_v16 = vpop.permute.xlu0 %8816 }
 0x4b6   : > { %8904 = vst.msk [vmem:[#allocation5 + $0x20] sm:$0xf] %vm6299_vm6, %v8817_v16  ;;  %v8819_v5 = vpop.permute.xlu1 %8818 }
 0x4b7   : > { %11075 = vmatmul.mubr.msk.bf16.gmra.mxu0 %vm9852_vm13, %v10657_v55  ;;  %8905 = vst.msk [vmem:[#allocation5 + $0x24] sm:$0xf] %vm6299_vm6, %v8819_v5  ;;  %v7891_v5 = vpop.f32.mrf.mxu0 }
 0x4b9   : > { %v8821_v23 = vpop.permute.xlu0 %8820 }
 0x4ba   : > { %8906 = vst.msk [vmem:[#allocation5 + $0x28] sm:$0xf] %vm6299_vm6, %v8821_v23  ;;  %v8823_v18 = vpop.permute.xlu1 %8822 }
 0x4bb   : > { %8907 = vst.msk [vmem:[#allocation5 + $0x2c] sm:$0xf] %vm6299_vm6, %v8823_v18 }
 0x4bd   : > { %v8489_v61 = vpop.permute.xlu0 %8488 }
 0x4be   : > { %8572 = vst.msk [vmem:[#allocation5 + $0x30] sm:$0xf] %vm5962_vm0, %v8489_v61  ;;  %v8491_v8 = vpop.permute.xlu1 %8490  ;;  %v11137_v63 = vld [vmem:[#allocation5 + $0x20] sm:$0xff]  }
 0x4bf   : > { %8573 = vst.msk [vmem:[#allocation5 + $0x34] sm:$0xf] %vm5962_vm0, %v8491_v8  ;;  %11020 = vmatprep.mubr.msk.bf16.mxu1 %vm7452_vm5, %v11137_v63 }
 0x4c1   : > { %v8493_v19 = vpop.permute.xlu0 %8492 }
 0x4c2   : > { %8574 = vst.msk [vmem:[#allocation5 + $0x38] sm:$0xf] %vm5962_vm0, %v8493_v19  ;;  %v8495_v53 = vpop.permute.xlu1 %8494  ;;  %v11138_v10 = vld [vmem:[#allocation5 + $0x28] sm:$0xff]  }
 0x4c3   : > { %8575 = vst.msk [vmem:[#allocation5 + $0x3c] sm:$0xf] %vm5962_vm0, %v8495_v53  ;;  %11021 = vmatmul.mubr.msk.bf16.gmra.mxu1 %vm7452_vm5, %v11138_v10 }
 0x4c5   : > { %v8825_v45 = vpop.permute.xlu0 %8824 }
 0x4c6   : > { %8908 = vst.msk [vmem:[#allocation5 + $0x30] sm:$0xf] %vm6299_vm6, %v8825_v45  ;;  %v8827_v34 = vpop.permute.xlu1 %8826 }
 0x4c7   : > { %8909 = vst.msk [vmem:[#allocation5 + $0x34] sm:$0xf] %vm6299_vm6, %v8827_v34 }
 0x4c9   : > { %v8829_v48 = vpop.permute.xlu0 %8828 }
 0x4ca   : > { %8910 = vst.msk [vmem:[#allocation5 + $0x38] sm:$0xf] %vm6299_vm6, %v8829_v48  ;;  %v8831_v7 = vpop.permute.xlu1 %8830  ;;  %v10994_v48 = vpop.f32.mrf.mxu0 }
 0x4cb   : > { %8911 = vst.msk [vmem:[#allocation5 + $0x3c] sm:$0xf] %vm6299_vm6, %v8831_v7 }
 0x4cc   : > { %v7904_v47 = vpop.f32.mrf.mxu0 }
 0x4cd   : > { %v8497_v57 = vpop.permute.xlu0 %8496 }
 0x4ce   : > { %8576 = vst.msk [vmem:[#allocation5 + $0x40] sm:$0xf] %vm5962_vm0, %v8497_v57  ;;  %v8499_v52 = vpop.permute.xlu1 %8498  ;;  %v11139_v35 = vld [vmem:[#allocation5 + $0x30] sm:$0xff]  }
 0x4cf   : > { %8577 = vst.msk [vmem:[#allocation5 + $0x44] sm:$0xf] %vm5962_vm0, %v8499_v52  ;;  %11024 = vmatprep.mubr.msk.bf16.mxu1 %vm7452_vm5, %v11139_v35 }
 0x4d0   : > { %v10954_v11 = vpop.f32.mrf.mxu1 }
 0x4d1   : > { %v8501_v36 = vpop.permute.xlu0 %8500  ;;  %v15512_v33 = vadd.f32 %v10990_v46, %v10954_v11 }
 0x4d2   : > { %8578 = vst.msk [vmem:[#allocation5 + $0x48] sm:$0xf] %vm5962_vm0, %v8501_v36  ;;  %v8503_v60 = vpop.permute.xlu1 %8502  ;;  %v11140_v50 = vld [vmem:[#allocation5 + $0x38] sm:$0xff]   ;;  %v7587_v62 = vpop.f32.mrf.mxu1 }
 0x4d3   : > { %8579 = vst.msk [vmem:[#allocation5 + $0x4c] sm:$0xf] %vm5962_vm0, %v8503_v60  ;;  %11025 = vmatmul.mubr.msk.bf16.gmra.mxu1 %vm7452_vm5, %v11140_v50  ;;  %v15515_v55 = vadd.f32 %v7888_v42, %v7587_v62  ;;  %v10995_v60 = vpop.f32.mrf.mxu0 }
 0x4d4   : > { %v10955_v16 = vpop.f32.mrf.mxu1 }
 0x4d5   : > { %v8833_v29 = vpop.permute.xlu0 %8832  ;;  %v15518_v23 = vadd.f32 %v10991_v54, %v10955_v16 }
 0x4d6   : > { %8912 = vst.msk [vmem:[#allocation5 + $0x40] sm:$0xf] %vm6299_vm6, %v8833_v29  ;;  %v8835_v44 = vpop.permute.xlu1 %8834  ;;  %v7590_v61 = vpop.f32.mrf.mxu1 }
 0x4d7   : > { %8913 = vst.msk [vmem:[#allocation5 + $0x44] sm:$0xf] %vm6299_vm6, %v8835_v44  ;;  %v15521_v8 = vadd.f32 %v7891_v5, %v7590_v61 }
 0x4d9   : > { %v8837_v26 = vpop.permute.xlu0 %8836 }
 0x4da   : > { %8914 = vst.msk [vmem:[#allocation5 + $0x48] sm:$0xf] %vm6299_vm6, %v8837_v26  ;;  %v8839_v27 = vpop.permute.xlu1 %8838 }
 0x4db   : > { %8915 = vst.msk [vmem:[#allocation5 + $0x4c] sm:$0xf] %vm6299_vm6, %v8839_v27 }
 0x4dd   : > { %v8505_v24 = vpop.permute.xlu0 %8504 }
 0x4de   : > { %8580 = vst.msk [vmem:[#allocation5 + $0x50] sm:$0xf] %vm5962_vm0, %v8505_v24  ;;  %v8507_v32 = vpop.permute.xlu1 %8506  ;;  %v11141_v43 = vld [vmem:[#allocation5 + $0x40] sm:$0xff]  }
 0x4df   : > { %8581 = vst.msk [vmem:[#allocation5 + $0x54] sm:$0xf] %vm5962_vm0, %v8507_v32  ;;  %11028 = vmatprep.mubr.msk.bf16.mxu1 %vm7452_vm5, %v11141_v43  ;;  %v7907_v43 = vpop.f32.mrf.mxu0 }
 0x4e1   : > { %v8509_v31 = vpop.permute.xlu0 %8508 }
 0x4e2   : > { %8582 = vst.msk [vmem:[#allocation5 + $0x58] sm:$0xf] %vm5962_vm0, %v8509_v31  ;;  %v8511_v59 = vpop.permute.xlu1 %8510  ;;  %v11142_v6 = vld [vmem:[#allocation5 + $0x48] sm:$0xff]  }
 0x4e3   : > { %8583 = vst.msk [vmem:[#allocation5 + $0x5c] sm:$0xf] %vm5962_vm0, %v8511_v59  ;;  %11029 = vmatmul.mubr.msk.bf16.gmra.mxu1 %vm7452_vm5, %v11142_v6 }
 0x4e5   : > { %v8841_v30 = vpop.permute.xlu0 %8840 }
 0x4e6   : > { %8916 = vst.msk [vmem:[#allocation5 + $0x50] sm:$0xf] %vm6299_vm6, %v8841_v30  ;;  %v8843_v17 = vpop.permute.xlu1 %8842  ;;  %v10998_v30 = vpop.f32.mrf.mxu0 }
 0x4e7   : > { %8917 = vst.msk [vmem:[#allocation5 + $0x54] sm:$0xf] %vm6299_vm6, %v8843_v17 }
 0x4e8   : > { %v7920_v11 = vpop.f32.mrf.mxu0 }
 0x4e9   : > { %v8845_v37 = vpop.permute.xlu0 %8844 }
 0x4ea   : > { %8918 = vst.msk [vmem:[#allocation5 + $0x58] sm:$0xf] %vm6299_vm6, %v8845_v37  ;;  %v8847_v18 = vpop.permute.xlu1 %8846  ;;  %v10999_v54 = vpop.f32.mrf.mxu0 }
 0x4eb   : > { %8919 = vst.msk [vmem:[#allocation5 + $0x5c] sm:$0xf] %vm6299_vm6, %v8847_v18 }
 0x4ec   : > { %v7923_v17 = vpop.f32.mrf.mxu0 }
 0x4ed   : > { %v8513_v9 = vpop.permute.xlu0 %8512 }
 0x4ee   : > { %8584 = vst.msk [vmem:[#allocation5 + $0x60] sm:$0xf] %vm5962_vm0, %v8513_v9  ;;  %v11143_v19 = vld [vmem:[#allocation5 + $0x50] sm:$0xff]  }
 0x4ef   : > { %v8515_v63 = vpop.permute.xlu1 %8514  ;;  %11032 = vmatprep.mubr.msk.bf16.mxu1 %vm7452_vm5, %v11143_v19 }
 0x4f0   : > { %8585 = vst.msk [vmem:[#allocation5 + $0x64] sm:$0xf] %vm5962_vm0, %v8515_v63 }
 0x4f1   : > { %v8517_v40 = vpop.permute.xlu0 %8516 }
 0x4f2   : > { %8586 = vst.msk [vmem:[#allocation5 + $0x68] sm:$0xf] %vm5962_vm0, %v8517_v40  ;;  %v11144_v10 = vld [vmem:[#allocation5 + $0x58] sm:$0xff]  }
 0x4f3   : > { %v8519_v53 = vpop.permute.xlu1 %8518  ;;  %11033 = vmatmul.mubr.msk.bf16.gmra.mxu1 %vm7452_vm5, %v11144_v10 }
 0x4f4   : > { %8587 = vst.msk [vmem:[#allocation5 + $0x6c] sm:$0xf] %vm5962_vm0, %v8519_v53 }
 0x4f6   : > { %v8849_v45 = vpop.permute.xlu0 %8848 }
 0x4f7   : > { %8920 = vst.msk [vmem:[#allocation5 + $0x60] sm:$0xf] %vm6299_vm6, %v8849_v45 }
 0x4f8   : > { %v10958_v36 = vpop.f32.mrf.mxu1 }
 0x4f9   : > { %v15540_v50 = vadd.f32 %v10994_v48, %v10958_v36 }
 0x4fa   : > { %v8851_v1 = vpop.permute.xlu1 %8850  ;;  %v7603_v44 = vpop.f32.mrf.mxu1 }
 0x4fb   : > { %8921 = vst.msk [vmem:[#allocation5 + $0x64] sm:$0xf] %vm6299_vm6, %v8851_v1  ;;  %v8853_v4 = vpop.permute.xlu0 %8852  ;;  %v15543_v27 = vadd.f32 %v7904_v47, %v7603_v44 }
 0x4fc   : > { %8922 = vst.msk [vmem:[#allocation5 + $0x68] sm:$0xf] %vm6299_vm6, %v8853_v4  ;;  %v10959_v24 = vpop.f32.mrf.mxu1 }
 0x4fd   : > { %v15546_v46 = vadd.f32 %v10995_v60, %v10959_v24 }
 0x4fe   : > { %v8855_v34 = vpop.permute.xlu1 %8854  ;;  %v7606_v31 = vpop.f32.mrf.mxu1 }
 0x4ff   : > { %8923 = vst.msk [vmem:[#allocation5 + $0x6c] sm:$0xf] %vm6299_vm6, %v8855_v34  ;;  %v8521_v56 = vpop.permute.xlu0 %8520  ;;  %v15549_v42 = vadd.f32 %v7907_v43, %v7606_v31 }
 0x500   : > { %8588 = vst.msk [vmem:[#allocation5 + $0x70] sm:$0xf] %vm5962_vm0, %v8521_v56 }
 0x502   : > { %v11145_v13 = vld [vmem:[#allocation5 + $0x60] sm:$0xff]  }
 0x503   : > { %v8525_v7 = vpop.permute.xlu0 %8524  ;;  %11036 = vmatprep.mubr.msk.bf16.mxu1 %vm7452_vm5, %v11145_v13 }
 0x504   : > { %v8523_v58 = vpop.permute.xlu1 %8522  ;;  %8590 = vst.msk [vmem:[#allocation5 + $0x78] sm:$0xf] %vm5962_vm0, %v8525_v7 }
 0x505   : > { %8589 = vst.msk [vmem:[#allocation5 + $0x74] sm:$0xf] %vm5962_vm0, %v8523_v58 }
 0x506   : > { %v11146_v52 = vld [vmem:[#allocation5 + $0x68] sm:$0xff]  }
 0x507   : > { %v8857_v35 = vpop.permute.xlu0 %8856  ;;  %11037 = vmatmul.mubr.msk.bf16.gmra.mxu1 %vm7452_vm5, %v11146_v52 }
 0x508   : > { %v8527_v57 = vpop.permute.xlu1 %8526  ;;  %8924 = vst.msk [vmem:[#allocation5 + $0x70] sm:$0xf] %vm6299_vm6, %v8857_v35 }
 0x509   : > { %8591 = vst.msk [vmem:[#allocation5 + $0x7c] sm:$0xf] %vm5962_vm0, %v8527_v57 }
 0x50b   : > { %v8861_v26 = vpop.permute.xlu0 %8860 }
 0x50c   : > { %v8859_v29 = vpop.permute.xlu1 %8858  ;;  %8926 = vst.msk [vmem:[#allocation5 + $0x78] sm:$0xf] %vm6299_vm6, %v8861_v26  ;;  %v11002_v16 = vpop.f32.mrf.mxu0 }
 0x50d   : > { %8925 = vst.msk [vmem:[#allocation5 + $0x74] sm:$0xf] %vm6299_vm6, %v8859_v29 }
 0x50e   : > { %v7936_v63 = vpop.f32.mrf.mxu0 }
 0x510   : > { %v8863_v32 = vpop.permute.xlu1 %8862  ;;  %v11003_v53 = vpop.f32.mrf.mxu0 }
 0x511   : > { %8927 = vst.msk [vmem:[#allocation5 + $0x7c] sm:$0xf] %vm6299_vm6, %v8863_v32 }
 0x512   : > { %v7939_v10 = vpop.f32.mrf.mxu0 }
 0x514   : > { %v11147_v59 = vld [vmem:[#allocation5 + $0x70] sm:$0xff]  }
 0x515   : > { %11040 = vmatprep.mubr.msk.bf16.mxu1 %vm7452_vm5, %v11147_v59 }
 0x518   : > { %v11148_v6 = vld [vmem:[#allocation5 + $0x78] sm:$0xff]  }
 0x519   : > { %11041 = vmatmul.mubr.msk.bf16.gmra.mxu1 %vm7452_vm5, %v11148_v6 }
 0x522   : > { %v10962_v62 = vpop.f32.mrf.mxu1 }
 0x523   : > { %v15553_v37 = vadd.f32 %v10998_v30, %v10962_v62 }
 0x524   : > { %v7619_v5 = vpop.f32.mrf.mxu1 }
 0x525   : > { %v15555_v18 = vadd.f32 %v7920_v11, %v7619_v5 }
 0x526   : > { %v10963_v61 = vpop.f32.mrf.mxu1 }
 0x527   : > { %v15557_v9 = vadd.f32 %v10999_v54, %v10963_v61 }
 0x528   : > { %v7622_v19 = vpop.f32.mrf.mxu1 }
 0x529   : > { %v15559_v40 = vadd.f32 %v7923_v17, %v7622_v19 }
 0x535   : > { %v11006_v45 = vpop.f32.mrf.mxu0 }
 0x537   : > { %v7952_v1 = vpop.f32.mrf.mxu0 }
 0x539   : > { %v11007_v4 = vpop.f32.mrf.mxu0 }
 0x53b   : > { %v7955_v34 = vpop.f32.mrf.mxu0 }
 0x53e   : > { %v11048_v56 = vpop.f32.mrf.mxu0 }
 0x540   : > { %v9939_v48 = vpop.f32.mrf.mxu0 }
 0x542   : > { %v11049_v58 = vpop.f32.mrf.mxu0 }
 0x544   : > { %v9942_v13 = vpop.f32.mrf.mxu0 }
 0x546   : > { %v15563_v57 = vpop.f32.mrf.mxu0 }
 0x548   : > { %v10966_v7 = vpop.f32.mrf.mxu1  ;;  %v15567_v36 = vpop.f32.mrf.mxu0 }
 0x549   : > { %v15561_v47 = vadd.f32 %v11002_v16, %v10966_v7 }
 0x54a   : > { %v7635_v52 = vpop.f32.mrf.mxu1  ;;  %v15571_v44 = vpop.f32.mrf.mxu0 }
 0x54b   : > { %v15565_v35 = vadd.f32 %v7936_v63, %v7635_v52 }
 0x54c   : > { %v10967_v60 = vpop.f32.mrf.mxu1  ;;  %v15575_v32 = vpop.f32.mrf.mxu0 }
 0x54d   : > { %16000 = vst [vmem:[#allocation7_spill] sm:$0xff] %v15565_v35  ;;  %v15569_v29 = vadd.f32 %v11003_v53, %v10967_v60 }
 0x54e   : > { %v7638_v26 = vpop.f32.mrf.mxu1  ;;  %v15577_v43 = vpop.f32.mrf.mxu0 }
 0x54f   : > { %16001 = vst [vmem:[#allocation6_spill] sm:$0xff] %v15569_v29  ;;  %v15573_v24 = vadd.f32 %v7939_v10, %v7638_v26 }
 0x550   : > { %v15579_v31 = vpop.f32.mrf.mxu0 }
 0x551   : > { %16002 = vst [vmem:[#allocation9_spill] sm:$0xff] %v15573_v24 }
 0x552   : > { %v15581_v59 = vpop.f32.mrf.mxu0 }
 0x554   : > { %v15583_v6 = vpop.f32.mrf.mxu0 }
 0x556   : > { %v15587_v54 = vpop.f32.mrf.mxu0 }
 0x558   : > { %v15591_v16 = vpop.f32.mrf.mxu0 }
 0x55a   : > { %v10970_v30 = vpop.f32.mrf.mxu1  ;;  %v15595_v63 = vpop.f32.mrf.mxu0 }
 0x55b   : > { %v15585_v11 = vadd.f32 %v11006_v45, %v10970_v30  ;;  %v15604_v45 = vld [vmem:[%s15921_s3 + $0x4] ss:$0 sm:$0xff] }
 0x55c   : > { %v7651_v17 = vpop.f32.mrf.mxu1  ;;  %v15599_v10 = vpop.f32.mrf.mxu0  ;;  %v10072_v26 = vmul.f32 %v11048_v56, %v15604_v45  ;;  %v7841_v56 = vadd.f32 %v15257_v49, %v15340_v25  ;;  %v10073_v49 = vmul.f32 %v11049_v58, %v15604_v45  ;;  %v10071_v24 = vmul.f32 %v15604_v45, %v9942_v13 }
 0x55d   : > { %16003 = vst [vmem:[#allocation13_spill] sm:$0xff] %v15585_v11  ;;  %v15589_v62 = vadd.f32 %v7952_v1, %v7651_v17  ;;  %v7849_v17 = vadd.f32 %v15236_v21, %v15288_v39 }
 0x55e   : > { %v10971_v5 = vpop.f32.mrf.mxu1  ;;  %v11064_v7 = vpop.f32.mrf.mxu0 }
 0x55f   : > { %16004 = vst [vmem:[#allocation14_spill] sm:$0xff] %v15589_v62  ;;  %v15593_v61 = vadd.f32 %v11007_v4, %v10971_v5  ;;  %v10088_v1 = vmul.f32 %v11064_v7, %v15604_v45  ;;  %v15610_v4 = vld [vmem:[%s15921_s3 + $0x5] ss:$0 sm:$0xff]  ;;  %v15626_v7 = vld [vmem:[%s15921_s3 + $0x2] ss:$0 sm:$0xff] }
 0x560   : > { %v7654_v19 = vpop.f32.mrf.mxu1  ;;  %v10003_v52 = vpop.f32.mrf.mxu0  ;;  %v10108_v62 = vadd.f32 %v15610_v4, %v10072_v26 }
 0x561   : > { %16005 = vst [vmem:[#allocation8_spill] sm:$0xff] %v15593_v61  ;;  %v15597_v53 = vadd.f32 %v7955_v34, %v7654_v19  ;;  %v15613_v60 = vadd.f32 %v15610_v4, %v10088_v1  ;;  %v10086_v34 = vmul.f32 %v15604_v45, %v10003_v52 }
 0x562   : > { %v11065_v30 = vpop.f32.mrf.mxu0 }
 0x563   : > { %16006 = vst [vmem:[#allocation10_spill] sm:$0xff] %v15597_v53  ;;  %v15620_v5 = vadd.f32 %v15610_v4, %v10086_v34  ;;  %v10089_v19 = vmul.f32 %v11065_v30, %v15604_v45  ;;  %v10070_v53 = vmul.f32 %v15604_v45, %v9939_v48  ;;  %v7852_v34 = vadd.f32 %v15310_v2, %v15363_v0  ;;  %v15640_v30 = vld [vmem:[%s15921_s3 + $0x3] ss:$0 sm:$0xff] }
 0x564   : > { %v10006_v52 = vpop.f32.mrf.mxu0  ;;  %v7844_v0 = vadd.f32 %v15349_v38, %v15391_v51 }
 0x565   : > { %v15632_v21 = vadd.f32 %v15610_v4, %v10089_v19  ;;  %v10087_v39 = vmul.f32 %v15604_v45, %v10006_v52  ;;  %v10106_v11 = vadd.f32 %v15610_v4, %v10070_v53 }
 0x566   : > { %v11014_v1 = vpop.f32.mrf.mxu1 }
 0x567   : > { %v9267_v61 = vadd.f32 %v11014_v1, %v7849_v17  ;;  %v11068_v25 = vpop.f32.mrf.mxu0  ;;  %v15646_v1 = vadd.f32 %v15610_v4, %v10087_v39 }
 0x568   : > { %v9138_v48 = vpop.f32.mrf.mxu1  ;;  %v10092_v2 = vmul.f32 %v11068_v25, %v15604_v45 }
 0x569   : > { %v9303_v17 = vmul.f32 %v15626_v7, %v9267_v61  ;;  %v9265_v19 = vadd.f32 %v9138_v48, %v7841_v56  ;;  %v10019_v26 = vpop.f32.mrf.mxu0  ;;  %v10109_v48 = vadd.f32 %v15610_v4, %v10073_v49 }
 0x56a   : > { %v11015_v52 = vpop.f32.mrf.mxu1  ;;  %v15657_v56 = vadd.f32 %v15610_v4, %v10092_v2  ;;  %v10090_v38 = vmul.f32 %v15604_v45, %v10019_v26 }
 0x56b   : > { %v9339_v58 = vadd.f32 %v15640_v30, %v9303_v17  ;;  %v9301_v29 = vmul.f32 %v15626_v7, %v9265_v19  ;;  %v9268_v61 = vadd.f32 %v11015_v52, %v7852_v34  ;;  %v11069_v51 = vpop.f32.mrf.mxu0  ;;  %v10107_v34 = vadd.f32 %v15610_v4, %v10071_v24 }
 0x56c   : > { %v9141_v39 = vpop.f32.mrf.mxu1  ;;  %v15670_v49 = vadd.f32 %v15610_v4, %v10090_v38  ;;  %v10093_v17 = vmul.f32 %v11069_v51, %v15604_v45 }
 0x56d   : > { %v9337_v53 = vadd.f32 %v15640_v30, %v9301_v29  ;;  %v10140_v25 = vadd.f32 %v10108_v62, %v9339_v58  ;;  %v9304_v13 = vmul.f32 %v15626_v7, %v9268_v61  ;;  %v9266_v35 = vadd.f32 %v9141_v39, %v7844_v0  ;;  %v10022_v29 = vpop.f32.mrf.mxu0 }
 0x56e   : > { %v15676_v52 = vadd.f32 %v15610_v4, %v10093_v17  ;;  %v10091_v26 = vmul.f32 %v15604_v45, %v10022_v29  ;;  %v10076_v17 = vmul.f32 %v15563_v57, %v15604_v45 }
 0x56f   : > { %v10172_v62 = vmax.f32 %v10140_v25, 0.0  ;;  %v9340_v19 = vadd.f32 %v15640_v30, %v9304_v13  ;;  %v10138_v2 = vadd.f32 %v10106_v11, %v9337_v53  ;;  %v9302_v0 = vmul.f32 %v15626_v7, %v9266_v35  ;;  %v11072_v24 = vpop.f32.mrf.mxu0 }
 0x570   : > { %v10096_v38 = vmul.f32 %v11072_v24, %v15604_v45  ;;  %v15684_v51 = vadd.f32 %v15610_v4, %v10091_v26 }
 0x571   : > { %10205 = vst.msk [vmem:[%s15666_s19 + $0x10] sm:$0xff] %vm10202_vm9, %v10172_v62  ;;  %v10170_v58 = vmax.f32 %v10138_v2, 0.0  ;;  %v9338_v61 = vadd.f32 %v15640_v30, %v9302_v0  ;;  %v10141_v39 = vadd.f32 %v10109_v48, %v9340_v19  ;;  %v10035_v35 = vpop.f32.mrf.mxu0 }
 0x572   : > { %v15689_v25 = vadd.f32 %v15610_v4, %v10096_v38  ;;  %v10094_v13 = vmul.f32 %v15604_v45, %v10035_v35 }
 0x573   : > { %10203 = vst.msk [vmem:[%s15666_s19] sm:$0xff] %vm10202_vm9, %v10170_v58  ;;  %v10173_v11 = vmax.f32 %v10141_v39, 0.0  ;;  %v10139_v53 = vadd.f32 %v10107_v34, %v9338_v61  ;;  %v11073_v48 = vpop.f32.mrf.mxu0  ;;  %v11018_v2 = vpop.f32.mrf.mxu1  ;;  %v10074_v34 = vmul.f32 %v15604_v45, %v15567_v36  ;;  %v10112_v61 = vadd.f32 %v15610_v4, %v10076_v17 }
 0x574   : > { %v15697_v62 = vadd.f32 %v15610_v4, %v10094_v13  ;;  %v10097_v19 = vmul.f32 %v11073_v48, %v15604_v45  ;;  %v9271_v26 = vadd.f32 %v11018_v2, %v15409_v12  ;;  %v10077_v39 = vmul.f32 %v15571_v44, %v15604_v45 }
 0x575   : > { %10206 = vst.msk [vmem:[%s15666_s19 + $0x18] sm:$0xff] %vm10202_vm9, %v10173_v11  ;;  %v10171_v29 = vmax.f32 %v10139_v53, 0.0  ;;  %v10038_v0 = vpop.f32.mrf.mxu0  ;;  %v9154_v58 = vpop.f32.mrf.mxu1  ;;  %v10110_v13 = vadd.f32 %v15610_v4, %v10074_v34  ;;  %v10075_v48 = vmul.f32 %v15604_v45, %v15575_v32 }
 0x576   : > { %v15706_v57 = vadd.f32 %v15610_v4, %v10097_v19  ;;  %v10095_v24 = vmul.f32 %v15604_v45, %v10038_v0  ;;  %v9307_v35 = vmul.f32 %v15626_v7, %v9271_v26  ;;  %v9269_v36 = vadd.f32 %v9154_v58, %v15413_v14 }
 0x577   : > { %10204 = vst.msk [vmem:[%s15666_s19 + $0x8] sm:$0xff] %vm10202_vm9, %v10171_v29  ;;  %v11076_v38 = vpop.f32.mrf.mxu0  ;;  %v11019_v53 = vpop.f32.mrf.mxu1  ;;  %v10113_v0 = vadd.f32 %v15610_v4, %v10077_v39 }
 0x578   : > { %v15715_v11 = vadd.f32 %v15610_v4, %v10095_v24  ;;  %v10100_v12 = vmul.f32 %v11076_v38, %v15604_v45  ;;  %v9343_v29 = vadd.f32 %v15640_v30, %v9307_v35  ;;  %v9305_v44 = vmul.f32 %v15626_v7, %v9269_v36 }
 0x579   : > { %v10051_v17 = vpop.f32.mrf.mxu0  ;;  %v9272_v19 = vadd.f32 %v11019_v53, %v15417_v41  ;;  %v9157_v2 = vpop.f32.mrf.mxu1  ;;  %v10111_v41 = vadd.f32 %v15610_v4, %v10075_v48 }
 0x57a   : > { %v15725_v14 = vadd.f32 %v15610_v4, %v10100_v12  ;;  %v10098_v26 = vmul.f32 %v15604_v45, %v10051_v17  ;;  %v9341_v24 = vadd.f32 %v15640_v30, %v9305_v44  ;;  %v10144_v32 = vadd.f32 %v10112_v61, %v9343_v29 }
 0x57b   : > { %v11077_v34 = vpop.f32.mrf.mxu0  ;;  %v9308_v58 = vmul.f32 %v15626_v7, %v9272_v19  ;;  %v9270_v38 = vadd.f32 %v9157_v2, %v15427_v20 }
 0x57c   : > { %v15734_v35 = vadd.f32 %v15610_v4, %v10098_v26  ;;  %v10101_v36 = vmul.f32 %v11077_v34, %v15604_v45  ;;  %v10176_v12 = vmax.f32 %v10144_v32, 0.0  ;;  %v10142_v17 = vadd.f32 %v10110_v13, %v9341_v24 }
 0x57d   : > { %v10054_v39 = vpop.f32.mrf.mxu0  ;;  %v9344_v53 = vadd.f32 %v15640_v30, %v9308_v58  ;;  %v9306_v61 = vmul.f32 %v15626_v7, %v9270_v38  ;;  %v10080_v24 = vmul.f32 %v15577_v43, %v15604_v45  ;;  %v10079_v43 = vmul.f32 %v15604_v45, %v15583_v6 }
 0x57e   : > { %v15740_v29 = vadd.f32 %v15610_v4, %v10101_v36  ;;  %v10099_v20 = vmul.f32 %v15604_v45, %v10054_v39  ;;  %10209 = vst.msk [vmem:[%s15666_s19 + $0x30] sm:$0xff] %vm10202_vm9, %v10176_v12  ;;  %v10174_v48 = vmax.f32 %v10142_v17, 0.0  ;;  %v10081_v36 = vmul.f32 %v15581_v59, %v15604_v45 }
 0x57f   : > { %v9342_v44 = vadd.f32 %v15640_v30, %v9306_v61  ;;  %v10145_v19 = vadd.f32 %v10113_v0, %v9344_v53  ;;  %v10078_v0 = vmul.f32 %v15604_v45, %v15579_v31  ;;  %v10116_v12 = vadd.f32 %v15610_v4, %v10080_v24 }
 0x580   : > { %v15747_v2 = vadd.f32 %v15610_v4, %v10099_v20  ;;  %10207 = vst.msk [vmem:[%s15666_s19 + $0x20] sm:$0xff] %vm10202_vm9, %v10174_v48  ;;  %v10117_v20 = vadd.f32 %v15610_v4, %v10081_v36  ;;  %v10084_v36 = vmul.f32 %v15587_v54, %v15604_v45  ;;  %v10083_v54 = vmul.f32 %v15604_v45, %v15599_v10 }
 0x581   : > { %v10177_v13 = vmax.f32 %v10145_v19, 0.0  ;;  %v10143_v26 = vadd.f32 %v10111_v41, %v9342_v44  ;;  %v10114_v61 = vadd.f32 %v15610_v4, %v10078_v0  ;;  %v10115_v19 = vadd.f32 %v15610_v4, %v10079_v43 }
 0x582   : > { %v10085_v43 = vmul.f32 %v15595_v63, %v15604_v45 }
 0x583   : > { %10210 = vst.msk [vmem:[%s15666_s19 + $0x38] sm:$0xff] %vm10202_vm9, %v10177_v13  ;;  %v10175_v34 = vmax.f32 %v10143_v26, 0.0  ;;  %v11022_v32 = vpop.f32.mrf.mxu1 }
 0x584   : > { %v9275_v58 = vadd.f32 %v11022_v32, %v15484_v22 }
 0x585   : > { %10208 = vst.msk [vmem:[%s15666_s19 + $0x28] sm:$0xff] %vm10202_vm9, %v10175_v34  ;;  %v9170_v38 = vpop.f32.mrf.mxu1 }
 0x586   : > { %v9311_v41 = vmul.f32 %v15626_v7, %v9275_v58  ;;  %v9273_v39 = vadd.f32 %v9170_v38, %v15487_v28 }
 0x587   : > { %v11023_v53 = vpop.f32.mrf.mxu1 }
 0x588   : > { %v9347_v22 = vadd.f32 %v15640_v30, %v9311_v41  ;;  %v9309_v17 = vmul.f32 %v15626_v7, %v9273_v39  ;;  %v9276_v31 = vadd.f32 %v11023_v53, %v15490_v3 }
 0x589   : > { %v9173_v59 = vpop.f32.mrf.mxu1 }
 0x58a   : > { %v9345_v28 = vadd.f32 %v15640_v30, %v9309_v17  ;;  %v10148_v48 = vadd.f32 %v10116_v12, %v9347_v22  ;;  %v9312_v44 = vmul.f32 %v15626_v7, %v9276_v31  ;;  %v9274_v6 = vadd.f32 %v9173_v59, %v15493_v15 }
 0x58b   : > { %v10082_v12 = vmul.f32 %v15604_v45, %v15591_v16  ;;  %v10120_v31 = vadd.f32 %v15610_v4, %v10084_v36  ;;  %v10119_v45 = vadd.f32 %v15610_v4, %v10083_v54 }
 0x58c   : > { %v10180_v13 = vmax.f32 %v10148_v48, 0.0  ;;  %v9348_v3 = vadd.f32 %v15640_v30, %v9312_v44  ;;  %v10146_v26 = vadd.f32 %v10114_v61, %v9345_v28  ;;  %v9310_v34 = vmul.f32 %v15626_v7, %v9274_v6 }
 0x58d   : > { %v10121_v28 = vadd.f32 %v15610_v4, %v10085_v43 }
 0x58e   : > { %10213 = vst.msk [vmem:[%s15666_s19 + $0x50] sm:$0xff] %vm10202_vm9, %v10180_v13  ;;  %v10178_v24 = vmax.f32 %v10146_v26, 0.0  ;;  %v9346_v32 = vadd.f32 %v15640_v30, %v9310_v34  ;;  %v10149_v58 = vadd.f32 %v10117_v20, %v9348_v3  ;;  %v10118_v20 = vadd.f32 %v15610_v4, %v10082_v12 }
 0x590   : > { %10211 = vst.msk [vmem:[%s15666_s19 + $0x40] sm:$0xff] %vm10202_vm9, %v10178_v24  ;;  %v10181_v0 = vmax.f32 %v10149_v58, 0.0  ;;  %v10147_v38 = vadd.f32 %v10115_v19, %v9346_v32 }
 0x592   : > { %10214 = vst.msk [vmem:[%s15666_s19 + $0x58] sm:$0xff] %vm10202_vm9, %v10181_v0  ;;  %v10179_v15 = vmax.f32 %v10147_v38, 0.0 }
 0x593   : > { %v11026_v41 = vpop.f32.mrf.mxu1 }
 0x594   : > { %10212 = vst.msk [vmem:[%s15666_s19 + $0x48] sm:$0xff] %vm10202_vm9, %v10179_v15  ;;  %v9279_v39 = vadd.f32 %v11026_v41, %v15512_v33 }
 0x595   : > { %v9186_v53 = vpop.f32.mrf.mxu1 }
 0x596   : > { %v9315_v22 = vmul.f32 %v15626_v7, %v9279_v39  ;;  %v9277_v17 = vadd.f32 %v9186_v53, %v15515_v55 }
 0x597   : > { %v11027_v61 = vpop.f32.mrf.mxu1 }
 0x598   : > { %v9351_v33 = vadd.f32 %v15640_v30, %v9315_v22  ;;  %v9313_v59 = vmul.f32 %v15626_v7, %v9277_v17  ;;  %v9280_v16 = vadd.f32 %v11027_v61, %v15518_v23 }
 0x599   : > { %v9189_v63 = vpop.f32.mrf.mxu1 }
 0x59a   : > { %v9349_v55 = vadd.f32 %v15640_v30, %v9313_v59  ;;  %v10152_v48 = vadd.f32 %v10120_v31, %v9351_v33  ;;  %v9316_v44 = vmul.f32 %v15626_v7, %v9280_v16  ;;  %v9278_v10 = vadd.f32 %v9189_v63, %v15521_v8 }
 0x59c   : > { %v10184_v6 = vmax.f32 %v10152_v48, 0.0  ;;  %v9352_v23 = vadd.f32 %v15640_v30, %v9316_v44  ;;  %v10150_v19 = vadd.f32 %v10118_v20, %v9349_v55  ;;  %v9314_v13 = vmul.f32 %v15626_v7, %v9278_v10 }
 0x59e   : > { %10217 = vst.msk [vmem:[%s15666_s19 + $0x70] sm:$0xff] %vm10202_vm9, %v10184_v6  ;;  %v10182_v3 = vmax.f32 %v10150_v19, 0.0  ;;  %v9350_v26 = vadd.f32 %v15640_v30, %v9314_v13  ;;  %v10153_v34 = vadd.f32 %v10121_v28, %v9352_v23 }
 0x5a0   : > { %10215 = vst.msk [vmem:[%s15666_s19 + $0x60] sm:$0xff] %vm10202_vm9, %v10182_v3  ;;  %v10185_v24 = vmax.f32 %v10153_v34, 0.0  ;;  %v10151_v32 = vadd.f32 %v10119_v45, %v9350_v26 }
 0x5a2   : > { %10218 = vst.msk [vmem:[%s15666_s19 + $0x78] sm:$0xff] %vm10202_vm9, %v10185_v24  ;;  %v10183_v8 = vmax.f32 %v10151_v32, 0.0 }
 0x5a3   : > { %v11030_v4 = vpop.f32.mrf.mxu1 }
 0x5a4   : > { %10216 = vst.msk [vmem:[%s15666_s19 + $0x68] sm:$0xff] %vm10202_vm9, %v10183_v8  ;;  %v9283_v58 = vadd.f32 %v11030_v4, %v15540_v50 }
 0x5a5   : > { %v9202_v0 = vpop.f32.mrf.mxu1 }
 0x5a6   : > { %v9319_v38 = vmul.f32 %v15626_v7, %v9283_v58  ;;  %v9281_v15 = vadd.f32 %v9202_v0, %v15543_v27  ;;  %v16007_v58 = vld [vmem:[#allocation7_spill] sm:$0xff] }
 0x5a7   : > { %v11031_v36 = vpop.f32.mrf.mxu1 }
 0x5a8   : > { %v9355_v41 = vadd.f32 %v15640_v30, %v9319_v38  ;;  %v9317_v39 = vmul.f32 %v15626_v7, %v9281_v15  ;;  %v9284_v12 = vadd.f32 %v11031_v36, %v15546_v46  ;;  %v16008_v15 = vld [vmem:[#allocation6_spill] sm:$0xff] }
 0x5a9   : > { %v9205_v53 = vpop.f32.mrf.mxu1 }
 0x5aa   : > { %v9353_v43 = vadd.f32 %v15640_v30, %v9317_v39  ;;  %v10156_v50 = vadd.f32 %v15613_v60, %v9355_v41  ;;  %v9320_v22 = vmul.f32 %v15626_v7, %v9284_v12  ;;  %v9282_v17 = vadd.f32 %v9205_v53, %v15549_v42  ;;  %v16009_v53 = vld [vmem:[#allocation9_spill] sm:$0xff] }
 0x5ac   : > { %v10188_v27 = vmax.f32 %v10156_v50, 0.0  ;;  %v9356_v31 = vadd.f32 %v15640_v30, %v9320_v22  ;;  %v10154_v61 = vadd.f32 %v15620_v5, %v9353_v43  ;;  %v9318_v54 = vmul.f32 %v15626_v7, %v9282_v17 }
 0x5ae   : > { %10221 = vst.msk [vmem:[%s15666_s19 + $0x90] sm:$0xff] %vm10202_vm9, %v10188_v27  ;;  %v10186_v46 = vmax.f32 %v10154_v61, 0.0  ;;  %v9354_v33 = vadd.f32 %v15640_v30, %v9318_v54  ;;  %v10157_v59 = vadd.f32 %v15632_v21, %v9356_v31 }
 0x5b0   : > { %10219 = vst.msk [vmem:[%s15666_s19 + $0x80] sm:$0xff] %vm10202_vm9, %v10186_v46  ;;  %v10189_v60 = vmax.f32 %v10157_v59, 0.0  ;;  %v10155_v16 = vadd.f32 %v15646_v1, %v9354_v33 }
 0x5b2   : > { %10222 = vst.msk [vmem:[%s15666_s19 + $0x98] sm:$0xff] %vm10202_vm9, %v10189_v60  ;;  %v10187_v42 = vmax.f32 %v10155_v16, 0.0 }
 0x5b3   : > { %v11034_v20 = vpop.f32.mrf.mxu1 }
 0x5b4   : > { %10220 = vst.msk [vmem:[%s15666_s19 + $0x88] sm:$0xff] %vm10202_vm9, %v10187_v42  ;;  %v9287_v5 = vadd.f32 %v11034_v20, %v15553_v37  ;;  %v16011_v20 = vld [vmem:[#allocation14_spill] sm:$0xff] }
 0x5b5   : > { %v9218_v63 = vpop.f32.mrf.mxu1 }
 0x5b6   : > { %v9323_v28 = vmul.f32 %v15626_v7, %v9287_v5  ;;  %v9285_v55 = vadd.f32 %v9218_v63, %v15555_v18 }
 0x5b7   : > { %v11035_v21 = vpop.f32.mrf.mxu1 }
 0x5b8   : > { %v9359_v48 = vadd.f32 %v15640_v30, %v9323_v28  ;;  %v9321_v1 = vmul.f32 %v15626_v7, %v9285_v55  ;;  %v9288_v44 = vadd.f32 %v11035_v21, %v15557_v9  ;;  %v16012_v28 = vld [vmem:[#allocation8_spill] sm:$0xff] }
 0x5b9   : > { %v9221_v10 = vpop.f32.mrf.mxu1 }
 0x5ba   : > { %v9357_v45 = vadd.f32 %v15640_v30, %v9321_v1  ;;  %v10160_v37 = vadd.f32 %v15657_v56, %v9359_v48  ;;  %v9324_v6 = vmul.f32 %v15626_v7, %v9288_v44  ;;  %v9286_v23 = vadd.f32 %v9221_v10, %v15559_v40  ;;  %v16013_v10 = vld [vmem:[#allocation10_spill] sm:$0xff] }
 0x5bc   : > { %v10192_v18 = vmax.f32 %v10160_v37, 0.0  ;;  %v9360_v19 = vadd.f32 %v15640_v30, %v9324_v6  ;;  %v10158_v13 = vadd.f32 %v15670_v49, %v9357_v45  ;;  %v9322_v3 = vmul.f32 %v15626_v7, %v9286_v23 }
 0x5be   : > { %10225 = vst.msk [vmem:[%s15666_s19 + $0xb0] sm:$0xff] %vm10202_vm9, %v10192_v18  ;;  %v10190_v9 = vmax.f32 %v10158_v13, 0.0  ;;  %v9358_v26 = vadd.f32 %v15640_v30, %v9322_v3  ;;  %v10161_v34 = vadd.f32 %v15676_v52, %v9360_v19 }
 0x5c0   : > { %10223 = vst.msk [vmem:[%s15666_s19 + $0xa0] sm:$0xff] %vm10202_vm9, %v10190_v9  ;;  %v10193_v56 = vmax.f32 %v10161_v34, 0.0  ;;  %v10159_v24 = vadd.f32 %v15684_v51, %v9358_v26 }
 0x5c2   : > { %10226 = vst.msk [vmem:[%s15666_s19 + $0xb8] sm:$0xff] %vm10202_vm9, %v10193_v56  ;;  %v10191_v40 = vmax.f32 %v10159_v24, 0.0 }
 0x5c4   : > { %10224 = vst.msk [vmem:[%s15666_s19 + $0xa8] sm:$0xff] %vm10202_vm9, %v10191_v40 }
 0x5c7   : > { %v11038_v32 = vpop.f32.mrf.mxu1 }
 0x5c8   : > { %v9291_v49 = vadd.f32 %v11038_v32, %v15561_v47 }
 0x5c9   : > { %v9234_v8 = vpop.f32.mrf.mxu1 }
 0x5ca   : > { %v9327_v4 = vmul.f32 %v15626_v7, %v9291_v49  ;;  %v9289_v0 = vadd.f32 %v9234_v8, %v16007_v58 }
 0x5cb   : > { %v11039_v52 = vpop.f32.mrf.mxu1 }
 0x5cc   : > { %v9363_v38 = vadd.f32 %v15640_v30, %v9327_v4  ;;  %v9325_v51 = vmul.f32 %v15626_v7, %v9289_v0  ;;  %v9292_v36 = vadd.f32 %v11039_v52, %v16008_v15 }
 0x5cd   : > { %v9237_v41 = vpop.f32.mrf.mxu1 }
 0x5ce   : > { %v9361_v39 = vadd.f32 %v15640_v30, %v9325_v51  ;;  %v10164_v47 = vadd.f32 %v15689_v25, %v9363_v38  ;;  %v9328_v12 = vmul.f32 %v15626_v7, %v9292_v36  ;;  %v9290_v43 = vadd.f32 %v9237_v41, %v16009_v53 }
 0x5d0   : > { %v10196_v50 = vmax.f32 %v10164_v47, 0.0  ;;  %v9364_v22 = vadd.f32 %v15640_v30, %v9328_v12  ;;  %v10162_v17 = vadd.f32 %v15697_v62, %v9361_v39  ;;  %v9326_v27 = vmul.f32 %v15626_v7, %v9290_v43  ;;  %v16010_v62 = vld [vmem:[#allocation13_spill] sm:$0xff] }
 0x5d2   : > { %10229 = vst.msk [vmem:[%s15666_s19 + $0xd0] sm:$0xff] %vm10202_vm9, %v10196_v50  ;;  %v10194_v31 = vmax.f32 %v10162_v17, 0.0  ;;  %v9362_v61 = vadd.f32 %v15640_v30, %v9326_v27  ;;  %v10165_v54 = vadd.f32 %v15706_v57, %v9364_v22 }
 0x5d4   : > { %10227 = vst.msk [vmem:[%s15666_s19 + $0xc0] sm:$0xff] %vm10202_vm9, %v10194_v31  ;;  %v10197_v25 = vmax.f32 %v10165_v54, 0.0  ;;  %v10163_v46 = vadd.f32 %v15715_v11, %v9362_v61 }
 0x5d6   : > { %10230 = vst.msk [vmem:[%s15666_s19 + $0xd8] sm:$0xff] %vm10202_vm9, %v10197_v25  ;;  %v10195_v33 = vmax.f32 %v10163_v46, 0.0 }
 0x5d8   : > { %10228 = vst.msk [vmem:[%s15666_s19 + $0xc8] sm:$0xff] %vm10202_vm9, %v10195_v33 }
 0x5d9   : > { %v11042_v59 = vpop.f32.mrf.mxu1 }
 0x5da   : > { %v9295_v60 = vadd.f32 %v11042_v59, %v16010_v62 }
 0x5db   : > { %v9250_v16 = vpop.f32.mrf.mxu1 }
 0x5dc   : > { %v9331_v42 = vmul.f32 %v15626_v7, %v9295_v60  ;;  %v9293_v5 = vadd.f32 %v9250_v16, %v16011_v20 }
 0x5dd   : > { %v11043_v57 = vpop.f32.mrf.mxu1 }
 0x5de   : > { %v9367_v63 = vadd.f32 %v15640_v30, %v9331_v42  ;;  %v9329_v11 = vmul.f32 %v15626_v7, %v9293_v5  ;;  %v9296_v55 = vadd.f32 %v11043_v57, %v16012_v28 }
 0x5df   : > { %v9253_v21 = vpop.f32.mrf.mxu1 }
 0x5e0   : > { %v10168_v48 = vadd.f32 %v15725_v14, %v9367_v63  ;;  %v9365_v1 = vadd.f32 %v15640_v30, %v9329_v11  ;;  %v9332_v44 = vmul.f32 %v15626_v7, %v9296_v55  ;;  %v9294_v45 = vadd.f32 %v9253_v21, %v16013_v10 }
 0x5e2   : > { %v10200_v37 = vmax.f32 %v10168_v48, 0.0  ;;  %v10166_v6 = vadd.f32 %v15734_v35, %v9365_v1  ;;  %v9368_v23 = vadd.f32 %v15640_v30, %v9332_v44  ;;  %v9330_v18 = vmul.f32 %v15626_v7, %v9294_v45 }
 0x5e4   : > { %10233 = vst.msk [vmem:[%s15666_s19 + $0xf0] sm:$0xff] %vm10202_vm9, %v10200_v37  ;;  %v10198_v19 = vmax.f32 %v10166_v6, 0.0  ;;  %v10169_v13 = vadd.f32 %v15740_v29, %v9368_v23  ;;  %v9366_v14 = vadd.f32 %v15640_v30, %v9330_v18 }
 0x5e6   : > { %10231 = vst.msk [vmem:[%s15666_s19 + $0xe0] sm:$0xff] %vm10202_vm9, %v10198_v19  ;;  %v10201_v3 = vmax.f32 %v10169_v13, 0.0  ;;  %v10167_v9 = vadd.f32 %v15747_v2, %v9366_v14 }
 0x5e8   : > { %10234 = vst.msk [vmem:[%s15666_s19 + $0xf8] sm:$0xff] %vm10202_vm9, %v10201_v3  ;;  %v10199_v26 = vmax.f32 %v10167_v9, 0.0 }
 0x5ea   : > { %10232 = vst.msk [vmem:[%s15666_s19 + $0xe8] sm:$0xff] %vm10202_vm9, %v10199_v26 }
 0x5eb PF: > { %s15_s18 = sadd.s32 1, %s11159_s18  }
 0x5ec   : > { %p12_p4 = scmp.ge.s32.totalorder %s15_s18, 4  }
 0x5ee   :  { %14 = sbr.rel (!%p12_p4) target bundleno = 1 (0x1), region = 78 }

</bundles_post_ra>
